<compile_context>
chip_gen: v5e
topology: v5e:2x2
jax: 0.10.0
libtpu: 0.0.40
codegen_flags: <defaults>
</compile_context>

<pallas_src>
import functools

import jax
import jax.numpy as jnp
import numpy as np
from jax.experimental import pallas as pl
from jax.experimental.pallas import tpu as pltpu


# ----------------------------------------------------------------------------
# The single fused encoder kernel.
#   refs (in order):
#     x_in   [S*B, M*Kpad]  time-major raw modality features, lane block per modality
#     ids    [S*B, 1]       speaker id (0./1.) per (time, batch) row
#     spk    [2, D]         speaker_embedding @ W_spk + b_spk (pre-folded)
#     wproj  [M*Kpad, M*D]  block-diag emb linears      bproj [1, M*D]
#     per layer l, per direction in (fwd, bwd):
#       wih  [Din_pack, 3*M*D]  block-diag, gate order [R|Z|N], chains lane-packed
#       bi   [1, 3*M*D]         bih (+ bhh for r,z gates) folded
#       whh  [M*D, 3*M*D]       block-diag
#       bhn  [1, M*D]
#     wgl    [2*M*D, M*D]   block-diag gru_linear       bgl   [1, M*D]
#     out    [M, B, D]
# ----------------------------------------------------------------------------
def _fused_encoder_kernel(*refs, M, D, B, S, T, L):
    it = iter(refs)
    nxt = lambda: next(it)

    x_in = nxt()[...]
    ids = nxt()[...]
    spk_tbl = nxt()[...]
    wproj = nxt()[...]
    bproj = nxt()[...]
    layers = []
    for _ in range(L):
        lw = {}
        for direc in ('f', 'b'):
            lw['wih_' + direc] = nxt()[...]
            lw['bi_' + direc] = nxt()[...]
            lw['whh_' + direc] = nxt()[...]
            lw['bhn_' + direc] = nxt()[...]
        layers.append(lw)
    wgl = nxt()[...]
    bgl = nxt()[...]
    out_ref = nxt()

    MD = M * D

    # ---- input projections: one block-diag matmul; speaker via 2-row arithmetic select
    proj = jnp.dot(x_in, wproj, preferred_element_type=jnp.float32) + bproj      # [S*B, MD]
    spk = spk_tbl[0:1, :] * (1.0 - ids) + spk_tbl[1:2, :] * ids                  # [S*B, D]
    spk = jnp.concatenate([spk] * M, axis=-1)                                    # [S*B, MD]
    x = jnp.concatenate([proj, spk], axis=0)                                     # [T*B, MD]

    def cell(gi, whh, h, bhn):
        # all M modality chains lane-packed; gate layout [R(MD) | Z(MD) | N(MD)]
        gh = jnp.dot(h, whh, preferred_element_type=jnp.float32)                 # [B, 3*MD]
        r = jax.nn.sigmoid(gi[:, 0:MD] + gh[:, 0:MD])
        z = jax.nn.sigmoid(gi[:, MD:2 * MD] + gh[:, MD:2 * MD])
        n = jnp.tanh(gi[:, 2 * MD:3 * MD] + r * (gh[:, 2 * MD:3 * MD] + bhn))
        return (1.0 - z) * n + z * h

    for l in range(L):
        lw = layers[l]
        # hoisted gate-input projection over the whole sequence
        gi_f = jnp.dot(x, lw['wih_f'], preferred_element_type=jnp.float32) + lw['bi_f']
        hf = jnp.zeros((B, MD), jnp.float32)

        if l < L - 1:
            gi_b = jnp.dot(x, lw['wih_b'], preferred_element_type=jnp.float32) + lw['bi_b']
            hb = jnp.zeros((B, MD), jnp.float32)
            hf_steps = [None] * T
            hb_steps = [None] * T
            # fully unrolled; fwd and bwd chains interleaved (independent -> latency hiding)
            for s in range(T):
                tb = T - 1 - s
                hf = cell(gi_f[s * B:(s + 1) * B, :], lw['whh_f'], hf, lw['bhn_f'])
                hb = cell(gi_b[tb * B:(tb + 1) * B, :], lw['whh_b'], hb, lw['bhn_b'])
                hf_steps[s] = hf
                hb_steps[tb] = hb
            yf = jnp.concatenate(hf_steps, axis=0)        # [T*B, MD]
            yb = jnp.concatenate(hb_steps, axis=0)        # [T*B, MD]
            x = jnp.concatenate([yf, yb], axis=-1)        # [T*B, 2*MD]  layout [HF_all | HB_all]
        else:
            # last layer: only output[:, -1, :] is consumed ->
            #   fwd needs all T steps; bwd needs a single step on x[T-1]
            gi_b1 = jnp.dot(x[(T - 1) * B:T * B, :], lw['wih_b'],
                            preferred_element_type=jnp.float32) + lw['bi_b']
            hb = cell(gi_b1, lw['whh_b'], jnp.zeros((B, MD), jnp.float32), lw['bhn_b'])
            for s in range(T):
                hf = cell(gi_f[s * B:(s + 1) * B, :], lw['whh_f'], hf, lw['bhn_f'])
            last = jnp.concatenate([hf, hb], axis=-1)     # [B, 2*MD]
            y = jnp.dot(last, wgl, preferred_element_type=jnp.float32) + bgl
            y = jnp.maximum(y, 0.0)                        # [B, MD]
            for i in range(M):
                out_ref[i, :, :] = y[:, i * D:(i + 1) * D]


# ----------------------------------------------------------------------------
# Weight pre-packing (done ONCE, outside the jitted forward)
# ----------------------------------------------------------------------------
_EMB_KEY = {'l': 'text_emb_linear', 'v': 'visual_emb_linear', 'a': 'audio_emb_linear'}
_GRU_KEY = {'l': 'text_gru', 'v': 'visual_gru', 'a': 'audio_gru'}
_GL_KEY = {'l': 'text_gru_linear', 'v': 'visual_gru_linear', 'a': 'audio_gru_linear'}


def pack_params(params, modal='val'):
    mods = list(modal)
    M = len(mods)
    d = int(np.asarray(params['speaker_embedding']).shape[-1])
    MD = M * d

    kdims = [int(np.asarray(params[_EMB_KEY[m]]['w']).shape[0]) for m in mods]
    kpad = max(kdims)

    # --- block-diag input projection ---
    wproj = np.zeros((M * kpad, MD), np.float32)
    bproj = np.zeros((1, MD), np.float32)
    for i, m in enumerate(mods):
        w = np.asarray(params[_EMB_KEY[m]]['w'], np.float32)
        b = np.asarray(params[_EMB_KEY[m]]['b'], np.float32)
        wproj[i * kpad:i * kpad + w.shape[0], i * d:(i + 1) * d] = w
        bproj[0, i * d:(i + 1) * d] = b

    # --- speaker embedding folded through speaker_linear (exact) ---
    spk_tbl = (np.asarray(params['speaker_embedding'], np.float32)
               @ np.asarray(params['speaker_linear']['w'], np.float32)
               + np.asarray(params['speaker_linear']['b'], np.float32)[None, :])

    # --- GRU layers: gates [R|Z|N], modalities lane-packed, block-diag weights ---
    L = len(params[_GRU_KEY[mods[0]]])
    layers = []
    for l in range(L):
        din = d if l == 0 else 2 * d           # per-modality input width
        rows = M * d if l == 0 else 2 * MD     # packed input width
        lw = {}
        for direc in ('f', 'b'):
            wih_bd = np.zeros((rows, 3 * MD), np.float32)
            whh_bd = np.zeros((MD, 3 * MD), np.float32)
            bi = np.zeros((1, 3 * MD), np.float32)
            bhn = np.zeros((1, MD), np.float32)
            for i, m in enumerate(mods):
                lp = params[_GRU_KEY[m]][l]
                wih = np.asarray(lp['wih_' + direc], np.float32)   # [3, din, d]
                whh = np.asarray(lp['whh_' + direc], np.float32)   # [3, d, d]
                bih = np.asarray(lp['bih_' + direc], np.float32)   # [3, 1, d]
                bhh = np.asarray(lp['bhh_' + direc], np.float32)   # [3, 1, d]
                for g in range(3):
                    col = slice(g * MD + i * d, g * MD + (i + 1) * d)
                    if l == 0:
                        wih_bd[i * d:(i + 1) * d, col] = wih[g]
                    else:
                        # layer>0 input layout: [HF_all(MD) | HB_all(MD)]
                        wih_bd[i * d:(i + 1) * d, col] = wih[g][0:d, :]
                        wih_bd[MD + i * d:MD + (i + 1) * d, col] = wih[g][d:2 * d, :]
                    whh_bd[i * d:(i + 1) * d, col] = whh[g]
                    bi[0, col] = bih[g, 0] + (bhh[g, 0] if g < 2 else 0.0)
                bhn[0, i * d:(i + 1) * d] = bhh[2, 0]
            lw['wih_' + direc] = wih_bd
            lw['bi_' + direc] = bi
            lw['whh_' + direc] = whh_bd
            lw['bhn_' + direc] = bhn
        layers.append(lw)

    # --- block-diag gru_linear, input layout [HF_all | HB_all] ---
    wgl = np.zeros((2 * MD, MD), np.float32)
    bgl = np.zeros((1, MD), np.float32)
    for i, m in enumerate(mods):
        w = np.asarray(params[_GL_KEY[m]]['w'], np.float32)    # [2d, d]
        b = np.asarray(params[_GL_KEY[m]]['b'], np.float32)
        wgl[i * d:(i + 1) * d, i * d:(i + 1) * d] = w[0:d, :]
        wgl[MD + i * d:MD + (i + 1) * d, i * d:(i + 1) * d] = w[d:2 * d, :]
        bgl[0, i * d:(i + 1) * d] = b

    packed = {'spk_tbl': spk_tbl, 'wproj': wproj, 'bproj': bproj,
              'layers': layers, 'wgl': wgl, 'bgl': bgl}
    return jax.tree_util.tree_map(jnp.asarray, packed)


# ----------------------------------------------------------------------------
# Jitted forward: minimal input glue + one pallas_call
# ----------------------------------------------------------------------------
@functools.partial(jax.jit, static_argnames=('modal',))
def conversational_context_encoder(packed, text_emb, visual_emb, audio_emb, speaker,
                                   history_text_emb, history_visual_emb,
                                   history_audio_emb, history_speaker, modal='val'):
    mods = list(modal)
    M = len(mods)
    d = packed['spk_tbl'].shape[-1]
    kpad = packed['wproj'].shape[0] // M
    B = speaker.shape[0]
    S = history_speaker.shape[1] + speaker.shape[1]
    T = 2 * S
    L = len(packed['layers'])

    raw = {'l': (history_text_emb, text_emb),
           'v': (history_visual_emb, visual_emb),
           'a': (history_audio_emb, audio_emb)}

    # time-major flattened, lane-packed per modality (zero-padded to kpad)
    pieces = []
    for m in mods:
        x = jnp.concatenate(raw[m], axis=1)                                   # [B, S, K]
        x = jnp.transpose(x, (1, 0, 2)).reshape(S * B, x.shape[-1])
        if x.shape[-1] < kpad:
            x = jnp.pad(x, ((0, 0), (0, kpad - x.shape[-1])))
        pieces.append(x)
    x_in = jnp.concatenate(pieces, axis=-1)                                   # [S*B, M*kpad]

    spk_ids = jnp.concatenate([history_speaker, speaker], axis=1)             # [B, S]
    ids = jnp.transpose(spk_ids, (1, 0)).reshape(S * B, 1).astype(jnp.float32)

    args = [x_in, ids, packed['spk_tbl'], packed['wproj'], packed['bproj']]
    for lw in packed['layers']:
        for direc in ('f', 'b'):
            args += [lw['wih_' + direc], lw['bi_' + direc],
                     lw['whh_' + direc], lw['bhn_' + direc]]
    args += [packed['wgl'], packed['bgl']]

    kern = functools.partial(_fused_encoder_kernel, M=M, D=d, B=B, S=S, T=T, L=L)
    vmem = pltpu.MemorySpace.VMEM
    return pl.pallas_call(
        kern,
        out_shape=jax.ShapeDtypeStruct((M, B, d), jnp.float32),
        in_specs=[pl.BlockSpec(memory_space=vmem)] * len(args),
        out_specs=pl.BlockSpec(memory_space=vmem),
    )(*args)


# ----------------------------------------------------------------------------
# Pure-JAX reference (mirrors the PyTorch forward; for correctness check only)
# ----------------------------------------------------------------------------
def ref_linear(x, w, b, relu=False):
    y = jnp.dot(x, w, precision=jax.lax.Precision.HIGHEST) + b.reshape(1, -1)
    return jnp.maximum(y, 0.0) if relu else y


def ref_gru_direction(x_tbd, wih, whh, bih, bhh):
    b = x_tbd.shape[1]
    d = whh.shape[-1]

    def step(h, x_t):
        hp = jax.lax.Precision.HIGHEST
        gi_r = jnp.dot(x_t, wih[0], precision=hp) + bih[0]
        gi_z = jnp.dot(x_t, wih[1], precision=hp) + bih[1]
        gi_n = jnp.dot(x_t, wih[2], precision=hp) + bih[2]
        gh_r = jnp.dot(h, whh[0], precision=hp) + bhh[0]
        gh_z = jnp.dot(h, whh[1], precision=hp) + bhh[1]
        gh_n = jnp.dot(h, whh[2], precision=hp) + bhh[2]
        r = jax.nn.sigmoid(gi_r + gh_r)
        z = jax.nn.sigmoid(gi_z + gh_z)
        n = jnp.tanh(gi_n + r * gh_n)
        h_new = (1.0 - z) * n + z * h
        return h_new, h_new

    h0 = jnp.zeros((b, d), jnp.float32)
    _, outs = jax.lax.scan(step, h0, x_tbd)
    return outs


def reference_forward(params, text_emb, visual_emb, audio_emb, speaker,
                      history_text_emb, history_visual_emb, history_audio_emb,
                      history_speaker, modal='val'):
    def lin_seq(x, p):
        bx, t, f = x.shape
        return ref_linear(x.reshape(bx * t, f), p['w'], p['b']).reshape(bx, t, -1)

    def bigru(x_btd, layers):
        x = jnp.transpose(x_btd, (1, 0, 2))
        for lp in layers:
            out_f = ref_gru_direction(x, lp['wih_f'], lp['whh_f'], lp['bih_f'], lp['bhh_f'])
            out_b = ref_gru_direction(x[::-1], lp['wih_b'], lp['whh_b'],
                                      lp['bih_b'], lp['bhh_b'])[::-1]
            x = jnp.concatenate([out_f, out_b], axis=-1)
        return jnp.transpose(x, (1, 0, 2))

    spk_ids = jnp.concatenate([history_speaker, speaker], axis=1)
    spk_emb = params['speaker_embedding'][spk_ids]
    h_spk = lin_seq(spk_emb, params['speaker_linear'])

    outs = {}
    if 'l' in modal:
        ht = lin_seq(jnp.concatenate([history_text_emb, text_emb], axis=1),
                     params['text_emb_linear'])
        last = bigru(jnp.concatenate([ht, h_spk], axis=1), params['text_gru'])[:, -1, :]
        outs['l'] = ref_linear(last, params['text_gru_linear']['w'],
                               params['text_gru_linear']['b'], True)
    if 'v' in modal:
        hv = lin_seq(jnp.concatenate([history_visual_emb, visual_emb], axis=1),
                     params['visual_emb_linear'])
        last = bigru(jnp.concatenate([hv, h_spk], axis=1), params['visual_gru'])[:, -1, :]
        outs['v'] = ref_linear(last, params['visual_gru_linear']['w'],
                               params['visual_gru_linear']['b'], True)
    if 'a' in modal:
        ha = lin_seq(jnp.concatenate([history_audio_emb, audio_emb], axis=1),
                     params['audio_emb_linear'])
        last = bigru(jnp.concatenate([ha, h_spk], axis=1), params['audio_gru'])[:, -1, :]
        outs['a'] = ref_linear(last, params['audio_gru_linear']['w'],
                               params['audio_gru_linear']['b'], True)

    return jnp.stack([outs[m] for m in modal], axis=0)


# ----------------------------------------------------------------------------
# Deterministic parameter init (shapes follow the PyTorch __init__)
# ----------------------------------------------------------------------------
def init_params(key, cfg):
    d = cfg['hidden_size']
    num_layers = cfg['layers']
    keys = iter(jax.random.split(key, 128))

    def linear(din, dout):
        bound = 1.0 / np.sqrt(din)
        return {
            'w': jax.random.uniform(next(keys), (din, dout), jnp.float32, -bound, bound),
            'b': jax.random.uniform(next(keys), (dout,), jnp.float32, -bound, bound),
        }

    def gru(din):
        layers = []
        bound = 1.0 / np.sqrt(d)
        for l in range(num_layers):
            inp = din if l == 0 else 2 * d
            lp = {}
            for direc in ('f', 'b'):
                lp['wih_' + direc] = jax.random.uniform(next(keys), (3, inp, d),
                                                        jnp.float32, -bound, bound)
                lp['whh_' + direc] = jax.random.uniform(next(keys), (3, d, d),
                                                        jnp.float32, -bound, bound)
                lp['bih_' + direc] = jax.random.uniform(next(keys), (3, 1, d),
                                                        jnp.float32, -bound, bound)
                lp['bhh_' + direc] = jax.random.uniform(next(keys), (3, 1, d),
                                                        jnp.float32, -bound, bound)
            layers.append(lp)
        return layers

    return {
        'text_emb_linear': linear(cfg['input_dim_l'], d),
        'visual_emb_linear': linear(cfg['input_dim_v'], d),
        'audio_emb_linear': linear(cfg['input_dim_a'], d),
        'speaker_linear': linear(d, d),
        'speaker_embedding': jax.random.normal(next(keys), (2, d), jnp.float32),
        'text_gru': gru(d),
        'visual_gru': gru(d),
        'audio_gru': gru(d),
        'text_gru_linear': linear(2 * d, d),
        'visual_gru_linear': linear(2 * d, d),
        'audio_gru_linear': linear(2 * d, d),
    }


# ----------------------------------------------------------------------------
if __name__ == "__main__":
    cfg = dict(hidden_size=32, layers=2, input_dim_l=24, input_dim_v=20,
               input_dim_a=16, max_history_len=3)
    B, H = 2, cfg['max_history_len']

    key = jax.random.PRNGKey(0)
    kp, kd = jax.random.split(key)
    params = init_params(kp, cfg)
    packed = pack_params(params, modal='val')   # one-time pre-packing, outside jit

    ks = jax.random.split(kd, 8)
    text_emb = jax.random.normal(ks[0], (B, 1, cfg['input_dim_l']), jnp.float32)
    visual_emb = jax.random.normal(ks[1], (B, 1, cfg['input_dim_v']), jnp.float32)
    audio_emb = jax.random.normal(ks[2], (B, 1, cfg['input_dim_a']), jnp.float32)
    speaker = jax.random.randint(ks[3], (B, 1), 0, 2)
    history_text_emb = jax.random.normal(ks[4], (B, H, cfg['input_dim_l']), jnp.float32)
    history_visual_emb = jax.random.normal(ks[5], (B, H, cfg['input_dim_v']), jnp.float32)
    history_audio_emb = jax.random.normal(ks[6], (B, H, cfg['input_dim_a']), jnp.float32)
    history_speaker = jax.random.randint(ks[7], (B, H), 0, 2)

    args = (text_emb, visual_emb, audio_emb, speaker,
            history_text_emb, history_visual_emb, history_audio_emb, history_speaker)

    out = conversational_context_encoder(packed, *args, modal='val')
    out = jax.block_until_ready(out)

    ref = reference_forward(params, *args, modal='val')
    assert out.shape == (3, B, cfg['hidden_size']), out.shape
    np.testing.assert_allclose(np.asarray(out), np.asarray(ref), rtol=2e-2, atol=2e-2)

    print("KERNEL_OK")
</pallas_src>

<mosaic_0001>
module attributes {stable_mosaic.version = 11 : i64} {
  func.func @_fused_encoder_kernel(%arg0: memref<8x72xf32, #tpu.memory_space<vmem>>, %arg1: memref<8x1xf32, #tpu.memory_space<vmem>>, %arg2: memref<2x32xf32, #tpu.memory_space<vmem>>, %arg3: memref<72x96xf32, #tpu.memory_space<vmem>>, %arg4: memref<1x96xf32, #tpu.memory_space<vmem>>, %arg5: memref<96x288xf32, #tpu.memory_space<vmem>>, %arg6: memref<1x288xf32, #tpu.memory_space<vmem>>, %arg7: memref<96x288xf32, #tpu.memory_space<vmem>>, %arg8: memref<1x96xf32, #tpu.memory_space<vmem>>, %arg9: memref<96x288xf32, #tpu.memory_space<vmem>>, %arg10: memref<1x288xf32, #tpu.memory_space<vmem>>, %arg11: memref<96x288xf32, #tpu.memory_space<vmem>>, %arg12: memref<1x96xf32, #tpu.memory_space<vmem>>, %arg13: memref<192x288xf32, #tpu.memory_space<vmem>>, %arg14: memref<1x288xf32, #tpu.memory_space<vmem>>, %arg15: memref<96x288xf32, #tpu.memory_space<vmem>>, %arg16: memref<1x96xf32, #tpu.memory_space<vmem>>, %arg17: memref<192x288xf32, #tpu.memory_space<vmem>>, %arg18: memref<1x288xf32, #tpu.memory_space<vmem>>, %arg19: memref<96x288xf32, #tpu.memory_space<vmem>>, %arg20: memref<1x96xf32, #tpu.memory_space<vmem>>, %arg21: memref<192x96xf32, #tpu.memory_space<vmem>>, %arg22: memref<1x96xf32, #tpu.memory_space<vmem>>, %arg23: memref<3x2x32xf32, #tpu.memory_space<vmem>>) attributes {dimension_semantics = [], scalar_prefetch = 0 : i64, scratch_operands = 0 : i64, tpu.core_type = #tpu.core_type<tc>} {
    %c0 = arith.constant 0 : index
    %c0_0 = arith.constant 0 : index
    %0 = vector.load %arg0[%c0, %c0_0] : memref<8x72xf32, #tpu.memory_space<vmem>>, vector<8x72xf32>
    %c0_1 = arith.constant 0 : index
    %c0_2 = arith.constant 0 : index
    %1 = vector.load %arg1[%c0_1, %c0_2] : memref<8x1xf32, #tpu.memory_space<vmem>>, vector<8x1xf32>
    %c0_3 = arith.constant 0 : index
    %c0_4 = arith.constant 0 : index
    %2 = vector.load %arg2[%c0_3, %c0_4] : memref<2x32xf32, #tpu.memory_space<vmem>>, vector<2x32xf32>
    %c0_5 = arith.constant 0 : index
    %c0_6 = arith.constant 0 : index
    %3 = vector.load %arg3[%c0_5, %c0_6] : memref<72x96xf32, #tpu.memory_space<vmem>>, vector<72x96xf32>
    %c0_7 = arith.constant 0 : index
    %c0_8 = arith.constant 0 : index
    %4 = vector.load %arg4[%c0_7, %c0_8] : memref<1x96xf32, #tpu.memory_space<vmem>>, vector<1x96xf32>
    %c0_9 = arith.constant 0 : index
    %c0_10 = arith.constant 0 : index
    %5 = vector.load %arg5[%c0_9, %c0_10] : memref<96x288xf32, #tpu.memory_space<vmem>>, vector<96x288xf32>
    %c0_11 = arith.constant 0 : index
    %c0_12 = arith.constant 0 : index
    %6 = vector.load %arg6[%c0_11, %c0_12] : memref<1x288xf32, #tpu.memory_space<vmem>>, vector<1x288xf32>
    %c0_13 = arith.constant 0 : index
    %c0_14 = arith.constant 0 : index
    %7 = vector.load %arg7[%c0_13, %c0_14] : memref<96x288xf32, #tpu.memory_space<vmem>>, vector<96x288xf32>
    %c0_15 = arith.constant 0 : index
    %c0_16 = arith.constant 0 : index
    %8 = vector.load %arg8[%c0_15, %c0_16] : memref<1x96xf32, #tpu.memory_space<vmem>>, vector<1x96xf32>
    %c0_17 = arith.constant 0 : index
    %c0_18 = arith.constant 0 : index
    %9 = vector.load %arg9[%c0_17, %c0_18] : memref<96x288xf32, #tpu.memory_space<vmem>>, vector<96x288xf32>
    %c0_19 = arith.constant 0 : index
    %c0_20 = arith.constant 0 : index
    %10 = vector.load %arg10[%c0_19, %c0_20] : memref<1x288xf32, #tpu.memory_space<vmem>>, vector<1x288xf32>
    %c0_21 = arith.constant 0 : index
    %c0_22 = arith.constant 0 : index
    %11 = vector.load %arg11[%c0_21, %c0_22] : memref<96x288xf32, #tpu.memory_space<vmem>>, vector<96x288xf32>
    %c0_23 = arith.constant 0 : index
    %c0_24 = arith.constant 0 : index
    %12 = vector.load %arg12[%c0_23, %c0_24] : memref<1x96xf32, #tpu.memory_space<vmem>>, vector<1x96xf32>
    %c0_25 = arith.constant 0 : index
    %c0_26 = arith.constant 0 : index
    %13 = vector.load %arg13[%c0_25, %c0_26] : memref<192x288xf32, #tpu.memory_space<vmem>>, vector<192x288xf32>
    %c0_27 = arith.constant 0 : index
    %c0_28 = arith.constant 0 : index
    %14 = vector.load %arg14[%c0_27, %c0_28] : memref<1x288xf32, #tpu.memory_space<vmem>>, vector<1x288xf32>
    %c0_29 = arith.constant 0 : index
    %c0_30 = arith.constant 0 : index
    %15 = vector.load %arg15[%c0_29, %c0_30] : memref<96x288xf32, #tpu.memory_space<vmem>>, vector<96x288xf32>
    %c0_31 = arith.constant 0 : index
    %c0_32 = arith.constant 0 : index
    %16 = vector.load %arg16[%c0_31, %c0_32] : memref<1x96xf32, #tpu.memory_space<vmem>>, vector<1x96xf32>
    %c0_33 = arith.constant 0 : index
    %c0_34 = arith.constant 0 : index
    %17 = vector.load %arg17[%c0_33, %c0_34] : memref<192x288xf32, #tpu.memory_space<vmem>>, vector<192x288xf32>
    %c0_35 = arith.constant 0 : index
    %c0_36 = arith.constant 0 : index
    %18 = vector.load %arg18[%c0_35, %c0_36] : memref<1x288xf32, #tpu.memory_space<vmem>>, vector<1x288xf32>
    %c0_37 = arith.constant 0 : index
    %c0_38 = arith.constant 0 : index
    %19 = vector.load %arg19[%c0_37, %c0_38] : memref<96x288xf32, #tpu.memory_space<vmem>>, vector<96x288xf32>
    %c0_39 = arith.constant 0 : index
    %c0_40 = arith.constant 0 : index
    %20 = vector.load %arg20[%c0_39, %c0_40] : memref<1x96xf32, #tpu.memory_space<vmem>>, vector<1x96xf32>
    %c0_41 = arith.constant 0 : index
    %c0_42 = arith.constant 0 : index
    %21 = vector.load %arg21[%c0_41, %c0_42] : memref<192x96xf32, #tpu.memory_space<vmem>>, vector<192x96xf32>
    %c0_43 = arith.constant 0 : index
    %c0_44 = arith.constant 0 : index
    %22 = vector.load %arg22[%c0_43, %c0_44] : memref<1x96xf32, #tpu.memory_space<vmem>>, vector<1x96xf32>
    %cst = arith.constant dense<0.000000e+00> : vector<8x96xf32>
    %23 = tpu.matmul %0, %3, %cst {dimension_numbers = #tpu.dot_dimension_numbers<[1], [0], [0], [1], [0, 0, 1, 1], [], []>} : vector<8x72xf32>, vector<72x96xf32>, vector<8x96xf32> -> vector<8x96xf32>
    %24 = vector.broadcast %4 : vector<1x96xf32> to vector<8x96xf32>
    %25 = arith.addf %23, %24 : vector<8x96xf32>
    %26 = vector.extract_strided_slice %2 {offsets = [0, 0], sizes = [1, 32], strides = [1, 1]} : vector<2x32xf32> to vector<1x32xf32>
    %cst_45 = arith.constant 1.000000e+00 : f32
    %27 = vector.broadcast %cst_45 : f32 to vector<8x1xf32>
    %28 = arith.subf %27, %1 : vector<8x1xf32>
    %29 = vector.broadcast %26 : vector<1x32xf32> to vector<8x32xf32>
    %30 = vector.broadcast %28 : vector<8x1xf32> to vector<8x32xf32>
    %31 = arith.mulf %29, %30 : vector<8x32xf32>
    %32 = vector.extract_strided_slice %2 {offsets = [1, 0], sizes = [1, 32], strides = [1, 1]} : vector<2x32xf32> to vector<1x32xf32>
    %33 = vector.broadcast %32 : vector<1x32xf32> to vector<8x32xf32>
    %34 = vector.broadcast %1 : vector<8x1xf32> to vector<8x32xf32>
    %35 = arith.mulf %33, %34 : vector<8x32xf32>
    %36 = arith.addf %31, %35 : vector<8x32xf32>
    %37 = tpu.concatenate %36, %36, %36 in 1 : vector<8x32xf32>, vector<8x32xf32>, vector<8x32xf32> -> vector<8x96xf32>
    %38 = tpu.concatenate %25, %37 in 0 : vector<8x96xf32>, vector<8x96xf32> -> vector<16x96xf32>
    %cst_46 = arith.constant dense<0.000000e+00> : vector<16x288xf32>
    %39 = tpu.matmul %38, %5, %cst_46 {dimension_numbers = #tpu.dot_dimension_numbers<[1], [0], [0], [1], [0, 0, 1, 1], [], []>} : vector<16x96xf32>, vector<96x288xf32>, vector<16x288xf32> -> vector<16x288xf32>
    %40 = vector.broadcast %6 : vector<1x288xf32> to vector<16x288xf32>
    %41 = arith.addf %39, %40 : vector<16x288xf32>
    %cst_47 = arith.constant 0.000000e+00 : f32
    %42 = vector.broadcast %cst_47 : f32 to vector<2x96xf32>
    %cst_48 = arith.constant dense<0.000000e+00> : vector<16x288xf32>
    %43 = tpu.matmul %38, %9, %cst_48 {dimension_numbers = #tpu.dot_dimension_numbers<[1], [0], [0], [1], [0, 0, 1, 1], [], []>} : vector<16x96xf32>, vector<96x288xf32>, vector<16x288xf32> -> vector<16x288xf32>
    %44 = vector.broadcast %10 : vector<1x288xf32> to vector<16x288xf32>
    %45 = arith.addf %43, %44 : vector<16x288xf32>
    %cst_49 = arith.constant 0.000000e+00 : f32
    %46 = vector.broadcast %cst_49 : f32 to vector<2x96xf32>
    %47 = vector.extract_strided_slice %41 {offsets = [0, 0], sizes = [2, 288], strides = [1, 1]} : vector<16x288xf32> to vector<2x288xf32>
    %cst_50 = arith.constant dense<0.000000e+00> : vector<2x288xf32>
    %48 = tpu.matmul %42, %7, %cst_50 {dimension_numbers = #tpu.dot_dimension_numbers<[1], [0], [0], [1], [0, 0, 1, 1], [], []>} : vector<2x96xf32>, vector<96x288xf32>, vector<2x288xf32> -> vector<2x288xf32>
    %49 = vector.extract_strided_slice %47 {offsets = [0, 0], sizes = [2, 96], strides = [1, 1]} : vector<2x288xf32> to vector<2x96xf32>
    %50 = vector.extract_strided_slice %48 {offsets = [0, 0], sizes = [2, 96], strides = [1, 1]} : vector<2x288xf32> to vector<2x96xf32>
    %51 = arith.addf %49, %50 : vector<2x96xf32>
    %52 = arith.negf %51 : vector<2x96xf32>
    %53 = math.exp %52 : vector<2x96xf32>
    %cst_51 = arith.constant 1.000000e+00 : f32
    %54 = vector.broadcast %cst_51 : f32 to vector<2x96xf32>
    %55 = arith.addf %54, %53 : vector<2x96xf32>
    %56 = arith.divf %54, %55 : vector<2x96xf32>
    %57 = vector.extract_strided_slice %47 {offsets = [0, 96], sizes = [2, 96], strides = [1, 1]} : vector<2x288xf32> to vector<2x96xf32>
    %58 = vector.extract_strided_slice %48 {offsets = [0, 96], sizes = [2, 96], strides = [1, 1]} : vector<2x288xf32> to vector<2x96xf32>
    %59 = arith.addf %57, %58 : vector<2x96xf32>
    %60 = arith.negf %59 : vector<2x96xf32>
    %61 = math.exp %60 : vector<2x96xf32>
    %cst_52 = arith.constant 1.000000e+00 : f32
    %62 = vector.broadcast %cst_52 : f32 to vector<2x96xf32>
    %63 = arith.addf %62, %61 : vector<2x96xf32>
    %64 = arith.divf %62, %63 : vector<2x96xf32>
    %65 = vector.extract_strided_slice %47 {offsets = [0, 192], sizes = [2, 96], strides = [1, 1]} : vector<2x288xf32> to vector<2x96xf32>
    %66 = vector.extract_strided_slice %48 {offsets = [0, 192], sizes = [2, 96], strides = [1, 1]} : vector<2x288xf32> to vector<2x96xf32>
    %67 = vector.broadcast %8 : vector<1x96xf32> to vector<2x96xf32>
    %68 = arith.addf %66, %67 : vector<2x96xf32>
    %69 = arith.mulf %56, %68 : vector<2x96xf32>
    %70 = arith.addf %65, %69 : vector<2x96xf32>
    %71 = math.tanh %70 : vector<2x96xf32>
    %cst_53 = arith.constant 1.000000e+00 : f32
    %72 = vector.broadcast %cst_53 : f32 to vector<2x96xf32>
    %73 = arith.subf %72, %64 : vector<2x96xf32>
    %74 = arith.mulf %73, %71 : vector<2x96xf32>
    %75 = arith.mulf %64, %42 : vector<2x96xf32>
    %76 = arith.addf %74, %75 : vector<2x96xf32>
    %77 = vector.extract_strided_slice %45 {offsets = [14, 0], sizes = [2, 288], strides = [1, 1]} : vector<16x288xf32> to vector<2x288xf32>
    %cst_54 = arith.constant dense<0.000000e+00> : vector<2x288xf32>
    %78 = tpu.matmul %46, %11, %cst_54 {dimension_numbers = #tpu.dot_dimension_numbers<[1], [0], [0], [1], [0, 0, 1, 1], [], []>} : vector<2x96xf32>, vector<96x288xf32>, vector<2x288xf32> -> vector<2x288xf32>
    %79 = vector.extract_strided_slice %77 {offsets = [0, 0], sizes = [2, 96], strides = [1, 1]} : vector<2x288xf32> to vector<2x96xf32>
    %80 = vector.extract_strided_slice %78 {offsets = [0, 0], sizes = [2, 96], strides = [1, 1]} : vector<2x288xf32> to vector<2x96xf32>
    %81 = arith.addf %79, %80 : vector<2x96xf32>
    %82 = arith.negf %81 : vector<2x96xf32>
    %83 = math.exp %82 : vector<2x96xf32>
    %cst_55 = arith.constant 1.000000e+00 : f32
    %84 = vector.broadcast %cst_55 : f32 to vector<2x96xf32>
    %85 = arith.addf %84, %83 : vector<2x96xf32>
    %86 = arith.divf %84, %85 : vector<2x96xf32>
    %87 = vector.extract_strided_slice %77 {offsets = [0, 96], sizes = [2, 96], strides = [1, 1]} : vector<2x288xf32> to vector<2x96xf32>
    %88 = vector.extract_strided_slice %78 {offsets = [0, 96], sizes = [2, 96], strides = [1, 1]} : vector<2x288xf32> to vector<2x96xf32>
    %89 = arith.addf %87, %88 : vector<2x96xf32>
    %90 = arith.negf %89 : vector<2x96xf32>
    %91 = math.exp %90 : vector<2x96xf32>
    %cst_56 = arith.constant 1.000000e+00 : f32
    %92 = vector.broadcast %cst_56 : f32 to vector<2x96xf32>
    %93 = arith.addf %92, %91 : vector<2x96xf32>
    %94 = arith.divf %92, %93 : vector<2x96xf32>
    %95 = vector.extract_strided_slice %77 {offsets = [0, 192], sizes = [2, 96], strides = [1, 1]} : vector<2x288xf32> to vector<2x96xf32>
    %96 = vector.extract_strided_slice %78 {offsets = [0, 192], sizes = [2, 96], strides = [1, 1]} : vector<2x288xf32> to vector<2x96xf32>
    %97 = vector.broadcast %12 : vector<1x96xf32> to vector<2x96xf32>
    %98 = arith.addf %96, %97 : vector<2x96xf32>
    %99 = arith.mulf %86, %98 : vector<2x96xf32>
    %100 = arith.addf %95, %99 : vector<2x96xf32>
    %101 = math.tanh %100 : vector<2x96xf32>
    %cst_57 = arith.constant 1.000000e+00 : f32
    %102 = vector.broadcast %cst_57 : f32 to vector<2x96xf32>
    %103 = arith.subf %102, %94 : vector<2x96xf32>
    %104 = arith.mulf %103, %101 : vector<2x96xf32>
    %105 = arith.mulf %94, %46 : vector<2x96xf32>
    %106 = arith.addf %104, %105 : vector<2x96xf32>
    %107 = vector.extract_strided_slice %41 {offsets = [2, 0], sizes = [2, 288], strides = [1, 1]} : vector<16x288xf32> to vector<2x288xf32>
    %cst_58 = arith.constant dense<0.000000e+00> : vector<2x288xf32>
    %108 = tpu.matmul %76, %7, %cst_58 {dimension_numbers = #tpu.dot_dimension_numbers<[1], [0], [0], [1], [0, 0, 1, 1], [], []>} : vector<2x96xf32>, vector<96x288xf32>, vector<2x288xf32> -> vector<2x288xf32>
    %109 = vector.extract_strided_slice %107 {offsets = [0, 0], sizes = [2, 96], strides = [1, 1]} : vector<2x288xf32> to vector<2x96xf32>
    %110 = vector.extract_strided_slice %108 {offsets = [0, 0], sizes = [2, 96], strides = [1, 1]} : vector<2x288xf32> to vector<2x96xf32>
    %111 = arith.addf %109, %110 : vector<2x96xf32>
    %112 = arith.negf %111 : vector<2x96xf32>
    %113 = math.exp %112 : vector<2x96xf32>
    %cst_59 = arith.constant 1.000000e+00 : f32
    %114 = vector.broadcast %cst_59 : f32 to vector<2x96xf32>
    %115 = arith.addf %114, %113 : vector<2x96xf32>
    %116 = arith.divf %114, %115 : vector<2x96xf32>
    %117 = vector.extract_strided_slice %107 {offsets = [0, 96], sizes = [2, 96], strides = [1, 1]} : vector<2x288xf32> to vector<2x96xf32>
    %118 = vector.extract_strided_slice %108 {offsets = [0, 96], sizes = [2, 96], strides = [1, 1]} : vector<2x288xf32> to vector<2x96xf32>
    %119 = arith.addf %117, %118 : vector<2x96xf32>
    %120 = arith.negf %119 : vector<2x96xf32>
    %121 = math.exp %120 : vector<2x96xf32>
    %cst_60 = arith.constant 1.000000e+00 : f32
    %122 = vector.broadcast %cst_60 : f32 to vector<2x96xf32>
    %123 = arith.addf %122, %121 : vector<2x96xf32>
    %124 = arith.divf %122, %123 : vector<2x96xf32>
    %125 = vector.extract_strided_slice %107 {offsets = [0, 192], sizes = [2, 96], strides = [1, 1]} : vector<2x288xf32> to vector<2x96xf32>
    %126 = vector.extract_strided_slice %108 {offsets = [0, 192], sizes = [2, 96], strides = [1, 1]} : vector<2x288xf32> to vector<2x96xf32>
    %127 = vector.broadcast %8 : vector<1x96xf32> to vector<2x96xf32>
    %128 = arith.addf %126, %127 : vector<2x96xf32>
    %129 = arith.mulf %116, %128 : vector<2x96xf32>
    %130 = arith.addf %125, %129 : vector<2x96xf32>
    %131 = math.tanh %130 : vector<2x96xf32>
    %cst_61 = arith.constant 1.000000e+00 : f32
    %132 = vector.broadcast %cst_61 : f32 to vector<2x96xf32>
    %133 = arith.subf %132, %124 : vector<2x96xf32>
    %134 = arith.mulf %133, %131 : vector<2x96xf32>
    %135 = arith.mulf %124, %76 : vector<2x96xf32>
    %136 = arith.addf %134, %135 : vector<2x96xf32>
    %137 = vector.extract_strided_slice %45 {offsets = [12, 0], sizes = [2, 288], strides = [1, 1]} : vector<16x288xf32> to vector<2x288xf32>
    %cst_62 = arith.constant dense<0.000000e+00> : vector<2x288xf32>
    %138 = tpu.matmul %106, %11, %cst_62 {dimension_numbers = #tpu.dot_dimension_numbers<[1], [0], [0], [1], [0, 0, 1, 1], [], []>} : vector<2x96xf32>, vector<96x288xf32>, vector<2x288xf32> -> vector<2x288xf32>
    %139 = vector.extract_strided_slice %137 {offsets = [0, 0], sizes = [2, 96], strides = [1, 1]} : vector<2x288xf32> to vector<2x96xf32>
    %140 = vector.extract_strided_slice %138 {offsets = [0, 0], sizes = [2, 96], strides = [1, 1]} : vector<2x288xf32> to vector<2x96xf32>
    %141 = arith.addf %139, %140 : vector<2x96xf32>
    %142 = arith.negf %141 : vector<2x96xf32>
    %143 = math.exp %142 : vector<2x96xf32>
    %cst_63 = arith.constant 1.000000e+00 : f32
    %144 = vector.broadcast %cst_63 : f32 to vector<2x96xf32>
    %145 = arith.addf %144, %143 : vector<2x96xf32>
    %146 = arith.divf %144, %145 : vector<2x96xf32>
    %147 = vector.extract_strided_slice %137 {offsets = [0, 96], sizes = [2, 96], strides = [1, 1]} : vector<2x288xf32> to vector<2x96xf32>
    %148 = vector.extract_strided_slice %138 {offsets = [0, 96], sizes = [2, 96], strides = [1, 1]} : vector<2x288xf32> to vector<2x96xf32>
    %149 = arith.addf %147, %148 : vector<2x96xf32>
    %150 = arith.negf %149 : vector<2x96xf32>
    %151 = math.exp %150 : vector<2x96xf32>
    %cst_64 = arith.constant 1.000000e+00 : f32
    %152 = vector.broadcast %cst_64 : f32 to vector<2x96xf32>
    %153 = arith.addf %152, %151 : vector<2x96xf32>
    %154 = arith.divf %152, %153 : vector<2x96xf32>
    %155 = vector.extract_strided_slice %137 {offsets = [0, 192], sizes = [2, 96], strides = [1, 1]} : vector<2x288xf32> to vector<2x96xf32>
    %156 = vector.extract_strided_slice %138 {offsets = [0, 192], sizes = [2, 96], strides = [1, 1]} : vector<2x288xf32> to vector<2x96xf32>
    %157 = vector.broadcast %12 : vector<1x96xf32> to vector<2x96xf32>
    %158 = arith.addf %156, %157 : vector<2x96xf32>
    %159 = arith.mulf %146, %158 : vector<2x96xf32>
    %160 = arith.addf %155, %159 : vector<2x96xf32>
    %161 = math.tanh %160 : vector<2x96xf32>
    %cst_65 = arith.constant 1.000000e+00 : f32
    %162 = vector.broadcast %cst_65 : f32 to vector<2x96xf32>
    %163 = arith.subf %162, %154 : vector<2x96xf32>
    %164 = arith.mulf %163, %161 : vector<2x96xf32>
    %165 = arith.mulf %154, %106 : vector<2x96xf32>
    %166 = arith.addf %164, %165 : vector<2x96xf32>
    %167 = vector.extract_strided_slice %41 {offsets = [4, 0], sizes = [2, 288], strides = [1, 1]} : vector<16x288xf32> to vector<2x288xf32>
    %cst_66 = arith.constant dense<0.000000e+00> : vector<2x288xf32>
    %168 = tpu.matmul %136, %7, %cst_66 {dimension_numbers = #tpu.dot_dimension_numbers<[1], [0], [0], [1], [0, 0, 1, 1], [], []>} : vector<2x96xf32>, vector<96x288xf32>, vector<2x288xf32> -> vector<2x288xf32>
    %169 = vector.extract_strided_slice %167 {offsets = [0, 0], sizes = [2, 96], strides = [1, 1]} : vector<2x288xf32> to vector<2x96xf32>
    %170 = vector.extract_strided_slice %168 {offsets = [0, 0], sizes = [2, 96], strides = [1, 1]} : vector<2x288xf32> to vector<2x96xf32>
    %171 = arith.addf %169, %170 : vector<2x96xf32>
    %172 = arith.negf %171 : vector<2x96xf32>
    %173 = math.exp %172 : vector<2x96xf32>
    %cst_67 = arith.constant 1.000000e+00 : f32
    %174 = vector.broadcast %cst_67 : f32 to vector<2x96xf32>
    %175 = arith.addf %174, %173 : vector<2x96xf32>
    %176 = arith.divf %174, %175 : vector<2x96xf32>
    %177 = vector.extract_strided_slice %167 {offsets = [0, 96], sizes = [2, 96], strides = [1, 1]} : vector<2x288xf32> to vector<2x96xf32>
    %178 = vector.extract_strided_slice %168 {offsets = [0, 96], sizes = [2, 96], strides = [1, 1]} : vector<2x288xf32> to vector<2x96xf32>
    %179 = arith.addf %177, %178 : vector<2x96xf32>
    %180 = arith.negf %179 : vector<2x96xf32>
    %181 = math.exp %180 : vector<2x96xf32>
    %cst_68 = arith.constant 1.000000e+00 : f32
    %182 = vector.broadcast %cst_68 : f32 to vector<2x96xf32>
    %183 = arith.addf %182, %181 : vector<2x96xf32>
    %184 = arith.divf %182, %183 : vector<2x96xf32>
    %185 = vector.extract_strided_slice %167 {offsets = [0, 192], sizes = [2, 96], strides = [1, 1]} : vector<2x288xf32> to vector<2x96xf32>
    %186 = vector.extract_strided_slice %168 {offsets = [0, 192], sizes = [2, 96], strides = [1, 1]} : vector<2x288xf32> to vector<2x96xf32>
    %187 = vector.broadcast %8 : vector<1x96xf32> to vector<2x96xf32>
    %188 = arith.addf %186, %187 : vector<2x96xf32>
    %189 = arith.mulf %176, %188 : vector<2x96xf32>
    %190 = arith.addf %185, %189 : vector<2x96xf32>
    %191 = math.tanh %190 : vector<2x96xf32>
    %cst_69 = arith.constant 1.000000e+00 : f32
    %192 = vector.broadcast %cst_69 : f32 to vector<2x96xf32>
    %193 = arith.subf %192, %184 : vector<2x96xf32>
    %194 = arith.mulf %193, %191 : vector<2x96xf32>
    %195 = arith.mulf %184, %136 : vector<2x96xf32>
    %196 = arith.addf %194, %195 : vector<2x96xf32>
    %197 = vector.extract_strided_slice %45 {offsets = [10, 0], sizes = [2, 288], strides = [1, 1]} : vector<16x288xf32> to vector<2x288xf32>
    %cst_70 = arith.constant dense<0.000000e+00> : vector<2x288xf32>
    %198 = tpu.matmul %166, %11, %cst_70 {dimension_numbers = #tpu.dot_dimension_numbers<[1], [0], [0], [1], [0, 0, 1, 1], [], []>} : vector<2x96xf32>, vector<96x288xf32>, vector<2x288xf32> -> vector<2x288xf32>
    %199 = vector.extract_strided_slice %197 {offsets = [0, 0], sizes = [2, 96], strides = [1, 1]} : vector<2x288xf32> to vector<2x96xf32>
    %200 = vector.extract_strided_slice %198 {offsets = [0, 0], sizes = [2, 96], strides = [1, 1]} : vector<2x288xf32> to vector<2x96xf32>
    %201 = arith.addf %199, %200 : vector<2x96xf32>
    %202 = arith.negf %201 : vector<2x96xf32>
    %203 = math.exp %202 : vector<2x96xf32>
    %cst_71 = arith.constant 1.000000e+00 : f32
    %204 = vector.broadcast %cst_71 : f32 to vector<2x96xf32>
    %205 = arith.addf %204, %203 : vector<2x96xf32>
    %206 = arith.divf %204, %205 : vector<2x96xf32>
    %207 = vector.extract_strided_slice %197 {offsets = [0, 96], sizes = [2, 96], strides = [1, 1]} : vector<2x288xf32> to vector<2x96xf32>
    %208 = vector.extract_strided_slice %198 {offsets = [0, 96], sizes = [2, 96], strides = [1, 1]} : vector<2x288xf32> to vector<2x96xf32>
    %209 = arith.addf %207, %208 : vector<2x96xf32>
    %210 = arith.negf %209 : vector<2x96xf32>
    %211 = math.exp %210 : vector<2x96xf32>
    %cst_72 = arith.constant 1.000000e+00 : f32
    %212 = vector.broadcast %cst_72 : f32 to vector<2x96xf32>
    %213 = arith.addf %212, %211 : vector<2x96xf32>
    %214 = arith.divf %212, %213 : vector<2x96xf32>
    %215 = vector.extract_strided_slice %197 {offsets = [0, 192], sizes = [2, 96], strides = [1, 1]} : vector<2x288xf32> to vector<2x96xf32>
    %216 = vector.extract_strided_slice %198 {offsets = [0, 192], sizes = [2, 96], strides = [1, 1]} : vector<2x288xf32> to vector<2x96xf32>
    %217 = vector.broadcast %12 : vector<1x96xf32> to vector<2x96xf32>
    %218 = arith.addf %216, %217 : vector<2x96xf32>
    %219 = arith.mulf %206, %218 : vector<2x96xf32>
    %220 = arith.addf %215, %219 : vector<2x96xf32>
    %221 = math.tanh %220 : vector<2x96xf32>
    %cst_73 = arith.constant 1.000000e+00 : f32
    %222 = vector.broadcast %cst_73 : f32 to vector<2x96xf32>
    %223 = arith.subf %222, %214 : vector<2x96xf32>
    %224 = arith.mulf %223, %221 : vector<2x96xf32>
    %225 = arith.mulf %214, %166 : vector<2x96xf32>
    %226 = arith.addf %224, %225 : vector<2x96xf32>
    %227 = vector.extract_strided_slice %41 {offsets = [6, 0], sizes = [2, 288], strides = [1, 1]} : vector<16x288xf32> to vector<2x288xf32>
    %cst_74 = arith.constant dense<0.000000e+00> : vector<2x288xf32>
    %228 = tpu.matmul %196, %7, %cst_74 {dimension_numbers = #tpu.dot_dimension_numbers<[1], [0], [0], [1], [0, 0, 1, 1], [], []>} : vector<2x96xf32>, vector<96x288xf32>, vector<2x288xf32> -> vector<2x288xf32>
    %229 = vector.extract_strided_slice %227 {offsets = [0, 0], sizes = [2, 96], strides = [1, 1]} : vector<2x288xf32> to vector<2x96xf32>
    %230 = vector.extract_strided_slice %228 {offsets = [0, 0], sizes = [2, 96], strides = [1, 1]} : vector<2x288xf32> to vector<2x96xf32>
    %231 = arith.addf %229, %230 : vector<2x96xf32>
    %232 = arith.negf %231 : vector<2x96xf32>
    %233 = math.exp %232 : vector<2x96xf32>
    %cst_75 = arith.constant 1.000000e+00 : f32
    %234 = vector.broadcast %cst_75 : f32 to vector<2x96xf32>
    %235 = arith.addf %234, %233 : vector<2x96xf32>
    %236 = arith.divf %234, %235 : vector<2x96xf32>
    %237 = vector.extract_strided_slice %227 {offsets = [0, 96], sizes = [2, 96], strides = [1, 1]} : vector<2x288xf32> to vector<2x96xf32>
    %238 = vector.extract_strided_slice %228 {offsets = [0, 96], sizes = [2, 96], strides = [1, 1]} : vector<2x288xf32> to vector<2x96xf32>
    %239 = arith.addf %237, %238 : vector<2x96xf32>
    %240 = arith.negf %239 : vector<2x96xf32>
    %241 = math.exp %240 : vector<2x96xf32>
    %cst_76 = arith.constant 1.000000e+00 : f32
    %242 = vector.broadcast %cst_76 : f32 to vector<2x96xf32>
    %243 = arith.addf %242, %241 : vector<2x96xf32>
    %244 = arith.divf %242, %243 : vector<2x96xf32>
    %245 = vector.extract_strided_slice %227 {offsets = [0, 192], sizes = [2, 96], strides = [1, 1]} : vector<2x288xf32> to vector<2x96xf32>
    %246 = vector.extract_strided_slice %228 {offsets = [0, 192], sizes = [2, 96], strides = [1, 1]} : vector<2x288xf32> to vector<2x96xf32>
    %247 = vector.broadcast %8 : vector<1x96xf32> to vector<2x96xf32>
    %248 = arith.addf %246, %247 : vector<2x96xf32>
    %249 = arith.mulf %236, %248 : vector<2x96xf32>
    %250 = arith.addf %245, %249 : vector<2x96xf32>
    %251 = math.tanh %250 : vector<2x96xf32>
    %cst_77 = arith.constant 1.000000e+00 : f32
    %252 = vector.broadcast %cst_77 : f32 to vector<2x96xf32>
    %253 = arith.subf %252, %244 : vector<2x96xf32>
    %254 = arith.mulf %253, %251 : vector<2x96xf32>
    %255 = arith.mulf %244, %196 : vector<2x96xf32>
    %256 = arith.addf %254, %255 : vector<2x96xf32>
    %257 = vector.extract_strided_slice %45 {offsets = [8, 0], sizes = [2, 288], strides = [1, 1]} : vector<16x288xf32> to vector<2x288xf32>
    %cst_78 = arith.constant dense<0.000000e+00> : vector<2x288xf32>
    %258 = tpu.matmul %226, %11, %cst_78 {dimension_numbers = #tpu.dot_dimension_numbers<[1], [0], [0], [1], [0, 0, 1, 1], [], []>} : vector<2x96xf32>, vector<96x288xf32>, vector<2x288xf32> -> vector<2x288xf32>
    %259 = vector.extract_strided_slice %257 {offsets = [0, 0], sizes = [2, 96], strides = [1, 1]} : vector<2x288xf32> to vector<2x96xf32>
    %260 = vector.extract_strided_slice %258 {offsets = [0, 0], sizes = [2, 96], strides = [1, 1]} : vector<2x288xf32> to vector<2x96xf32>
    %261 = arith.addf %259, %260 : vector<2x96xf32>
    %262 = arith.negf %261 : vector<2x96xf32>
    %263 = math.exp %262 : vector<2x96xf32>
    %cst_79 = arith.constant 1.000000e+00 : f32
    %264 = vector.broadcast %cst_79 : f32 to vector<2x96xf32>
    %265 = arith.addf %264, %263 : vector<2x96xf32>
    %266 = arith.divf %264, %265 : vector<2x96xf32>
    %267 = vector.extract_strided_slice %257 {offsets = [0, 96], sizes = [2, 96], strides = [1, 1]} : vector<2x288xf32> to vector<2x96xf32>
    %268 = vector.extract_strided_slice %258 {offsets = [0, 96], sizes = [2, 96], strides = [1, 1]} : vector<2x288xf32> to vector<2x96xf32>
    %269 = arith.addf %267, %268 : vector<2x96xf32>
    %270 = arith.negf %269 : vector<2x96xf32>
    %271 = math.exp %270 : vector<2x96xf32>
    %cst_80 = arith.constant 1.000000e+00 : f32
    %272 = vector.broadcast %cst_80 : f32 to vector<2x96xf32>
    %273 = arith.addf %272, %271 : vector<2x96xf32>
    %274 = arith.divf %272, %273 : vector<2x96xf32>
    %275 = vector.extract_strided_slice %257 {offsets = [0, 192], sizes = [2, 96], strides = [1, 1]} : vector<2x288xf32> to vector<2x96xf32>
    %276 = vector.extract_strided_slice %258 {offsets = [0, 192], sizes = [2, 96], strides = [1, 1]} : vector<2x288xf32> to vector<2x96xf32>
    %277 = vector.broadcast %12 : vector<1x96xf32> to vector<2x96xf32>
    %278 = arith.addf %276, %277 : vector<2x96xf32>
    %279 = arith.mulf %266, %278 : vector<2x96xf32>
    %280 = arith.addf %275, %279 : vector<2x96xf32>
    %281 = math.tanh %280 : vector<2x96xf32>
    %cst_81 = arith.constant 1.000000e+00 : f32
    %282 = vector.broadcast %cst_81 : f32 to vector<2x96xf32>
    %283 = arith.subf %282, %274 : vector<2x96xf32>
    %284 = arith.mulf %283, %281 : vector<2x96xf32>
    %285 = arith.mulf %274, %226 : vector<2x96xf32>
    %286 = arith.addf %284, %285 : vector<2x96xf32>
    %287 = vector.extract_strided_slice %41 {offsets = [8, 0], sizes = [2, 288], strides = [1, 1]} : vector<16x288xf32> to vector<2x288xf32>
    %cst_82 = arith.constant dense<0.000000e+00> : vector<2x288xf32>
    %288 = tpu.matmul %256, %7, %cst_82 {dimension_numbers = #tpu.dot_dimension_numbers<[1], [0], [0], [1], [0, 0, 1, 1], [], []>} : vector<2x96xf32>, vector<96x288xf32>, vector<2x288xf32> -> vector<2x288xf32>
    %289 = vector.extract_strided_slice %287 {offsets = [0, 0], sizes = [2, 96], strides = [1, 1]} : vector<2x288xf32> to vector<2x96xf32>
    %290 = vector.extract_strided_slice %288 {offsets = [0, 0], sizes = [2, 96], strides = [1, 1]} : vector<2x288xf32> to vector<2x96xf32>
    %291 = arith.addf %289, %290 : vector<2x96xf32>
    %292 = arith.negf %291 : vector<2x96xf32>
    %293 = math.exp %292 : vector<2x96xf32>
    %cst_83 = arith.constant 1.000000e+00 : f32
    %294 = vector.broadcast %cst_83 : f32 to vector<2x96xf32>
    %295 = arith.addf %294, %293 : vector<2x96xf32>
    %296 = arith.divf %294, %295 : vector<2x96xf32>
    %297 = vector.extract_strided_slice %287 {offsets = [0, 96], sizes = [2, 96], strides = [1, 1]} : vector<2x288xf32> to vector<2x96xf32>
    %298 = vector.extract_strided_slice %288 {offsets = [0, 96], sizes = [2, 96], strides = [1, 1]} : vector<2x288xf32> to vector<2x96xf32>
    %299 = arith.addf %297, %298 : vector<2x96xf32>
    %300 = arith.negf %299 : vector<2x96xf32>
    %301 = math.exp %300 : vector<2x96xf32>
    %cst_84 = arith.constant 1.000000e+00 : f32
    %302 = vector.broadcast %cst_84 : f32 to vector<2x96xf32>
    %303 = arith.addf %302, %301 : vector<2x96xf32>
    %304 = arith.divf %302, %303 : vector<2x96xf32>
    %305 = vector.extract_strided_slice %287 {offsets = [0, 192], sizes = [2, 96], strides = [1, 1]} : vector<2x288xf32> to vector<2x96xf32>
    %306 = vector.extract_strided_slice %288 {offsets = [0, 192], sizes = [2, 96], strides = [1, 1]} : vector<2x288xf32> to vector<2x96xf32>
    %307 = vector.broadcast %8 : vector<1x96xf32> to vector<2x96xf32>
    %308 = arith.addf %306, %307 : vector<2x96xf32>
    %309 = arith.mulf %296, %308 : vector<2x96xf32>
    %310 = arith.addf %305, %309 : vector<2x96xf32>
    %311 = math.tanh %310 : vector<2x96xf32>
    %cst_85 = arith.constant 1.000000e+00 : f32
    %312 = vector.broadcast %cst_85 : f32 to vector<2x96xf32>
    %313 = arith.subf %312, %304 : vector<2x96xf32>
    %314 = arith.mulf %313, %311 : vector<2x96xf32>
    %315 = arith.mulf %304, %256 : vector<2x96xf32>
    %316 = arith.addf %314, %315 : vector<2x96xf32>
    %317 = vector.extract_strided_slice %45 {offsets = [6, 0], sizes = [2, 288], strides = [1, 1]} : vector<16x288xf32> to vector<2x288xf32>
    %cst_86 = arith.constant dense<0.000000e+00> : vector<2x288xf32>
    %318 = tpu.matmul %286, %11, %cst_86 {dimension_numbers = #tpu.dot_dimension_numbers<[1], [0], [0], [1], [0, 0, 1, 1], [], []>} : vector<2x96xf32>, vector<96x288xf32>, vector<2x288xf32> -> vector<2x288xf32>
    %319 = vector.extract_strided_slice %317 {offsets = [0, 0], sizes = [2, 96], strides = [1, 1]} : vector<2x288xf32> to vector<2x96xf32>
    %320 = vector.extract_strided_slice %318 {offsets = [0, 0], sizes = [2, 96], strides = [1, 1]} : vector<2x288xf32> to vector<2x96xf32>
    %321 = arith.addf %319, %320 : vector<2x96xf32>
    %322 = arith.negf %321 : vector<2x96xf32>
    %323 = math.exp %322 : vector<2x96xf32>
    %cst_87 = arith.constant 1.000000e+00 : f32
    %324 = vector.broadcast %cst_87 : f32 to vector<2x96xf32>
    %325 = arith.addf %324, %323 : vector<2x96xf32>
    %326 = arith.divf %324, %325 : vector<2x96xf32>
    %327 = vector.extract_strided_slice %317 {offsets = [0, 96], sizes = [2, 96], strides = [1, 1]} : vector<2x288xf32> to vector<2x96xf32>
    %328 = vector.extract_strided_slice %318 {offsets = [0, 96], sizes = [2, 96], strides = [1, 1]} : vector<2x288xf32> to vector<2x96xf32>
    %329 = arith.addf %327, %328 : vector<2x96xf32>
    %330 = arith.negf %329 : vector<2x96xf32>
    %331 = math.exp %330 : vector<2x96xf32>
    %cst_88 = arith.constant 1.000000e+00 : f32
    %332 = vector.broadcast %cst_88 : f32 to vector<2x96xf32>
    %333 = arith.addf %332, %331 : vector<2x96xf32>
    %334 = arith.divf %332, %333 : vector<2x96xf32>
    %335 = vector.extract_strided_slice %317 {offsets = [0, 192], sizes = [2, 96], strides = [1, 1]} : vector<2x288xf32> to vector<2x96xf32>
    %336 = vector.extract_strided_slice %318 {offsets = [0, 192], sizes = [2, 96], strides = [1, 1]} : vector<2x288xf32> to vector<2x96xf32>
    %337 = vector.broadcast %12 : vector<1x96xf32> to vector<2x96xf32>
    %338 = arith.addf %336, %337 : vector<2x96xf32>
    %339 = arith.mulf %326, %338 : vector<2x96xf32>
    %340 = arith.addf %335, %339 : vector<2x96xf32>
    %341 = math.tanh %340 : vector<2x96xf32>
    %cst_89 = arith.constant 1.000000e+00 : f32
    %342 = vector.broadcast %cst_89 : f32 to vector<2x96xf32>
    %343 = arith.subf %342, %334 : vector<2x96xf32>
    %344 = arith.mulf %343, %341 : vector<2x96xf32>
    %345 = arith.mulf %334, %286 : vector<2x96xf32>
    %346 = arith.addf %344, %345 : vector<2x96xf32>
    %347 = vector.extract_strided_slice %41 {offsets = [10, 0], sizes = [2, 288], strides = [1, 1]} : vector<16x288xf32> to vector<2x288xf32>
    %cst_90 = arith.constant dense<0.000000e+00> : vector<2x288xf32>
    %348 = tpu.matmul %316, %7, %cst_90 {dimension_numbers = #tpu.dot_dimension_numbers<[1], [0], [0], [1], [0, 0, 1, 1], [], []>} : vector<2x96xf32>, vector<96x288xf32>, vector<2x288xf32> -> vector<2x288xf32>
    %349 = vector.extract_strided_slice %347 {offsets = [0, 0], sizes = [2, 96], strides = [1, 1]} : vector<2x288xf32> to vector<2x96xf32>
    %350 = vector.extract_strided_slice %348 {offsets = [0, 0], sizes = [2, 96], strides = [1, 1]} : vector<2x288xf32> to vector<2x96xf32>
    %351 = arith.addf %349, %350 : vector<2x96xf32>
    %352 = arith.negf %351 : vector<2x96xf32>
    %353 = math.exp %352 : vector<2x96xf32>
    %cst_91 = arith.constant 1.000000e+00 : f32
    %354 = vector.broadcast %cst_91 : f32 to vector<2x96xf32>
    %355 = arith.addf %354, %353 : vector<2x96xf32>
    %356 = arith.divf %354, %355 : vector<2x96xf32>
    %357 = vector.extract_strided_slice %347 {offsets = [0, 96], sizes = [2, 96], strides = [1, 1]} : vector<2x288xf32> to vector<2x96xf32>
    %358 = vector.extract_strided_slice %348 {offsets = [0, 96], sizes = [2, 96], strides = [1, 1]} : vector<2x288xf32> to vector<2x96xf32>
    %359 = arith.addf %357, %358 : vector<2x96xf32>
    %360 = arith.negf %359 : vector<2x96xf32>
    %361 = math.exp %360 : vector<2x96xf32>
    %cst_92 = arith.constant 1.000000e+00 : f32
    %362 = vector.broadcast %cst_92 : f32 to vector<2x96xf32>
    %363 = arith.addf %362, %361 : vector<2x96xf32>
    %364 = arith.divf %362, %363 : vector<2x96xf32>
    %365 = vector.extract_strided_slice %347 {offsets = [0, 192], sizes = [2, 96], strides = [1, 1]} : vector<2x288xf32> to vector<2x96xf32>
    %366 = vector.extract_strided_slice %348 {offsets = [0, 192], sizes = [2, 96], strides = [1, 1]} : vector<2x288xf32> to vector<2x96xf32>
    %367 = vector.broadcast %8 : vector<1x96xf32> to vector<2x96xf32>
    %368 = arith.addf %366, %367 : vector<2x96xf32>
    %369 = arith.mulf %356, %368 : vector<2x96xf32>
    %370 = arith.addf %365, %369 : vector<2x96xf32>
    %371 = math.tanh %370 : vector<2x96xf32>
    %cst_93 = arith.constant 1.000000e+00 : f32
    %372 = vector.broadcast %cst_93 : f32 to vector<2x96xf32>
    %373 = arith.subf %372, %364 : vector<2x96xf32>
    %374 = arith.mulf %373, %371 : vector<2x96xf32>
    %375 = arith.mulf %364, %316 : vector<2x96xf32>
    %376 = arith.addf %374, %375 : vector<2x96xf32>
    %377 = vector.extract_strided_slice %45 {offsets = [4, 0], sizes = [2, 288], strides = [1, 1]} : vector<16x288xf32> to vector<2x288xf32>
    %cst_94 = arith.constant dense<0.000000e+00> : vector<2x288xf32>
    %378 = tpu.matmul %346, %11, %cst_94 {dimension_numbers = #tpu.dot_dimension_numbers<[1], [0], [0], [1], [0, 0, 1, 1], [], []>} : vector<2x96xf32>, vector<96x288xf32>, vector<2x288xf32> -> vector<2x288xf32>
    %379 = vector.extract_strided_slice %377 {offsets = [0, 0], sizes = [2, 96], strides = [1, 1]} : vector<2x288xf32> to vector<2x96xf32>
    %380 = vector.extract_strided_slice %378 {offsets = [0, 0], sizes = [2, 96], strides = [1, 1]} : vector<2x288xf32> to vector<2x96xf32>
    %381 = arith.addf %379, %380 : vector<2x96xf32>
    %382 = arith.negf %381 : vector<2x96xf32>
    %383 = math.exp %382 : vector<2x96xf32>
    %cst_95 = arith.constant 1.000000e+00 : f32
    %384 = vector.broadcast %cst_95 : f32 to vector<2x96xf32>
    %385 = arith.addf %384, %383 : vector<2x96xf32>
    %386 = arith.divf %384, %385 : vector<2x96xf32>
    %387 = vector.extract_strided_slice %377 {offsets = [0, 96], sizes = [2, 96], strides = [1, 1]} : vector<2x288xf32> to vector<2x96xf32>
    %388 = vector.extract_strided_slice %378 {offsets = [0, 96], sizes = [2, 96], strides = [1, 1]} : vector<2x288xf32> to vector<2x96xf32>
    %389 = arith.addf %387, %388 : vector<2x96xf32>
    %390 = arith.negf %389 : vector<2x96xf32>
    %391 = math.exp %390 : vector<2x96xf32>
    %cst_96 = arith.constant 1.000000e+00 : f32
    %392 = vector.broadcast %cst_96 : f32 to vector<2x96xf32>
    %393 = arith.addf %392, %391 : vector<2x96xf32>
    %394 = arith.divf %392, %393 : vector<2x96xf32>
    %395 = vector.extract_strided_slice %377 {offsets = [0, 192], sizes = [2, 96], strides = [1, 1]} : vector<2x288xf32> to vector<2x96xf32>
    %396 = vector.extract_strided_slice %378 {offsets = [0, 192], sizes = [2, 96], strides = [1, 1]} : vector<2x288xf32> to vector<2x96xf32>
    %397 = vector.broadcast %12 : vector<1x96xf32> to vector<2x96xf32>
    %398 = arith.addf %396, %397 : vector<2x96xf32>
    %399 = arith.mulf %386, %398 : vector<2x96xf32>
    %400 = arith.addf %395, %399 : vector<2x96xf32>
    %401 = math.tanh %400 : vector<2x96xf32>
    %cst_97 = arith.constant 1.000000e+00 : f32
    %402 = vector.broadcast %cst_97 : f32 to vector<2x96xf32>
    %403 = arith.subf %402, %394 : vector<2x96xf32>
    %404 = arith.mulf %403, %401 : vector<2x96xf32>
    %405 = arith.mulf %394, %346 : vector<2x96xf32>
    %406 = arith.addf %404, %405 : vector<2x96xf32>
    %407 = vector.extract_strided_slice %41 {offsets = [12, 0], sizes = [2, 288], strides = [1, 1]} : vector<16x288xf32> to vector<2x288xf32>
    %cst_98 = arith.constant dense<0.000000e+00> : vector<2x288xf32>
    %408 = tpu.matmul %376, %7, %cst_98 {dimension_numbers = #tpu.dot_dimension_numbers<[1], [0], [0], [1], [0, 0, 1, 1], [], []>} : vector<2x96xf32>, vector<96x288xf32>, vector<2x288xf32> -> vector<2x288xf32>
    %409 = vector.extract_strided_slice %407 {offsets = [0, 0], sizes = [2, 96], strides = [1, 1]} : vector<2x288xf32> to vector<2x96xf32>
    %410 = vector.extract_strided_slice %408 {offsets = [0, 0], sizes = [2, 96], strides = [1, 1]} : vector<2x288xf32> to vector<2x96xf32>
    %411 = arith.addf %409, %410 : vector<2x96xf32>
    %412 = arith.negf %411 : vector<2x96xf32>
    %413 = math.exp %412 : vector<2x96xf32>
    %cst_99 = arith.constant 1.000000e+00 : f32
    %414 = vector.broadcast %cst_99 : f32 to vector<2x96xf32>
    %415 = arith.addf %414, %413 : vector<2x96xf32>
    %416 = arith.divf %414, %415 : vector<2x96xf32>
    %417 = vector.extract_strided_slice %407 {offsets = [0, 96], sizes = [2, 96], strides = [1, 1]} : vector<2x288xf32> to vector<2x96xf32>
    %418 = vector.extract_strided_slice %408 {offsets = [0, 96], sizes = [2, 96], strides = [1, 1]} : vector<2x288xf32> to vector<2x96xf32>
    %419 = arith.addf %417, %418 : vector<2x96xf32>
    %420 = arith.negf %419 : vector<2x96xf32>
    %421 = math.exp %420 : vector<2x96xf32>
    %cst_100 = arith.constant 1.000000e+00 : f32
    %422 = vector.broadcast %cst_100 : f32 to vector<2x96xf32>
    %423 = arith.addf %422, %421 : vector<2x96xf32>
    %424 = arith.divf %422, %423 : vector<2x96xf32>
    %425 = vector.extract_strided_slice %407 {offsets = [0, 192], sizes = [2, 96], strides = [1, 1]} : vector<2x288xf32> to vector<2x96xf32>
    %426 = vector.extract_strided_slice %408 {offsets = [0, 192], sizes = [2, 96], strides = [1, 1]} : vector<2x288xf32> to vector<2x96xf32>
    %427 = vector.broadcast %8 : vector<1x96xf32> to vector<2x96xf32>
    %428 = arith.addf %426, %427 : vector<2x96xf32>
    %429 = arith.mulf %416, %428 : vector<2x96xf32>
    %430 = arith.addf %425, %429 : vector<2x96xf32>
    %431 = math.tanh %430 : vector<2x96xf32>
    %cst_101 = arith.constant 1.000000e+00 : f32
    %432 = vector.broadcast %cst_101 : f32 to vector<2x96xf32>
    %433 = arith.subf %432, %424 : vector<2x96xf32>
    %434 = arith.mulf %433, %431 : vector<2x96xf32>
    %435 = arith.mulf %424, %376 : vector<2x96xf32>
    %436 = arith.addf %434, %435 : vector<2x96xf32>
    %437 = vector.extract_strided_slice %45 {offsets = [2, 0], sizes = [2, 288], strides = [1, 1]} : vector<16x288xf32> to vector<2x288xf32>
    %cst_102 = arith.constant dense<0.000000e+00> : vector<2x288xf32>
    %438 = tpu.matmul %406, %11, %cst_102 {dimension_numbers = #tpu.dot_dimension_numbers<[1], [0], [0], [1], [0, 0, 1, 1], [], []>} : vector<2x96xf32>, vector<96x288xf32>, vector<2x288xf32> -> vector<2x288xf32>
    %439 = vector.extract_strided_slice %437 {offsets = [0, 0], sizes = [2, 96], strides = [1, 1]} : vector<2x288xf32> to vector<2x96xf32>
    %440 = vector.extract_strided_slice %438 {offsets = [0, 0], sizes = [2, 96], strides = [1, 1]} : vector<2x288xf32> to vector<2x96xf32>
    %441 = arith.addf %439, %440 : vector<2x96xf32>
    %442 = arith.negf %441 : vector<2x96xf32>
    %443 = math.exp %442 : vector<2x96xf32>
    %cst_103 = arith.constant 1.000000e+00 : f32
    %444 = vector.broadcast %cst_103 : f32 to vector<2x96xf32>
    %445 = arith.addf %444, %443 : vector<2x96xf32>
    %446 = arith.divf %444, %445 : vector<2x96xf32>
    %447 = vector.extract_strided_slice %437 {offsets = [0, 96], sizes = [2, 96], strides = [1, 1]} : vector<2x288xf32> to vector<2x96xf32>
    %448 = vector.extract_strided_slice %438 {offsets = [0, 96], sizes = [2, 96], strides = [1, 1]} : vector<2x288xf32> to vector<2x96xf32>
    %449 = arith.addf %447, %448 : vector<2x96xf32>
    %450 = arith.negf %449 : vector<2x96xf32>
    %451 = math.exp %450 : vector<2x96xf32>
    %cst_104 = arith.constant 1.000000e+00 : f32
    %452 = vector.broadcast %cst_104 : f32 to vector<2x96xf32>
    %453 = arith.addf %452, %451 : vector<2x96xf32>
    %454 = arith.divf %452, %453 : vector<2x96xf32>
    %455 = vector.extract_strided_slice %437 {offsets = [0, 192], sizes = [2, 96], strides = [1, 1]} : vector<2x288xf32> to vector<2x96xf32>
    %456 = vector.extract_strided_slice %438 {offsets = [0, 192], sizes = [2, 96], strides = [1, 1]} : vector<2x288xf32> to vector<2x96xf32>
    %457 = vector.broadcast %12 : vector<1x96xf32> to vector<2x96xf32>
    %458 = arith.addf %456, %457 : vector<2x96xf32>
    %459 = arith.mulf %446, %458 : vector<2x96xf32>
    %460 = arith.addf %455, %459 : vector<2x96xf32>
    %461 = math.tanh %460 : vector<2x96xf32>
    %cst_105 = arith.constant 1.000000e+00 : f32
    %462 = vector.broadcast %cst_105 : f32 to vector<2x96xf32>
    %463 = arith.subf %462, %454 : vector<2x96xf32>
    %464 = arith.mulf %463, %461 : vector<2x96xf32>
    %465 = arith.mulf %454, %406 : vector<2x96xf32>
    %466 = arith.addf %464, %465 : vector<2x96xf32>
    %467 = vector.extract_strided_slice %41 {offsets = [14, 0], sizes = [2, 288], strides = [1, 1]} : vector<16x288xf32> to vector<2x288xf32>
    %cst_106 = arith.constant dense<0.000000e+00> : vector<2x288xf32>
    %468 = tpu.matmul %436, %7, %cst_106 {dimension_numbers = #tpu.dot_dimension_numbers<[1], [0], [0], [1], [0, 0, 1, 1], [], []>} : vector<2x96xf32>, vector<96x288xf32>, vector<2x288xf32> -> vector<2x288xf32>
    %469 = vector.extract_strided_slice %467 {offsets = [0, 0], sizes = [2, 96], strides = [1, 1]} : vector<2x288xf32> to vector<2x96xf32>
    %470 = vector.extract_strided_slice %468 {offsets = [0, 0], sizes = [2, 96], strides = [1, 1]} : vector<2x288xf32> to vector<2x96xf32>
    %471 = arith.addf %469, %470 : vector<2x96xf32>
    %472 = arith.negf %471 : vector<2x96xf32>
    %473 = math.exp %472 : vector<2x96xf32>
    %cst_107 = arith.constant 1.000000e+00 : f32
    %474 = vector.broadcast %cst_107 : f32 to vector<2x96xf32>
    %475 = arith.addf %474, %473 : vector<2x96xf32>
    %476 = arith.divf %474, %475 : vector<2x96xf32>
    %477 = vector.extract_strided_slice %467 {offsets = [0, 96], sizes = [2, 96], strides = [1, 1]} : vector<2x288xf32> to vector<2x96xf32>
    %478 = vector.extract_strided_slice %468 {offsets = [0, 96], sizes = [2, 96], strides = [1, 1]} : vector<2x288xf32> to vector<2x96xf32>
    %479 = arith.addf %477, %478 : vector<2x96xf32>
    %480 = arith.negf %479 : vector<2x96xf32>
    %481 = math.exp %480 : vector<2x96xf32>
    %cst_108 = arith.constant 1.000000e+00 : f32
    %482 = vector.broadcast %cst_108 : f32 to vector<2x96xf32>
    %483 = arith.addf %482, %481 : vector<2x96xf32>
    %484 = arith.divf %482, %483 : vector<2x96xf32>
    %485 = vector.extract_strided_slice %467 {offsets = [0, 192], sizes = [2, 96], strides = [1, 1]} : vector<2x288xf32> to vector<2x96xf32>
    %486 = vector.extract_strided_slice %468 {offsets = [0, 192], sizes = [2, 96], strides = [1, 1]} : vector<2x288xf32> to vector<2x96xf32>
    %487 = vector.broadcast %8 : vector<1x96xf32> to vector<2x96xf32>
    %488 = arith.addf %486, %487 : vector<2x96xf32>
    %489 = arith.mulf %476, %488 : vector<2x96xf32>
    %490 = arith.addf %485, %489 : vector<2x96xf32>
    %491 = math.tanh %490 : vector<2x96xf32>
    %cst_109 = arith.constant 1.000000e+00 : f32
    %492 = vector.broadcast %cst_109 : f32 to vector<2x96xf32>
    %493 = arith.subf %492, %484 : vector<2x96xf32>
    %494 = arith.mulf %493, %491 : vector<2x96xf32>
    %495 = arith.mulf %484, %436 : vector<2x96xf32>
    %496 = arith.addf %494, %495 : vector<2x96xf32>
    %497 = vector.extract_strided_slice %45 {offsets = [0, 0], sizes = [2, 288], strides = [1, 1]} : vector<16x288xf32> to vector<2x288xf32>
    %cst_110 = arith.constant dense<0.000000e+00> : vector<2x288xf32>
    %498 = tpu.matmul %466, %11, %cst_110 {dimension_numbers = #tpu.dot_dimension_numbers<[1], [0], [0], [1], [0, 0, 1, 1], [], []>} : vector<2x96xf32>, vector<96x288xf32>, vector<2x288xf32> -> vector<2x288xf32>
    %499 = vector.extract_strided_slice %497 {offsets = [0, 0], sizes = [2, 96], strides = [1, 1]} : vector<2x288xf32> to vector<2x96xf32>
    %500 = vector.extract_strided_slice %498 {offsets = [0, 0], sizes = [2, 96], strides = [1, 1]} : vector<2x288xf32> to vector<2x96xf32>
    %501 = arith.addf %499, %500 : vector<2x96xf32>
    %502 = arith.negf %501 : vector<2x96xf32>
    %503 = math.exp %502 : vector<2x96xf32>
    %cst_111 = arith.constant 1.000000e+00 : f32
    %504 = vector.broadcast %cst_111 : f32 to vector<2x96xf32>
    %505 = arith.addf %504, %503 : vector<2x96xf32>
    %506 = arith.divf %504, %505 : vector<2x96xf32>
    %507 = vector.extract_strided_slice %497 {offsets = [0, 96], sizes = [2, 96], strides = [1, 1]} : vector<2x288xf32> to vector<2x96xf32>
    %508 = vector.extract_strided_slice %498 {offsets = [0, 96], sizes = [2, 96], strides = [1, 1]} : vector<2x288xf32> to vector<2x96xf32>
    %509 = arith.addf %507, %508 : vector<2x96xf32>
    %510 = arith.negf %509 : vector<2x96xf32>
    %511 = math.exp %510 : vector<2x96xf32>
    %cst_112 = arith.constant 1.000000e+00 : f32
    %512 = vector.broadcast %cst_112 : f32 to vector<2x96xf32>
    %513 = arith.addf %512, %511 : vector<2x96xf32>
    %514 = arith.divf %512, %513 : vector<2x96xf32>
    %515 = vector.extract_strided_slice %497 {offsets = [0, 192], sizes = [2, 96], strides = [1, 1]} : vector<2x288xf32> to vector<2x96xf32>
    %516 = vector.extract_strided_slice %498 {offsets = [0, 192], sizes = [2, 96], strides = [1, 1]} : vector<2x288xf32> to vector<2x96xf32>
    %517 = vector.broadcast %12 : vector<1x96xf32> to vector<2x96xf32>
    %518 = arith.addf %516, %517 : vector<2x96xf32>
    %519 = arith.mulf %506, %518 : vector<2x96xf32>
    %520 = arith.addf %515, %519 : vector<2x96xf32>
    %521 = math.tanh %520 : vector<2x96xf32>
    %cst_113 = arith.constant 1.000000e+00 : f32
    %522 = vector.broadcast %cst_113 : f32 to vector<2x96xf32>
    %523 = arith.subf %522, %514 : vector<2x96xf32>
    %524 = arith.mulf %523, %521 : vector<2x96xf32>
    %525 = arith.mulf %514, %466 : vector<2x96xf32>
    %526 = arith.addf %524, %525 : vector<2x96xf32>
    %527 = tpu.concatenate %76, %136, %196, %256, %316, %376, %436, %496 in 0 : vector<2x96xf32>, vector<2x96xf32>, vector<2x96xf32>, vector<2x96xf32>, vector<2x96xf32>, vector<2x96xf32>, vector<2x96xf32>, vector<2x96xf32> -> vector<16x96xf32>
    %528 = tpu.concatenate %526, %466, %406, %346, %286, %226, %166, %106 in 0 : vector<2x96xf32>, vector<2x96xf32>, vector<2x96xf32>, vector<2x96xf32>, vector<2x96xf32>, vector<2x96xf32>, vector<2x96xf32>, vector<2x96xf32> -> vector<16x96xf32>
    %529 = tpu.concatenate %527, %528 in 1 : vector<16x96xf32>, vector<16x96xf32> -> vector<16x192xf32>
    %cst_114 = arith.constant dense<0.000000e+00> : vector<16x288xf32>
    %530 = tpu.matmul %529, %13, %cst_114 {dimension_numbers = #tpu.dot_dimension_numbers<[1], [0], [0], [1], [0, 0, 1, 1], [], []>} : vector<16x192xf32>, vector<192x288xf32>, vector<16x288xf32> -> vector<16x288xf32>
    %531 = vector.broadcast %14 : vector<1x288xf32> to vector<16x288xf32>
    %532 = arith.addf %530, %531 : vector<16x288xf32>
    %cst_115 = arith.constant 0.000000e+00 : f32
    %533 = vector.broadcast %cst_115 : f32 to vector<2x96xf32>
    %534 = vector.extract_strided_slice %529 {offsets = [14, 0], sizes = [2, 192], strides = [1, 1]} : vector<16x192xf32> to vector<2x192xf32>
    %cst_116 = arith.constant dense<0.000000e+00> : vector<2x288xf32>
    %535 = tpu.matmul %534, %17, %cst_116 {dimension_numbers = #tpu.dot_dimension_numbers<[1], [0], [0], [1], [0, 0, 1, 1], [], []>} : vector<2x192xf32>, vector<192x288xf32>, vector<2x288xf32> -> vector<2x288xf32>
    %536 = vector.broadcast %18 : vector<1x288xf32> to vector<2x288xf32>
    %537 = arith.addf %535, %536 : vector<2x288xf32>
    %cst_117 = arith.constant 0.000000e+00 : f32
    %538 = vector.broadcast %cst_117 : f32 to vector<2x96xf32>
    %cst_118 = arith.constant dense<0.000000e+00> : vector<2x288xf32>
    %539 = tpu.matmul %538, %19, %cst_118 {dimension_numbers = #tpu.dot_dimension_numbers<[1], [0], [0], [1], [0, 0, 1, 1], [], []>} : vector<2x96xf32>, vector<96x288xf32>, vector<2x288xf32> -> vector<2x288xf32>
    %540 = vector.extract_strided_slice %537 {offsets = [0, 0], sizes = [2, 96], strides = [1, 1]} : vector<2x288xf32> to vector<2x96xf32>
    %541 = vector.extract_strided_slice %539 {offsets = [0, 0], sizes = [2, 96], strides = [1, 1]} : vector<2x288xf32> to vector<2x96xf32>
    %542 = arith.addf %540, %541 : vector<2x96xf32>
    %543 = arith.negf %542 : vector<2x96xf32>
    %544 = math.exp %543 : vector<2x96xf32>
    %cst_119 = arith.constant 1.000000e+00 : f32
    %545 = vector.broadcast %cst_119 : f32 to vector<2x96xf32>
    %546 = arith.addf %545, %544 : vector<2x96xf32>
    %547 = arith.divf %545, %546 : vector<2x96xf32>
    %548 = vector.extract_strided_slice %537 {offsets = [0, 96], sizes = [2, 96], strides = [1, 1]} : vector<2x288xf32> to vector<2x96xf32>
    %549 = vector.extract_strided_slice %539 {offsets = [0, 96], sizes = [2, 96], strides = [1, 1]} : vector<2x288xf32> to vector<2x96xf32>
    %550 = arith.addf %548, %549 : vector<2x96xf32>
    %551 = arith.negf %550 : vector<2x96xf32>
    %552 = math.exp %551 : vector<2x96xf32>
    %cst_120 = arith.constant 1.000000e+00 : f32
    %553 = vector.broadcast %cst_120 : f32 to vector<2x96xf32>
    %554 = arith.addf %553, %552 : vector<2x96xf32>
    %555 = arith.divf %553, %554 : vector<2x96xf32>
    %556 = vector.extract_strided_slice %537 {offsets = [0, 192], sizes = [2, 96], strides = [1, 1]} : vector<2x288xf32> to vector<2x96xf32>
    %557 = vector.extract_strided_slice %539 {offsets = [0, 192], sizes = [2, 96], strides = [1, 1]} : vector<2x288xf32> to vector<2x96xf32>
    %558 = vector.broadcast %20 : vector<1x96xf32> to vector<2x96xf32>
    %559 = arith.addf %557, %558 : vector<2x96xf32>
    %560 = arith.mulf %547, %559 : vector<2x96xf32>
    %561 = arith.addf %556, %560 : vector<2x96xf32>
    %562 = math.tanh %561 : vector<2x96xf32>
    %cst_121 = arith.constant 1.000000e+00 : f32
    %563 = vector.broadcast %cst_121 : f32 to vector<2x96xf32>
    %564 = arith.subf %563, %555 : vector<2x96xf32>
    %565 = arith.mulf %564, %562 : vector<2x96xf32>
    %566 = arith.mulf %555, %538 : vector<2x96xf32>
    %567 = arith.addf %565, %566 : vector<2x96xf32>
    %568 = vector.extract_strided_slice %532 {offsets = [0, 0], sizes = [2, 288], strides = [1, 1]} : vector<16x288xf32> to vector<2x288xf32>
    %cst_122 = arith.constant dense<0.000000e+00> : vector<2x288xf32>
    %569 = tpu.matmul %533, %15, %cst_122 {dimension_numbers = #tpu.dot_dimension_numbers<[1], [0], [0], [1], [0, 0, 1, 1], [], []>} : vector<2x96xf32>, vector<96x288xf32>, vector<2x288xf32> -> vector<2x288xf32>
    %570 = vector.extract_strided_slice %568 {offsets = [0, 0], sizes = [2, 96], strides = [1, 1]} : vector<2x288xf32> to vector<2x96xf32>
    %571 = vector.extract_strided_slice %569 {offsets = [0, 0], sizes = [2, 96], strides = [1, 1]} : vector<2x288xf32> to vector<2x96xf32>
    %572 = arith.addf %570, %571 : vector<2x96xf32>
    %573 = arith.negf %572 : vector<2x96xf32>
    %574 = math.exp %573 : vector<2x96xf32>
    %cst_123 = arith.constant 1.000000e+00 : f32
    %575 = vector.broadcast %cst_123 : f32 to vector<2x96xf32>
    %576 = arith.addf %575, %574 : vector<2x96xf32>
    %577 = arith.divf %575, %576 : vector<2x96xf32>
    %578 = vector.extract_strided_slice %568 {offsets = [0, 96], sizes = [2, 96], strides = [1, 1]} : vector<2x288xf32> to vector<2x96xf32>
    %579 = vector.extract_strided_slice %569 {offsets = [0, 96], sizes = [2, 96], strides = [1, 1]} : vector<2x288xf32> to vector<2x96xf32>
    %580 = arith.addf %578, %579 : vector<2x96xf32>
    %581 = arith.negf %580 : vector<2x96xf32>
    %582 = math.exp %581 : vector<2x96xf32>
    %cst_124 = arith.constant 1.000000e+00 : f32
    %583 = vector.broadcast %cst_124 : f32 to vector<2x96xf32>
    %584 = arith.addf %583, %582 : vector<2x96xf32>
    %585 = arith.divf %583, %584 : vector<2x96xf32>
    %586 = vector.extract_strided_slice %568 {offsets = [0, 192], sizes = [2, 96], strides = [1, 1]} : vector<2x288xf32> to vector<2x96xf32>
    %587 = vector.extract_strided_slice %569 {offsets = [0, 192], sizes = [2, 96], strides = [1, 1]} : vector<2x288xf32> to vector<2x96xf32>
    %588 = vector.broadcast %16 : vector<1x96xf32> to vector<2x96xf32>
    %589 = arith.addf %587, %588 : vector<2x96xf32>
    %590 = arith.mulf %577, %589 : vector<2x96xf32>
    %591 = arith.addf %586, %590 : vector<2x96xf32>
    %592 = math.tanh %591 : vector<2x96xf32>
    %cst_125 = arith.constant 1.000000e+00 : f32
    %593 = vector.broadcast %cst_125 : f32 to vector<2x96xf32>
    %594 = arith.subf %593, %585 : vector<2x96xf32>
    %595 = arith.mulf %594, %592 : vector<2x96xf32>
    %596 = arith.mulf %585, %533 : vector<2x96xf32>
    %597 = arith.addf %595, %596 : vector<2x96xf32>
    %598 = vector.extract_strided_slice %532 {offsets = [2, 0], sizes = [2, 288], strides = [1, 1]} : vector<16x288xf32> to vector<2x288xf32>
    %cst_126 = arith.constant dense<0.000000e+00> : vector<2x288xf32>
    %599 = tpu.matmul %597, %15, %cst_126 {dimension_numbers = #tpu.dot_dimension_numbers<[1], [0], [0], [1], [0, 0, 1, 1], [], []>} : vector<2x96xf32>, vector<96x288xf32>, vector<2x288xf32> -> vector<2x288xf32>
    %600 = vector.extract_strided_slice %598 {offsets = [0, 0], sizes = [2, 96], strides = [1, 1]} : vector<2x288xf32> to vector<2x96xf32>
    %601 = vector.extract_strided_slice %599 {offsets = [0, 0], sizes = [2, 96], strides = [1, 1]} : vector<2x288xf32> to vector<2x96xf32>
    %602 = arith.addf %600, %601 : vector<2x96xf32>
    %603 = arith.negf %602 : vector<2x96xf32>
    %604 = math.exp %603 : vector<2x96xf32>
    %cst_127 = arith.constant 1.000000e+00 : f32
    %605 = vector.broadcast %cst_127 : f32 to vector<2x96xf32>
    %606 = arith.addf %605, %604 : vector<2x96xf32>
    %607 = arith.divf %605, %606 : vector<2x96xf32>
    %608 = vector.extract_strided_slice %598 {offsets = [0, 96], sizes = [2, 96], strides = [1, 1]} : vector<2x288xf32> to vector<2x96xf32>
    %609 = vector.extract_strided_slice %599 {offsets = [0, 96], sizes = [2, 96], strides = [1, 1]} : vector<2x288xf32> to vector<2x96xf32>
    %610 = arith.addf %608, %609 : vector<2x96xf32>
    %611 = arith.negf %610 : vector<2x96xf32>
    %612 = math.exp %611 : vector<2x96xf32>
    %cst_128 = arith.constant 1.000000e+00 : f32
    %613 = vector.broadcast %cst_128 : f32 to vector<2x96xf32>
    %614 = arith.addf %613, %612 : vector<2x96xf32>
    %615 = arith.divf %613, %614 : vector<2x96xf32>
    %616 = vector.extract_strided_slice %598 {offsets = [0, 192], sizes = [2, 96], strides = [1, 1]} : vector<2x288xf32> to vector<2x96xf32>
    %617 = vector.extract_strided_slice %599 {offsets = [0, 192], sizes = [2, 96], strides = [1, 1]} : vector<2x288xf32> to vector<2x96xf32>
    %618 = vector.broadcast %16 : vector<1x96xf32> to vector<2x96xf32>
    %619 = arith.addf %617, %618 : vector<2x96xf32>
    %620 = arith.mulf %607, %619 : vector<2x96xf32>
    %621 = arith.addf %616, %620 : vector<2x96xf32>
    %622 = math.tanh %621 : vector<2x96xf32>
    %cst_129 = arith.constant 1.000000e+00 : f32
    %623 = vector.broadcast %cst_129 : f32 to vector<2x96xf32>
    %624 = arith.subf %623, %615 : vector<2x96xf32>
    %625 = arith.mulf %624, %622 : vector<2x96xf32>
    %626 = arith.mulf %615, %597 : vector<2x96xf32>
    %627 = arith.addf %625, %626 : vector<2x96xf32>
    %628 = vector.extract_strided_slice %532 {offsets = [4, 0], sizes = [2, 288], strides = [1, 1]} : vector<16x288xf32> to vector<2x288xf32>
    %cst_130 = arith.constant dense<0.000000e+00> : vector<2x288xf32>
    %629 = tpu.matmul %627, %15, %cst_130 {dimension_numbers = #tpu.dot_dimension_numbers<[1], [0], [0], [1], [0, 0, 1, 1], [], []>} : vector<2x96xf32>, vector<96x288xf32>, vector<2x288xf32> -> vector<2x288xf32>
    %630 = vector.extract_strided_slice %628 {offsets = [0, 0], sizes = [2, 96], strides = [1, 1]} : vector<2x288xf32> to vector<2x96xf32>
    %631 = vector.extract_strided_slice %629 {offsets = [0, 0], sizes = [2, 96], strides = [1, 1]} : vector<2x288xf32> to vector<2x96xf32>
    %632 = arith.addf %630, %631 : vector<2x96xf32>
    %633 = arith.negf %632 : vector<2x96xf32>
    %634 = math.exp %633 : vector<2x96xf32>
    %cst_131 = arith.constant 1.000000e+00 : f32
    %635 = vector.broadcast %cst_131 : f32 to vector<2x96xf32>
    %636 = arith.addf %635, %634 : vector<2x96xf32>
    %637 = arith.divf %635, %636 : vector<2x96xf32>
    %638 = vector.extract_strided_slice %628 {offsets = [0, 96], sizes = [2, 96], strides = [1, 1]} : vector<2x288xf32> to vector<2x96xf32>
    %639 = vector.extract_strided_slice %629 {offsets = [0, 96], sizes = [2, 96], strides = [1, 1]} : vector<2x288xf32> to vector<2x96xf32>
    %640 = arith.addf %638, %639 : vector<2x96xf32>
    %641 = arith.negf %640 : vector<2x96xf32>
    %642 = math.exp %641 : vector<2x96xf32>
    %cst_132 = arith.constant 1.000000e+00 : f32
    %643 = vector.broadcast %cst_132 : f32 to vector<2x96xf32>
    %644 = arith.addf %643, %642 : vector<2x96xf32>
    %645 = arith.divf %643, %644 : vector<2x96xf32>
    %646 = vector.extract_strided_slice %628 {offsets = [0, 192], sizes = [2, 96], strides = [1, 1]} : vector<2x288xf32> to vector<2x96xf32>
    %647 = vector.extract_strided_slice %629 {offsets = [0, 192], sizes = [2, 96], strides = [1, 1]} : vector<2x288xf32> to vector<2x96xf32>
    %648 = vector.broadcast %16 : vector<1x96xf32> to vector<2x96xf32>
    %649 = arith.addf %647, %648 : vector<2x96xf32>
    %650 = arith.mulf %637, %649 : vector<2x96xf32>
    %651 = arith.addf %646, %650 : vector<2x96xf32>
    %652 = math.tanh %651 : vector<2x96xf32>
    %cst_133 = arith.constant 1.000000e+00 : f32
    %653 = vector.broadcast %cst_133 : f32 to vector<2x96xf32>
    %654 = arith.subf %653, %645 : vector<2x96xf32>
    %655 = arith.mulf %654, %652 : vector<2x96xf32>
    %656 = arith.mulf %645, %627 : vector<2x96xf32>
    %657 = arith.addf %655, %656 : vector<2x96xf32>
    %658 = vector.extract_strided_slice %532 {offsets = [6, 0], sizes = [2, 288], strides = [1, 1]} : vector<16x288xf32> to vector<2x288xf32>
    %cst_134 = arith.constant dense<0.000000e+00> : vector<2x288xf32>
    %659 = tpu.matmul %657, %15, %cst_134 {dimension_numbers = #tpu.dot_dimension_numbers<[1], [0], [0], [1], [0, 0, 1, 1], [], []>} : vector<2x96xf32>, vector<96x288xf32>, vector<2x288xf32> -> vector<2x288xf32>
    %660 = vector.extract_strided_slice %658 {offsets = [0, 0], sizes = [2, 96], strides = [1, 1]} : vector<2x288xf32> to vector<2x96xf32>
    %661 = vector.extract_strided_slice %659 {offsets = [0, 0], sizes = [2, 96], strides = [1, 1]} : vector<2x288xf32> to vector<2x96xf32>
    %662 = arith.addf %660, %661 : vector<2x96xf32>
    %663 = arith.negf %662 : vector<2x96xf32>
    %664 = math.exp %663 : vector<2x96xf32>
    %cst_135 = arith.constant 1.000000e+00 : f32
    %665 = vector.broadcast %cst_135 : f32 to vector<2x96xf32>
    %666 = arith.addf %665, %664 : vector<2x96xf32>
    %667 = arith.divf %665, %666 : vector<2x96xf32>
    %668 = vector.extract_strided_slice %658 {offsets = [0, 96], sizes = [2, 96], strides = [1, 1]} : vector<2x288xf32> to vector<2x96xf32>
    %669 = vector.extract_strided_slice %659 {offsets = [0, 96], sizes = [2, 96], strides = [1, 1]} : vector<2x288xf32> to vector<2x96xf32>
    %670 = arith.addf %668, %669 : vector<2x96xf32>
    %671 = arith.negf %670 : vector<2x96xf32>
    %672 = math.exp %671 : vector<2x96xf32>
    %cst_136 = arith.constant 1.000000e+00 : f32
    %673 = vector.broadcast %cst_136 : f32 to vector<2x96xf32>
    %674 = arith.addf %673, %672 : vector<2x96xf32>
    %675 = arith.divf %673, %674 : vector<2x96xf32>
    %676 = vector.extract_strided_slice %658 {offsets = [0, 192], sizes = [2, 96], strides = [1, 1]} : vector<2x288xf32> to vector<2x96xf32>
    %677 = vector.extract_strided_slice %659 {offsets = [0, 192], sizes = [2, 96], strides = [1, 1]} : vector<2x288xf32> to vector<2x96xf32>
    %678 = vector.broadcast %16 : vector<1x96xf32> to vector<2x96xf32>
    %679 = arith.addf %677, %678 : vector<2x96xf32>
    %680 = arith.mulf %667, %679 : vector<2x96xf32>
    %681 = arith.addf %676, %680 : vector<2x96xf32>
    %682 = math.tanh %681 : vector<2x96xf32>
    %cst_137 = arith.constant 1.000000e+00 : f32
    %683 = vector.broadcast %cst_137 : f32 to vector<2x96xf32>
    %684 = arith.subf %683, %675 : vector<2x96xf32>
    %685 = arith.mulf %684, %682 : vector<2x96xf32>
    %686 = arith.mulf %675, %657 : vector<2x96xf32>
    %687 = arith.addf %685, %686 : vector<2x96xf32>
    %688 = vector.extract_strided_slice %532 {offsets = [8, 0], sizes = [2, 288], strides = [1, 1]} : vector<16x288xf32> to vector<2x288xf32>
    %cst_138 = arith.constant dense<0.000000e+00> : vector<2x288xf32>
    %689 = tpu.matmul %687, %15, %cst_138 {dimension_numbers = #tpu.dot_dimension_numbers<[1], [0], [0], [1], [0, 0, 1, 1], [], []>} : vector<2x96xf32>, vector<96x288xf32>, vector<2x288xf32> -> vector<2x288xf32>
    %690 = vector.extract_strided_slice %688 {offsets = [0, 0], sizes = [2, 96], strides = [1, 1]} : vector<2x288xf32> to vector<2x96xf32>
    %691 = vector.extract_strided_slice %689 {offsets = [0, 0], sizes = [2, 96], strides = [1, 1]} : vector<2x288xf32> to vector<2x96xf32>
    %692 = arith.addf %690, %691 : vector<2x96xf32>
    %693 = arith.negf %692 : vector<2x96xf32>
    %694 = math.exp %693 : vector<2x96xf32>
    %cst_139 = arith.constant 1.000000e+00 : f32
    %695 = vector.broadcast %cst_139 : f32 to vector<2x96xf32>
    %696 = arith.addf %695, %694 : vector<2x96xf32>
    %697 = arith.divf %695, %696 : vector<2x96xf32>
    %698 = vector.extract_strided_slice %688 {offsets = [0, 96], sizes = [2, 96], strides = [1, 1]} : vector<2x288xf32> to vector<2x96xf32>
    %699 = vector.extract_strided_slice %689 {offsets = [0, 96], sizes = [2, 96], strides = [1, 1]} : vector<2x288xf32> to vector<2x96xf32>
    %700 = arith.addf %698, %699 : vector<2x96xf32>
    %701 = arith.negf %700 : vector<2x96xf32>
    %702 = math.exp %701 : vector<2x96xf32>
    %cst_140 = arith.constant 1.000000e+00 : f32
    %703 = vector.broadcast %cst_140 : f32 to vector<2x96xf32>
    %704 = arith.addf %703, %702 : vector<2x96xf32>
    %705 = arith.divf %703, %704 : vector<2x96xf32>
    %706 = vector.extract_strided_slice %688 {offsets = [0, 192], sizes = [2, 96], strides = [1, 1]} : vector<2x288xf32> to vector<2x96xf32>
    %707 = vector.extract_strided_slice %689 {offsets = [0, 192], sizes = [2, 96], strides = [1, 1]} : vector<2x288xf32> to vector<2x96xf32>
    %708 = vector.broadcast %16 : vector<1x96xf32> to vector<2x96xf32>
    %709 = arith.addf %707, %708 : vector<2x96xf32>
    %710 = arith.mulf %697, %709 : vector<2x96xf32>
    %711 = arith.addf %706, %710 : vector<2x96xf32>
    %712 = math.tanh %711 : vector<2x96xf32>
    %cst_141 = arith.constant 1.000000e+00 : f32
    %713 = vector.broadcast %cst_141 : f32 to vector<2x96xf32>
    %714 = arith.subf %713, %705 : vector<2x96xf32>
    %715 = arith.mulf %714, %712 : vector<2x96xf32>
    %716 = arith.mulf %705, %687 : vector<2x96xf32>
    %717 = arith.addf %715, %716 : vector<2x96xf32>
    %718 = vector.extract_strided_slice %532 {offsets = [10, 0], sizes = [2, 288], strides = [1, 1]} : vector<16x288xf32> to vector<2x288xf32>
    %cst_142 = arith.constant dense<0.000000e+00> : vector<2x288xf32>
    %719 = tpu.matmul %717, %15, %cst_142 {dimension_numbers = #tpu.dot_dimension_numbers<[1], [0], [0], [1], [0, 0, 1, 1], [], []>} : vector<2x96xf32>, vector<96x288xf32>, vector<2x288xf32> -> vector<2x288xf32>
    %720 = vector.extract_strided_slice %718 {offsets = [0, 0], sizes = [2, 96], strides = [1, 1]} : vector<2x288xf32> to vector<2x96xf32>
    %721 = vector.extract_strided_slice %719 {offsets = [0, 0], sizes = [2, 96], strides = [1, 1]} : vector<2x288xf32> to vector<2x96xf32>
    %722 = arith.addf %720, %721 : vector<2x96xf32>
    %723 = arith.negf %722 : vector<2x96xf32>
    %724 = math.exp %723 : vector<2x96xf32>
    %cst_143 = arith.constant 1.000000e+00 : f32
    %725 = vector.broadcast %cst_143 : f32 to vector<2x96xf32>
    %726 = arith.addf %725, %724 : vector<2x96xf32>
    %727 = arith.divf %725, %726 : vector<2x96xf32>
    %728 = vector.extract_strided_slice %718 {offsets = [0, 96], sizes = [2, 96], strides = [1, 1]} : vector<2x288xf32> to vector<2x96xf32>
    %729 = vector.extract_strided_slice %719 {offsets = [0, 96], sizes = [2, 96], strides = [1, 1]} : vector<2x288xf32> to vector<2x96xf32>
    %730 = arith.addf %728, %729 : vector<2x96xf32>
    %731 = arith.negf %730 : vector<2x96xf32>
    %732 = math.exp %731 : vector<2x96xf32>
    %cst_144 = arith.constant 1.000000e+00 : f32
    %733 = vector.broadcast %cst_144 : f32 to vector<2x96xf32>
    %734 = arith.addf %733, %732 : vector<2x96xf32>
    %735 = arith.divf %733, %734 : vector<2x96xf32>
    %736 = vector.extract_strided_slice %718 {offsets = [0, 192], sizes = [2, 96], strides = [1, 1]} : vector<2x288xf32> to vector<2x96xf32>
    %737 = vector.extract_strided_slice %719 {offsets = [0, 192], sizes = [2, 96], strides = [1, 1]} : vector<2x288xf32> to vector<2x96xf32>
    %738 = vector.broadcast %16 : vector<1x96xf32> to vector<2x96xf32>
    %739 = arith.addf %737, %738 : vector<2x96xf32>
    %740 = arith.mulf %727, %739 : vector<2x96xf32>
    %741 = arith.addf %736, %740 : vector<2x96xf32>
    %742 = math.tanh %741 : vector<2x96xf32>
    %cst_145 = arith.constant 1.000000e+00 : f32
    %743 = vector.broadcast %cst_145 : f32 to vector<2x96xf32>
    %744 = arith.subf %743, %735 : vector<2x96xf32>
    %745 = arith.mulf %744, %742 : vector<2x96xf32>
    %746 = arith.mulf %735, %717 : vector<2x96xf32>
    %747 = arith.addf %745, %746 : vector<2x96xf32>
    %748 = vector.extract_strided_slice %532 {offsets = [12, 0], sizes = [2, 288], strides = [1, 1]} : vector<16x288xf32> to vector<2x288xf32>
    %cst_146 = arith.constant dense<0.000000e+00> : vector<2x288xf32>
    %749 = tpu.matmul %747, %15, %cst_146 {dimension_numbers = #tpu.dot_dimension_numbers<[1], [0], [0], [1], [0, 0, 1, 1], [], []>} : vector<2x96xf32>, vector<96x288xf32>, vector<2x288xf32> -> vector<2x288xf32>
    %750 = vector.extract_strided_slice %748 {offsets = [0, 0], sizes = [2, 96], strides = [1, 1]} : vector<2x288xf32> to vector<2x96xf32>
    %751 = vector.extract_strided_slice %749 {offsets = [0, 0], sizes = [2, 96], strides = [1, 1]} : vector<2x288xf32> to vector<2x96xf32>
    %752 = arith.addf %750, %751 : vector<2x96xf32>
    %753 = arith.negf %752 : vector<2x96xf32>
    %754 = math.exp %753 : vector<2x96xf32>
    %cst_147 = arith.constant 1.000000e+00 : f32
    %755 = vector.broadcast %cst_147 : f32 to vector<2x96xf32>
    %756 = arith.addf %755, %754 : vector<2x96xf32>
    %757 = arith.divf %755, %756 : vector<2x96xf32>
    %758 = vector.extract_strided_slice %748 {offsets = [0, 96], sizes = [2, 96], strides = [1, 1]} : vector<2x288xf32> to vector<2x96xf32>
    %759 = vector.extract_strided_slice %749 {offsets = [0, 96], sizes = [2, 96], strides = [1, 1]} : vector<2x288xf32> to vector<2x96xf32>
    %760 = arith.addf %758, %759 : vector<2x96xf32>
    %761 = arith.negf %760 : vector<2x96xf32>
    %762 = math.exp %761 : vector<2x96xf32>
    %cst_148 = arith.constant 1.000000e+00 : f32
    %763 = vector.broadcast %cst_148 : f32 to vector<2x96xf32>
    %764 = arith.addf %763, %762 : vector<2x96xf32>
    %765 = arith.divf %763, %764 : vector<2x96xf32>
    %766 = vector.extract_strided_slice %748 {offsets = [0, 192], sizes = [2, 96], strides = [1, 1]} : vector<2x288xf32> to vector<2x96xf32>
    %767 = vector.extract_strided_slice %749 {offsets = [0, 192], sizes = [2, 96], strides = [1, 1]} : vector<2x288xf32> to vector<2x96xf32>
    %768 = vector.broadcast %16 : vector<1x96xf32> to vector<2x96xf32>
    %769 = arith.addf %767, %768 : vector<2x96xf32>
    %770 = arith.mulf %757, %769 : vector<2x96xf32>
    %771 = arith.addf %766, %770 : vector<2x96xf32>
    %772 = math.tanh %771 : vector<2x96xf32>
    %cst_149 = arith.constant 1.000000e+00 : f32
    %773 = vector.broadcast %cst_149 : f32 to vector<2x96xf32>
    %774 = arith.subf %773, %765 : vector<2x96xf32>
    %775 = arith.mulf %774, %772 : vector<2x96xf32>
    %776 = arith.mulf %765, %747 : vector<2x96xf32>
    %777 = arith.addf %775, %776 : vector<2x96xf32>
    %778 = vector.extract_strided_slice %532 {offsets = [14, 0], sizes = [2, 288], strides = [1, 1]} : vector<16x288xf32> to vector<2x288xf32>
    %cst_150 = arith.constant dense<0.000000e+00> : vector<2x288xf32>
    %779 = tpu.matmul %777, %15, %cst_150 {dimension_numbers = #tpu.dot_dimension_numbers<[1], [0], [0], [1], [0, 0, 1, 1], [], []>} : vector<2x96xf32>, vector<96x288xf32>, vector<2x288xf32> -> vector<2x288xf32>
    %780 = vector.extract_strided_slice %778 {offsets = [0, 0], sizes = [2, 96], strides = [1, 1]} : vector<2x288xf32> to vector<2x96xf32>
    %781 = vector.extract_strided_slice %779 {offsets = [0, 0], sizes = [2, 96], strides = [1, 1]} : vector<2x288xf32> to vector<2x96xf32>
    %782 = arith.addf %780, %781 : vector<2x96xf32>
    %783 = arith.negf %782 : vector<2x96xf32>
    %784 = math.exp %783 : vector<2x96xf32>
    %cst_151 = arith.constant 1.000000e+00 : f32
    %785 = vector.broadcast %cst_151 : f32 to vector<2x96xf32>
    %786 = arith.addf %785, %784 : vector<2x96xf32>
    %787 = arith.divf %785, %786 : vector<2x96xf32>
    %788 = vector.extract_strided_slice %778 {offsets = [0, 96], sizes = [2, 96], strides = [1, 1]} : vector<2x288xf32> to vector<2x96xf32>
    %789 = vector.extract_strided_slice %779 {offsets = [0, 96], sizes = [2, 96], strides = [1, 1]} : vector<2x288xf32> to vector<2x96xf32>
    %790 = arith.addf %788, %789 : vector<2x96xf32>
    %791 = arith.negf %790 : vector<2x96xf32>
    %792 = math.exp %791 : vector<2x96xf32>
    %cst_152 = arith.constant 1.000000e+00 : f32
    %793 = vector.broadcast %cst_152 : f32 to vector<2x96xf32>
    %794 = arith.addf %793, %792 : vector<2x96xf32>
    %795 = arith.divf %793, %794 : vector<2x96xf32>
    %796 = vector.extract_strided_slice %778 {offsets = [0, 192], sizes = [2, 96], strides = [1, 1]} : vector<2x288xf32> to vector<2x96xf32>
    %797 = vector.extract_strided_slice %779 {offsets = [0, 192], sizes = [2, 96], strides = [1, 1]} : vector<2x288xf32> to vector<2x96xf32>
    %798 = vector.broadcast %16 : vector<1x96xf32> to vector<2x96xf32>
    %799 = arith.addf %797, %798 : vector<2x96xf32>
    %800 = arith.mulf %787, %799 : vector<2x96xf32>
    %801 = arith.addf %796, %800 : vector<2x96xf32>
    %802 = math.tanh %801 : vector<2x96xf32>
    %cst_153 = arith.constant 1.000000e+00 : f32
    %803 = vector.broadcast %cst_153 : f32 to vector<2x96xf32>
    %804 = arith.subf %803, %795 : vector<2x96xf32>
    %805 = arith.mulf %804, %802 : vector<2x96xf32>
    %806 = arith.mulf %795, %777 : vector<2x96xf32>
    %807 = arith.addf %805, %806 : vector<2x96xf32>
    %808 = tpu.concatenate %807, %567 in 1 : vector<2x96xf32>, vector<2x96xf32> -> vector<2x192xf32>
    %cst_154 = arith.constant dense<0.000000e+00> : vector<2x96xf32>
    %809 = tpu.matmul %808, %21, %cst_154 {dimension_numbers = #tpu.dot_dimension_numbers<[1], [0], [0], [1], [0, 0, 1, 1], [], []>} : vector<2x192xf32>, vector<192x96xf32>, vector<2x96xf32> -> vector<2x96xf32>
    %810 = vector.broadcast %22 : vector<1x96xf32> to vector<2x96xf32>
    %811 = arith.addf %809, %810 : vector<2x96xf32>
    %cst_155 = arith.constant 0.000000e+00 : f32
    %812 = vector.broadcast %cst_155 : f32 to vector<2x96xf32>
    %813 = arith.maximumf %811, %812 : vector<2x96xf32>
    %814 = vector.extract_strided_slice %813 {offsets = [0, 0], sizes = [2, 32], strides = [1, 1]} : vector<2x96xf32> to vector<2x32xf32>
    %c0_156 = arith.constant 0 : index
    %c0_157 = arith.constant 0 : index
    %c0_158 = arith.constant 0 : index
    %815 = vector.load %arg23[%c0_156, %c0_157, %c0_158] : memref<3x2x32xf32, #tpu.memory_space<vmem>>, vector<1x2x32xf32>
    %816 = vector.shape_cast %815 : vector<1x2x32xf32> to vector<2x32xf32>
    %817 = vector.shape_cast %814 : vector<2x32xf32> to vector<1x2x32xf32>
    tpu.vector_store %arg23[%c0_156, %c0_157, %c0_158], %817 {strides = array<i32>} : memref<3x2x32xf32, #tpu.memory_space<vmem>>, vector<1x2x32xf32>,
    %818 = vector.extract_strided_slice %813 {offsets = [0, 32], sizes = [2, 32], strides = [1, 1]} : vector<2x96xf32> to vector<2x32xf32>
    %c1 = arith.constant 1 : index
    %c0_159 = arith.constant 0 : index
    %c0_160 = arith.constant 0 : index
    %819 = vector.load %arg23[%c1, %c0_159, %c0_160] : memref<3x2x32xf32, #tpu.memory_space<vmem>>, vector<1x2x32xf32>
    %820 = vector.shape_cast %819 : vector<1x2x32xf32> to vector<2x32xf32>
    %821 = vector.shape_cast %818 : vector<2x32xf32> to vector<1x2x32xf32>
    tpu.vector_store %arg23[%c1, %c0_159, %c0_160], %821 {strides = array<i32>} : memref<3x2x32xf32, #tpu.memory_space<vmem>>, vector<1x2x32xf32>,
    %822 = vector.extract_strided_slice %813 {offsets = [0, 64], sizes = [2, 32], strides = [1, 1]} : vector<2x96xf32> to vector<2x32xf32>
    %c2 = arith.constant 2 : index
    %c0_161 = arith.constant 0 : index
    %c0_162 = arith.constant 0 : index
    %823 = vector.load %arg23[%c2, %c0_161, %c0_162] : memref<3x2x32xf32, #tpu.memory_space<vmem>>, vector<1x2x32xf32>
    %824 = vector.shape_cast %823 : vector<1x2x32xf32> to vector<2x32xf32>
    %825 = vector.shape_cast %822 : vector<2x32xf32> to vector<1x2x32xf32>
    tpu.vector_store %arg23[%c2, %c0_161, %c0_162], %825 {strides = array<i32>} : memref<3x2x32xf32, #tpu.memory_space<vmem>>, vector<1x2x32xf32>,
    return
  }
}

</mosaic_0001>

<bundles_post_ra>
// kernel: conversational_context_encoder.1
= control target key start
LH: loop header
LB: loop body
LE: loop exit
PB: predicated region body
PF: predicated region fallthrough
CT: control target
= control target key end

     0   :  { %s8868_s0 = inlined_call_operand.vmem [shape: f32[8,72], index: 0, kind: input, shape index: {}]   ;;  %s8869_s1 = inlined_call_operand.vmem [shape: f32[8,1], index: 1, kind: input, shape index: {}]   ;;  %s8870_s2 = inlined_call_operand.vmem [shape: f32[2,32], index: 2, kind: input, shape index: {}]   ;;  %s8871_s3 = inlined_call_operand.hbm [shape: f32[72,96], index: 3, kind: input, shape index: {}]   ;;  %s8872_s4 = inlined_call_operand.vmem [shape: f32[1,96], index: 4, kind: input, shape index: {}]   ;;  %s8873_s5 = inlined_call_operand.hbm [shape: f32[96,288], index: 5, kind: input, shape index: {}]   ;;  %s8874_s6 = inlined_call_operand.vmem [shape: f32[1,288], index: 6, kind: input, shape index: {}]   ;;  %s8875_s7 = inlined_call_operand.hbm [shape: f32[96,288], index: 7, kind: input, shape index: {}]   ;;  %s8876_s8 = inlined_call_operand.vmem [shape: f32[1,96], index: 8, kind: input, shape index: {}]   ;;  %s8877_s9 = inlined_call_operand.hbm [shape: f32[96,288], index: 9, kind: input, shape index: {}]   ;;  %s8878_s10 = inlined_call_operand.vmem [shape: f32[1,288], index: 10, kind: input, shape index: {}]   ;;  %s8879_s11 = inlined_call_operand.hbm [shape: f32[96,288], index: 11, kind: input, shape index: {}]   ;;  %s8880_s12 = inlined_call_operand.vmem [shape: f32[1,96], index: 12, kind: input, shape index: {}]   ;;  %s8881_s13 = inlined_call_operand.hbm [shape: f32[192,288], index: 13, kind: input, shape index: {}]   ;;  %s8882_s14 = inlined_call_operand.vmem [shape: f32[1,288], index: 14, kind: input, shape index: {}]   ;;  %s8883_s15 = inlined_call_operand.hbm [shape: f32[96,288], index: 15, kind: input, shape index: {}]   ;;  %s8884_s16 = inlined_call_operand.vmem [shape: f32[1,96], index: 16, kind: input, shape index: {}]   ;;  %s8885_s17 = inlined_call_operand.hbm [shape: f32[192,288], index: 17, kind: input, shape index: {}]   ;;  %s8886_s18 = inlined_call_operand.vmem [shape: f32[1,288], index: 18, kind: input, shape index: {}]   ;;  %s8887_s19 = inlined_call_operand.hbm [shape: f32[96,288], index: 19, kind: input, shape index: {}]   ;;  %s8888_s20 = inlined_call_operand.vmem [shape: f32[1,96], index: 20, kind: input, shape index: {}]   ;;  %s8889_s21 = inlined_call_operand.hbm [shape: f32[192,96], index: 21, kind: input, shape index: {}]   ;;  %s8890_s22 = inlined_call_operand.vmem [shape: f32[1,96], index: 22, kind: input, shape index: {}]   ;;  %s8891_s23 = inlined_call_operand.hbm [shape: f32[3,2,32], index: 23, kind: output, shape index: {}]  }
   0x1   :  { %9057 = sst [smem:[#allocation90_spill]] %s8868_s0 }
   0x2   :  { %9058 = sst [smem:[#allocation91_spill]] %s8869_s1 }
   0x3   :  { %9059 = sst [smem:[#allocation92_spill]] %s8870_s2 }
   0x4   :  { %9060 = sst [smem:[#allocation93_spill]] %s8871_s3 }
   0x5   :  { %9061 = sst [smem:[#allocation94_spill]] %s8872_s4 }
   0x6   :  { %9062 = sst [smem:[#allocation95_spill]] %s8873_s5 }
   0x7   :  { %9063 = sst [smem:[#allocation96_spill]] %s8874_s6 }
   0x8   :  { %9064 = sst [smem:[#allocation97_spill]] %s8875_s7 }
   0x9   :  { %28 = vsyncpa [#allocation3], 0 }
   0xa   :  { %29 = vsyncpa [#allocation6], 0 }
   0xb   :  { %30 = vsyncpa [#allocation9], 0 }
   0xc   :  { %31 = vsyncpa [#allocation12], 0 }
   0xd   :  { %32 = vsyncpa [#allocation15], 0 }
   0xe   :  { %33 = vsyncpa [#allocation18], 0  ;;  %s9065_s24 = sld [smem:[#allocation95_spill]] }
  0x14   :  { %s60_s25 = sshll.u32 %s9065_s24, 4  ;;  %s61_s25 = int_to_ptr.hbm [resolvable:$true] %s60_s25 }
  0x15   :  { %34 = vsyncpa [#allocation4], 0  ;;  %s6083_s5 = smov [#allocation5]   ;;  %s90_s6 = sshll.u32 %s8877_s9, 4  ;;  %s91_s6 = int_to_ptr.hbm [resolvable:$true] %s90_s6 }
  0x16   :  { %s62_s1 = sshll.u32 %s6083_s5, 4  ;;  %s6084_s27 = smov 384   ;;  %s63_s1 = int_to_ptr.vmem [resolvable:$true] %s62_s1 }
  0x17   :  { %s6085_s7 = smov 24   ;;  %s6086_s28 = smov [#allocation8]  }
  0x18   :  { %68 = dma.hbm_to_vmem [thread:$0]  %s61_s25, 4608, %s63_s1, [#allocation6], %s6084_s27, %s6084_s27, %s6085_s7  }
  0x19   :  { %s92_s29 = sshll.u32 %s6086_s28, 4  ;;  %s120_s4 = sshll.u32 %s8881_s13, 4  ;;  %s93_s29 = int_to_ptr.vmem [resolvable:$true] %s92_s29  ;;  %s121_s4 = int_to_ptr.hbm [resolvable:$true] %s120_s4 }
  0x1a   :  { %98 = dma.hbm_to_vmem [thread:$0]  %s91_s6, 4608, %s93_s29, [#allocation9], %s6084_s27, %s6084_s27, %s6085_s7  }
  0x1b   :  { %s150_s24 = sshll.u32 %s8885_s17, 4  ;;  %s6087_s5 = smov [#allocation11]   ;;  %s151_s24 = int_to_ptr.hbm [resolvable:$true] %s150_s24 }
  0x1c   :  { %s122_s26 = sshll.u32 %s6087_s5, 4  ;;  %s6088_s25 = smov [#allocation14]   ;;  %s123_s26 = int_to_ptr.vmem [resolvable:$true] %s122_s26 }
  0x1d   :  { %128 = dma.hbm_to_vmem [thread:$0]  %s121_s4, 9216, %s123_s26, [#allocation12], %s6084_s27, %s6084_s27, %s6085_s7  }
  0x1e   :  { %s152_s13 = sshll.u32 %s6088_s25, 4  ;;  %s9066_s28 = sld [smem:[#allocation93_spill]]  ;;  %s153_s13 = int_to_ptr.vmem [resolvable:$true] %s152_s13 }
  0x1f   :  { %158 = dma.hbm_to_vmem [thread:$0]  %s151_s24, 9216, %s153_s13, [#allocation15], %s6084_s27, %s6084_s27, %s6085_s7  }
  0x20   :  { %s6089_s17 = smov [#allocation2]   ;;  %s9067_s9 = sld [smem:[#allocation97_spill]] }
  0x21   :  { %s47_s6 = sshll.u32 %s6089_s17, 4  ;;  %s6090_s4 = smov 128   ;;  %s48_s6 = int_to_ptr.vmem [resolvable:$true] %s47_s6 }
  0x22   :  { %s6091_s5 = smov 8   ;;  %s6092_s26 = smov [#allocation7]  }
  0x23   :  { %s77_s25 = sshll.u32 %s6092_s26, 4  ;;  %s105_s24 = sshll.u32 %s8879_s11, 4  ;;  %s78_s25 = int_to_ptr.vmem [resolvable:$true] %s77_s25  ;;  %s106_s24 = int_to_ptr.hbm [resolvable:$true] %s105_s24 }
  0x24   :  { %s45_s3 = sshll.u32 %s9066_s28, 4  ;;  %s135_s17 = sshll.u32 %s8883_s15, 4  ;;  %s46_s3 = int_to_ptr.hbm [resolvable:$true] %s45_s3  ;;  %s136_s17 = int_to_ptr.hbm [resolvable:$true] %s135_s17 }
  0x25   :  { %53 = dma.hbm_to_vmem [thread:$0]  %s46_s3, 1152, %s48_s6, [#allocation3], %s6090_s4, %s6090_s4, %s6091_s5  }
  0x26   :  { %s75_s30 = sshll.u32 %s9067_s9, 4  ;;  %s6093_s29 = smov [#allocation10]   ;;  %s76_s30 = int_to_ptr.hbm [resolvable:$true] %s75_s30 }
  0x27   :  { %83 = dma.hbm_to_vmem [thread:$0]  %s76_s30, 4608, %s78_s25, [#allocation6], %s6084_s27, %s6084_s27, %s6085_s7  }
  0x28   :  { %s107_s0 = sshll.u32 %s6093_s29, 4  ;;  %s6094_s3 = smov [#allocation13]   ;;  %s108_s0 = int_to_ptr.vmem [resolvable:$true] %s107_s0 }
  0x29   :  { %113 = dma.hbm_to_vmem [thread:$0]  %s106_s24, 4608, %s108_s0, [#allocation9], %s6084_s27, %s6084_s27, %s6085_s7  }
  0x2a   :  { %s137_s11 = sshll.u32 %s6094_s3, 4  ;;  %s165_s26 = sshll.u32 %s8887_s19, 4  ;;  %s138_s11 = int_to_ptr.vmem [resolvable:$true] %s137_s11  ;;  %s166_s26 = int_to_ptr.hbm [resolvable:$true] %s165_s26 }
  0x2b   :  { %143 = dma.hbm_to_vmem [thread:$0]  %s136_s17, 4608, %s138_s11, [#allocation12], %s6084_s27, %s6084_s27, %s6085_s7  }
  0x2c   :  { %s180_s25 = sshll.u32 %s8889_s21, 4  ;;  %s6095_s1 = smov [#allocation16]   ;;  %s181_s25 = int_to_ptr.hbm [resolvable:$true] %s180_s25 }
  0x2d   :  { %s167_s2 = sshll.u32 %s6095_s1, 4  ;;  %s6096_s24 = smov [#allocation17]   ;;  %s168_s2 = int_to_ptr.vmem [resolvable:$true] %s167_s2 }
  0x2e   :  { %173 = dma.hbm_to_vmem [thread:$0]  %s166_s26, 4608, %s168_s2, [#allocation15], %s6084_s27, %s6084_s27, %s6085_s7  }
  0x2f   :  { %s182_s19 = sshll.u32 %s6096_s24, 4  ;;  %s183_s19 = int_to_ptr.vmem [resolvable:$true] %s182_s19 }
  0x30   :  { %188 = dma.hbm_to_vmem [thread:$0]  %s181_s25, 3072, %s183_s19, [#allocation18], %s6090_s4, %s6090_s4, %s6091_s5  }
  0x31   :  { %6069 = dma.done.wait [#allocation3], 1152  }
  0x32   :  { %6070 = vsyncadd [#allocation3], 4294966144 }
  0x33   :  { %6071 = dma.done.wait [#allocation6], 9216  }
  0x34   :  { %6072 = vsyncadd [#allocation6], 4294958080 }
  0x35   :  { %6073 = dma.done.wait [#allocation9], 9216  }
  0x36   :  { %6074 = vsyncadd [#allocation9], 4294958080 }
  0x37   :  { %6075 = dma.done.wait [#allocation12], 13824  }
  0x38   :  { %6076 = vsyncadd [#allocation12], 4294953472 }
  0x39   :  { %6077 = dma.done.wait [#allocation15], 13824  }
  0x3a   :  { %6078 = vsyncadd [#allocation15], 4294953472 }
  0x3b   :  { %6079 = dma.done.wait [#allocation18], 3072  }
  0x3c   :  { %6080 = vsyncadd [#allocation18], 4294964224  ;;  %v6097_v0 = vmov 0   ;;  %s9068_s7 = sld [smem:[#allocation91_spill]]  ;;  %v242_v2 = vld [vmem:[#allocation2 + $0x40] sm:$0xff]  ;;  %v241_v3 = vld [vmem:[#allocation2 + $0x38] sm:$0xff] }
  0x3d   :  { %5302 = vset.pattern.permute.xlu0 %v6097_v0  ;;  %651 = vmatpush.msra.mxu0 %v242_v2  ;;  %v240_v5 = vld [vmem:[#allocation2 + $0x30] sm:$0xff]  ;;  %v239_v6 = vld [vmem:[#allocation2 + $0x28] sm:$0xff]  ;;  %v238_v7 = vld [vmem:[#allocation2 + $0x20] sm:$0xff]  ;;  %s9069_s13 = sld [smem:[#allocation90_spill]]  ;;  %vm640_vm0 = vcmask 588800   ;;  %s6098_s0 = smov 32  }
  0x3e   :  { %v237_v8 = vld [vmem:[#allocation2 + $0x18] sm:$0xff]  ;;  %v236_v9 = vld [vmem:[#allocation2 + $0x10] sm:$0xff]  ;;  %v235_v10 = vld [vmem:[#allocation2 + $0x8] sm:$0xff]  ;;  %s9070_s29 = sld [smem:[#allocation92_spill]]  ;;  %s6099_s3 = smov 64   ;;  %vm698_vm1 = vcmask 785408  }
  0x3f   :  { %652 = vmatpush.msra.mxu0 %v241_v3  ;;  %v234_v11 = vld [vmem:[#allocation2] sm:$0xff]  ;;  %v351_v14 = vld [vmem:[#allocation8 + $0x108] sm:$0xff]  ;;  %v276_v15 = vld [vmem:[#allocation5 + $0x100] sm:$0xff]  ;;  %s9071_s9 = sld [smem:[#allocation94_spill]]  ;;  %vm687_vm2 = vcmask 261120   ;;  %vm689_vm3 = vcmask 523264  }
  0x40   :  { %v279_v13 = vld [vmem:[#allocation5 + $0x118] sm:$0xff]  ;;  %v348_v16 = vld [vmem:[#allocation8 + $0xf0] sm:$0xff]  ;;  %v273_v17 = vld [vmem:[#allocation5 + $0xe8] sm:$0xff]  ;;  %s9119_s2 = sld [smem:[#allocation96_spill]]  ;;  %s6101_s5 = smov 96  }
  0x41   :  { %653 = vmatpush.msra.mxu0 %v240_v5  ;;  %755 = vmatpush.msra.mxu3 %v279_v13  ;;  %v345_v18 = vld [vmem:[#allocation8 + $0xd8] sm:$0xff]  ;;  %v277_v19 = vld [vmem:[#allocation5 + $0x108] sm:$0xff]  ;;  %v270_v20 = vld [vmem:[#allocation5 + $0xd0] sm:$0xff]  ;;  %s5126_s11 = sshll.u32 %s8891_s23, 4  ;;  %s5127_s11 = int_to_ptr.hbm [resolvable:$true] %s5126_s11 }
  0x42   :  { %v232_v1 = vld [vmem:[%s9068_s7] sm:$0xff]  ;;  %v278_v21 = vld [vmem:[#allocation5 + $0x110] sm:$0xff]  ;;  %v342_v22 = vld [vmem:[#allocation8 + $0xc0] sm:$0xff]  ;;  %709 = vmatpush.msra.mxu1 %v277_v19 }
  0x43   :  { %v664_v4 = vsub.f32 1.0, %v232_v1  ;;  %654 = vmatpush.msra.mxu0 %v239_v6  ;;  %v231_v12 = vld [vmem:[%s9069_s13] sm:$0xff]  ;;  %756 = vmatpush.msra.mxu3 %v276_v15  ;;  %v274_v23 = vld [vmem:[#allocation5 + $0xf0] sm:$0xff]  ;;  %v272_v26 = vld [vmem:[#allocation5 + $0xe0] sm:$0xff]  ;;  %s6102_s13 = smov [#allocation19]  }
  0x44   :  { %732 = vmatpush.msra.mxu2 %v278_v21  ;;  %v275_v24 = vld [vmem:[#allocation5 + $0xf8] sm:$0xff]  ;;  %v339_v28 = vld [vmem:[#allocation8 + $0xa8] sm:$0xff]  ;;  %710 = vmatpush.msra.mxu1 %v274_v23  ;;  %v268_v29 = vld [vmem:[#allocation5 + $0xc0] sm:$0xff]  ;;  %s5124_s28 = sshll.u32 %s6102_s13, 4  ;;  %s5125_s28 = int_to_ptr.vmem [resolvable:$true] %s5124_s28 }
  0x45   :  { %668 = vperm.xlu0 %5302, %v664_v4   ;;  %655 = vmatpush.msra.mxu0 %v238_v7  ;;  %v271_v25 = vld [vmem:[#allocation5 + $0xd8] sm:$0xff]  ;;  %v269_v30 = vld [vmem:[#allocation5 + $0xc8] sm:$0xff]  ;;  %v264_v31 = vld [vmem:[#allocation5 + $0xa0] sm:$0xff] }
  0x46   :  { %757 = vmatpush.msra.mxu3 %v273_v17  ;;  %v267_v27 = vld [vmem:[#allocation5 + $0xb8] sm:$0xff]  ;;  %733 = vmatpush.msra.mxu2 %v275_v24  ;;  %v336_v32 = vld [vmem:[#allocation8 + $0x90] sm:$0xff]  ;;  %v265_v33 = vld [vmem:[#allocation5 + $0xa8] sm:$0xff] }
  0x47   :  { %656 = vmatpush.msra.mxu0 %v237_v8  ;;  %711 = vmatpush.msra.mxu1 %v271_v25  ;;  %v266_v34 = vld [vmem:[#allocation5 + $0xb0] sm:$0xff]  ;;  %v261_v35 = vld [vmem:[#allocation5 + $0x88] sm:$0xff]  ;;  %v333_v36 = vld [vmem:[#allocation8 + $0x78] sm:$0xff] }
  0x48   :  { %758 = vmatpush.msra.mxu3 %v270_v20  ;;  %734 = vmatpush.msra.mxu2 %v272_v26  ;;  %v262_v38 = vld [vmem:[#allocation5 + $0x90] sm:$0xff]  ;;  %v263_v39 = vld [vmem:[#allocation5 + $0x98] sm:$0xff]  ;;  %v330_v41 = vld [vmem:[#allocation8 + $0x60] sm:$0xff] }
  0x49   :  { %657 = vmatpush.msra.mxu0 %v236_v9  ;;  %712 = vmatpush.msra.mxu1 %v268_v29  ;;  %v258_v40 = vld [vmem:[#allocation5 + $0x70] sm:$0xff]  ;;  %v233_v42 = vld [vmem:[%s9070_s29] sm:$0x3]  ;;  %v260_v44 = vld [vmem:[#allocation5 + $0x80] sm:$0xff] }
  0x4a   :  { %759 = vmatpush.msra.mxu3 %v267_v27  ;;  %735 = vmatpush.msra.mxu2 %v269_v30  ;;  %v259_v43 = vld [vmem:[#allocation5 + $0x78] sm:$0xff]  ;;  %v327_v46 = vld [vmem:[#allocation8 + $0x48] sm:$0xff]  ;;  %v256_v47 = vld [vmem:[#allocation5 + $0x60] sm:$0xff]  ;;  %v665_v49 = vperm.slane %v233_v42, 0  ;;  %v672_v50 = vperm.slane %v233_v42, 1 }
  0x4b   :  { %658 = vmatpush.msra.mxu0 %v235_v10  ;;  %713 = vmatpush.msra.mxu1 %v265_v33  ;;  %v255_v45 = vld [vmem:[#allocation5 + $0x58] sm:$0xff]  ;;  %v257_v48 = vld [vmem:[#allocation5 + $0x68] sm:$0xff]  ;;  %v252_v51 = vld [vmem:[#allocation5 + $0x40] sm:$0xff] }
  0x4c   :  { %760 = vmatpush.msra.mxu3 %v264_v31  ;;  %736 = vmatpush.msra.mxu2 %v266_v34  ;;  %v324_v52 = vld [vmem:[#allocation8 + $0x30] sm:$0xff]  ;;  %v253_v53 = vld [vmem:[#allocation5 + $0x48] sm:$0xff]  ;;  %v321_v56 = vld [vmem:[#allocation8 + $0x18] sm:$0xff] }
  0x4d   :  { %675 = vperm.xlu0 %5302, %v232_v1   ;;  %659 = vmatpush.msra.mxu0 %v234_v11  ;;  %v254_v54 = vld [vmem:[#allocation5 + $0x50] sm:$0xff]  ;;  %v249_v55 = vld [vmem:[#allocation5 + $0x28] sm:$0xff]  ;;  %v251_v59 = vld [vmem:[#allocation5 + $0x38] sm:$0xff] }
  0x4e   :  { %5144 = vmatmul.msk.f32.vlgmr.msra.gmra.mxu0 %vm640_vm0, %v231_v12  ;;  %761 = vmatpush.msra.mxu3 %v261_v35  ;;  %v250_v58 = vld [vmem:[#allocation5 + $0x30] sm:$0xff]  ;;  %v318_v63 = vld [vmem:[#allocation8] sm:$0xff]  ;;  %v6293_v0 = vld [vmem:[#allocation7 + $0x108] sm:$0xff] }
  0x4f   :  { %785 = vmatpush.msrb.mxu0 %v351_v14  ;;  %714 = vmatpush.msra.mxu1 %v262_v38  ;;  %v246_v62 = vld [vmem:[#allocation5 + $0x10] sm:$0xff]  ;;  %v247_v3 = vld [vmem:[#allocation5 + $0x18] sm:$0xff]  ;;  %v248_v5 = vld [vmem:[#allocation5 + $0x20] sm:$0xff] }
  0x50   :  { %737 = vmatpush.msra.mxu2 %v263_v39  ;;  %762 = vmatpush.msra.mxu3 %v258_v40  ;;  %v6297_v2 = vld [vmem:[#allocation7 + $0x110] sm:$0xff]  ;;  %v6304_v6 = vld [vmem:[#allocation7 + $0xf8] sm:$0xff]  ;;  %v244_v7 = vld [vmem:[#allocation5] sm:$0xff] }
  0x51   :  { %786 = vmatpush.msrb.mxu0 %v348_v16  ;;  %715 = vmatpush.msra.mxu1 %v259_v43  ;;  %v6299_v4 = vld [vmem:[#allocation7 + $0xf0] sm:$0xff]  ;;  %v6307_v8 = vld [vmem:[#allocation7 + $0xd8] sm:$0xff]  ;;  %v245_v9 = vld [vmem:[#allocation5 + $0x8] sm:$0xff] }
  0x52   :  { %738 = vmatpush.msra.mxu2 %v260_v44  ;;  %763 = vmatpush.msra.mxu3 %v255_v45  ;;  %v6310_v10 = vld [vmem:[#allocation7 + $0xe0] sm:$0xff]  ;;  %v352_v11 = vld [vmem:[#allocation8 + $0x110] sm:$0xff]  ;;  %v353_v13 = vld [vmem:[#allocation8 + $0x118] sm:$0xff] }
  0x53   :  { %787 = vmatpush.msrb.mxu0 %v345_v18  ;;  %716 = vmatpush.msra.mxu1 %v256_v47  ;;  %v6313_v12 = vld [vmem:[#allocation7 + $0xc0] sm:$0xff]  ;;  %v6316_v14 = vld [vmem:[#allocation7 + $0xc8] sm:$0xff]  ;;  %v349_v15 = vld [vmem:[#allocation8 + $0xf8] sm:$0xff] }
  0x54   :  { %739 = vmatpush.msra.mxu2 %v257_v48  ;;  %764 = vmatpush.msra.mxu3 %v252_v51  ;;  %v6319_v16 = vld [vmem:[#allocation7 + $0xa8] sm:$0xff]  ;;  %v6322_v17 = vld [vmem:[#allocation7 + $0xb0] sm:$0xff]  ;;  %v350_v18 = vld [vmem:[#allocation8 + $0x100] sm:$0xff] }
  0x55   :  { %788 = vmatpush.msrb.mxu0 %v342_v22  ;;  %717 = vmatpush.msra.mxu1 %v253_v53  ;;  %v6325_v19 = vld [vmem:[#allocation7 + $0x90] sm:$0xff]  ;;  %v346_v20 = vld [vmem:[#allocation8 + $0xe0] sm:$0xff]  ;;  %v6330_v21 = vld [vmem:[#allocation7 + $0x98] sm:$0xff] }
  0x56   :  { %740 = vmatpush.msra.mxu2 %v254_v54  ;;  %765 = vmatpush.msra.mxu3 %v249_v55  ;;  %v347_v22 = vld [vmem:[#allocation8 + $0xe8] sm:$0xff]  ;;  %v6333_v23 = vld [vmem:[#allocation7 + $0x78] sm:$0xff]  ;;  %v6336_v25 = vld [vmem:[#allocation7 + $0x80] sm:$0xff] }
  0x57   :  { %789 = vmatpush.msrb.mxu0 %v339_v28  ;;  %718 = vmatpush.msra.mxu1 %v250_v58  ;;  %v343_v24 = vld [vmem:[#allocation8 + $0xc8] sm:$0xff]  ;;  %v344_v26 = vld [vmem:[#allocation8 + $0xd0] sm:$0xff]  ;;  %v6339_v27 = vld [vmem:[#allocation7 + $0x60] sm:$0xff] }
  0x58   :  { %741 = vmatpush.msra.mxu2 %v251_v59  ;;  %766 = vmatpush.msra.mxu3 %v246_v62  ;;  %v340_v28 = vld [vmem:[#allocation8 + $0xb0] sm:$0xff]  ;;  %v6342_v29 = vld [vmem:[#allocation7 + $0x68] sm:$0xff]  ;;  %v341_v30 = vld [vmem:[#allocation8 + $0xb8] sm:$0xff] }
  0x59   :  { %790 = vmatpush.msrb.mxu0 %v336_v32  ;;  %719 = vmatpush.msra.mxu1 %v247_v3  ;;  %v6345_v31 = vld [vmem:[#allocation7 + $0x48] sm:$0xff]  ;;  %v337_v32 = vld [vmem:[#allocation8 + $0x98] sm:$0xff]  ;;  %v6348_v33 = vld [vmem:[#allocation7 + $0x50] sm:$0xff] }
  0x5a   :  { %857 = vmatpush.msrb.mxu3 %v6293_v0  ;;  %742 = vmatpush.msra.mxu2 %v248_v5  ;;  %v338_v34 = vld [vmem:[#allocation8 + $0xa0] sm:$0xff]  ;;  %v6351_v35 = vld [vmem:[#allocation7 + $0x30] sm:$0xff]  ;;  %v335_v38 = vld [vmem:[#allocation8 + $0x88] sm:$0xff] }
  0x5b   :  { %791 = vmatpush.msrb.mxu0 %v333_v36  ;;  %720 = vmatpush.msra.mxu1 %v244_v7  ;;  %v6354_v36 = vld [vmem:[#allocation7 + $0x38] sm:$0xff]  ;;  %v6365_v42 = vld [vmem:[#allocation7 + $0x20] sm:$0xff]  ;;  %v331_v44 = vld [vmem:[#allocation8 + $0x68] sm:$0xff] }
  0x5c   :  { %858 = vmatpush.msrb.mxu3 %v6299_v4  ;;  %743 = vmatpush.msra.mxu2 %v245_v9  ;;  %v6359_v39 = vld [vmem:[#allocation7 + $0x18] sm:$0xff]  ;;  %v332_v45 = vld [vmem:[#allocation8 + $0x70] sm:$0xff]  ;;  %v6376_v47 = vld [vmem:[#allocation7 + $0x8] sm:$0xff] }
  0x5d   :  { %792 = vmatpush.msrb.mxu0 %v330_v41  ;;  %808 = vmatpush.msrb.mxu1 %v352_v11  ;;  %v5318_v40 = vld [vmem:[%s9071_s9] ss:$0 sm:$0xff]  ;;  %9073 = vst [vmem:[#allocation28_spill] sm:$0xff] %v6376_v47  ;;  %v6382_v48 = vld [vmem:[#allocation10 + $0x110] sm:$0xff]  ;;  %v6390_v53 = vld [vmem:[#allocation10 + $0x100] sm:$0xff] }
  0x5e   :  { %859 = vmatpush.msrb.mxu3 %v6307_v8  ;;  %831 = vmatpush.msrb.mxu2 %v353_v13  ;;  %v329_v51 = vld [vmem:[#allocation8 + $0x58] sm:$0xff]  ;;  %v326_v55 = vld [vmem:[#allocation8 + $0x40] sm:$0xff]  ;;  %v323_v59 = vld [vmem:[#allocation8 + $0x28] sm:$0xff] }
  0x5f   :  { %793 = vmatpush.msrb.mxu0 %v327_v46  ;;  %809 = vmatpush.msrb.mxu1 %v349_v15  ;;  %v6374_v46 = vld [vmem:[#allocation7] sm:$0xff]  ;;  %v325_v54 = vld [vmem:[#allocation8 + $0x38] sm:$0xff]  ;;  %v319_v62 = vld [vmem:[#allocation8 + $0x8] sm:$0xff] }
  0x60   :  { %860 = vmatpush.msrb.mxu3 %v6313_v12  ;;  %832 = vmatpush.msrb.mxu2 %v350_v18  ;;  %9072 = vst [vmem:[#allocation27_spill] sm:$0xff] %v6374_v46  ;;  %v322_v58 = vld [vmem:[#allocation8 + $0x20] sm:$0xff]  ;;  %v6406_v3 = vld [vmem:[#allocation7 + $0x118] sm:$0xff]  ;;  %v6408_v5 = vld [vmem:[#allocation10 + $0x108] sm:$0xff] }
  0x61   :  { %794 = vmatpush.msrb.mxu0 %v324_v52  ;;  %810 = vmatpush.msrb.mxu1 %v346_v20  ;;  %v6388_v52 = vld [vmem:[#allocation10 + $0xf8] sm:$0xff]  ;;  %v6412_v7 = vld [vmem:[#allocation10 + $0xb0] sm:$0xff]  ;;  %v6416_v11 = vld [vmem:[#allocation7 + $0x100] sm:$0xff] }
  0x62   :  { %861 = vmatpush.msrb.mxu3 %v6319_v16  ;;  %833 = vmatpush.msrb.mxu2 %v347_v22  ;;  %9074 = vst [vmem:[#allocation29_spill] sm:$0xff] %v6412_v7  ;;  %v6414_v9 = vld [vmem:[#allocation10 + $0xb8] sm:$0xff]  ;;  %v6418_v13 = vld [vmem:[#allocation10 + $0xf0] sm:$0xff]  ;;  %v6424_v18 = vld [vmem:[#allocation10 + $0xa0] sm:$0xff] }
  0x63   :  { %795 = vmatpush.msrb.mxu0 %v321_v56  ;;  %811 = vmatpush.msrb.mxu1 %v343_v24  ;;  %v6394_v56 = vld [vmem:[#allocation10 + $0xe0] sm:$0xff]  ;;  %9075 = vst [vmem:[#allocation30_spill] sm:$0xff] %v6414_v9  ;;  %v6422_v15 = vld [vmem:[#allocation10 + $0x98] sm:$0xff]  ;;  %v6428_v20 = vld [vmem:[#allocation7 + $0xe8] sm:$0xff] }
  0x64   :  { %862 = vmatpush.msrb.mxu3 %v6325_v19  ;;  %834 = vmatpush.msrb.mxu2 %v344_v26  ;;  %9076 = vst [vmem:[#allocation31_spill] sm:$0xff] %v6422_v15  ;;  %v6430_v22 = vld [vmem:[#allocation10 + $0xd8] sm:$0xff]  ;;  %v6434_v24 = vld [vmem:[#allocation10 + $0x80] sm:$0xff]  ;;  %v6436_v26 = vld [vmem:[#allocation10 + $0x88] sm:$0xff] }
  0x65   :  { %796 = vmatpush.msrb.mxu0 %v318_v63  ;;  %812 = vmatpush.msrb.mxu1 %v340_v28  ;;  %v320_v63 = vld [vmem:[#allocation8 + $0x10] sm:$0xff]  ;;  %9077 = vst [vmem:[#allocation32_spill] sm:$0xff] %v6424_v18 }
  0x66   :  { %863 = vmatpush.msrb.mxu3 %v6333_v23  ;;  %835 = vmatpush.msrb.mxu2 %v341_v30  ;;  %9078 = vst [vmem:[#allocation33_spill] sm:$0xff] %v6434_v24  ;;  %v6440_v28 = vld [vmem:[#allocation7 + $0xd0] sm:$0xff]  ;;  %v6442_v30 = vld [vmem:[#allocation10 + $0xc0] sm:$0xff] }
  0x67   :  { %877 = vmatpush.msra.mxu0 %v6297_v2  ;;  %813 = vmatpush.msrb.mxu1 %v337_v32  ;;  %9079 = vst [vmem:[#allocation34_spill] sm:$0xff] %v6436_v26  ;;  %v6446_v32 = vld [vmem:[#allocation10 + $0x68] sm:$0xff] }
  0x68   :  { %864 = vmatpush.msrb.mxu3 %v6339_v27  ;;  %836 = vmatpush.msrb.mxu2 %v338_v34  ;;  %9080 = vst [vmem:[#allocation35_spill] sm:$0xff] %v6446_v32  ;;  %v6448_v34 = vld [vmem:[#allocation10 + $0x70] sm:$0xff] }
  0x69   :  { %878 = vmatpush.msra.mxu0 %v6304_v6  ;;  %9081 = vst [vmem:[#allocation36_spill] sm:$0xff] %v6448_v34 }
  0x6a   :  { %865 = vmatpush.msrb.mxu3 %v6345_v31  ;;  %837 = vmatpush.msrb.mxu2 %v335_v38  ;;  %v6454_v38 = vld [vmem:[#allocation10 + $0xa8] sm:$0xff] }
  0x6b   :  { %879 = vmatpush.msra.mxu0 %v6310_v10 }
  0x6c   :  { %866 = vmatpush.msrb.mxu3 %v6351_v35  ;;  %838 = vmatpush.msrb.mxu2 %v332_v45  ;;  %v6466_v45 = vld [vmem:[#allocation10 + $0x90] sm:$0xff] }
  0x6d   :  { %880 = vmatpush.msra.mxu0 %v6316_v14 }
  0x6e   :  { %867 = vmatpush.msrb.mxu3 %v6359_v39  ;;  %839 = vmatpush.msrb.mxu2 %v329_v51  ;;  %v6472_v51 = vld [vmem:[#allocation10 + $0x40] sm:$0xff] }
  0x6f   :  { %881 = vmatpush.msra.mxu0 %v6322_v17  ;;  %9085 = vst [vmem:[#allocation40_spill] sm:$0xff] %v6472_v51 }
  0x70   :  { %868 = vmatpush.msrb.mxu3 %v6374_v46  ;;  %840 = vmatpush.msrb.mxu2 %v326_v55  ;;  %v6478_v55 = vld [vmem:[#allocation10 + $0x78] sm:$0xff] }
  0x71   :  { %882 = vmatpush.msra.mxu0 %v6330_v21 }
  0x72   :  { %841 = vmatpush.msrb.mxu2 %v323_v59  ;;  %v6484_v59 = vld [vmem:[#allocation10 + $0x28] sm:$0xff] }
  0x73   :  { %883 = vmatpush.msra.mxu0 %v6336_v25  ;;  %9087 = vst [vmem:[#allocation42_spill] sm:$0xff] %v6484_v59 }
  0x74   :  { %842 = vmatpush.msrb.mxu2 %v320_v63  ;;  %v6490_v63 = vld [vmem:[#allocation10 + $0x60] sm:$0xff] }
  0x75   :  { %884 = vmatpush.msra.mxu0 %v6342_v29 }
  0x77   :  { %885 = vmatpush.msra.mxu0 %v6348_v33 }
  0x79   :  { %886 = vmatpush.msra.mxu0 %v6354_v36 }
  0x7b   :  { %887 = vmatpush.msra.mxu0 %v6365_v42 }
  0x7d   :  { %888 = vmatpush.msra.mxu0 %v6376_v47 }
  0xb7   :  { %v669_v37 = vpop.permute.xlu0 %668 }
  0xb8   :  { %v671_v60 = vmul.f32 %v669_v37, %v665_v49  ;;  %v334_v37 = vld [vmem:[#allocation8 + $0x80] sm:$0xff]  ;;  %v6384_v49 = vld [vmem:[#allocation10 + $0x118] sm:$0xff] }
  0xb9   :  { %814 = vmatpush.msrb.mxu1 %v334_v37  ;;  %v6452_v37 = vld [vmem:[#allocation7 + $0xb8] sm:$0xff] }
  0xbb   :  { %815 = vmatpush.msrb.mxu1 %v331_v44  ;;  %v6464_v44 = vld [vmem:[#allocation7 + $0xa0] sm:$0xff] }
  0xbf   :  { %v676_v57 = vpop.permute.xlu0 %675 }
  0xc0   :  { %v678_v61 = vmul.f32 %v676_v57, %v672_v50  ;;  %v328_v50 = vld [vmem:[#allocation8 + $0x50] sm:$0xff]  ;;  %v6396_v57 = vld [vmem:[#allocation10 + $0xe8] sm:$0xff] }
  0xc1   :  { %816 = vmatpush.msrb.mxu1 %v328_v50  ;;  %v6470_v50 = vld [vmem:[#allocation10 + $0x38] sm:$0xff] }
  0xc2   :  { %v6295_v1 = vadd.f32 %v678_v61, %v671_v60  ;;  %v6400_v60 = vld [vmem:[#allocation10 + $0xc8] sm:$0xff]  ;;  %v6402_v61 = vld [vmem:[#allocation10 + $0xd0] sm:$0xff]  ;;  %9084 = vst [vmem:[#allocation39_spill] sm:$0xff] %v6470_v50 }
  0xc3   :  { %817 = vmatpush.msrb.mxu1 %v325_v54  ;;  %v6476_v54 = vld [vmem:[#allocation7 + $0x88] sm:$0xff] }
  0xc4   :  { %681 = vrot.lane.b32.xlu1 %v6295_v1, %s6098_s0 }
  0xc5   :  { %818 = vmatpush.msrb.mxu1 %v322_v58  ;;  %v6482_v58 = vld [vmem:[#allocation10 + $0x20] sm:$0xff] }
  0xc6   :  { %9086 = vst [vmem:[#allocation41_spill] sm:$0xff] %v6482_v58 }
  0xc7   :  { %819 = vmatpush.msrb.mxu1 %v319_v62  ;;  %v6488_v62 = vld [vmem:[#allocation7 + $0x70] sm:$0xff] }
  0xcb   :  { %v661_v41 = vpop.f32.mrf.mxu0 }
  0xcc   :  { %684 = vrot.lane.b32.xlu1 %v6295_v1, %s6099_s3  ;;  %v6367_v43 = vadd.f32 %v5318_v40, %v661_v41  ;;  %v6458_v40 = vld [vmem:[#allocation10 + $0x50] sm:$0xff]  ;;  %v6460_v41 = vld [vmem:[#allocation10 + $0x58] sm:$0xff] }
  0xcd   :  { %9082 = vst [vmem:[#allocation37_spill] sm:$0xff] %v6458_v40 }
  0xce   :  { %5145 = vmatmul.msk.f32.vlgmr.msra.gmra.mxu1 %vm698_vm1, %v6367_v43  ;;  %5147 = vmatmul.msk.f32.vlgmr.msra.gmra.mxu2 %vm698_vm1, %v6367_v43  ;;  %9083 = vst [vmem:[#allocation38_spill] sm:$0xff] %v6460_v41 }
  0xcf   :  { %5149 = vmatmul.msk.f32.vlgmr.msra.gmra.mxu3 %vm698_vm1, %v6367_v43  ;;  %5151 = vmatmul.msk.f32.vlgmr.msrb.gmra.mxu0 %vm698_vm1, %v6367_v43 }
  0xd0   :  { %1018 = vmatpush.msra.mxu3 %v6382_v48  ;;  %1038 = vmatpush.msrb.mxu0 %v6384_v49 }
  0xd1   :  { %897 = vmatpush.msra.mxu1 %v6406_v3  ;;  %998 = vmatpush.msra.mxu2 %v6408_v5 }
  0xd2   :  { %1019 = vmatpush.msra.mxu3 %v6388_v52  ;;  %1039 = vmatpush.msrb.mxu0 %v6390_v53 }
  0xd3   :  { %898 = vmatpush.msra.mxu1 %v6416_v11  ;;  %999 = vmatpush.msra.mxu2 %v6418_v13 }
  0xd4   :  { %1020 = vmatpush.msra.mxu3 %v6394_v56  ;;  %1040 = vmatpush.msrb.mxu0 %v6396_v57 }
  0xd5   :  { %899 = vmatpush.msra.mxu1 %v6428_v20  ;;  %1000 = vmatpush.msra.mxu2 %v6430_v22 }
  0xd6   :  { %1021 = vmatpush.msra.mxu3 %v6400_v60  ;;  %1041 = vmatpush.msrb.mxu0 %v6402_v61 }
  0xd7   :  { %900 = vmatpush.msra.mxu1 %v6440_v28  ;;  %1001 = vmatpush.msra.mxu2 %v6442_v30 }
  0xd8   :  { %1022 = vmatpush.msra.mxu3 %v6412_v7  ;;  %1042 = vmatpush.msrb.mxu0 %v6414_v9  ;;  %v5320_v7 = vld [vmem:[%s8880_s12] ss:$0 sm:$0xff] }
  0xd9   :  { %901 = vmatpush.msra.mxu1 %v6452_v37  ;;  %1002 = vmatpush.msra.mxu2 %v6454_v38 }
  0xda   :  { %1023 = vmatpush.msra.mxu3 %v6422_v15  ;;  %1043 = vmatpush.msrb.mxu0 %v6424_v18 }
  0xdb   :  { %902 = vmatpush.msra.mxu1 %v6464_v44  ;;  %1003 = vmatpush.msra.mxu2 %v6466_v45 }
  0xdc   :  { %1024 = vmatpush.msra.mxu3 %v6434_v24  ;;  %1044 = vmatpush.msrb.mxu0 %v6436_v26  ;;  %v5319_v24 = vld [vmem:[%s8876_s8] ss:$0 sm:$0xff] }
  0xdd   :  { %903 = vmatpush.msra.mxu1 %v6476_v54  ;;  %1004 = vmatpush.msra.mxu2 %v6478_v55 }
  0xde   :  { %1025 = vmatpush.msra.mxu3 %v6446_v32  ;;  %1045 = vmatpush.msrb.mxu0 %v6448_v34  ;;  %v6500_v34 = vld [vmem:[#allocation7 + $0x58] sm:$0xff]  ;;  %v6510_v32 = vld [vmem:[#allocation10 + $0x30] sm:$0xff] }
  0xdf   :  { %904 = vmatpush.msra.mxu1 %v6488_v62  ;;  %1005 = vmatpush.msra.mxu2 %v6490_v63 }
  0xe0   :  { %1026 = vmatpush.msra.mxu3 %v6458_v40  ;;  %1046 = vmatpush.msrb.mxu0 %v6460_v41  ;;  %v6494_v41 = vld [vmem:[#allocation10 + $0x8] sm:$0xff]  ;;  %v6496_v40 = vld [vmem:[#allocation10 + $0x10] sm:$0xff] }
  0xe1   :  { %9088 = vst [vmem:[#allocation43_spill] sm:$0xff] %v6494_v41  ;;  %905 = vmatpush.msra.mxu1 %v6500_v34  ;;  %955 = vrot.lane.b32.xlu2 %v5319_v24, %s6099_s3 }
  0xe2   :  { %1027 = vmatpush.msra.mxu3 %v6470_v50  ;;  %1047 = vmatpush.msrb.mxu0 %v6472_v51  ;;  %9089 = vst [vmem:[#allocation44_spill] sm:$0xff] %v6496_v40  ;;  %v6502_v50 = vld [vmem:[#allocation10 + $0x48] sm:$0xff]  ;;  %v6508_v51 = vld [vmem:[#allocation7 + $0x40] sm:$0xff] }
  0xe3   :  { %1006 = vmatpush.msra.mxu2 %v6502_v50  ;;  %906 = vmatpush.msra.mxu1 %v6508_v51 }
  0xe4   :  { %1028 = vmatpush.msra.mxu3 %v6482_v58  ;;  %1048 = vmatpush.msrb.mxu0 %v6484_v59  ;;  %v6514_v59 = vld [vmem:[#allocation7 + $0x28] sm:$0xff]  ;;  %v6516_v58 = vld [vmem:[#allocation10 + $0x18] sm:$0xff] }
  0xe5   :  { %9090 = vst [vmem:[#allocation45_spill] sm:$0xff] %v6514_v59  ;;  %1007 = vmatpush.msra.mxu2 %v6510_v32  ;;  %907 = vmatpush.msra.mxu1 %v6514_v59 }
  0xe6   :  { %1029 = vmatpush.msra.mxu3 %v6494_v41  ;;  %1049 = vmatpush.msrb.mxu0 %v6496_v40  ;;  %9091 = vst [vmem:[#allocation46_spill] sm:$0xff] %v6516_v58  ;;  %v6520_v41 = vld [vmem:[#allocation7 + $0x10] sm:$0xff]  ;;  %v6522_v40 = vld [vmem:[#allocation10] sm:$0xff] }
  0xe7   :  { %9092 = vst [vmem:[#allocation47_spill] sm:$0xff] %v6520_v41  ;;  %1008 = vmatpush.msra.mxu2 %v6516_v58  ;;  %908 = vmatpush.msra.mxu1 %v6520_v41 }
  0xe8   :  { %9093 = vst [vmem:[#allocation48_spill] sm:$0xff] %v6522_v40 }
  0xe9   :  { %1009 = vmatpush.msra.mxu2 %v6522_v40  ;;  %1102 = vrot.lane.b32.xlu2 %v5320_v7, %s6099_s3 }
 0x136   :  { %v682_v26 = vpop.permute.xlu1 %681 }
 0x137   :  { %v688_v18 = vsel %vm687_vm2, %v6295_v1, %v682_v26  ;;  %v8924_v1 = vmov 0.0  }
 0x13e   :  { %v685_v15 = vpop.permute.xlu1 %684 }
 0x13f   :  { %v690_v9 = vsel %vm689_vm3, %v688_v18, %v685_v15 }
 0x140   :  { %5146 = vmatmul.msk.f32.gmra.mxu1 %vm698_vm1, %v690_v9  ;;  %5148 = vmatmul.msk.f32.gmra.mxu2 %vm698_vm1, %v690_v9 }
 0x141   :  { %5150 = vmatmul.msk.f32.gmra.mxu3 %vm698_vm1, %v690_v9  ;;  %5152 = vmatmul.msk.f32.gmra.mxu0 %vm698_vm1, %v690_v9 }
 0x148   :  { %5153 = vmatmul.msk.f32.vlgmr.msrb.gmra.mxu1 %vm698_vm1, %v6367_v43  ;;  %5155 = vmatmul.msk.f32.vlgmr.msrb.gmra.mxu2 %vm698_vm1, %v6367_v43  ;;  %v9094_v43 = vld [vmem:[#allocation29_spill] sm:$0xff] }
 0x149   :  { %869 = vmatmul.f32.vlgmr.msrb.gmra.mxu3 %v8924_v1  ;;  %889 = vmatmul.f32.vlgmr.msra.gmra.mxu0 %v8924_v1 }
 0x14a   :  { %1156 = vmatpush.msrb.mxu1 %v6293_v0  ;;  %1176 = vmatpush.msrb.mxu2 %v6297_v2 }
 0x14b   :  { %1196 = vmatpush.msrb.mxu3 %v6406_v3  ;;  %1315 = vmatpush.msra.mxu0 %v6408_v5 }
 0x14c   :  { %1157 = vmatpush.msrb.mxu1 %v6299_v4  ;;  %1177 = vmatpush.msrb.mxu2 %v6304_v6 }
 0x14d   :  { %1197 = vmatpush.msrb.mxu3 %v6416_v11  ;;  %1316 = vmatpush.msra.mxu0 %v6418_v13 }
 0x14e   :  { %1158 = vmatpush.msrb.mxu1 %v6307_v8  ;;  %1178 = vmatpush.msrb.mxu2 %v6310_v10 }
 0x14f   :  { %1198 = vmatpush.msrb.mxu3 %v6428_v20  ;;  %1317 = vmatpush.msra.mxu0 %v6430_v22 }
 0x150   :  { %5154 = vmatmul.msk.f32.gmra.mxu1 %vm698_vm1, %v690_v9  ;;  %5156 = vmatmul.msk.f32.gmra.mxu2 %vm698_vm1, %v690_v9  ;;  %v6659_v9 = vpop.permute.xlu2 %955 }
 0x151   :  { %1030 = vmatmul.f32.vlgmr.msra.gmra.mxu3 %v8924_v1  ;;  %1050 = vmatmul.f32.vlgmr.msrb.gmra.mxu0 %v8924_v1 }
 0x152   :  { %1159 = vmatpush.msrb.mxu1 %v6313_v12  ;;  %1179 = vmatpush.msrb.mxu2 %v6316_v14 }
 0x153   :  { %1199 = vmatpush.msrb.mxu3 %v6440_v28  ;;  %1318 = vmatpush.msra.mxu0 %v6442_v30 }
 0x154   :  { %1160 = vmatpush.msrb.mxu1 %v6319_v16  ;;  %1180 = vmatpush.msrb.mxu2 %v6322_v17 }
 0x155   :  { %1200 = vmatpush.msrb.mxu3 %v6452_v37  ;;  %1319 = vmatpush.msra.mxu0 %v6454_v38 }
 0x156   :  { %1161 = vmatpush.msrb.mxu1 %v6325_v19  ;;  %1181 = vmatpush.msrb.mxu2 %v6330_v21 }
 0x157   :  { %1201 = vmatpush.msrb.mxu3 %v6464_v44  ;;  %1320 = vmatpush.msra.mxu0 %v6466_v45 }
 0x158   :  { %909 = vmatmul.f32.vlgmr.msra.gmra.mxu1 %v8924_v1  ;;  %1010 = vmatmul.f32.vlgmr.msra.gmra.mxu2 %v8924_v1 }
 0x159   :  { %1162 = vmatpush.msrb.mxu1 %v6333_v23  ;;  %1182 = vmatpush.msrb.mxu2 %v6336_v25 }
 0x15a   :  { %1202 = vmatpush.msrb.mxu3 %v6476_v54  ;;  %1321 = vmatpush.msra.mxu0 %v6478_v55 }
 0x15b   :  { %1163 = vmatpush.msrb.mxu1 %v6339_v27  ;;  %1183 = vmatpush.msrb.mxu2 %v6342_v29 }
 0x15c   :  { %1203 = vmatpush.msrb.mxu3 %v6488_v62  ;;  %1322 = vmatpush.msra.mxu0 %v6490_v63 }
 0x15d   :  { %1164 = vmatpush.msrb.mxu1 %v6345_v31  ;;  %1184 = vmatpush.msrb.mxu2 %v6348_v33 }
 0x15e   :  { %1204 = vmatpush.msrb.mxu3 %v6500_v34  ;;  %1323 = vmatpush.msra.mxu0 %v6502_v50 }
 0x15f   :  { %1165 = vmatpush.msrb.mxu1 %v6351_v35  ;;  %1185 = vmatpush.msrb.mxu2 %v6354_v36 }
 0x160   :  { %1205 = vmatpush.msrb.mxu3 %v6508_v51  ;;  %1324 = vmatpush.msra.mxu0 %v6510_v32 }
 0x161   :  { %1166 = vmatpush.msrb.mxu1 %v6359_v39  ;;  %1186 = vmatpush.msrb.mxu2 %v6365_v42 }
 0x162   :  { %1206 = vmatpush.msrb.mxu3 %v6514_v59  ;;  %1325 = vmatpush.msra.mxu0 %v6516_v58 }
 0x163   :  { %1167 = vmatpush.msrb.mxu1 %v6374_v46  ;;  %1187 = vmatpush.msrb.mxu2 %v6376_v47 }
 0x164   :  { %1207 = vmatpush.msrb.mxu3 %v6520_v41  ;;  %1326 = vmatpush.msra.mxu0 %v6522_v40 }
 0x165   :  { %1335 = vmatpush.msra.mxu1 %v6382_v48  ;;  %1355 = vmatpush.msra.mxu2 %v6384_v49 }
 0x166   :  { %1474 = vmatpush.msra.mxu3 %v6293_v0  ;;  %1494 = vmatpush.msrb.mxu0 %v6297_v2  ;;  %v9095_v0 = vld [vmem:[#allocation30_spill] sm:$0xff]  ;;  %v9096_v2 = vld [vmem:[#allocation31_spill] sm:$0xff] }
 0x167   :  { %1336 = vmatpush.msra.mxu1 %v6388_v52  ;;  %1356 = vmatpush.msra.mxu2 %v6390_v53  ;;  %9112 = vst [vmem:[#allocation31_spill] sm:$0xff] %v6659_v9 }
 0x168   :  { %1475 = vmatpush.msra.mxu3 %v6299_v4  ;;  %1495 = vmatpush.msrb.mxu0 %v6304_v6  ;;  %v9097_v4 = vld [vmem:[#allocation32_spill] sm:$0xff]  ;;  %v9098_v6 = vld [vmem:[#allocation33_spill] sm:$0xff] }
 0x169   :  { %1337 = vmatpush.msra.mxu1 %v6394_v56  ;;  %1357 = vmatpush.msra.mxu2 %v6396_v57 }
 0x16a   :  { %1476 = vmatpush.msra.mxu3 %v6307_v8  ;;  %1496 = vmatpush.msrb.mxu0 %v6310_v10  ;;  %v9099_v8 = vld [vmem:[#allocation34_spill] sm:$0xff]  ;;  %v9100_v10 = vld [vmem:[#allocation35_spill] sm:$0xff] }
 0x16b   :  { %1338 = vmatpush.msra.mxu1 %v6400_v60  ;;  %1358 = vmatpush.msra.mxu2 %v6402_v61 }
 0x16c   :  { %1477 = vmatpush.msra.mxu3 %v6313_v12  ;;  %1497 = vmatpush.msrb.mxu0 %v6316_v14  ;;  %v9101_v12 = vld [vmem:[#allocation36_spill] sm:$0xff]  ;;  %v9102_v14 = vld [vmem:[#allocation37_spill] sm:$0xff] }
 0x16d   :  { %1339 = vmatpush.msra.mxu1 %v9094_v43  ;;  %1359 = vmatpush.msra.mxu2 %v9095_v0 }
 0x16e   :  { %1478 = vmatpush.msra.mxu3 %v6319_v16  ;;  %1498 = vmatpush.msrb.mxu0 %v6322_v17  ;;  %v9103_v16 = vld [vmem:[#allocation38_spill] sm:$0xff]  ;;  %v9104_v17 = vld [vmem:[#allocation39_spill] sm:$0xff] }
 0x16f   :  { %1340 = vmatpush.msra.mxu1 %v9096_v2  ;;  %1360 = vmatpush.msra.mxu2 %v9097_v4 }
 0x170   :  { %1479 = vmatpush.msra.mxu3 %v6325_v19  ;;  %1499 = vmatpush.msrb.mxu0 %v6330_v21  ;;  %v9105_v19 = vld [vmem:[#allocation40_spill] sm:$0xff]  ;;  %v9106_v21 = vld [vmem:[#allocation41_spill] sm:$0xff] }
 0x171   :  { %1341 = vmatpush.msra.mxu1 %v9098_v6  ;;  %1361 = vmatpush.msra.mxu2 %v9099_v8 }
 0x172   :  { %1480 = vmatpush.msra.mxu3 %v6333_v23  ;;  %1500 = vmatpush.msrb.mxu0 %v6336_v25  ;;  %v9107_v23 = vld [vmem:[#allocation42_spill] sm:$0xff]  ;;  %v9108_v25 = vld [vmem:[#allocation43_spill] sm:$0xff] }
 0x173   :  { %1342 = vmatpush.msra.mxu1 %v9100_v10  ;;  %1362 = vmatpush.msra.mxu2 %v9101_v12 }
 0x174   :  { %1481 = vmatpush.msra.mxu3 %v6339_v27  ;;  %1501 = vmatpush.msrb.mxu0 %v6342_v29  ;;  %v9109_v27 = vld [vmem:[#allocation44_spill] sm:$0xff]  ;;  %v722_v29 = vpop.f32.mrf.mxu1 }
 0x175   :  { %1343 = vmatpush.msra.mxu1 %v9102_v14  ;;  %1363 = vmatpush.msra.mxu2 %v9103_v16 }
 0x176   :  { %1482 = vmatpush.msra.mxu3 %v6345_v31  ;;  %1502 = vmatpush.msrb.mxu0 %v6348_v33  ;;  %v6651_v31 = vpop.f32.mrf.mxu0  ;;  %v6653_v33 = vpop.f32.mrf.mxu2 }
 0x177   :  { %1344 = vmatpush.msra.mxu1 %v9104_v17  ;;  %1364 = vmatpush.msra.mxu2 %v9105_v19  ;;  %9110 = vst [vmem:[#allocation29_spill] sm:$0xff] %v6651_v31  ;;  %v6674_v31 = vpop.permute.xlu2 %1102 }
 0x178   :  { %1483 = vmatpush.msra.mxu3 %v6351_v35  ;;  %1503 = vmatpush.msrb.mxu0 %v6354_v36  ;;  %v6655_v35 = vpop.f32.mrf.mxu3  ;;  %9117 = vst [vmem:[#allocation49_spill] sm:$0xff] %v6674_v31 }
 0x179   :  { %1345 = vmatpush.msra.mxu1 %v9106_v21  ;;  %1365 = vmatpush.msra.mxu2 %v9107_v23 }
 0x17a   :  { %1484 = vmatpush.msra.mxu3 %v6359_v39  ;;  %1504 = vmatpush.msrb.mxu0 %v6365_v42 }
 0x17b   :  { %1346 = vmatpush.msra.mxu1 %v9108_v25  ;;  %1366 = vmatpush.msra.mxu2 %v9109_v27 }
 0x17c   :  { %1485 = vmatpush.msra.mxu3 %v6374_v46  ;;  %1505 = vmatpush.msrb.mxu0 %v6376_v47 }
 0x1bd   :  { %v6657_v36 = vpop.f32.mrf.mxu1 }
 0x1be   :  { %9111 = vst [vmem:[#allocation30_spill] sm:$0xff] %v6657_v36  ;;  %v801_v7 = vpop.f32.mrf.mxu0 }
 0x1c3   :  { %v6661_v15 = vpop.f32.mrf.mxu2 }
 0x1c4   :  { %9113 = vst [vmem:[#allocation32_spill] sm:$0xff] %v6661_v15  ;;  %v6663_v39 = vpop.f32.mrf.mxu3 }
 0x1c5   :  { %9114 = vst [vmem:[#allocation33_spill] sm:$0xff] %v6663_v39  ;;  %v6665_v42 = vpop.f32.mrf.mxu1 }
 0x1c6   :  { %9115 = vst [vmem:[#allocation35_spill] sm:$0xff] %v6665_v42  ;;  %v6667_v18 = vpop.f32.mrf.mxu0  ;;  %v6682_v42 = vld [vmem:[%s8878_s10] sm:$0x7] }
 0x1c7   :  { %v958_v24 = vadd.f32 %v6659_v9, %v6667_v18  ;;  %9118 = vst [vmem:[#allocation50_spill] sm:$0xff] %v6682_v42  ;;  %v8928_v46 = vperm.slane %v6682_v42, 2 }
 0x1c9   :  { %962 = vrot.lane.b32.xlu0 %v958_v24, %s6099_s3 }
 0x1cb   :  { %v6672_v26 = vpop.f32.mrf.mxu2 }
 0x1cc   :  { %9116 = vst [vmem:[#allocation37_spill] sm:$0xff] %v6672_v26  ;;  %v870_v1 = vpop.f32.mrf.mxu3 }
 0x1cd   :  { %v6676_v36 = vpop.f32.mrf.mxu1 }
 0x1ce   :  { %v1051_v47 = vpop.f32.mrf.mxu0 }
 0x1cf   :  { %v1106_v15 = vadd.f32 %v6674_v31, %v1051_v47 }
 0x1d1   :  { %v1110_v39 = vrot.slane %v1106_v15, 2 }
 0x1d3   :  { %1113 = vrot.lane.b32.xlu0 %v1110_v39, %s6099_s3  ;;  %v847_v24 = vpop.f32.mrf.mxu2  ;;  %v6700_v39 = vld [vmem:[%s9119_s2] sm:$0x7] }
 0x1d4   :  { %v6688_v26 = vadd.f32 %v847_v24, %v8928_v46  ;;  %v6690_v27 = vpop.f32.mrf.mxu3  ;;  %9120 = vst [vmem:[#allocation51_spill] sm:$0xff] %v6700_v39  ;;  %v8934_v24 = vperm.slane %v6682_v42, 0 }
 0x1d5   :  { %v1105_v47 = vadd.f32 %v6674_v31, %v6690_v27  ;;  %v910_v23 = vpop.f32.mrf.mxu1 }
 0x1d6   :  { %v959_v19 = vadd.f32 %v6659_v9, %v910_v23  ;;  %v6705_v31 = vadd.f32 %v801_v7, %v8934_v24  ;;  %v8938_v23 = vperm.slane %v6700_v39, 0 }
 0x1d7   :  { %v1109_v16 = vrot.slane %v1105_v47, 2 }
 0x1d8   :  { %964 = vrot.lane.b32.xlu1 %v959_v19, %s6099_s3  ;;  %9121 = vst [vmem:[#allocation52_spill] sm:$0xff] %v6705_v31 }
 0x1d9   :  { %1111 = vrot.lane.b32.xlu2 %v1109_v16, %s6099_s3  ;;  %v6711_v16 = vadd.f32 %v722_v29, %v8938_v23 }
 0x1db   :  { %v1011_v15 = vpop.f32.mrf.mxu2  ;;  %9122 = vst [vmem:[#allocation53_spill] sm:$0xff] %v6711_v16  ;;  %v913_v9 = vadd.f32 %v870_v1, %v6711_v16 }
 0x1dc   :  { %v1055_v46 = vrot.slane %v1011_v15, 2 }
 0x1dd   :  { %v5157_v25 = vmul.f32 -1.442695, %v913_v9 }
 0x1de   :  { %v1057_v47 = vadd.f32 %v1055_v46, %v6705_v31 }
 0x1e0   :  { %v5159_v19 = vmul.f32 -1.442695, %v1057_v47 }
 0x1e2   :  { %5324 = vpow2.f32 %v5159_v19 }
 0x1e3   :  { %5326 = vpow2.f32 %v5157_v25 }
 0x1e8   :  { %v5325_v12 = vpop.eup %5324 }
 0x1e9   :  { %v1061_v15 = vadd.f32 1.0, %v5325_v12  ;;  %v5327_v40 = vpop.eup %5326 }
 0x1ea   :  { %v917_v7 = vadd.f32 1.0, %v5327_v40 }
 0x1eb   :  { %5328 = vrcp.f32 %v1061_v15  ;;  %v1073_v1 = vand.u32 2147483648, %v1061_v15  ;;  %vm1067_vm5 = vweird.f32 %v1061_v15  ;;  %v1071_v25 = vand.u32 2147483647, %v1061_v15 }
 0x1ec   :  { %5330 = vrcp.f32 %v917_v7  ;;  %v929_v59 = vand.u32 2147483648, %v917_v7  ;;  %vm923_vm9 = vweird.f32 %v917_v7 }
 0x1ed   :  { %v1074_v16 = vor.u32 1.1754944e-38, %v1073_v1  ;;  %vm1072_vm8 = vcmp.eq.f32.partialorder %v1071_v25, 8.507059e+37 }
 0x1f1   :  { %v5329_v24 = vpop.eup %5328 }
 0x1f2   :  { %v1063_v41 = vmul.f32 %v5329_v24, %v1061_v15  ;;  %v5331_v21 = vpop.eup %5330  ;;  %vm1068_vm4 = vweird.f32 %v5329_v24 }
 0x1f3   :  { %v919_v31 = vmul.f32 %v5331_v21, %v917_v7  ;;  %vm1069_vm6 = vmor %vm1067_vm5, %vm1068_vm4  ;;  %vm924_vm7 = vweird.f32 %v5331_v21 }
 0x1f4   :  { %v1064_v46 = vsub.f32 1.0, %v1063_v41  ;;  %vm925_vm10 = vmor %vm923_vm9, %vm924_vm7 }
 0x1f5   :  { %v920_v23 = vsub.f32 1.0, %v919_v31  ;;  %v927_v31 = vand.u32 2147483647, %v917_v7  ;;  %v8944_v7 = vperm.slane %v6700_v39, 2 }
 0x1f6   :  { %v1065_v29 = vmul.f32 %v5329_v24, %v1064_v46 }
 0x1f7   :  { %v921_v19 = vmul.f32 %v5331_v21, %v920_v23  ;;  %v930_v23 = vor.u32 1.1754944e-38, %v929_v59  ;;  %vm928_vm11 = vcmp.eq.f32.partialorder %v927_v31, 8.507059e+37 }
 0x1f8   :  { %v1066_v47 = vadd.f32 %v5329_v24, %v1065_v29 }
 0x1f9   :  { %v922_v40 = vadd.f32 %v5331_v21, %v921_v19 }
 0x1fa   :  { %v1070_v9 = vsel %vm1069_vm6, %v5329_v24, %v1066_v47 }
 0x1fb   :  { %v1075_v41 = vsel %vm1072_vm8, %v1074_v16, %v1070_v9  ;;  %v926_v29 = vsel %vm925_vm10, %v5331_v21, %v922_v40 }
 0x1fc   :  { %v6716_v24 = vsel %vm928_vm11, %v930_v23, %v926_v29  ;;  %v1139_v23 = vmul.f32 0.0, %v1075_v41 }
 0x233   :  { %v1112_v12 = vpop.permute.xlu2 %1111 }
 0x23b   :  { %v963_v8 = vpop.permute.xlu0 %962 }
 0x245   :  { %v1114_v58 = vpop.permute.xlu0 %1113 }
 0x246   :  { %v1115_v17 = vsel %vm689_vm3, %v1112_v12, %v1114_v58  ;;  %v8943_v58 = vperm.slane %v6682_v42, 1  ;;  %v990_v42 = vmul.f32 0.0, %v6716_v24 }
 0x247   :  { %v1117_v46 = vmul.f32 %v1115_v17, %v1075_v41 }
 0x248   :  { %v6725_v17 = vadd.f32 %v6676_v36, %v8943_v58  ;;  %v6739_v36 = vadd.f32 %v6655_v35, %v8944_v7  ;;  %v1126_v35 = vsub.f32 1.0, %v1075_v41  ;;  %v977_v58 = vsub.f32 1.0, %v6716_v24 }
 0x249   :  { %1119 = vrot.lane.b32.xlu2 %v1117_v46, %s6099_s3 }
 0x24a   :  { %v965_v15 = vpop.permute.xlu1 %964 }
 0x24b   :  { %v966_v47 = vsel %vm689_vm3, %v963_v8, %v965_v15  ;;  %v8945_v8 = vperm.slane %v6700_v39, 1  ;;  %v7047_v39 = vld [vmem:[#allocation10 + $0x80] sm:$0xff] }
 0x24c   :  { %v968_v1 = vmul.f32 %v966_v47, %v6716_v24 }
 0x24d   :  { %v6734_v19 = vadd.f32 %v6653_v33, %v8945_v8 }
 0x24e   :  { %970 = vrot.lane.b32.xlu1 %v968_v1, %s6099_s3 }
 0x24f   :  { %v933_v47 = vadd.f32 %v6667_v18, %v6734_v19 }
 0x2a3   :  { %v1120_v21 = vpop.permute.xlu2 %1119 }
 0x2a4   :  { %v1122_v59 = vadd.f32 %v1120_v21, %v6725_v17  ;;  %v1123_v40 = vadd.f32 %v1120_v21, %v6688_v26  ;;  %v1078_v21 = vrot.slane %v6690_v27, 2 }
 0x2a6   :  { %5332 = vtanh.f32 %v1122_v59 }
 0x2ac   :  { %v5333_v16 = vpop.eup %5332 }
 0x2ad   :  { %1130 = vrot.lane.b32.xlu2 %v5333_v16, %s6098_s0  ;;  %v5158_v16 = vmul.f32 -1.442695, %v933_v47 }
 0x2c0   :  { %v971_v25 = vpop.permute.xlu1 %970 }
 0x2c1   :  { %v973_v12 = vadd.f32 %v971_v25, %v6734_v19  ;;  %v974_v9 = vadd.f32 %v971_v25, %v6739_v36  ;;  %v1080_v25 = vadd.f32 %v1078_v21, %v6725_v17 }
 0x2c3   :  { %5334 = vtanh.f32 %v973_v12  ;;  %v5160_v12 = vmul.f32 -1.442695, %v1080_v25 }
 0x2c4   :  { %5336 = vtanh.f32 %v974_v9 }
 0x2c5   :  { %5338 = vtanh.f32 %v1123_v40 }
 0x2c6   :  { %5340 = vpow2.f32 %v5158_v16 }
 0x2c7   :  { %5342 = vpow2.f32 %v5160_v12 }
 0x2c9   :  { %v5335_v31 = vpop.eup %5334 }
 0x2ca   :  { %v5337_v46 = vpop.eup %5336  ;;  %981 = vrot.lane.b32.xlu0 %v5335_v31, %s6098_s0 }
 0x2cb   :  { %983 = vrot.lane.b32.xlu1 %v5337_v46, %s6098_s0  ;;  %v5339_v33 = vpop.eup %5338 }
 0x2cc   :  { %v5341_v9 = vpop.eup %5340 }
 0x2cd   :  { %v937_v41 = vadd.f32 1.0, %v5341_v9  ;;  %v5343_v40 = vpop.eup %5342 }
 0x2ce   :  { %v1084_v31 = vadd.f32 1.0, %v5343_v40 }
 0x2cf   :  { %5344 = vrcp.f32 %v937_v41  ;;  %vm943_vm13 = vweird.f32 %v937_v41  ;;  %v947_v21 = vand.u32 2147483647, %v937_v41 }
 0x2d0   :  { %5346 = vrcp.f32 %v1084_v31  ;;  %v1096_v7 = vand.u32 2147483648, %v1084_v31  ;;  %vm1090_vm4 = vweird.f32 %v1084_v31 }
 0x2d1   :  { %vm948_vm15 = vcmp.eq.f32.partialorder %v947_v21, 8.507059e+37 }
 0x2d2   :  { %1132 = vrot.lane.b32.xlu0 %v5339_v33, %s6098_s0  ;;  %v1097_v21 = vor.u32 1.1754944e-38, %v1096_v7 }
 0x2d5   :  { %v5345_v18 = vpop.eup %5344 }
 0x2d6   :  { %v939_v46 = vmul.f32 %v5345_v18, %v937_v41  ;;  %v5347_v33 = vpop.eup %5346  ;;  %vm944_vm12 = vweird.f32 %v5345_v18 }
 0x2d7   :  { %vm945_vm14 = vmor %vm943_vm13, %vm944_vm12  ;;  %vm1091_vm0 = vweird.f32 %v5347_v33 }
 0x2d8   :  { %v940_v27 = vsub.f32 1.0, %v939_v46  ;;  %vm1092_vm5 = vmor %vm1090_vm4, %vm1091_vm0 }
 0x307   :  { %v6747_v29 = vpop.permute.xlu2 %1130 }
 0x308   :  { %v1137_v15 = vmul.f32 %v6747_v29, %v1126_v35  ;;  %v1086_v35 = vmul.f32 %v5347_v33, %v1084_v31 }
 0x30a   :  { %v6752_v1 = vadd.f32 %v1139_v23, %v1137_v15  ;;  %v941_v23 = vmul.f32 %v5345_v18, %v940_v27  ;;  %v1087_v15 = vsub.f32 1.0, %v1086_v35  ;;  %v1094_v27 = vand.u32 2147483647, %v1084_v31 }
 0x30c   :  { %9123 = vst [vmem:[#allocation54_spill] sm:$0xff] %v6752_v1  ;;  %v1302_v59 = vrot.slane %v6752_v1, 6  ;;  %v942_v47 = vadd.f32 %v5345_v18, %v941_v23  ;;  %v1088_v16 = vmul.f32 %v5347_v33, %v1087_v15  ;;  %vm1095_vm6 = vcmp.eq.f32.partialorder %v1094_v27, 8.507059e+37  ;;  %v6894_v27 = vld [vmem:[#allocation7 + $0x20] sm:$0xff] }
 0x30d   :  { %9154 = vst [vmem:[#allocation59_spill] sm:$0xff] %v6894_v27 }
 0x30e   :  { %1304 = vrot.lane.b32.xlu0 %v1302_v59, %s6098_s0  ;;  %v949_v59 = vand.u32 2147483648, %v937_v41  ;;  %v946_v25 = vsel %vm945_vm14, %v5345_v18, %v942_v47  ;;  %v1089_v40 = vadd.f32 %v5347_v33, %v1088_v16 }
 0x310   :  { %v950_v12 = vor.u32 1.1754944e-38, %v949_v59  ;;  %v1093_v18 = vsel %vm1092_vm5, %v5347_v33, %v1089_v40 }
 0x311   :  { %v1098_v31 = vsel %vm1095_vm6, %v1097_v21, %v1093_v18 }
 0x312   :  { %v951_v9 = vsel %vm948_vm15, %v950_v12, %v946_v25  ;;  %v1127_v24 = vsub.f32 1.0, %v1098_v31  ;;  %v1140_v25 = vmul.f32 0.0, %v1098_v31 }
 0x313   :  { %v978_v23 = vsub.f32 1.0, %v951_v9  ;;  %v991_v59 = vmul.f32 0.0, %v951_v9 }
 0x33c   :  { %v982_v46 = vpop.permute.xlu0 %981 }
 0x33d   :  { %v984_v35 = vpop.permute.xlu1 %983  ;;  %v988_v8 = vmul.f32 %v982_v46, %v977_v58 }
 0x33e   :  { %v985_v41 = vsel %vm687_vm2, %v982_v46, %v984_v35  ;;  %v6891_v46 = vld [vmem:[#allocation7 + $0x18] sm:$0xff]  ;;  %v9155_v35 = vld [vmem:[#allocation27_spill] sm:$0xff] }
 0x33f   :  { %v989_v15 = vmul.f32 %v985_v41, %v978_v23  ;;  %v6761_v47 = vadd.f32 %v990_v42, %v988_v8  ;;  %9153 = vst [vmem:[#allocation58_spill] sm:$0xff] %v6891_v46  ;;  %v9156_v23 = vld [vmem:[#allocation28_spill] sm:$0xff] }
 0x341   :  { %1145 = vrot.lane.b32.xlu1 %v6761_v47, %s6098_s0  ;;  %v6765_v16 = vadd.f32 %v991_v59, %v989_v15  ;;  %v9157_v15 = vld [vmem:[#allocation31_spill] sm:$0xff] }
 0x343   :  { %1147 = vrot.lane.b32.xlu2 %v6765_v16, %s6098_s0 }
 0x344   :  { %v1133_v58 = vpop.permute.xlu0 %1132 }
 0x345   :  { %v1134_v33 = vsel %vm687_vm2, %v6747_v29, %v1133_v58  ;;  %v6888_v29 = vld [vmem:[#allocation7 + $0x38] sm:$0xff] }
 0x346   :  { %v1138_v42 = vmul.f32 %v1134_v33, %v1127_v24  ;;  %9152 = vst [vmem:[#allocation57_spill] sm:$0xff] %v6888_v29 }
 0x348   :  { %v6771_v8 = vadd.f32 %v1140_v25, %v1138_v42  ;;  %v9158_v25 = vld [vmem:[#allocation49_spill] sm:$0xff] }
 0x34a   :  { %9124 = vst [vmem:[#allocation55_spill] sm:$0xff] %v6771_v8  ;;  %v1303_v7 = vrot.slane %v6771_v8, 6 }
 0x34c   :  { %1306 = vrot.lane.b32.xlu1 %v1303_v7, %s6098_s0 }
 0x39d   :  { %v1148_v12 = vpop.permute.xlu2 %1147 }
 0x3b3   :  { %v1146_v9 = vpop.permute.xlu1 %1145 }
 0x3b4   :  { %v1149_v40 = vsel %vm687_vm2, %v1146_v9, %v1148_v12 }
 0x3b5   :  { %5161 = vmatmul.msk.f32.vlgmr.msrb.gmra.mxu1 %vm698_vm1, %v1149_v40  ;;  %5162 = vmatmul.msk.f32.vlgmr.msrb.gmra.mxu2 %vm698_vm1, %v1149_v40 }
 0x3b6   :  { %5163 = vmatmul.msk.f32.vlgmr.msrb.gmra.mxu3 %vm698_vm1, %v1149_v40  ;;  %1514 = vmatpush.msrb.mxu1 %v6406_v3  ;;  %v1305_v3 = vpop.permute.xlu0 %1304 }
 0x3b7   :  { %1633 = vmatpush.msrb.mxu2 %v6408_v5  ;;  %1653 = vmatpush.msrb.mxu3 %v6382_v48 }
 0x3b8   :  { %1515 = vmatpush.msrb.mxu1 %v6416_v11  ;;  %v9132_v11 = vld [vmem:[#allocation36_spill] sm:$0xff] }
 0x3b9   :  { %1634 = vmatpush.msrb.mxu2 %v6418_v13  ;;  %1654 = vmatpush.msrb.mxu3 %v6388_v52  ;;  %v9126_v52 = vld [vmem:[#allocation45_spill] sm:$0xff]  ;;  %v9133_v13 = vld [vmem:[#allocation43_spill] sm:$0xff] }
 0x3ba   :  { %1516 = vmatpush.msrb.mxu1 %v6428_v20  ;;  %v6827_v20 = vld [vmem:[#allocation7 + $0x108] sm:$0xff] }
 0x3bb   :  { %1635 = vmatpush.msrb.mxu2 %v6430_v22  ;;  %1655 = vmatpush.msrb.mxu3 %v6394_v56  ;;  %v9128_v56 = vld [vmem:[#allocation34_spill] sm:$0xff]  ;;  %v6830_v22 = vld [vmem:[#allocation7 + $0x110] sm:$0xff] }
 0x3bc   :  { %1517 = vmatpush.msrb.mxu1 %v6440_v28  ;;  %v9134_v28 = vld [vmem:[#allocation38_spill] sm:$0xff] }
 0x3bd   :  { %1636 = vmatpush.msrb.mxu2 %v6442_v30  ;;  %1656 = vmatpush.msrb.mxu3 %v6400_v60  ;;  %v9130_v60 = vld [vmem:[#allocation47_spill] sm:$0xff]  ;;  %v6834_v30 = vld [vmem:[#allocation7 + $0xf0] sm:$0xff] }
 0x3be   :  { %v1307_v48 = vpop.permute.xlu1 %1306  ;;  %1518 = vmatpush.msrb.mxu1 %v6452_v37  ;;  %v6841_v37 = vld [vmem:[#allocation7 + $0xd8] sm:$0xff] }
 0x3bf   :  { %v1308_v5 = vsel %vm687_vm2, %v1305_v3, %v1307_v48  ;;  %1637 = vmatpush.msrb.mxu2 %v6454_v38  ;;  %1657 = vmatpush.msrb.mxu3 %v9094_v43  ;;  %v6844_v38 = vld [vmem:[#allocation7 + $0xe0] sm:$0xff]  ;;  %v6867_v43 = vld [vmem:[#allocation7 + $0x78] sm:$0xff] }
 0x3c0   :  { %5166 = vmatmul.msk.f32.vlgmr.msra.gmra.mxu0 %vm698_vm1, %v1308_v5  ;;  %5167 = vmatmul.msk.f32.vlgmr.msra.gmra.mxu1 %vm698_vm1, %v1308_v5  ;;  %9145 = vst [vmem:[#allocation36_spill] sm:$0xff] %v6867_v43 }
 0x3c1   :  { %5168 = vmatmul.msk.f32.vlgmr.msra.gmra.mxu2 %vm698_vm1, %v1308_v5  ;;  %1673 = vmatpush.msra.mxu0 %v6384_v49  ;;  %v9125_v49 = vld [vmem:[#allocation39_spill] sm:$0xff]  ;;  %v9159_v5 = vld [vmem:[#allocation53_spill] sm:$0xff] }
 0x3c2   :  { %1519 = vmatpush.msrb.mxu1 %v6464_v44  ;;  %1638 = vmatpush.msrb.mxu2 %v6466_v45  ;;  %9136 = vst [vmem:[#allocation39_spill] sm:$0xff] %v6844_v38  ;;  %v9137_v44 = vld [vmem:[#allocation42_spill] sm:$0xff] }
 0x3c3   :  { %1674 = vmatpush.msra.mxu0 %v6390_v53  ;;  %1658 = vmatpush.msrb.mxu3 %v9096_v2  ;;  %v9127_v53 = vld [vmem:[#allocation46_spill] sm:$0xff] }
 0x3c4   :  { %1520 = vmatpush.msrb.mxu1 %v6476_v54  ;;  %1639 = vmatpush.msrb.mxu2 %v6478_v55  ;;  %v6848_v45 = vld [vmem:[#allocation7 + $0xc0] sm:$0xff]  ;;  %v6855_v54 = vld [vmem:[#allocation7 + $0xa8] sm:$0xff]  ;;  %v6858_v55 = vld [vmem:[#allocation7 + $0xb0] sm:$0xff] }
 0x3c5   :  { %1675 = vmatpush.msra.mxu0 %v6396_v57  ;;  %1659 = vmatpush.msrb.mxu3 %v9098_v6  ;;  %v9129_v57 = vld [vmem:[#allocation41_spill] sm:$0xff]  ;;  %9138 = vst [vmem:[#allocation45_spill] sm:$0xff] %v6848_v45  ;;  %v6873_v2 = vld [vmem:[#allocation7 + $0x60] sm:$0xff]  ;;  %v6879_v6 = vld [vmem:[#allocation7 + $0x48] sm:$0xff] }
 0x3c6   :  { %1521 = vmatpush.msrb.mxu1 %v6488_v62  ;;  %1640 = vmatpush.msrb.mxu2 %v6490_v63  ;;  %9141 = vst [vmem:[#allocation34_spill] sm:$0xff] %v6855_v54  ;;  %v6861_v62 = vld [vmem:[#allocation7 + $0x90] sm:$0xff]  ;;  %v6864_v63 = vld [vmem:[#allocation7 + $0x98] sm:$0xff] }
 0x3c7   :  { %1676 = vmatpush.msra.mxu0 %v6402_v61  ;;  %1660 = vmatpush.msrb.mxu3 %v9100_v10  ;;  %v9131_v61 = vld [vmem:[#allocation48_spill] sm:$0xff]  ;;  %9142 = vst [vmem:[#allocation41_spill] sm:$0xff] %v6858_v55 }
 0x3c8   :  { %1522 = vmatpush.msrb.mxu1 %v6500_v34  ;;  %1641 = vmatpush.msrb.mxu2 %v6502_v50  ;;  %v9135_v34 = vld [vmem:[#allocation40_spill] sm:$0xff]  ;;  %9143 = vst [vmem:[#allocation47_spill] sm:$0xff] %v6861_v62 }
 0x3c9   :  { %1677 = vmatpush.msra.mxu0 %v9095_v0  ;;  %1661 = vmatpush.msrb.mxu3 %v9102_v14  ;;  %v6851_v50 = vld [vmem:[#allocation7 + $0xc8] sm:$0xff]  ;;  %9144 = vst [vmem:[#allocation48_spill] sm:$0xff] %v6864_v63  ;;  %v6870_v0 = vld [vmem:[#allocation7 + $0x80] sm:$0xff]  ;;  %v6882_v10 = vld [vmem:[#allocation7 + $0x50] sm:$0xff] }
 0x3ca   :  { %1523 = vmatpush.msrb.mxu1 %v6508_v51  ;;  %1642 = vmatpush.msrb.mxu2 %v6510_v32  ;;  %v6837_v32 = vld [vmem:[#allocation7 + $0xf8] sm:$0xff]  ;;  %9139 = vst [vmem:[#allocation46_spill] sm:$0xff] %v6851_v50  ;;  %v9140_v51 = vld [vmem:[#allocation44_spill] sm:$0xff] }
 0x3cb   :  { %1678 = vmatpush.msra.mxu0 %v9097_v4  ;;  %1662 = vmatpush.msrb.mxu3 %v9125_v49  ;;  %9146 = vst [vmem:[#allocation43_spill] sm:$0xff] %v6870_v0  ;;  %v6876_v4 = vld [vmem:[#allocation7 + $0x68] sm:$0xff]  ;;  %v6885_v14 = vld [vmem:[#allocation7 + $0x30] sm:$0xff] }
 0x3cc   :  { %1524 = vmatpush.msrb.mxu1 %v9126_v52  ;;  %1643 = vmatpush.msrb.mxu2 %v9127_v53  ;;  %9147 = vst [vmem:[#allocation38_spill] sm:$0xff] %v6873_v2 }
 0x3cd   :  { %1679 = vmatpush.msra.mxu0 %v9128_v56  ;;  %1663 = vmatpush.msrb.mxu3 %v9129_v57  ;;  %9148 = vst [vmem:[#allocation40_spill] sm:$0xff] %v6876_v4  ;;  %v9160_v56 = vld [vmem:[#allocation52_spill] sm:$0xff] }
 0x3ce   :  { %1525 = vmatpush.msrb.mxu1 %v9130_v60  ;;  %1644 = vmatpush.msrb.mxu2 %v9131_v61  ;;  %9149 = vst [vmem:[#allocation42_spill] sm:$0xff] %v6879_v6 }
 0x3cf   :  { %1680 = vmatpush.msra.mxu0 %v9132_v11  ;;  %1664 = vmatpush.msrb.mxu3 %v9133_v13  ;;  %9150 = vst [vmem:[#allocation44_spill] sm:$0xff] %v6882_v10 }
 0x3d0   :  { %1792 = vmatpush.msra.mxu1 %v6827_v20  ;;  %1812 = vmatpush.msra.mxu2 %v6830_v22  ;;  %9151 = vst [vmem:[#allocation56_spill] sm:$0xff] %v6885_v14 }
 0x3d1   :  { %1681 = vmatpush.msra.mxu0 %v9134_v28 }
 0x3d2   :  { %1793 = vmatpush.msra.mxu1 %v6834_v30  ;;  %1813 = vmatpush.msra.mxu2 %v6837_v32 }
 0x3d3   :  { %1682 = vmatpush.msra.mxu0 %v9135_v34 }
 0x3d4   :  { %1794 = vmatpush.msra.mxu1 %v6841_v37  ;;  %1814 = vmatpush.msra.mxu2 %v6844_v38 }
 0x3d5   :  { %1683 = vmatpush.msra.mxu0 %v9137_v44 }
 0x3d6   :  { %1795 = vmatpush.msra.mxu1 %v6848_v45  ;;  %1815 = vmatpush.msra.mxu2 %v6851_v50 }
 0x3d7   :  { %1684 = vmatpush.msra.mxu0 %v9140_v51 }
 0x3d8   :  { %1796 = vmatpush.msra.mxu1 %v6855_v54  ;;  %1816 = vmatpush.msra.mxu2 %v6858_v55 }
 0x3da   :  { %1797 = vmatpush.msra.mxu1 %v6861_v62  ;;  %1817 = vmatpush.msra.mxu2 %v6864_v63 }
 0x3dc   :  { %1798 = vmatpush.msra.mxu1 %v6867_v43  ;;  %1818 = vmatpush.msra.mxu2 %v6870_v0 }
 0x3de   :  { %1799 = vmatpush.msra.mxu1 %v6873_v2  ;;  %1819 = vmatpush.msra.mxu2 %v6876_v4 }
 0x3e0   :  { %1800 = vmatpush.msra.mxu1 %v6879_v6  ;;  %1820 = vmatpush.msra.mxu2 %v6882_v10 }
 0x3e2   :  { %1801 = vmatpush.msra.mxu1 %v6885_v14  ;;  %1821 = vmatpush.msra.mxu2 %v6888_v29 }
 0x3e4   :  { %1802 = vmatpush.msra.mxu1 %v6891_v46  ;;  %1822 = vmatpush.msra.mxu2 %v6894_v27 }
 0x3e6   :  { %1803 = vmatpush.msra.mxu1 %v9155_v35  ;;  %1823 = vmatpush.msra.mxu2 %v9156_v23 }
 0x432   :  { %v1169_v41 = vpop.f32.mrf.mxu1 }
 0x433   :  { %v1213_v3 = vrot.slane %v1169_v41, 6 }
 0x435   :  { %v1215_v49 = vadd.f32 %v1213_v3, %v9159_v5 }
 0x437   :  { %v5164_v53 = vmul.f32 -1.442695, %v1215_v49 }
 0x438   :  { %v6899_v18 = vpop.f32.mrf.mxu2 }
 0x439   :  { %v1258_v59 = vadd.f32 %v6899_v18, %v9157_v15  ;;  %v1209_v21 = vpop.f32.mrf.mxu3  ;;  %5348 = vpow2.f32 %v5164_v53 }
 0x43a   :  { %v1259_v31 = vadd.f32 %v1209_v21, %v9157_v15 }
 0x43b   :  { %v1262_v24 = vrot.slane %v1258_v59, 6 }
 0x43c   :  { %v1263_v58 = vrot.slane %v1259_v31, 6 }
 0x43d   :  { %1264 = vrot.lane.b32.xlu2 %v1262_v24, %s6099_s3  ;;  %v6905_v33 = vpop.f32.mrf.mxu1  ;;  %v1328_v48 = vpop.f32.mrf.mxu0 }
 0x43e   :  { %1266 = vrot.lane.b32.xlu0 %v1263_v58, %s6099_s3  ;;  %v1417_v42 = vadd.f32 %v6905_v33, %v9158_v25  ;;  %v1372_v52 = vrot.slane %v1328_v48, 4 }
 0x43f   :  { %v5349_v61 = vpop.eup %5348 }
 0x440   :  { %v1421_v7 = vrot.slane %v1417_v42, 4  ;;  %v1374_v57 = vadd.f32 %v1372_v52, %v9160_v56  ;;  %v1219_v11 = vadd.f32 1.0, %v5349_v61 }
 0x442   :  { %1423 = vrot.lane.b32.xlu1 %v1421_v7, %s6099_s3  ;;  %v5169_v60 = vmul.f32 -1.442695, %v1374_v57  ;;  %v1231_v24 = vand.u32 2147483648, %v1219_v11  ;;  %vm1225_vm8 = vweird.f32 %v1219_v11  ;;  %v1229_v42 = vand.u32 2147483647, %v1219_v11 }
 0x444   :  { %v1368_v12 = vpop.f32.mrf.mxu2  ;;  %5350 = vpow2.f32 %v5169_v60  ;;  %vm1230_vm11 = vcmp.eq.f32.partialorder %v1229_v42, 8.507059e+37  ;;  %v1236_v42 = vrot.slane %v6899_v18, 6 }
 0x445   :  { %v1418_v9 = vadd.f32 %v1368_v12, %v9158_v25  ;;  %5352 = vrcp.f32 %v1219_v11 }
 0x447   :  { %v1422_v40 = vrot.slane %v1418_v9, 4  ;;  %v1232_v9 = vor.u32 1.1754944e-38, %v1231_v24 }
 0x449   :  { %1425 = vrot.lane.b32.xlu2 %v1422_v40, %s6099_s3 }
 0x44a   :  { %v5351_v13 = vpop.eup %5350 }
 0x44b   :  { %v1378_v28 = vadd.f32 1.0, %v5351_v13  ;;  %v5353_v34 = vpop.eup %5352 }
 0x44c   :  { %v1221_v44 = vmul.f32 %v5353_v34, %v1219_v11  ;;  %vm1226_vm7 = vweird.f32 %v5353_v34 }
 0x44d   :  { %5354 = vrcp.f32 %v1378_v28  ;;  %vm1227_vm9 = vmor %vm1225_vm8, %vm1226_vm7  ;;  %v1390_v40 = vand.u32 2147483648, %v1378_v28  ;;  %vm1384_vm12 = vweird.f32 %v1378_v28  ;;  %v1388_v48 = vand.u32 2147483647, %v1378_v28 }
 0x44e   :  { %v1222_v35 = vsub.f32 1.0, %v1221_v44 }
 0x44f   :  { %v1391_v60 = vor.u32 1.1754944e-38, %v1390_v40  ;;  %vm1389_vm14 = vcmp.eq.f32.partialorder %v1388_v48, 8.507059e+37 }
 0x450   :  { %v1223_v41 = vmul.f32 %v5353_v34, %v1222_v35 }
 0x452   :  { %v1224_v21 = vadd.f32 %v5353_v34, %v1223_v41 }
 0x453   :  { %v5355_v51 = vpop.eup %5354 }
 0x454   :  { %v1380_v23 = vmul.f32 %v5355_v51, %v1378_v28  ;;  %v1228_v7 = vsel %vm1227_vm9, %v5353_v34, %v1224_v21  ;;  %vm1385_vm10 = vweird.f32 %v5355_v51 }
 0x455   :  { %v1233_v49 = vsel %vm1230_vm11, %v1232_v9, %v1228_v7  ;;  %vm1386_vm13 = vmor %vm1384_vm12, %vm1385_vm10  ;;  %v1395_v7 = vrot.slane %v6905_v33, 4 }
 0x456   :  { %v1381_v59 = vsub.f32 1.0, %v1380_v23 }
 0x457   :  { %v1397_v9 = vadd.f32 %v1395_v7, %v6725_v17 }
 0x458   :  { %v1382_v31 = vmul.f32 %v5355_v51, %v1381_v59 }
 0x45a   :  { %v1383_v12 = vadd.f32 %v5355_v51, %v1382_v31 }
 0x45c   :  { %v1387_v57 = vsel %vm1386_vm13, %v5355_v51, %v1383_v12  ;;  %v1238_v12 = vadd.f32 %v1236_v42, %v6734_v19 }
 0x45d   :  { %v6917_v13 = vsel %vm1389_vm14, %v1391_v60, %v1387_v57  ;;  %v1292_v60 = vrot.slane %v6761_v47, 6 }
 0x45e   :  { %v5165_v40 = vmul.f32 -1.442695, %v1238_v12 }
 0x45f   :  { %v1296_v33 = vmul.f32 %v1292_v60, %v1233_v49  ;;  %v1293_v60 = vrot.slane %v6765_v16, 6 }
 0x497   :  { %v1265_v58 = vpop.permute.xlu2 %1264 }
 0x4a3   :  { %v1426_v61 = vpop.permute.xlu2 %1425 }
 0x4b0   :  { %v1267_v3 = vpop.permute.xlu0 %1266 }
 0x4b1   :  { %v1268_v52 = vsel %vm689_vm3, %v1265_v58, %v1267_v3  ;;  %v5170_v3 = vmul.f32 -1.442695, %v1397_v9 }
 0x4b2   :  { %v1270_v53 = vmul.f32 %v1268_v52, %v1233_v49 }
 0x4b4   :  { %1272 = vrot.lane.b32.xlu0 %v1270_v53, %s6099_s3  ;;  %v1424_v11 = vpop.permute.xlu1 %1423 }
 0x4b5   :  { %v1427_v34 = vsel %vm689_vm3, %v1424_v11, %v1426_v61  ;;  %v1279_v61 = vsub.f32 1.0, %v1233_v49 }
 0x4b6   :  { %v1429_v44 = vmul.f32 %v1427_v34, %v6917_v13 }
 0x4b8   :  { %1431 = vrot.lane.b32.xlu1 %v1429_v44, %s6099_s3 }
 0x526   :  { %v1273_v28 = vpop.permute.xlu0 %1272 }
 0x527   :  { %v1275_v35 = vadd.f32 %v1273_v28, %v6734_v19  ;;  %v1276_v23 = vadd.f32 %v1273_v28, %v6739_v36 }
 0x529   :  { %5356 = vtanh.f32 %v1275_v35 }
 0x52a   :  { %5358 = vtanh.f32 %v1276_v23  ;;  %v1432_v51 = vpop.permute.xlu1 %1431 }
 0x52b   :  { %v1434_v41 = vadd.f32 %v1432_v51, %v6725_v17  ;;  %v1435_v59 = vadd.f32 %v1432_v51, %v6688_v26 }
 0x52d   :  { %5360 = vtanh.f32 %v1434_v41 }
 0x52e   :  { %5362 = vtanh.f32 %v1435_v59 }
 0x52f   :  { %v5357_v21 = vpop.eup %5356  ;;  %5364 = vpow2.f32 %v5165_v40 }
 0x530   :  { %v5359_v31 = vpop.eup %5358  ;;  %1283 = vrot.lane.b32.xlu2 %v5357_v21, %s6098_s0  ;;  %5366 = vpow2.f32 %v5170_v3 }
 0x531   :  { %1285 = vrot.lane.b32.xlu0 %v5359_v31, %s6098_s0 }
 0x533   :  { %v5361_v24 = vpop.eup %5360 }
 0x534   :  { %1442 = vrot.lane.b32.xlu1 %v5361_v24, %s6098_s0  ;;  %v5363_v58 = vpop.eup %5362 }
 0x535   :  { %v5365_v48 = vpop.eup %5364 }
 0x536   :  { %v5367_v52 = vpop.eup %5366  ;;  %v1242_v53 = vadd.f32 1.0, %v5365_v48 }
 0x537   :  { %v1401_v57 = vadd.f32 1.0, %v5367_v52 }
 0x538   :  { %1444 = vrot.lane.b32.xlu2 %v5363_v58, %s6098_s0  ;;  %5368 = vrcp.f32 %v1242_v53  ;;  %v1254_v58 = vand.u32 2147483648, %v1242_v53  ;;  %vm1248_vm0 = vweird.f32 %v1242_v53  ;;  %v1252_v42 = vand.u32 2147483647, %v1242_v53 }
 0x539   :  { %5370 = vrcp.f32 %v1401_v57  ;;  %v1413_v12 = vand.u32 2147483648, %v1401_v57  ;;  %vm1407_vm6 = vweird.f32 %v1401_v57  ;;  %v1411_v40 = vand.u32 2147483647, %v1401_v57 }
 0x53a   :  { %v1255_v9 = vor.u32 1.1754944e-38, %v1254_v58  ;;  %vm1253_vm7 = vcmp.eq.f32.partialorder %v1252_v42, 8.507059e+37 }
 0x53b   :  { %v1414_v52 = vor.u32 1.1754944e-38, %v1413_v12  ;;  %vm1412_vm9 = vcmp.eq.f32.partialorder %v1411_v40, 8.507059e+37 }
 0x53e   :  { %v5369_v18 = vpop.eup %5368 }
 0x53f   :  { %v5371_v44 = vpop.eup %5370  ;;  %v1244_v35 = vmul.f32 %v5369_v18, %v1242_v53  ;;  %vm1249_vm15 = vweird.f32 %v5369_v18 }
 0x540   :  { %v1403_v51 = vmul.f32 %v5371_v44, %v1401_v57  ;;  %vm1250_vm4 = vmor %vm1248_vm0, %vm1249_vm15  ;;  %vm1408_vm5 = vweird.f32 %v5371_v44  ;;  %v1452_v57 = vrot.slane %v6771_v8, 2  ;;  %v7044_v8 = vld [vmem:[#allocation10 + $0x78] sm:$0xff] }
 0x541   :  { %v1245_v41 = vsub.f32 1.0, %v1244_v35  ;;  %vm1409_vm8 = vmor %vm1407_vm6, %vm1408_vm5  ;;  %v1451_v35 = vrot.slane %v6752_v1, 2  ;;  %v7041_v1 = vld [vmem:[#allocation10 + $0xa0] sm:$0xff] }
 0x542   :  { %v1404_v59 = vsub.f32 1.0, %v1403_v51  ;;  %v1438_v51 = vsub.f32 1.0, %v6917_v13  ;;  %9168 = vst [vmem:[#allocation65_spill] sm:$0xff] %v7041_v1 }
 0x543   :  { %v1246_v21 = vmul.f32 %v5369_v18, %v1245_v41 }
 0x544   :  { %v1405_v31 = vmul.f32 %v5371_v44, %v1404_v59 }
 0x545   :  { %v1247_v24 = vadd.f32 %v5369_v18, %v1246_v21  ;;  %v1455_v21 = vmul.f32 %v1451_v35, %v6917_v13  ;;  %v6973_v35 = vld [vmem:[#allocation7 + $0x100] sm:$0xff] }
 0x546   :  { %v1406_v49 = vadd.f32 %v5371_v44, %v1405_v31 }
 0x547   :  { %v1251_v7 = vsel %vm1250_vm4, %v5369_v18, %v1247_v24 }
 0x548   :  { %v1256_v3 = vsel %vm1253_vm7, %v1255_v9, %v1251_v7  ;;  %v1410_v48 = vsel %vm1409_vm8, %v5371_v44, %v1406_v49 }
 0x549   :  { %v1297_v18 = vmul.f32 %v1293_v60, %v1256_v3 }
 0x58a   :  { %v1284_v11 = vpop.permute.xlu2 %1283 }
 0x58b   :  { %v1290_v34 = vmul.f32 %v1284_v11, %v1279_v61  ;;  %v1280_v61 = vsub.f32 1.0, %v1256_v3 }
 0x58d   :  { %v6935_v28 = vadd.f32 %v1296_v33, %v1290_v34  ;;  %v1415_v34 = vsel %vm1412_vm9, %v1414_v52, %v1410_v48  ;;  %vm3333_vm9 = vcmask 1041408  }
 0x58e   :  { %v1439_v59 = vsub.f32 1.0, %v1415_v34  ;;  %v1456_v42 = vmul.f32 %v1452_v57, %v1415_v34  ;;  %v6966_v34 = vld [vmem:[#allocation10 + $0x108] sm:$0xff]  ;;  %v6985_v57 = vld [vmem:[#allocation10 + $0xf8] sm:$0xff] }
 0x58f   :  { %v1461_v23 = vrot.slane %v6935_v28, 2 }
 0x591   :  { %1463 = vrot.lane.b32.xlu0 %v1461_v23, %s6098_s0 }
 0x592   :  { %v1445_v41 = vpop.permute.xlu2 %1444 }
 0x5a3   :  { %v1286_v33 = vpop.permute.xlu0 %1285 }
 0x5a4   :  { %v1287_v53 = vsel %vm687_vm2, %v1284_v11, %v1286_v33 }
 0x5a5   :  { %v1291_v23 = vmul.f32 %v1287_v53, %v1280_v61  ;;  %v6962_v61 = vld [vmem:[#allocation7 + $0x118] sm:$0xff]  ;;  %v6969_v53 = vld [vmem:[#allocation10 + $0x110] sm:$0xff] }
 0x5a6   :  { %v1443_v44 = vpop.permute.xlu1 %1442 }
 0x5a7   :  { %v6945_v31 = vadd.f32 %v1297_v18, %v1291_v23  ;;  %v1446_v24 = vsel %vm687_vm2, %v1443_v44, %v1445_v41  ;;  %v1449_v58 = vmul.f32 %v1443_v44, %v1438_v51  ;;  %v6976_v18 = vld [vmem:[#allocation10 + $0x118] sm:$0xff]  ;;  %v6979_v23 = vld [vmem:[#allocation10 + $0xf0] sm:$0xff]  ;;  %v6982_v51 = vld [vmem:[#allocation7 + $0xe8] sm:$0xff] }
 0x5a8   :  { %v1450_v11 = vmul.f32 %v1446_v24, %v1439_v59  ;;  %9163 = vst [vmem:[#allocation60_spill] sm:$0xff] %v6976_v18  ;;  %v6988_v41 = vld [vmem:[#allocation10 + $0x100] sm:$0xff]  ;;  %v6991_v59 = vld [vmem:[#allocation10 + $0xd8] sm:$0xff]  ;;  %v6994_v44 = vld [vmem:[#allocation7 + $0xd0] sm:$0xff] }
 0x5a9   :  { %v6948_v49 = vadd.f32 %v1455_v21, %v1449_v58  ;;  %v1462_v7 = vrot.slane %v6945_v31, 2  ;;  %9164 = vst [vmem:[#allocation61_spill] sm:$0xff] %v6988_v41  ;;  %v6997_v21 = vld [vmem:[#allocation10 + $0xe0] sm:$0xff]  ;;  %v7002_v24 = vld [vmem:[#allocation7 + $0xb8] sm:$0xff]  ;;  %v7005_v58 = vld [vmem:[#allocation10 + $0xe8] sm:$0xff] }
 0x5aa   :  { %v6951_v12 = vadd.f32 %v1456_v42, %v1450_v11  ;;  %9165 = vst [vmem:[#allocation62_spill] sm:$0xff] %v7005_v58  ;;  %v7008_v42 = vld [vmem:[#allocation10 + $0xc0] sm:$0xff]  ;;  %v7011_v11 = vld [vmem:[#allocation10 + $0xc8] sm:$0xff] }
 0x5ab   :  { %9161 = vst [vmem:[#allocation27_spill] sm:$0xff] %v6948_v49  ;;  %1465 = vrot.lane.b32.xlu1 %v1462_v7, %s6098_s0  ;;  %v1620_v9 = vrot.slane %v6948_v49, 4  ;;  %v7014_v7 = vld [vmem:[#allocation7 + $0xa0] sm:$0xff] }
 0x5ac   :  { %9162 = vst [vmem:[#allocation28_spill] sm:$0xff] %v6951_v12  ;;  %v1621_v40 = vrot.slane %v6951_v12, 4 }
 0x5ad   :  { %1622 = vrot.lane.b32.xlu2 %v1620_v9, %s6098_s0  ;;  %v7017_v9 = vld [vmem:[#allocation10 + $0xd0] sm:$0xff] }
 0x5ae   :  { %1624 = vrot.lane.b32.xlu0 %v1621_v40, %s6098_s0  ;;  %9166 = vst [vmem:[#allocation63_spill] sm:$0xff] %v7017_v9  ;;  %v7020_v40 = vld [vmem:[#allocation10 + $0xa8] sm:$0xff] }
 0x603   :  { %v1464_v13 = vpop.permute.xlu0 %1463 }
 0x607   :  { %v1623_v52 = vpop.permute.xlu2 %1622 }
 0x61d   :  { %v1466_v3 = vpop.permute.xlu1 %1465 }
 0x61e   :  { %v1467_v48 = vsel %vm687_vm2, %v1464_v13, %v1466_v3  ;;  %v7023_v13 = vld [vmem:[#allocation10 + $0xb0] sm:$0xff]  ;;  %v7026_v3 = vld [vmem:[#allocation7 + $0x88] sm:$0xff] }
 0x61f   :  { %5171 = vmatmul.msk.f32.vlgmr.msra.gmra.mxu3 %vm698_vm1, %v1467_v48  ;;  %5172 = vmatmul.msk.f32.vlgmr.msrb.gmra.mxu0 %vm698_vm1, %v1467_v48 }
 0x620   :  { %5173 = vmatmul.msk.f32.vlgmr.msrb.gmra.mxu1 %vm698_vm1, %v1467_v48  ;;  %v1625_v60 = vpop.permute.xlu0 %1624  ;;  %1832 = vmatpush.msra.mxu3 %v6962_v61  ;;  %v7029_v48 = vld [vmem:[#allocation10 + $0xb8] sm:$0xff] }
 0x621   :  { %v1626_v33 = vsel %vm687_vm2, %v1623_v52, %v1625_v60  ;;  %1951 = vmatpush.msrb.mxu0 %v6966_v34  ;;  %1971 = vmatpush.msrb.mxu1 %v6969_v53  ;;  %9167 = vst [vmem:[#allocation64_spill] sm:$0xff] %v7029_v48  ;;  %v7032_v52 = vld [vmem:[#allocation10 + $0x90] sm:$0xff]  ;;  %v7035_v60 = vld [vmem:[#allocation10 + $0x98] sm:$0xff] }
 0x622   :  { %5176 = vmatmul.msk.f32.vlgmr.msrb.gmra.mxu2 %vm698_vm1, %v1626_v33  ;;  %1833 = vmatpush.msra.mxu3 %v6973_v35 }
 0x623   :  { %1991 = vmatpush.msrb.mxu2 %v6976_v18  ;;  %1952 = vmatpush.msrb.mxu0 %v6979_v23  ;;  %v7065_v18 = vld [vmem:[#allocation10 + $0x70] sm:$0xff] }
 0x624   :  { %1834 = vmatpush.msra.mxu3 %v6982_v51  ;;  %1972 = vmatpush.msrb.mxu1 %v6985_v57  ;;  %9174 = vst [vmem:[#allocation71_spill] sm:$0xff] %v7065_v18 }
 0x625   :  { %1992 = vmatpush.msrb.mxu2 %v6988_v41  ;;  %1953 = vmatpush.msrb.mxu0 %v6991_v59  ;;  %v7062_v41 = vld [vmem:[#allocation7 + $0x40] sm:$0xff] }
 0x626   :  { %1835 = vmatpush.msra.mxu3 %v6994_v44  ;;  %1973 = vmatpush.msrb.mxu1 %v6997_v21  ;;  %9173 = vst [vmem:[#allocation70_spill] sm:$0xff] %v7062_v41 }
 0x627   :  { %5177 = vmatmul.msk.f32.vlgmr.msrb.gmra.mxu3 %vm698_vm1, %v1626_v33  ;;  %5178 = vmatmul.msk.f32.vlgmr.msra.gmra.mxu0 %vm698_vm1, %v1626_v33  ;;  %v7038_v33 = vld [vmem:[#allocation7 + $0x70] sm:$0xff] }
 0x628   :  { %1836 = vmatpush.msra.mxu3 %v7002_v24  ;;  %1993 = vmatpush.msrb.mxu2 %v7005_v58  ;;  %v7056_v58 = vld [vmem:[#allocation10 + $0x60] sm:$0xff] }
 0x629   :  { %1954 = vmatpush.msrb.mxu0 %v7008_v42  ;;  %1974 = vmatpush.msrb.mxu1 %v7011_v11  ;;  %9171 = vst [vmem:[#allocation68_spill] sm:$0xff] %v7056_v58 }
 0x62a   :  { %1837 = vmatpush.msra.mxu3 %v7014_v7  ;;  %1994 = vmatpush.msrb.mxu2 %v7017_v9  ;;  %v7053_v9 = vld [vmem:[#allocation10 + $0x88] sm:$0xff] }
 0x62b   :  { %1955 = vmatpush.msrb.mxu0 %v7020_v40  ;;  %1975 = vmatpush.msrb.mxu1 %v7023_v13  ;;  %9170 = vst [vmem:[#allocation67_spill] sm:$0xff] %v7053_v9 }
 0x62c   :  { %1838 = vmatpush.msra.mxu3 %v7026_v3  ;;  %1995 = vmatpush.msrb.mxu2 %v7029_v48  ;;  %v7050_v48 = vld [vmem:[#allocation7 + $0x58] sm:$0xff] }
 0x62d   :  { %1956 = vmatpush.msrb.mxu0 %v7032_v52  ;;  %1976 = vmatpush.msrb.mxu1 %v7035_v60  ;;  %9169 = vst [vmem:[#allocation66_spill] sm:$0xff] %v7050_v48 }
 0x62e   :  { %1839 = vmatpush.msra.mxu3 %v7038_v33  ;;  %1996 = vmatpush.msrb.mxu2 %v7041_v1  ;;  %v7059_v1 = vld [vmem:[#allocation10 + $0x68] sm:$0xff] }
 0x62f   :  { %1957 = vmatpush.msrb.mxu0 %v7044_v8  ;;  %1977 = vmatpush.msrb.mxu1 %v7047_v39  ;;  %9172 = vst [vmem:[#allocation69_spill] sm:$0xff] %v7059_v1 }
 0x630   :  { %1840 = vmatpush.msra.mxu3 %v7050_v48  ;;  %1997 = vmatpush.msrb.mxu2 %v7053_v9  ;;  %v7068_v48 = vld [vmem:[#allocation10 + $0x48] sm:$0xff]  ;;  %v7071_v9 = vld [vmem:[#allocation10 + $0x50] sm:$0xff] }
 0x631   :  { %1958 = vmatpush.msrb.mxu0 %v7056_v58  ;;  %1978 = vmatpush.msrb.mxu1 %v7059_v1  ;;  %9175 = vst [vmem:[#allocation72_spill] sm:$0xff] %v7068_v48  ;;  %v7074_v58 = vld [vmem:[#allocation7 + $0x28] sm:$0xff]  ;;  %v7077_v1 = vld [vmem:[#allocation10 + $0x58] sm:$0xff] }
 0x632   :  { %1841 = vmatpush.msra.mxu3 %v7062_v41  ;;  %1998 = vmatpush.msrb.mxu2 %v7065_v18  ;;  %9176 = vst [vmem:[#allocation73_spill] sm:$0xff] %v7071_v9  ;;  %v7080_v41 = vld [vmem:[#allocation10 + $0x30] sm:$0xff]  ;;  %v7083_v18 = vld [vmem:[#allocation10 + $0x38] sm:$0xff] }
 0x633   :  { %1959 = vmatpush.msrb.mxu0 %v7068_v48  ;;  %1979 = vmatpush.msrb.mxu1 %v7071_v9  ;;  %9177 = vst [vmem:[#allocation74_spill] sm:$0xff] %v7074_v58  ;;  %v7086_v48 = vld [vmem:[#allocation7 + $0x10] sm:$0xff]  ;;  %v7089_v9 = vld [vmem:[#allocation10 + $0x40] sm:$0xff] }
 0x634   :  { %1842 = vmatpush.msra.mxu3 %v7074_v58  ;;  %9178 = vst [vmem:[#allocation75_spill] sm:$0xff] %v7077_v1  ;;  %1999 = vmatpush.msrb.mxu2 %v7077_v1  ;;  %v7092_v58 = vld [vmem:[#allocation10 + $0x18] sm:$0xff]  ;;  %v7095_v1 = vld [vmem:[#allocation10 + $0x20] sm:$0xff] }
 0x635   :  { %9179 = vst [vmem:[#allocation76_spill] sm:$0xff] %v7080_v41  ;;  %1960 = vmatpush.msrb.mxu0 %v7080_v41  ;;  %1980 = vmatpush.msrb.mxu1 %v7083_v18  ;;  %v7098_v41 = vld [vmem:[#allocation10 + $0x28] sm:$0xff] }
 0x636   :  { %9180 = vst [vmem:[#allocation77_spill] sm:$0xff] %v7083_v18  ;;  %1843 = vmatpush.msra.mxu3 %v7086_v48  ;;  %2000 = vmatpush.msrb.mxu2 %v7089_v9  ;;  %v7102_v18 = vld [vmem:[#allocation10] sm:$0xff] }
 0x637   :  { %9181 = vst [vmem:[#allocation78_spill] sm:$0xff] %v7086_v48  ;;  %1961 = vmatpush.msrb.mxu0 %v7092_v58  ;;  %1981 = vmatpush.msrb.mxu1 %v7095_v1  ;;  %v7105_v48 = vld [vmem:[#allocation10 + $0x8] sm:$0xff] }
 0x638   :  { %9182 = vst [vmem:[#allocation79_spill] sm:$0xff] %v7089_v9  ;;  %2001 = vmatpush.msrb.mxu2 %v7098_v41  ;;  %2100 = vmatpush.msrb.mxu3 %v6827_v20  ;;  %v7108_v9 = vld [vmem:[#allocation10 + $0x10] sm:$0xff] }
 0x639   :  { %9183 = vst [vmem:[#allocation80_spill] sm:$0xff] %v7092_v58  ;;  %1962 = vmatpush.msrb.mxu0 %v7102_v18  ;;  %1982 = vmatpush.msrb.mxu1 %v7105_v48 }
 0x63a   :  { %9184 = vst [vmem:[#allocation81_spill] sm:$0xff] %v7095_v1  ;;  %2002 = vmatpush.msrb.mxu2 %v7108_v9  ;;  %2101 = vmatpush.msrb.mxu3 %v6834_v30 }
 0x63b   :  { %9185 = vst [vmem:[#allocation82_spill] sm:$0xff] %v7098_v41  ;;  %2120 = vmatpush.msra.mxu0 %v6830_v22  ;;  %v7135_v41 = vld [vmem:[#allocation7 + $0x8] sm:$0xff] }
 0x63c   :  { %9186 = vst [vmem:[#allocation83_spill] sm:$0xff] %v7102_v18  ;;  %2102 = vmatpush.msrb.mxu3 %v6841_v37 }
 0x63d   :  { %9187 = vst [vmem:[#allocation84_spill] sm:$0xff] %v7105_v48  ;;  %2121 = vmatpush.msra.mxu0 %v6837_v32 }
 0x63e   :  { %9188 = vst [vmem:[#allocation85_spill] sm:$0xff] %v7108_v9  ;;  %2103 = vmatpush.msrb.mxu3 %v6848_v45  ;;  %v7132_v9 = vld [vmem:[#allocation7] sm:$0xff] }
 0x63f   :  { %2122 = vmatpush.msra.mxu0 %v6844_v38  ;;  %9189 = vst [vmem:[#allocation86_spill] sm:$0xff] %v7132_v9 }
 0x640   :  { %2104 = vmatpush.msrb.mxu3 %v6855_v54  ;;  %9190 = vst [vmem:[#allocation87_spill] sm:$0xff] %v7135_v41 }
 0x641   :  { %2123 = vmatpush.msra.mxu0 %v6851_v50 }
 0x642   :  { %2105 = vmatpush.msrb.mxu3 %v6861_v62 }
 0x643   :  { %2124 = vmatpush.msra.mxu0 %v6858_v55 }
 0x644   :  { %2106 = vmatpush.msrb.mxu3 %v6867_v43 }
 0x645   :  { %2125 = vmatpush.msra.mxu0 %v6864_v63 }
 0x646   :  { %2107 = vmatpush.msrb.mxu3 %v6873_v2 }
 0x647   :  { %2126 = vmatpush.msra.mxu0 %v6870_v0 }
 0x648   :  { %2108 = vmatpush.msrb.mxu3 %v6879_v6 }
 0x649   :  { %2127 = vmatpush.msra.mxu0 %v6876_v4 }
 0x64a   :  { %2109 = vmatpush.msrb.mxu3 %v6885_v14 }
 0x64b   :  { %2128 = vmatpush.msra.mxu0 %v6882_v10 }
 0x64c   :  { %2110 = vmatpush.msrb.mxu3 %v6891_v46 }
 0x64d   :  { %2129 = vmatpush.msra.mxu0 %v6888_v29 }
 0x64e   :  { %2111 = vmatpush.msrb.mxu3 %v7132_v9 }
 0x64f   :  { %2130 = vmatpush.msra.mxu0 %v6894_v27 }
 0x651   :  { %2131 = vmatpush.msra.mxu0 %v7135_v41 }
 0x69c   :  { %v1507_v4 = vpop.f32.mrf.mxu0 }
 0x69d   :  { %v1554_v6 = vrot.slane %v1507_v4, 4  ;;  %v1576_v10 = vadd.f32 %v1507_v4, %v9157_v15  ;;  %v1527_v2 = vpop.f32.mrf.mxu1 }
 0x69e   :  { %v1577_v14 = vadd.f32 %v1527_v2, %v9157_v15 }
 0x69f   :  { %v1556_v29 = vadd.f32 %v1554_v6, %v6734_v19  ;;  %v1580_v46 = vrot.slane %v1576_v10, 4 }
 0x6a0   :  { %v1581_v0 = vrot.slane %v1577_v14, 4 }
 0x6a1   :  { %v5175_v27 = vmul.f32 -1.442695, %v1556_v29  ;;  %1582 = vrot.lane.b32.xlu1 %v1580_v46, %s6099_s3 }
 0x6a2   :  { %1584 = vrot.lane.b32.xlu2 %v1581_v0, %s6099_s3  ;;  %v1487_v9 = vpop.f32.mrf.mxu3 }
 0x6a3   :  { %5372 = vpow2.f32 %v5175_v27 }
 0x6a4   :  { %v1686_v43 = vpop.f32.mrf.mxu0 }
 0x6a5   :  { %v1736_v41 = vadd.f32 %v1686_v43, %v9158_v25 }
 0x6a7   :  { %v1740_v63 = vrot.slane %v1736_v41, 6 }
 0x6a9   :  { %v5373_v62 = vpop.eup %5372  ;;  %1743 = vrot.lane.b32.xlu1 %v1740_v63, %s6099_s3 }
 0x6aa   :  { %v1560_v4 = vadd.f32 1.0, %v5373_v62  ;;  %v7145_v2 = vpop.f32.mrf.mxu3 }
 0x6ab   :  { %v1735_v6 = vadd.f32 %v7145_v2, %v9158_v25  ;;  %v1611_v25 = vrot.slane %v6945_v31, 6 }
 0x6ac   :  { %5374 = vrcp.f32 %v1560_v4  ;;  %v1572_v46 = vand.u32 2147483648, %v1560_v4  ;;  %v1570_v43 = vand.u32 2147483647, %v1560_v4  ;;  %vm1566_vm11 = vweird.f32 %v1560_v4 }
 0x6ad   :  { %v1739_v10 = vrot.slane %v1735_v6, 6 }
 0x6ae   :  { %v1573_v62 = vor.u32 1.1754944e-38, %v1572_v46  ;;  %vm1571_vm13 = vcmp.eq.f32.partialorder %v1570_v43, 8.507059e+37 }
 0x6af   :  { %1741 = vrot.lane.b32.xlu0 %v1739_v10, %s6099_s3  ;;  %v1531_v10 = vrot.slane %v1487_v9, 4 }
 0x6b2   :  { %v5375_v0 = vpop.eup %5374 }
 0x6b3   :  { %v1562_v14 = vmul.f32 %v5375_v0, %v1560_v4  ;;  %vm1567_vm10 = vweird.f32 %v5375_v0 }
 0x6b4   :  { %vm1568_vm12 = vmor %vm1566_vm11, %vm1567_vm10  ;;  %vm3336_vm10 = vcmask 1043456  }
 0x6b5   :  { %v1563_v29 = vsub.f32 1.0, %v1562_v14  ;;  %v1533_v14 = vadd.f32 %v1531_v10, %v9159_v5 }
 0x6b7   :  { %v1564_v27 = vmul.f32 %v5375_v0, %v1563_v29  ;;  %v5174_v55 = vmul.f32 -1.442695, %v1533_v14  ;;  %v1646_v29 = vpop.f32.mrf.mxu2 }
 0x6b8   :  { %v1690_v54 = vrot.slane %v1646_v29, 6 }
 0x6b9   :  { %v1565_v41 = vadd.f32 %v5375_v0, %v1564_v27  ;;  %5376 = vpow2.f32 %v5174_v55 }
 0x6ba   :  { %v1692_v4 = vadd.f32 %v1690_v54, %v9160_v56 }
 0x6bb   :  { %v1569_v63 = vsel %vm1568_vm12, %v5375_v0, %v1565_v41 }
 0x6bc   :  { %v7150_v15 = vsel %vm1571_vm13, %v1573_v62, %v1569_v63  ;;  %v5179_v0 = vmul.f32 -1.442695, %v1692_v4 }
 0x6bd   :  { %v7154_v6 = vmul.f32 %v1611_v25, %v7150_v15 }
 0x6bf   :  { %v5377_v27 = vpop.eup %5376 }
 0x6c0   :  { %v1537_v46 = vadd.f32 1.0, %v5377_v27 }
 0x6c2   :  { %5378 = vrcp.f32 %v1537_v46  ;;  %v1549_v14 = vand.u32 2147483648, %v1537_v46  ;;  %vm1543_vm15 = vweird.f32 %v1537_v46  ;;  %v1547_v55 = vand.u32 2147483647, %v1537_v46 }
 0x6c3   :  { %5380 = vpow2.f32 %v5179_v0 }
 0x6c4   :  { %v1550_v27 = vor.u32 1.1754944e-38, %v1549_v14  ;;  %vm1548_vm4 = vcmp.eq.f32.partialorder %v1547_v55, 8.507059e+37 }
 0x6c8   :  { %v5379_v43 = vpop.eup %5378 }
 0x6c9   :  { %v5381_v41 = vpop.eup %5380  ;;  %v1539_v62 = vmul.f32 %v5379_v43, %v1537_v46  ;;  %vm1544_vm14 = vweird.f32 %v5379_v43 }
 0x6ca   :  { %v1696_v63 = vadd.f32 1.0, %v5381_v41  ;;  %vm1545_vm0 = vmor %vm1543_vm15, %vm1544_vm14 }
 0x6cb   :  { %v1540_v25 = vsub.f32 1.0, %v1539_v62 }
 0x6cc   :  { %5382 = vrcp.f32 %v1696_v63  ;;  %v1708_v45 = vand.u32 2147483648, %v1696_v63  ;;  %vm1702_vm6 = vweird.f32 %v1696_v63  ;;  %v1706_v46 = vand.u32 2147483647, %v1696_v63 }
 0x6cd   :  { %v1541_v9 = vmul.f32 %v5379_v43, %v1540_v25 }
 0x6ce   :  { %vm1707_vm8 = vcmp.eq.f32.partialorder %v1706_v46, 8.507059e+37 }
 0x6cf   :  { %v1542_v10 = vadd.f32 %v5379_v43, %v1541_v9 }
 0x6d1   :  { %v1546_v54 = vsel %vm1545_vm0, %v5379_v43, %v1542_v10  ;;  %v1709_v43 = vor.u32 1.1754944e-38, %v1708_v45 }
 0x6d2   :  { %v5383_v50 = vpop.eup %5382  ;;  %v1551_v5 = vsel %vm1548_vm4, %v1550_v27, %v1546_v54 }
 0x6d3   :  { %v1698_v29 = vmul.f32 %v5383_v50, %v1696_v63  ;;  %vm1703_vm5 = vweird.f32 %v5383_v50 }
 0x6d4   :  { %vm1704_vm7 = vmor %vm1702_vm6, %vm1703_vm5 }
 0x6d5   :  { %v1699_v0 = vsub.f32 1.0, %v1698_v29 }
 0x6d7   :  { %v1700_v25 = vmul.f32 %v5383_v50, %v1699_v0 }
 0x6d9   :  { %v1701_v9 = vadd.f32 %v5383_v50, %v1700_v25  ;;  %v1713_v25 = vrot.slane %v7145_v2, 6 }
 0x6db   :  { %v1705_v38 = vsel %vm1704_vm7, %v5383_v50, %v1701_v9  ;;  %v1715_v9 = vadd.f32 %v1713_v25, %v6725_v17 }
 0x6dc   :  { %v7160_v55 = vsel %vm1707_vm8, %v1709_v43, %v1705_v38  ;;  %v1597_v43 = vsub.f32 1.0, %v1551_v5 }
 0x6dd   :  { %v5180_v46 = vmul.f32 -1.442695, %v1715_v9 }
 0x6fc   :  { %v1585_v4 = vpop.permute.xlu2 %1584 }
 0x713   :  { %v1583_v56 = vpop.permute.xlu1 %1582 }
 0x714   :  { %v1586_v41 = vsel %vm689_vm3, %v1583_v56, %v1585_v4 }
 0x715   :  { %v1588_v62 = vmul.f32 %v1586_v41, %v1551_v5 }
 0x717   :  { %1590 = vrot.lane.b32.xlu2 %v1588_v62, %s6099_s3 }
 0x71b   :  { %v1744_v10 = vpop.permute.xlu1 %1743 }
 0x721   :  { %v1742_v14 = vpop.permute.xlu0 %1741 }
 0x722   :  { %v1745_v29 = vsel %vm689_vm3, %v1742_v14, %v1744_v10  ;;  %v1610_v10 = vrot.slane %v6935_v28, 6 }
 0x723   :  { %v1747_v56 = vmul.f32 %v1745_v29, %v7160_v55  ;;  %v1598_v29 = vsub.f32 1.0, %v7150_v15  ;;  %v3335_v15 = vsel %vm3333_vm9, %v6765_v16, %v6945_v31 }
 0x725   :  { %1749 = vrot.lane.b32.xlu0 %v1747_v56, %s6099_s3 }
 0x771   :  { %v1591_v54 = vpop.permute.xlu2 %1590 }
 0x772   :  { %v1593_v27 = vadd.f32 %v1591_v54, %v6734_v19  ;;  %v1594_v4 = vadd.f32 %v1591_v54, %v6739_v36 }
 0x774   :  { %5384 = vtanh.f32 %v1593_v27  ;;  %v1614_v27 = vmul.f32 %v1610_v10, %v1551_v5 }
 0x775   :  { %5386 = vtanh.f32 %v1594_v4 }
 0x77a   :  { %v5385_v50 = vpop.eup %5384 }
 0x77b   :  { %v5387_v45 = vpop.eup %5386  ;;  %1601 = vrot.lane.b32.xlu1 %v5385_v50, %s6098_s0 }
 0x77c   :  { %1603 = vrot.lane.b32.xlu2 %v5387_v45, %s6098_s0 }
 0x797   :  { %v1750_v38 = vpop.permute.xlu0 %1749 }
 0x798   :  { %v1752_v63 = vadd.f32 %v1750_v38, %v6725_v17  ;;  %v1753_v0 = vadd.f32 %v1750_v38, %v6688_v26 }
 0x79a   :  { %5388 = vtanh.f32 %v1752_v63 }
 0x79b   :  { %5390 = vtanh.f32 %v1753_v0  ;;  %v3334_v0 = vsel %vm3333_vm9, %v6761_v47, %v6935_v28 }
 0x79c   :  { %5392 = vpow2.f32 %v5180_v46 }
 0x7a0   :  { %v5389_v41 = vpop.eup %5388 }
 0x7a1   :  { %v5391_v62 = vpop.eup %5390  ;;  %1760 = vrot.lane.b32.xlu0 %v5389_v41, %s6098_s0 }
 0x7a2   :  { %1762 = vrot.lane.b32.xlu1 %v5391_v62, %s6098_s0  ;;  %v5393_v54 = vpop.eup %5392 }
 0x7a3   :  { %v1719_v38 = vadd.f32 1.0, %v5393_v54 }
 0x7a5   :  { %5394 = vrcp.f32 %v1719_v38  ;;  %v1731_v9 = vand.u32 2147483648, %v1719_v38  ;;  %vm1725_vm12 = vweird.f32 %v1719_v38  ;;  %v1729_v46 = vand.u32 2147483647, %v1719_v38 }
 0x7a7   :  { %v1732_v10 = vor.u32 1.1754944e-38, %v1731_v9  ;;  %vm1730_vm14 = vcmp.eq.f32.partialorder %v1729_v46, 8.507059e+37  ;;  %v9193_v9 = vld [vmem:[#allocation68_spill] sm:$0xff]  ;;  %v9194_v46 = vld [vmem:[#allocation69_spill] sm:$0xff] }
 0x7ab   :  { %v5395_v47 = vpop.eup %5394 }
 0x7ac   :  { %v1721_v28 = vmul.f32 %v5395_v47, %v1719_v38  ;;  %vm1726_vm11 = vweird.f32 %v5395_v47 }
 0x7ad   :  { %vm1727_vm13 = vmor %vm1725_vm12, %vm1726_vm11 }
 0x7ae   :  { %v1722_v16 = vsub.f32 1.0, %v1721_v28 }
 0x7b0   :  { %v1723_v31 = vmul.f32 %v5395_v47, %v1722_v16 }
 0x7b2   :  { %v1724_v25 = vadd.f32 %v5395_v47, %v1723_v31 }
 0x7d6   :  { %v1604_v14 = vpop.permute.xlu2 %1603 }
 0x7ed   :  { %v1602_v56 = vpop.permute.xlu1 %1601 }
 0x7ee   :  { %v1605_v4 = vsel %vm687_vm2, %v1602_v56, %v1604_v14  ;;  %v1608_v50 = vmul.f32 %v1602_v56, %v1597_v43  ;;  %v1728_v43 = vsel %vm1727_vm13, %v5395_v47, %v1724_v25  ;;  %v1769_v56 = vrot.slane %v6948_v49, 2  ;;  %v9230_v49 = vld [vmem:[#allocation59_spill] sm:$0xff] }
 0x7ef   :  { %v1609_v45 = vmul.f32 %v1605_v4, %v1598_v29  ;;  %v1733_v14 = vsel %vm1730_vm14, %v1732_v10, %v1728_v43  ;;  %v1756_v29 = vsub.f32 1.0, %v7160_v55  ;;  %v9195_v43 = vld [vmem:[#allocation66_spill] sm:$0xff]  ;;  %v9196_v10 = vld [vmem:[#allocation72_spill] sm:$0xff] }
 0x7f0   :  { %v7178_v2 = vadd.f32 %v1614_v27, %v1608_v50  ;;  %v1773_v27 = vmul.f32 %v1769_v56, %v7160_v55  ;;  %v1757_v50 = vsub.f32 1.0, %v1733_v14  ;;  %v9199_v56 = vld [vmem:[#allocation76_spill] sm:$0xff] }
 0x7f1   :  { %v7181_v63 = vadd.f32 %v7154_v6, %v1609_v45  ;;  %v1770_v45 = vrot.slane %v6951_v12, 2  ;;  %v9233_v12 = vld [vmem:[#allocation87_spill] sm:$0xff] }
 0x7f2   :  { %v1779_v5 = vrot.slane %v7178_v2, 4  ;;  %v7192_v41 = vsel %vm3336_vm10, %v3334_v0, %v7178_v2 }
 0x7f3   :  { %v1780_v62 = vrot.slane %v7181_v63, 4  ;;  %v7197_v6 = vsel %vm3336_vm10, %v3335_v15, %v7181_v63 }
 0x7f4   :  { %1781 = vrot.lane.b32.xlu2 %v1779_v5, %s6098_s0  ;;  %v1774_v5 = vmul.f32 %v1770_v45, %v1733_v14  ;;  %v9197_v14 = vld [vmem:[#allocation73_spill] sm:$0xff] }
 0x7f5   :  { %1783 = vrot.lane.b32.xlu0 %v1780_v62, %s6098_s0 }
 0x813   :  { %v1761_v54 = vpop.permute.xlu0 %1760 }
 0x814   :  { %v1767_v4 = vmul.f32 %v1761_v54, %v1756_v29  ;;  %v1763_v0 = vpop.permute.xlu1 %1762  ;;  %v9198_v29 = vld [vmem:[#allocation70_spill] sm:$0xff] }
 0x815   :  { %v1764_v15 = vsel %vm687_vm2, %v1761_v54, %v1763_v0  ;;  %v9200_v54 = vld [vmem:[#allocation77_spill] sm:$0xff] }
 0x816   :  { %v7206_v38 = vadd.f32 %v1773_v27, %v1767_v4  ;;  %v1768_v62 = vmul.f32 %v1764_v15, %v1757_v50  ;;  %v9201_v27 = vld [vmem:[#allocation74_spill] sm:$0xff]  ;;  %v9203_v15 = vld [vmem:[#allocation60_spill] sm:$0xff] }
 0x817   :  { %v9202_v4 = vld [vmem:[#allocation78_spill] sm:$0xff] }
 0x818   :  { %9191 = vst [vmem:[#allocation88_spill] sm:$0xff] %v7206_v38  ;;  %v7208_v47 = vadd.f32 %v1774_v5, %v1768_v62  ;;  %v9020_v28 = vrot.slane %v7206_v38, 2  ;;  %v9204_v5 = vld [vmem:[#allocation61_spill] sm:$0xff]  ;;  %v9205_v62 = vld [vmem:[#allocation62_spill] sm:$0xff] }
 0x81a   :  { %9192 = vst [vmem:[#allocation89_spill] sm:$0xff] %v7208_v47  ;;  %1940 = vrot.lane.b32.xlu1 %v9020_v28, %s6098_s0  ;;  %v9019_v55 = vrot.slane %v7208_v47, 2  ;;  %v9227_v28 = vld [vmem:[#allocation57_spill] sm:$0xff] }
 0x81c   :  { %1942 = vrot.lane.b32.xlu2 %v9019_v55, %s6098_s0  ;;  %v9224_v55 = vld [vmem:[#allocation44_spill] sm:$0xff] }
 0x84e   :  { %v1782_v16 = vpop.permute.xlu2 %1781 }
 0x867   :  { %v1784_v31 = vpop.permute.xlu0 %1783 }
 0x868   :  { %v1785_v25 = vsel %vm687_vm2, %v1782_v16, %v1784_v31  ;;  %v9206_v16 = vld [vmem:[#allocation39_spill] sm:$0xff] }
 0x869   :  { %5181 = vmatmul.msk.f32.vlgmr.msra.gmra.mxu1 %vm698_vm1, %v1785_v25  ;;  %5182 = vmatmul.msk.f32.vlgmr.msra.gmra.mxu2 %vm698_vm1, %v1785_v25  ;;  %v9207_v31 = vld [vmem:[#allocation63_spill] sm:$0xff] }
 0x86a   :  { %5183 = vmatmul.msk.f32.vlgmr.msra.gmra.mxu3 %vm698_vm1, %v1785_v25  ;;  %2140 = vmatpush.msra.mxu1 %v6962_v61  ;;  %v9208_v25 = vld [vmem:[#allocation45_spill] sm:$0xff] }
 0x86b   :  { %2247 = vmatpush.msra.mxu2 %v6966_v34  ;;  %2267 = vmatpush.msra.mxu3 %v6969_v53 }
 0x86c   :  { %2141 = vmatpush.msra.mxu1 %v6973_v35 }
 0x86d   :  { %2248 = vmatpush.msra.mxu2 %v6979_v23  ;;  %2268 = vmatpush.msra.mxu3 %v6985_v57 }
 0x86e   :  { %2142 = vmatpush.msra.mxu1 %v6982_v51 }
 0x86f   :  { %2249 = vmatpush.msra.mxu2 %v6991_v59  ;;  %2269 = vmatpush.msra.mxu3 %v6997_v21 }
 0x870   :  { %2143 = vmatpush.msra.mxu1 %v6994_v44 }
 0x871   :  { %2250 = vmatpush.msra.mxu2 %v7008_v42  ;;  %2270 = vmatpush.msra.mxu3 %v7011_v11 }
 0x872   :  { %2144 = vmatpush.msra.mxu1 %v7002_v24 }
 0x873   :  { %2251 = vmatpush.msra.mxu2 %v7020_v40  ;;  %2271 = vmatpush.msra.mxu3 %v7023_v13 }
 0x874   :  { %2145 = vmatpush.msra.mxu1 %v7014_v7 }
 0x875   :  { %2252 = vmatpush.msra.mxu2 %v7032_v52  ;;  %2272 = vmatpush.msra.mxu3 %v7035_v60 }
 0x876   :  { %2146 = vmatpush.msra.mxu1 %v7026_v3  ;;  %v1943_v50 = vpop.permute.xlu2 %1942 }
 0x877   :  { %2253 = vmatpush.msra.mxu2 %v7044_v8  ;;  %2273 = vmatpush.msra.mxu3 %v7047_v39 }
 0x878   :  { %2147 = vmatpush.msra.mxu1 %v7038_v33 }
 0x879   :  { %2254 = vmatpush.msra.mxu2 %v9193_v9  ;;  %2274 = vmatpush.msra.mxu3 %v9194_v46 }
 0x87a   :  { %2148 = vmatpush.msra.mxu1 %v9195_v43 }
 0x87b   :  { %2255 = vmatpush.msra.mxu2 %v9196_v10  ;;  %2275 = vmatpush.msra.mxu3 %v9197_v14 }
 0x87c   :  { %2149 = vmatpush.msra.mxu1 %v9198_v29 }
 0x87d   :  { %2256 = vmatpush.msra.mxu2 %v9199_v56  ;;  %2276 = vmatpush.msra.mxu3 %v9200_v54 }
 0x87e   :  { %2150 = vmatpush.msra.mxu1 %v9201_v27 }
 0x87f   :  { %2257 = vmatpush.msra.mxu2 %v7092_v58  ;;  %2277 = vmatpush.msra.mxu3 %v7095_v1 }
 0x880   :  { %2151 = vmatpush.msra.mxu1 %v9202_v4  ;;  %v9237_v4 = vld [vmem:[#allocation52_spill] sm:$0xff] }
 0x881   :  { %2258 = vmatpush.msra.mxu2 %v7102_v18  ;;  %2278 = vmatpush.msra.mxu3 %v7105_v48 }
 0x88c   :  { %v1941_v45 = vpop.permute.xlu1 %1940 }
 0x88d   :  { %v1944_v0 = vsel %vm687_vm2, %v1941_v45, %v1943_v50  ;;  %v9209_v50 = vld [vmem:[#allocation46_spill] sm:$0xff]  ;;  %v9212_v45 = vld [vmem:[#allocation41_spill] sm:$0xff] }
 0x88e   :  { %5186 = vmatmul.msk.f32.vlgmr.msrb.gmra.mxu0 %vm698_vm1, %v1944_v0  ;;  %5187 = vmatmul.msk.f32.vlgmr.msrb.gmra.mxu1 %vm698_vm1, %v1944_v0 }
 0x88f   :  { %5188 = vmatmul.msk.f32.vlgmr.msrb.gmra.mxu2 %vm698_vm1, %v1944_v0  ;;  %2287 = vmatpush.msrb.mxu0 %v9203_v15  ;;  %v9215_v0 = vld [vmem:[#allocation48_spill] sm:$0xff] }
 0x890   :  { %2404 = vmatpush.msrb.mxu1 %v6827_v20  ;;  %2424 = vmatpush.msrb.mxu2 %v6830_v22  ;;  %v9210_v20 = vld [vmem:[#allocation64_spill] sm:$0xff]  ;;  %v9211_v22 = vld [vmem:[#allocation34_spill] sm:$0xff] }
 0x891   :  { %2288 = vmatpush.msrb.mxu0 %v9204_v5  ;;  %v9217_v15 = vld [vmem:[#allocation36_spill] sm:$0xff]  ;;  %v9218_v5 = vld [vmem:[#allocation43_spill] sm:$0xff] }
 0x892   :  { %2405 = vmatpush.msrb.mxu1 %v6834_v30  ;;  %2425 = vmatpush.msrb.mxu2 %v6837_v32  ;;  %v9213_v30 = vld [vmem:[#allocation65_spill] sm:$0xff]  ;;  %v9214_v32 = vld [vmem:[#allocation47_spill] sm:$0xff] }
 0x893   :  { %2289 = vmatpush.msrb.mxu0 %v9205_v62 }
 0x894   :  { %2406 = vmatpush.msrb.mxu1 %v6841_v37  ;;  %2426 = vmatpush.msrb.mxu2 %v9206_v16  ;;  %v9216_v37 = vld [vmem:[#allocation67_spill] sm:$0xff] }
 0x895   :  { %2290 = vmatpush.msrb.mxu0 %v9207_v31  ;;  %v9219_v16 = vld [vmem:[#allocation71_spill] sm:$0xff] }
 0x896   :  { %2407 = vmatpush.msrb.mxu1 %v9208_v25  ;;  %2427 = vmatpush.msrb.mxu2 %v9209_v50  ;;  %v9220_v25 = vld [vmem:[#allocation38_spill] sm:$0xff]  ;;  %v9221_v50 = vld [vmem:[#allocation40_spill] sm:$0xff] }
 0x897   :  { %2291 = vmatpush.msrb.mxu0 %v9210_v20 }
 0x898   :  { %2408 = vmatpush.msrb.mxu1 %v9211_v22  ;;  %2428 = vmatpush.msrb.mxu2 %v9212_v45  ;;  %v9222_v22 = vld [vmem:[#allocation75_spill] sm:$0xff]  ;;  %v9223_v45 = vld [vmem:[#allocation42_spill] sm:$0xff] }
 0x899   :  { %2292 = vmatpush.msrb.mxu0 %v9213_v30 }
 0x89a   :  { %2409 = vmatpush.msrb.mxu1 %v9214_v32  ;;  %2429 = vmatpush.msrb.mxu2 %v9215_v0  ;;  %v9225_v32 = vld [vmem:[#allocation79_spill] sm:$0xff]  ;;  %v9226_v0 = vld [vmem:[#allocation56_spill] sm:$0xff] }
 0x89b   :  { %2293 = vmatpush.msrb.mxu0 %v9216_v37 }
 0x89c   :  { %2410 = vmatpush.msrb.mxu1 %v9217_v15  ;;  %2430 = vmatpush.msrb.mxu2 %v9218_v5  ;;  %v9228_v15 = vld [vmem:[#allocation82_spill] sm:$0xff] }
 0x89d   :  { %2294 = vmatpush.msrb.mxu0 %v9219_v16  ;;  %v9229_v5 = vld [vmem:[#allocation58_spill] sm:$0xff] }
 0x89e   :  { %2411 = vmatpush.msrb.mxu1 %v9220_v25  ;;  %2431 = vmatpush.msrb.mxu2 %v9221_v50  ;;  %v9231_v25 = vld [vmem:[#allocation85_spill] sm:$0xff]  ;;  %v9232_v50 = vld [vmem:[#allocation86_spill] sm:$0xff] }
 0x89f   :  { %2295 = vmatpush.msrb.mxu0 %v9222_v22  ;;  %v9234_v22 = vld [vmem:[#allocation31_spill] sm:$0xff] }
 0x8a0   :  { %2412 = vmatpush.msrb.mxu1 %v9223_v45  ;;  %2432 = vmatpush.msrb.mxu2 %v9224_v55 }
 0x8a1   :  { %2296 = vmatpush.msrb.mxu0 %v9225_v32 }
 0x8a2   :  { %2413 = vmatpush.msrb.mxu1 %v9226_v0  ;;  %2433 = vmatpush.msrb.mxu2 %v9227_v28 }
 0x8a3   :  { %2297 = vmatpush.msrb.mxu0 %v9228_v15 }
 0x8a4   :  { %2414 = vmatpush.msrb.mxu1 %v9229_v5  ;;  %2434 = vmatpush.msrb.mxu2 %v9230_v49 }
 0x8a5   :  { %2298 = vmatpush.msrb.mxu0 %v9231_v25 }
 0x8a6   :  { %2415 = vmatpush.msrb.mxu1 %v9232_v50  ;;  %2435 = vmatpush.msrb.mxu2 %v9233_v12 }
 0x8e6   :  { %v1805_v25 = vpop.f32.mrf.mxu1 }
 0x8ec   :  { %v1825_v45 = vpop.f32.mrf.mxu2 }
 0x8ed   :  { %v1872_v55 = vrot.slane %v1825_v45, 2  ;;  %v1894_v32 = vadd.f32 %v1825_v45, %v9234_v22  ;;  %v1845_v16 = vpop.f32.mrf.mxu3 }
 0x8ee   :  { %v1895_v0 = vadd.f32 %v1845_v16, %v9234_v22 }
 0x8ef   :  { %v1874_v28 = vadd.f32 %v1872_v55, %v6734_v19  ;;  %v1898_v15 = vrot.slane %v1894_v32, 2 }
 0x8f0   :  { %v1899_v48 = vrot.slane %v1895_v0, 2 }
 0x8f1   :  { %v5185_v5 = vmul.f32 -1.442695, %v1874_v28  ;;  %1900 = vrot.lane.b32.xlu0 %v1898_v15, %s6099_s3  ;;  %v9235_v28 = vld [vmem:[#allocation49_spill] sm:$0xff] }
 0x8f2   :  { %1902 = vrot.lane.b32.xlu1 %v1899_v48, %s6099_s3  ;;  %v1929_v48 = vrot.slane %v7181_v63, 6 }
 0x8f3   :  { %5396 = vpow2.f32 %v5185_v5 }
 0x8f9   :  { %v5397_v49 = vpop.eup %5396 }
 0x8fa   :  { %v1878_v50 = vadd.f32 1.0, %v5397_v49 }
 0x8fc   :  { %5398 = vrcp.f32 %v1878_v50  ;;  %v1890_v37 = vand.u32 2147483648, %v1878_v50  ;;  %v1888_v16 = vand.u32 2147483647, %v1878_v50  ;;  %vm1884_vm0 = vweird.f32 %v1878_v50 }
 0x8fe   :  { %v1891_v32 = vor.u32 1.1754944e-38, %v1890_v37  ;;  %vm1889_vm5 = vcmp.eq.f32.partialorder %v1888_v16, 8.507059e+37  ;;  %v1849_v37 = vrot.slane %v1805_v25, 2 }
 0x902   :  { %v5399_v12 = vpop.eup %5398 }
 0x903   :  { %v1880_v18 = vmul.f32 %v5399_v12, %v1878_v50  ;;  %vm1885_vm15 = vweird.f32 %v5399_v12 }
 0x904   :  { %vm1886_vm4 = vmor %vm1884_vm0, %vm1885_vm15 }
 0x905   :  { %v1881_v45 = vsub.f32 1.0, %v1880_v18 }
 0x907   :  { %v1882_v1 = vmul.f32 %v5399_v12, %v1881_v45 }
 0x909   :  { %v1883_v55 = vadd.f32 %v5399_v12, %v1882_v1 }
 0x90b   :  { %v7303_v0 = vpop.f32.mrf.mxu1  ;;  %v1887_v15 = vsel %vm1886_vm4, %v5399_v12, %v1883_v55  ;;  %v9236_v12 = vld [vmem:[#allocation53_spill] sm:$0xff]  ;;  %v1964_v22 = vpop.f32.mrf.mxu0 }
 0x90c   :  { %v2047_v5 = vadd.f32 %v7303_v0, %v9235_v28  ;;  %v7308_v49 = vsel %vm1889_vm5, %v1891_v32, %v1887_v15  ;;  %v1851_v45 = vadd.f32 %v1849_v37, %v9236_v12  ;;  %v2007_v58 = vadd.f32 %v1964_v22, %v9237_v4 }
 0x90d   :  { %v7311_v18 = vmul.f32 %v1929_v48, %v7308_v49  ;;  %vm3339_vm5 = vcmask 1045504  }
 0x90e   :  { %2051 = vrot.lane.b32.xlu2 %v2047_v5, %s6099_s3  ;;  %v5184_v16 = vmul.f32 -1.442695, %v1851_v45  ;;  %v5189_v30 = vmul.f32 -1.442695, %v2007_v58 }
 0x910   :  { %5400 = vpow2.f32 %v5184_v16 }
 0x912   :  { %v2004_v1 = vpop.f32.mrf.mxu2 }
 0x913   :  { %v2048_v50 = vadd.f32 %v2004_v1, %v9235_v28 }
 0x915   :  { %2053 = vrot.lane.b32.xlu0 %v2048_v50, %s6099_s3 }
 0x916   :  { %v5401_v63 = vpop.eup %5400 }
 0x917   :  { %v1855_v55 = vadd.f32 1.0, %v5401_v63 }
 0x919   :  { %5402 = vrcp.f32 %v1855_v55  ;;  %v1867_v1 = vand.u32 2147483648, %v1855_v55  ;;  %vm1861_vm7 = vweird.f32 %v1855_v55  ;;  %v1865_v25 = vand.u32 2147483647, %v1855_v55 }
 0x91a   :  { %5404 = vpow2.f32 %v5189_v30 }
 0x91b   :  { %v1868_v12 = vor.u32 1.1754944e-38, %v1867_v1  ;;  %vm1866_vm11 = vcmp.eq.f32.partialorder %v1865_v25, 8.507059e+37 }
 0x91f   :  { %v5403_v32 = vpop.eup %5402 }
 0x920   :  { %v1857_v15 = vmul.f32 %v5403_v32, %v1855_v55  ;;  %vm1862_vm6 = vweird.f32 %v5403_v32  ;;  %v5405_v16 = vpop.eup %5404 }
 0x921   :  { %vm1863_vm8 = vmor %vm1861_vm7, %vm1862_vm6  ;;  %v2011_v58 = vadd.f32 1.0, %v5405_v16 }
 0x922   :  { %v1858_v48 = vsub.f32 1.0, %v1857_v15 }
 0x923   :  { %5406 = vrcp.f32 %v2011_v58  ;;  %vm2017_vm13 = vweird.f32 %v2011_v58 }
 0x924   :  { %v1859_v5 = vmul.f32 %v5403_v32, %v1858_v48 }
 0x926   :  { %v1860_v54 = vadd.f32 %v5403_v32, %v1859_v5  ;;  %v2021_v5 = vand.u32 2147483647, %v2011_v58 }
 0x928   :  { %v1864_v50 = vsel %vm1863_vm8, %v5403_v32, %v1860_v54  ;;  %v2023_v32 = vand.u32 2147483648, %v2011_v58  ;;  %vm2022_vm15 = vcmp.eq.f32.partialorder %v2021_v5, 8.507059e+37 }
 0x929   :  { %v7318_v63 = vsel %vm1866_vm11, %v1868_v12, %v1864_v50  ;;  %v5407_v30 = vpop.eup %5406 }
 0x92a   :  { %v2013_v22 = vmul.f32 %v5407_v30, %v2011_v58  ;;  %vm2018_vm12 = vweird.f32 %v5407_v30  ;;  %v2024_v25 = vor.u32 1.1754944e-38, %v2023_v32 }
 0x92b   :  { %vm2019_vm14 = vmor %vm2017_vm13, %vm2018_vm12 }
 0x92c   :  { %v2014_v55 = vsub.f32 1.0, %v2013_v22 }
 0x92e   :  { %v2015_v48 = vmul.f32 %v5407_v30, %v2014_v55 }
 0x930   :  { %v2016_v54 = vadd.f32 %v5407_v30, %v2015_v48 }
 0x932   :  { %v2020_v1 = vsel %vm2019_vm14, %v5407_v30, %v2016_v54 }
 0x933   :  { %v2025_v12 = vsel %vm2022_vm15, %v2024_v25, %v2020_v1 }
 0x963   :  { %v1901_v37 = vpop.permute.xlu0 %1900 }
 0x964   :  { %v1903_v45 = vpop.permute.xlu1 %1902 }
 0x965   :  { %v1904_v15 = vsel %vm689_vm3, %v1901_v37, %v1903_v45 }
 0x966   :  { %v1906_v4 = vmul.f32 %v1904_v15, %v7318_v63 }
 0x968   :  { %1908 = vrot.lane.b32.xlu1 %v1906_v4, %s6099_s3  ;;  %v2052_v50 = vpop.permute.xlu2 %2051 }
 0x987   :  { %v2054_v37 = vpop.permute.xlu0 %2053 }
 0x988   :  { %v2055_v45 = vsel %vm689_vm3, %v2052_v50, %v2054_v37  ;;  %v2066_v50 = vsub.f32 1.0, %v2025_v12 }
 0x989   :  { %v2057_v16 = vmul.f32 %v2055_v45, %v2025_v12 }
 0x98b   :  { %2059 = vrot.lane.b32.xlu2 %v2057_v16, %s6099_s3 }
 0x9da   :  { %v1909_v15 = vpop.permute.xlu1 %1908 }
 0x9db   :  { %v1911_v4 = vadd.f32 %v1909_v15, %v6734_v19  ;;  %v1912_v22 = vadd.f32 %v1909_v15, %v6739_v36  ;;  %v2027_v19 = vadd.f32 %v7303_v0, %v6725_v17  ;;  %v1915_v0 = vsub.f32 1.0, %v7318_v63 }
 0x9dd   :  { %5408 = vtanh.f32 %v1911_v4  ;;  %v5190_v36 = vmul.f32 -1.442695, %v2027_v19 }
 0x9de   :  { %5410 = vtanh.f32 %v1912_v22 }
 0x9e3   :  { %v5409_v58 = vpop.eup %5408 }
 0x9e4   :  { %v5411_v55 = vpop.eup %5410  ;;  %1919 = vrot.lane.b32.xlu0 %v5409_v58, %s6098_s0 }
 0x9e5   :  { %1921 = vrot.lane.b32.xlu1 %v5411_v55, %s6098_s0  ;;  %v2060_v30 = vpop.permute.xlu2 %2059  ;;  %v1928_v55 = vrot.slane %v7178_v2, 6 }
 0x9e6   :  { %v2062_v48 = vadd.f32 %v2060_v30, %v6725_v17  ;;  %v2063_v54 = vadd.f32 %v2060_v30, %v6688_v26  ;;  %v9238_v26 = vrot.slane %v7206_v38, 2  ;;  %v7670_v38 = vld [vmem:[#allocation10 + $0x68] sm:$0xff] }
 0x9e7   :  { %9279 = vst [vmem:[#allocation61_spill] sm:$0xff] %v7670_v38 }
 0x9e8   :  { %5412 = vtanh.f32 %v2062_v48  ;;  %v2081_v16 = vmul.f32 %v2025_v12, %v9238_v26 }
 0x9e9   :  { %5414 = vtanh.f32 %v2063_v54  ;;  %v1916_v54 = vsub.f32 1.0, %v7308_v49 }
 0x9ea   :  { %5416 = vpow2.f32 %v5190_v36 }
 0x9ee   :  { %v5413_v32 = vpop.eup %5412 }
 0x9ef   :  { %v5415_v5 = vpop.eup %5414  ;;  %2070 = vrot.lane.b32.xlu2 %v5413_v32, %s6098_s0  ;;  %v1932_v32 = vmul.f32 %v1928_v55, %v7318_v63  ;;  %v9242_v55 = vrot.slane %v7208_v47, 2 }
 0x9f0   :  { %2072 = vrot.lane.b32.xlu0 %v5415_v5, %s6098_s0  ;;  %v5417_v1 = vpop.eup %5416 }
 0x9f1   :  { %v2031_v25 = vadd.f32 1.0, %v5417_v1 }
 0x9f3   :  { %5418 = vrcp.f32 %v2031_v25  ;;  %vm2037_vm4 = vweird.f32 %v2031_v25  ;;  %v2041_v26 = vand.u32 2147483647, %v2031_v25 }
 0x9f5   :  { %vm2042_vm7 = vcmp.eq.f32.partialorder %v2041_v26, 8.507059e+37  ;;  %v7501_v26 = vld [vmem:[#allocation7 + $0x20] sm:$0xff] }
 0x9f9   :  { %v5419_v37 = vpop.eup %5418 }
 0x9fa   :  { %v2033_v22 = vmul.f32 %v5419_v37, %v2031_v25  ;;  %vm2038_vm0 = vweird.f32 %v5419_v37 }
 0x9fb   :  { %vm2039_vm6 = vmor %vm2037_vm4, %vm2038_vm0 }
 0x9fc   :  { %v2034_v58 = vsub.f32 1.0, %v2033_v22  ;;  %v7664_v22 = vld [vmem:[#allocation7 + $0x70] sm:$0xff] }
 0x9fd   :  { %9278 = vst [vmem:[#allocation60_spill] sm:$0xff] %v7664_v22 }
 0x9fe   :  { %v2035_v17 = vmul.f32 %v5419_v37, %v2034_v58 }
 0xa00   :  { %v2036_v19 = vadd.f32 %v5419_v37, %v2035_v17 }
 0xa02   :  { %v2040_v63 = vsel %vm2039_vm6, %v5419_v37, %v2036_v19  ;;  %v7492_v19 = vld [vmem:[#allocation7 + $0x30] sm:$0xff] }
 0xa49   :  { %v2071_v45 = vpop.permute.xlu2 %2070 }
 0xa4a   :  { %v2077_v15 = vmul.f32 %v2071_v45, %v2066_v50  ;;  %v2043_v50 = vand.u32 2147483648, %v2031_v25 }
 0xa4c   :  { %v7337_v4 = vadd.f32 %v2081_v16, %v2077_v15  ;;  %v2044_v25 = vor.u32 1.1754944e-38, %v2043_v50  ;;  %v7498_v50 = vld [vmem:[#allocation7 + $0x18] sm:$0xff] }
 0xa4e   :  { %9239 = vst [vmem:[#allocation68_spill] sm:$0xff] %v7337_v4  ;;  %2236 = vrot.lane.b32.xlu0 %v7337_v4, %s6098_s0 }
 0xa56   :  { %v1920_v30 = vpop.permute.xlu0 %1919 }
 0xa57   :  { %v1922_v48 = vpop.permute.xlu1 %1921  ;;  %v1926_v12 = vmul.f32 %v1920_v30, %v1915_v0 }
 0xa58   :  { %v1923_v5 = vsel %vm687_vm2, %v1920_v30, %v1922_v48 }
 0xa59   :  { %v1927_v36 = vmul.f32 %v1923_v5, %v1916_v54  ;;  %v7346_v1 = vadd.f32 %v1932_v32, %v1926_v12  ;;  %v7486_v12 = vld [vmem:[#allocation7 + $0x48] sm:$0xff]  ;;  %v7489_v5 = vld [vmem:[#allocation7 + $0x50] sm:$0xff] }
 0xa5b   :  { %v7349_v2 = vadd.f32 %v7311_v18, %v1927_v36  ;;  %v2087_v16 = vrot.slane %v7346_v1, 6  ;;  %v7355_v49 = vsel %vm3339_vm5, %v7192_v41, %v7346_v1  ;;  %v2045_v41 = vsel %vm2042_vm7, %v2044_v25, %v2040_v63  ;;  %v7495_v36 = vld [vmem:[#allocation7 + $0x38] sm:$0xff]  ;;  %v9259_v25 = vld [vmem:[#allocation87_spill] sm:$0xff] }
 0xa5c   :  { %9240 = vst [vmem:[#allocation69_spill] sm:$0xff] %v7355_v49  ;;  %v2067_v37 = vsub.f32 1.0, %v2045_v41  ;;  %v2082_v30 = vmul.f32 %v2045_v41, %v9242_v55  ;;  %v9258_v63 = vld [vmem:[#allocation86_spill] sm:$0xff] }
 0xa5d   :  { %2089 = vrot.lane.b32.xlu1 %v2087_v16, %s6098_s0  ;;  %v2088_v15 = vrot.slane %v7349_v2, 6  ;;  %v7364_v18 = vsel %vm3339_vm5, %v7197_v6, %v7349_v2  ;;  %v2383_v2 = vrot.slane %v7337_v4, 2  ;;  %v7667_v4 = vld [vmem:[#allocation10 + $0x60] sm:$0xff]  ;;  %v7673_v49 = vld [vmem:[#allocation7 + $0x58] sm:$0xff] }
 0xa5e   :  { %9241 = vst [vmem:[#allocation66_spill] sm:$0xff] %v7364_v18 }
 0xa5f   :  { %2091 = vrot.lane.b32.xlu2 %v2088_v15, %s6098_s0 }
 0xa62   :  { %v2073_v58 = vpop.permute.xlu0 %2072 }
 0xa63   :  { %v2074_v17 = vsel %vm687_vm2, %v2071_v45, %v2073_v58  ;;  %v7483_v45 = vld [vmem:[#allocation7 + $0x68] sm:$0xff] }
 0xa64   :  { %v2078_v0 = vmul.f32 %v2074_v17, %v2067_v37  ;;  %v9260_v37 = vld [vmem:[#allocation31_spill] sm:$0xff] }
 0xa66   :  { %v7374_v48 = vadd.f32 %v2082_v30, %v2078_v0 }
 0xa68   :  { %9243 = vst [vmem:[#allocation72_spill] sm:$0xff] %v7374_v48  ;;  %2238 = vrot.lane.b32.xlu1 %v7374_v48, %s6098_s0 }
 0xab9   :  { %v2092_v6 = vpop.permute.xlu2 %2091 }
 0xacf   :  { %v2090_v54 = vpop.permute.xlu1 %2089 }
 0xad0   :  { %v2093_v32 = vsel %vm687_vm2, %v2090_v54, %v2092_v6 }
 0xad1   :  { %5191 = vmatmul.msk.f32.vlgmr.msrb.gmra.mxu3 %vm698_vm1, %v2093_v32  ;;  %5192 = vmatmul.msk.f32.vlgmr.msra.gmra.mxu0 %vm698_vm1, %v2093_v32 }
 0xad2   :  { %5193 = vmatmul.msk.f32.vlgmr.msra.gmra.mxu1 %vm698_vm1, %v2093_v32  ;;  %2444 = vmatpush.msrb.mxu3 %v6962_v61  ;;  %v2237_v61 = vpop.permute.xlu0 %2236 }
 0xad3   :  { %2563 = vmatpush.msra.mxu0 %v6966_v34  ;;  %2583 = vmatpush.msra.mxu1 %v6969_v53 }
 0xad4   :  { %2445 = vmatpush.msrb.mxu3 %v6973_v35  ;;  %v7402_v35 = vld [vmem:[#allocation10 + $0x118] sm:$0xff] }
 0xad5   :  { %2564 = vmatpush.msra.mxu0 %v6979_v23  ;;  %2584 = vmatpush.msra.mxu1 %v6985_v57  ;;  %v7408_v23 = vld [vmem:[#allocation10 + $0x100] sm:$0xff] }
 0xad6   :  { %2446 = vmatpush.msrb.mxu3 %v6982_v51  ;;  %9244 = vst [vmem:[#allocation73_spill] sm:$0xff] %v7408_v23  ;;  %v9247_v51 = vld [vmem:[#allocation80_spill] sm:$0xff]  ;;  %v9248_v57 = vld [vmem:[#allocation78_spill] sm:$0xff] }
 0xad7   :  { %2565 = vmatpush.msra.mxu0 %v6991_v59  ;;  %2585 = vmatpush.msra.mxu1 %v6997_v21  ;;  %v9249_v59 = vld [vmem:[#allocation81_spill] sm:$0xff]  ;;  %v9251_v21 = vld [vmem:[#allocation83_spill] sm:$0xff] }
 0xad8   :  { %2447 = vmatpush.msrb.mxu3 %v6994_v44  ;;  %v9250_v44 = vld [vmem:[#allocation67_spill] sm:$0xff] }
 0xad9   :  { %2566 = vmatpush.msra.mxu0 %v7008_v42  ;;  %2586 = vmatpush.msra.mxu1 %v7011_v11  ;;  %v7433_v42 = vld [vmem:[#allocation7 + $0x108] sm:$0xff] }
 0xada   :  { %v2239_v34 = vpop.permute.xlu1 %2238  ;;  %2448 = vmatpush.msrb.mxu3 %v7002_v24  ;;  %v9252_v24 = vld [vmem:[#allocation84_spill] sm:$0xff]  ;;  %v9253_v11 = vld [vmem:[#allocation71_spill] sm:$0xff] }
 0xadb   :  { %v2240_v53 = vsel %vm687_vm2, %v2237_v61, %v2239_v34  ;;  %2567 = vmatpush.msra.mxu0 %v7020_v40  ;;  %2587 = vmatpush.msra.mxu1 %v7023_v13  ;;  %v7440_v40 = vld [vmem:[#allocation7 + $0xf0] sm:$0xff]  ;;  %v9254_v13 = vld [vmem:[#allocation75_spill] sm:$0xff] }
 0xadc   :  { %5196 = vmatmul.msk.f32.vlgmr.msra.gmra.mxu2 %vm698_vm1, %v2240_v53  ;;  %5197 = vmatmul.msk.f32.vlgmr.msra.gmra.mxu3 %vm698_vm1, %v2240_v53 }
 0xadd   :  { %5198 = vmatmul.msk.f32.vlgmr.msrb.gmra.mxu0 %vm698_vm1, %v2240_v53  ;;  %2449 = vmatpush.msrb.mxu3 %v7014_v7  ;;  %v7437_v7 = vld [vmem:[#allocation7 + $0x110] sm:$0xff]  ;;  %v9261_v53 = vld [vmem:[#allocation51_spill] sm:$0xff] }
 0xade   :  { %2603 = vmatpush.msra.mxu2 %v7402_v35  ;;  %2568 = vmatpush.msra.mxu0 %v7032_v52  ;;  %v7447_v52 = vld [vmem:[#allocation7 + $0xd8] sm:$0xff] }
 0xadf   :  { %2450 = vmatpush.msrb.mxu3 %v7026_v3  ;;  %2588 = vmatpush.msra.mxu1 %v7035_v60  ;;  %v7444_v3 = vld [vmem:[#allocation7 + $0xf8] sm:$0xff]  ;;  %v9255_v60 = vld [vmem:[#allocation79_spill] sm:$0xff] }
 0xae0   :  { %2604 = vmatpush.msra.mxu2 %v7408_v23  ;;  %2569 = vmatpush.msra.mxu0 %v7044_v8  ;;  %v9246_v8 = vld [vmem:[#allocation65_spill] sm:$0xff] }
 0xae1   :  { %2451 = vmatpush.msrb.mxu3 %v7038_v33  ;;  %2589 = vmatpush.msra.mxu1 %v7047_v39  ;;  %v9245_v39 = vld [vmem:[#allocation77_spill] sm:$0xff]  ;;  %v7451_v33 = vld [vmem:[#allocation7 + $0xe0] sm:$0xff] }
 0xae2   :  { %2605 = vmatpush.msra.mxu2 %v9205_v62  ;;  %2570 = vmatpush.msra.mxu0 %v9193_v9  ;;  %v7454_v9 = vld [vmem:[#allocation7 + $0xc0] sm:$0xff]  ;;  %v7474_v62 = vld [vmem:[#allocation7 + $0x78] sm:$0xff] }
 0xae3   :  { %2452 = vmatpush.msrb.mxu3 %v9195_v43  ;;  %2590 = vmatpush.msra.mxu1 %v9194_v46  ;;  %v9256_v46 = vld [vmem:[#allocation82_spill] sm:$0xff]  ;;  %v7458_v43 = vld [vmem:[#allocation7 + $0xc8] sm:$0xff] }
 0xae4   :  { %2606 = vmatpush.msra.mxu2 %v9207_v31  ;;  %2571 = vmatpush.msra.mxu0 %v9196_v10  ;;  %v7461_v10 = vld [vmem:[#allocation7 + $0xa8] sm:$0xff]  ;;  %v7477_v31 = vld [vmem:[#allocation7 + $0x80] sm:$0xff] }
 0xae5   :  { %2453 = vmatpush.msrb.mxu3 %v9198_v29  ;;  %2591 = vmatpush.msra.mxu1 %v9197_v14  ;;  %v9257_v14 = vld [vmem:[#allocation85_spill] sm:$0xff] }
 0xae6   :  { %2607 = vmatpush.msra.mxu2 %v9210_v20  ;;  %2572 = vmatpush.msra.mxu0 %v9199_v56  ;;  %v7465_v29 = vld [vmem:[#allocation7 + $0xb0] sm:$0xff]  ;;  %v7480_v20 = vld [vmem:[#allocation7 + $0x60] sm:$0xff] }
 0xae7   :  { %2454 = vmatpush.msrb.mxu3 %v9201_v27  ;;  %2592 = vmatpush.msra.mxu1 %v9245_v39  ;;  %v7468_v56 = vld [vmem:[#allocation7 + $0x90] sm:$0xff]  ;;  %v7471_v27 = vld [vmem:[#allocation7 + $0x98] sm:$0xff]  ;;  %v9262_v39 = vperm.slane %v9261_v53, 0 }
 0xae8   :  { %2608 = vmatpush.msra.mxu2 %v9246_v8  ;;  %2573 = vmatpush.msra.mxu0 %v9247_v51  ;;  %v9263_v8 = vld [vmem:[#allocation30_spill] sm:$0xff] }
 0xae9   :  { %2455 = vmatpush.msrb.mxu3 %v9248_v57  ;;  %2593 = vmatpush.msra.mxu1 %v9249_v59  ;;  %v7523_v51 = vadd.f32 %v9263_v8, %v9262_v39 }
 0xaea   :  { %2609 = vmatpush.msra.mxu2 %v9250_v44  ;;  %2574 = vmatpush.msra.mxu0 %v9251_v21 }
 0xaeb   :  { %2594 = vmatpush.msra.mxu1 %v9252_v24  ;;  %2722 = vmatpush.msra.mxu3 %v7433_v42  ;;  %9264 = vst [vmem:[#allocation70_spill] sm:$0xff] %v7523_v51 }
 0xaec   :  { %2610 = vmatpush.msra.mxu2 %v9253_v11  ;;  %2742 = vmatpush.msrb.mxu0 %v7437_v7  ;;  %v9265_v11 = vld [vmem:[#allocation50_spill] sm:$0xff] }
 0xaed   :  { %2723 = vmatpush.msra.mxu3 %v7440_v40 }
 0xaee   :  { %2611 = vmatpush.msra.mxu2 %v9254_v13  ;;  %2743 = vmatpush.msrb.mxu0 %v7444_v3  ;;  %v9266_v13 = vperm.slane %v9265_v11, 0 }
 0xaef   :  { %2724 = vmatpush.msra.mxu3 %v7447_v52 }
 0xaf0   :  { %2612 = vmatpush.msra.mxu2 %v9255_v60  ;;  %2744 = vmatpush.msrb.mxu0 %v7451_v33  ;;  %v9267_v60 = vld [vmem:[#allocation29_spill] sm:$0xff] }
 0xaf1   :  { %2725 = vmatpush.msra.mxu3 %v7454_v9 }
 0xaf2   :  { %2613 = vmatpush.msra.mxu2 %v9256_v46  ;;  %2745 = vmatpush.msrb.mxu0 %v7458_v43  ;;  %v7529_v46 = vadd.f32 %v9267_v60, %v9266_v13 }
 0xaf3   :  { %2726 = vmatpush.msra.mxu3 %v7461_v10 }
 0xaf4   :  { %2614 = vmatpush.msra.mxu2 %v9257_v14  ;;  %2746 = vmatpush.msrb.mxu0 %v7465_v29  ;;  %9268 = vst [vmem:[#allocation76_spill] sm:$0xff] %v7529_v46 }
 0xaf5   :  { %2727 = vmatpush.msra.mxu3 %v7468_v56 }
 0xaf6   :  { %2747 = vmatpush.msrb.mxu0 %v7471_v27 }
 0xaf7   :  { %2728 = vmatpush.msra.mxu3 %v7474_v62 }
 0xaf8   :  { %2748 = vmatpush.msrb.mxu0 %v7477_v31 }
 0xaf9   :  { %2729 = vmatpush.msra.mxu3 %v7480_v20 }
 0xafa   :  { %2749 = vmatpush.msrb.mxu0 %v7483_v45 }
 0xafb   :  { %2730 = vmatpush.msra.mxu3 %v7486_v12 }
 0xafc   :  { %2750 = vmatpush.msrb.mxu0 %v7489_v5 }
 0xafd   :  { %2731 = vmatpush.msra.mxu3 %v7492_v19 }
 0xafe   :  { %2751 = vmatpush.msrb.mxu0 %v7495_v36 }
 0xaff   :  { %2732 = vmatpush.msra.mxu3 %v7498_v50 }
 0xb00   :  { %2752 = vmatpush.msrb.mxu0 %v7501_v26 }
 0xb01   :  { %2733 = vmatpush.msra.mxu3 %v9258_v63 }
 0xb02   :  { %2753 = vmatpush.msrb.mxu0 %v9259_v25 }
 0xb4e   :  { %v7506_v41 = vpop.f32.mrf.mxu0 }
 0xb4f   :  { %v2196_v58 = vadd.f32 %v7506_v41, %v9260_v37  ;;  %v2153_v17 = vpop.f32.mrf.mxu1 }
 0xb50   :  { %v2197_v0 = vadd.f32 %v2153_v17, %v9260_v37 }
 0xb51   :  { %2200 = vrot.lane.b32.xlu2 %v2196_v58, %s6099_s3 }
 0xb52   :  { %2202 = vrot.lane.b32.xlu0 %v2197_v0, %s6099_s3 }
 0xb54   :  { %v2113_v55 = vpop.f32.mrf.mxu3 }
 0xb55   :  { %v2156_v57 = vadd.f32 %v2113_v55, %v7523_v51 }
 0xb57   :  { %v5194_v59 = vmul.f32 -1.442695, %v2156_v57 }
 0xb59   :  { %5420 = vpow2.f32 %v5194_v59 }
 0xb5a   :  { %v2300_v30 = vpop.f32.mrf.mxu0 }
 0xb5b   :  { %v2350_v6 = vadd.f32 %v2300_v30, %v9235_v28 }
 0xb5d   :  { %v2354_v54 = vrot.slane %v2350_v6, 2 }
 0xb5f   :  { %2357 = vrot.lane.b32.xlu2 %v2354_v54, %s6099_s3  ;;  %v7515_v32 = vpop.f32.mrf.mxu3  ;;  %v2260_v44 = vpop.f32.mrf.mxu2 }
 0xb60   :  { %v2349_v61 = vadd.f32 %v7515_v32, %v9235_v28  ;;  %v5421_v21 = vpop.eup %5420  ;;  %v2304_v24 = vrot.slane %v2260_v44, 2 }
 0xb61   :  { %v2160_v14 = vadd.f32 1.0, %v5421_v21 }
 0xb62   :  { %v2353_v34 = vrot.slane %v2349_v61, 2  ;;  %v2306_v63 = vadd.f32 %v2304_v24, %v7529_v46 }
 0xb63   :  { %5422 = vrcp.f32 %v2160_v14  ;;  %v2172_v61 = vand.u32 2147483648, %v2160_v14  ;;  %vm2166_vm11 = vweird.f32 %v2160_v14 }
 0xb64   :  { %2355 = vrot.lane.b32.xlu1 %v2353_v34, %s6099_s3  ;;  %v5199_v25 = vmul.f32 -1.442695, %v2306_v63  ;;  %v2170_v34 = vand.u32 2147483647, %v2160_v14 }
 0xb65   :  { %v2173_v57 = vor.u32 1.1754944e-38, %v2172_v61 }
 0xb66   :  { %5424 = vpow2.f32 %v5199_v25  ;;  %vm2171_vm13 = vcmp.eq.f32.partialorder %v2170_v34, 8.507059e+37 }
 0xb69   :  { %v5423_v58 = vpop.eup %5422 }
 0xb6a   :  { %v2162_v17 = vmul.f32 %v5423_v58, %v2160_v14  ;;  %vm2167_vm8 = vweird.f32 %v5423_v58 }
 0xb6b   :  { %vm2168_vm12 = vmor %vm2166_vm11, %vm2167_vm8 }
 0xb6c   :  { %v5425_v0 = vpop.eup %5424  ;;  %v2163_v55 = vsub.f32 1.0, %v2162_v17 }
 0xb6d   :  { %v2310_v30 = vadd.f32 1.0, %v5425_v0 }
 0xb6e   :  { %v2164_v6 = vmul.f32 %v5423_v58, %v2163_v55 }
 0xb6f   :  { %5426 = vrcp.f32 %v2310_v30  ;;  %v2322_v0 = vand.u32 2147483648, %v2310_v30  ;;  %vm2316_vm15 = vweird.f32 %v2310_v30  ;;  %v2320_v14 = vand.u32 2147483647, %v2310_v30 }
 0xb70   :  { %v2165_v54 = vadd.f32 %v5423_v58, %v2164_v6 }
 0xb71   :  { %v2323_v55 = vor.u32 1.1754944e-38, %v2322_v0  ;;  %vm2321_vm4 = vcmp.eq.f32.partialorder %v2320_v14, 8.507059e+37  ;;  %v9273_v0 = vperm.slane %v9265_v11, 1  ;;  %v9274_v14 = vld [vmem:[#allocation35_spill] sm:$0xff] }
 0xb72   :  { %v2169_v8 = vsel %vm2168_vm12, %v5423_v58, %v2165_v54 }
 0xb73   :  { %v2174_v24 = vsel %vm2171_vm13, %v2173_v57, %v2169_v8  ;;  %v9269_v57 = vperm.slane %v9261_v53, 1 }
 0xb75   :  { %v5427_v39 = vpop.eup %5426 }
 0xb76   :  { %v2312_v21 = vmul.f32 %v5427_v39, %v2310_v30  ;;  %vm2317_vm14 = vweird.f32 %v5427_v39  ;;  %v9271_v30 = vperm.slane %v9261_v53, 2  ;;  %v7556_v53 = vadd.f32 %v9274_v14, %v9273_v0 }
 0xb77   :  { %vm2318_vm0 = vmor %vm2316_vm15, %vm2317_vm14 }
 0xb78   :  { %v2313_v63 = vsub.f32 1.0, %v2312_v21 }
 0xb7a   :  { %v2314_v25 = vmul.f32 %v5427_v39, %v2313_v63 }
 0xb7c   :  { %v2315_v17 = vadd.f32 %v5427_v39, %v2314_v25 }
 0xb7e   :  { %v2319_v58 = vsel %vm2318_vm0, %v5427_v39, %v2315_v17  ;;  %v9272_v39 = vld [vmem:[#allocation33_spill] sm:$0xff] }
 0xb7f   :  { %v7534_v61 = vsel %vm2321_vm4, %v2323_v55, %v2319_v58  ;;  %v7547_v21 = vadd.f32 %v9272_v39, %v9271_v30  ;;  %v9275_v58 = vperm.slane %v9265_v11, 2  ;;  %v9276_v55 = vld [vmem:[#allocation37_spill] sm:$0xff]  ;;  %v2327_v39 = vrot.slane %v7515_v32, 2 }
 0xbab   :  { %v2201_v59 = vpop.permute.xlu2 %2200 }
 0xbb9   :  { %v2358_v6 = vpop.permute.xlu2 %2357 }
 0xbc4   :  { %v2203_v44 = vpop.permute.xlu0 %2202 }
 0xbc5   :  { %v2204_v13 = vsel %vm689_vm3, %v2201_v59, %v2203_v44  ;;  %v9270_v59 = vld [vmem:[#allocation32_spill] sm:$0xff] }
 0xbc6   :  { %v2206_v60 = vmul.f32 %v2204_v13, %v2174_v24  ;;  %v7542_v44 = vadd.f32 %v9270_v59, %v9269_v57 }
 0xbc8   :  { %2208 = vrot.lane.b32.xlu0 %v2206_v60, %s6099_s3  ;;  %v2176_v30 = vadd.f32 %v7506_v41, %v7542_v44 }
 0xbca   :  { %v5195_v11 = vmul.f32 -1.442695, %v2176_v30 }
 0xbd6   :  { %v2356_v54 = vpop.permute.xlu1 %2355 }
 0xbd7   :  { %v2359_v34 = vsel %vm689_vm3, %v2356_v54, %v2358_v6  ;;  %v7561_v6 = vadd.f32 %v9276_v55, %v9275_v58  ;;  %v2230_v58 = vmul.f32 %v2174_v24, %v2087_v16 }
 0xbd8   :  { %v2361_v8 = vmul.f32 %v2359_v34, %v7534_v61 }
 0xbda   :  { %2363 = vrot.lane.b32.xlu1 %v2361_v8, %s6099_s3 }
 0xc3a   :  { %v2209_v13 = vpop.permute.xlu0 %2208 }
 0xc3b   :  { %v2211_v60 = vadd.f32 %v2209_v13, %v7542_v44  ;;  %v2212_v63 = vadd.f32 %v2209_v13, %v7547_v21 }
 0xc3d   :  { %5428 = vtanh.f32 %v2211_v60 }
 0xc3e   :  { %5430 = vtanh.f32 %v2212_v63  ;;  %v2329_v63 = vadd.f32 %v2327_v39, %v7556_v53 }
 0xc43   :  { %v5429_v25 = vpop.eup %5428 }
 0xc44   :  { %v5431_v17 = vpop.eup %5430  ;;  %2219 = vrot.lane.b32.xlu2 %v5429_v25, %s6098_s0  ;;  %v5200_v25 = vmul.f32 -1.442695, %v2329_v63 }
 0xc45   :  { %2221 = vrot.lane.b32.xlu0 %v5431_v17, %s6098_s0  ;;  %v2215_v17 = vsub.f32 1.0, %v2174_v24 }
 0xc4c   :  { %v2364_v54 = vpop.permute.xlu1 %2363 }
 0xc4d   :  { %v2366_v34 = vadd.f32 %v2364_v54, %v7556_v53  ;;  %v2367_v8 = vadd.f32 %v2364_v54, %v7561_v6 }
 0xc4f   :  { %5432 = vtanh.f32 %v2366_v34 }
 0xc50   :  { %5434 = vtanh.f32 %v2367_v8 }
 0xc51   :  { %5436 = vpow2.f32 %v5195_v11 }
 0xc55   :  { %v5433_v57 = vpop.eup %5432 }
 0xc56   :  { %v5435_v59 = vpop.eup %5434  ;;  %2374 = vrot.lane.b32.xlu1 %v5433_v57, %s6098_s0 }
 0xc57   :  { %2376 = vrot.lane.b32.xlu2 %v5435_v59, %s6098_s0  ;;  %v5437_v13 = vpop.eup %5436 }
 0xc58   :  { %v2180_v60 = vadd.f32 1.0, %v5437_v13 }
 0xc5a   :  { %5438 = vrcp.f32 %v2180_v60  ;;  %v2192_v30 = vand.u32 2147483648, %v2180_v60  ;;  %vm2186_vm7 = vweird.f32 %v2180_v60  ;;  %v2190_v39 = vand.u32 2147483647, %v2180_v60 }
 0xc5b   :  { %5440 = vpow2.f32 %v5200_v25 }
 0xc5c   :  { %v2193_v16 = vor.u32 1.1754944e-38, %v2192_v30  ;;  %vm2191_vm11 = vcmp.eq.f32.partialorder %v2190_v39, 8.507059e+37  ;;  %v2370_v39 = vsub.f32 1.0, %v7534_v61 }
 0xc60   :  { %v5439_v0 = vpop.eup %5438 }
 0xc61   :  { %v2182_v41 = vmul.f32 %v5439_v0, %v2180_v60  ;;  %v5441_v34 = vpop.eup %5440  ;;  %vm2187_vm6 = vweird.f32 %v5439_v0 }
 0xc62   :  { %v2333_v32 = vadd.f32 1.0, %v5441_v34  ;;  %vm2188_vm8 = vmor %vm2186_vm7, %vm2187_vm6 }
 0xc63   :  { %v2183_v8 = vsub.f32 1.0, %v2182_v41 }
 0xc64   :  { %5442 = vrcp.f32 %v2333_v32  ;;  %vm2339_vm13 = vweird.f32 %v2333_v32 }
 0xc65   :  { %v2184_v57 = vmul.f32 %v5439_v0, %v2183_v8 }
 0xc67   :  { %v2185_v59 = vadd.f32 %v5439_v0, %v2184_v57  ;;  %v2343_v57 = vand.u32 2147483647, %v2333_v32 }
 0xc69   :  { %v2189_v1 = vsel %vm2188_vm8, %v5439_v0, %v2185_v59  ;;  %v2345_v0 = vand.u32 2147483648, %v2333_v32  ;;  %vm2344_vm15 = vcmp.eq.f32.partialorder %v2343_v57, 8.507059e+37  ;;  %v7604_v57 = vld [vmem:[#allocation10 + $0x108] sm:$0xff] }
 0xc6a   :  { %v5443_v11 = vpop.eup %5442  ;;  %v2194_v13 = vsel %vm2191_vm11, %v2193_v16, %v2189_v1 }
 0xc6b   :  { %v2335_v24 = vmul.f32 %v5443_v11, %v2333_v32  ;;  %v2216_v25 = vsub.f32 1.0, %v2194_v13  ;;  %v2231_v41 = vmul.f32 %v2194_v13, %v2088_v15  ;;  %vm2340_vm12 = vweird.f32 %v5443_v11 }
 0xc6c   :  { %vm2341_vm14 = vmor %vm2339_vm13, %vm2340_vm12  ;;  %v2346_v30 = vor.u32 1.1754944e-38, %v2345_v0  ;;  %v2384_v15 = vrot.slane %v7374_v48, 2  ;;  %v2387_v13 = vmul.f32 %v2383_v2, %v7534_v61  ;;  %v7601_v0 = vld [vmem:[#allocation7 + $0x118] sm:$0xff]  ;;  %v7619_v2 = vld [vmem:[#allocation7 + $0xe8] sm:$0xff] }
 0xc6d   :  { %v2336_v63 = vsub.f32 1.0, %v2335_v24 }
 0xc6f   :  { %v2337_v34 = vmul.f32 %v5443_v11, %v2336_v63 }
 0xc71   :  { %v2338_v60 = vadd.f32 %v5443_v11, %v2337_v34 }
 0xc73   :  { %v2342_v59 = vsel %vm2341_vm14, %v5443_v11, %v2338_v60 }
 0xc9e   :  { %v2220_v14 = vpop.permute.xlu2 %2219 }
 0xc9f   :  { %v2226_v55 = vmul.f32 %v2220_v14, %v2215_v17 }
 0xca1   :  { %v7573_v54 = vadd.f32 %v2230_v58, %v2226_v55 }
 0xca3   :  { %2393 = vrot.lane.b32.xlu0 %v7573_v54, %s6098_s0 }
 0xcb1   :  { %v2377_v1 = vpop.permute.xlu2 %2376 }
 0xcb7   :  { %v2222_v17 = vpop.permute.xlu0 %2221 }
 0xcb8   :  { %v2223_v58 = vsel %vm687_vm2, %v2220_v14, %v2222_v17  ;;  %v2347_v14 = vsel %vm2344_vm15, %v2346_v30, %v2342_v59  ;;  %v7607_v59 = vld [vmem:[#allocation10 + $0x110] sm:$0xff]  ;;  %v7610_v30 = vld [vmem:[#allocation7 + $0x100] sm:$0xff] }
 0xcb9   :  { %v2227_v55 = vmul.f32 %v2223_v58, %v2216_v25  ;;  %v2371_v16 = vsub.f32 1.0, %v2347_v14  ;;  %v2388_v32 = vmul.f32 %v2384_v15, %v2347_v14  ;;  %v7613_v14 = vld [vmem:[#allocation10 + $0xf0] sm:$0xff]  ;;  %v7622_v15 = vld [vmem:[#allocation10 + $0xd8] sm:$0xff] }
 0xcbb   :  { %v7580_v8 = vadd.f32 %v2231_v41, %v2227_v55 }
 0xcbd   :  { %2395 = vrot.lane.b32.xlu1 %v7580_v8, %s6098_s0 }
 0xcc8   :  { %v2375_v24 = vpop.permute.xlu1 %2374 }
 0xcc9   :  { %v2378_v63 = vsel %vm687_vm2, %v2375_v24, %v2377_v1  ;;  %v2381_v25 = vmul.f32 %v2375_v24, %v2370_v39  ;;  %v7616_v39 = vld [vmem:[#allocation10 + $0xf8] sm:$0xff]  ;;  %v7625_v1 = vld [vmem:[#allocation10 + $0xe0] sm:$0xff] }
 0xcca   :  { %v2382_v17 = vmul.f32 %v2378_v63, %v2371_v16  ;;  %v7628_v16 = vld [vmem:[#allocation7 + $0xd0] sm:$0xff]  ;;  %v7631_v24 = vld [vmem:[#allocation10 + $0xc0] sm:$0xff]  ;;  %v7637_v63 = vld [vmem:[#allocation7 + $0xb8] sm:$0xff] }
 0xccb   :  { %v7589_v11 = vadd.f32 %v2387_v13, %v2381_v25  ;;  %v7634_v13 = vld [vmem:[#allocation10 + $0xc8] sm:$0xff] }
 0xccc   :  { %v7591_v58 = vadd.f32 %v2388_v32, %v2382_v17  ;;  %v7640_v25 = vld [vmem:[#allocation10 + $0xa8] sm:$0xff]  ;;  %v7643_v32 = vld [vmem:[#allocation10 + $0xb0] sm:$0xff]  ;;  %v7646_v17 = vld [vmem:[#allocation7 + $0xa0] sm:$0xff] }
 0xccd   :  { %v2550_v55 = vrot.slane %v7589_v11, 6 }
 0xcce   :  { %v2551_v41 = vrot.slane %v7591_v58, 6 }
 0xccf   :  { %2552 = vrot.lane.b32.xlu2 %v2550_v55, %s6098_s0  ;;  %v7649_v55 = vld [vmem:[#allocation10 + $0x90] sm:$0xff] }
 0xcd0   :  { %2554 = vrot.lane.b32.xlu0 %v2551_v41, %s6098_s0  ;;  %v7652_v41 = vld [vmem:[#allocation10 + $0x98] sm:$0xff] }
 0xd15   :  { %v2394_v34 = vpop.permute.xlu0 %2393 }
 0xd29   :  { %v2553_v48 = vpop.permute.xlu2 %2552 }
 0xd2f   :  { %v2396_v60 = vpop.permute.xlu1 %2395 }
 0xd30   :  { %v2397_v61 = vsel %vm687_vm2, %v2394_v34, %v2396_v60  ;;  %v7655_v34 = vld [vmem:[#allocation7 + $0x88] sm:$0xff]  ;;  %v7658_v60 = vld [vmem:[#allocation10 + $0x78] sm:$0xff] }
 0xd31   :  { %5201 = vmatmul.msk.f32.vlgmr.msrb.gmra.mxu1 %vm698_vm1, %v2397_v61  ;;  %5202 = vmatmul.msk.f32.vlgmr.msrb.gmra.mxu2 %vm698_vm1, %v2397_v61 }
 0xd32   :  { %5203 = vmatmul.msk.f32.vlgmr.msrb.gmra.mxu3 %vm698_vm1, %v2397_v61  ;;  %2762 = vmatpush.msrb.mxu1 %v7601_v0  ;;  %v7661_v61 = vld [vmem:[#allocation10 + $0x80] sm:$0xff] }
 0xd33   :  { %2881 = vmatpush.msrb.mxu2 %v7604_v57  ;;  %2901 = vmatpush.msrb.mxu3 %v7607_v59  ;;  %9277 = vst [vmem:[#allocation74_spill] sm:$0xff] %v7661_v61 }
 0xd34   :  { %2763 = vmatpush.msrb.mxu1 %v7610_v30 }
 0xd35   :  { %2882 = vmatpush.msrb.mxu2 %v7613_v14  ;;  %2902 = vmatpush.msrb.mxu3 %v7616_v39 }
 0xd36   :  { %2764 = vmatpush.msrb.mxu1 %v7619_v2 }
 0xd37   :  { %2883 = vmatpush.msrb.mxu2 %v7622_v15  ;;  %2903 = vmatpush.msrb.mxu3 %v7625_v1 }
 0xd38   :  { %2765 = vmatpush.msrb.mxu1 %v7628_v16 }
 0xd39   :  { %2884 = vmatpush.msrb.mxu2 %v7631_v24  ;;  %2904 = vmatpush.msrb.mxu3 %v7634_v13 }
 0xd3a   :  { %2766 = vmatpush.msrb.mxu1 %v7637_v63 }
 0xd3b   :  { %2885 = vmatpush.msrb.mxu2 %v7640_v25  ;;  %2905 = vmatpush.msrb.mxu3 %v7643_v32 }
 0xd3c   :  { %2767 = vmatpush.msrb.mxu1 %v7646_v17 }
 0xd3d   :  { %2886 = vmatpush.msrb.mxu2 %v7649_v55  ;;  %2906 = vmatpush.msrb.mxu3 %v7652_v41 }
 0xd3e   :  { %2768 = vmatpush.msrb.mxu1 %v7655_v34 }
 0xd3f   :  { %2887 = vmatpush.msrb.mxu2 %v7658_v60  ;;  %2907 = vmatpush.msrb.mxu3 %v7661_v61  ;;  %v7677_v61 = vld [vmem:[#allocation10 + $0x48] sm:$0xff] }
 0xd40   :  { %2769 = vmatpush.msrb.mxu1 %v7664_v22  ;;  %v7680_v22 = vld [vmem:[#allocation10 + $0x50] sm:$0xff] }
 0xd41   :  { %2888 = vmatpush.msrb.mxu2 %v7667_v4  ;;  %2908 = vmatpush.msrb.mxu3 %v7670_v38  ;;  %9280 = vst [vmem:[#allocation62_spill] sm:$0xff] %v7680_v22  ;;  %v7686_v38 = vld [vmem:[#allocation7 + $0x40] sm:$0xff] }
 0xd42   :  { %v2555_v47 = vpop.permute.xlu0 %2554  ;;  %2770 = vmatpush.msrb.mxu1 %v7673_v49  ;;  %9281 = vst [vmem:[#allocation39_spill] sm:$0xff] %v7686_v38 }
 0xd43   :  { %v2556_v18 = vsel %vm687_vm2, %v2553_v48, %v2555_v47  ;;  %2889 = vmatpush.msrb.mxu2 %v7677_v61  ;;  %2909 = vmatpush.msrb.mxu3 %v7680_v22  ;;  %v7690_v47 = vld [vmem:[#allocation10 + $0x30] sm:$0xff]  ;;  %v7693_v48 = vld [vmem:[#allocation7 + $0x28] sm:$0xff]  ;;  %v7696_v22 = vld [vmem:[#allocation10 + $0x38] sm:$0xff] }
 0xd44   :  { %5206 = vmatmul.msk.f32.vlgmr.msra.gmra.mxu0 %vm698_vm1, %v2556_v18  ;;  %5207 = vmatmul.msk.f32.vlgmr.msra.gmra.mxu1 %vm698_vm1, %v2556_v18  ;;  %9282 = vst [vmem:[#allocation63_spill] sm:$0xff] %v7690_v47 }
 0xd45   :  { %5208 = vmatmul.msk.f32.vlgmr.msra.gmra.mxu2 %vm698_vm1, %v2556_v18  ;;  %2771 = vmatpush.msrb.mxu1 %v7686_v38  ;;  %9283 = vst [vmem:[#allocation45_spill] sm:$0xff] %v7693_v48  ;;  %v7700_v18 = vld [vmem:[#allocation10 + $0x18] sm:$0xff]  ;;  %v7703_v38 = vld [vmem:[#allocation7 + $0x10] sm:$0xff] }
 0xd46   :  { %2921 = vmatpush.msra.mxu0 %v7402_v35  ;;  %2890 = vmatpush.msrb.mxu2 %v7690_v47  ;;  %9284 = vst [vmem:[#allocation46_spill] sm:$0xff] %v7700_v18  ;;  %v7706_v35 = vld [vmem:[#allocation10 + $0x20] sm:$0xff]  ;;  %v7709_v47 = vld [vmem:[#allocation10 + $0xe8] sm:$0xff] }
 0xd47   :  { %2772 = vmatpush.msrb.mxu1 %v7693_v48  ;;  %2910 = vmatpush.msrb.mxu3 %v7696_v22  ;;  %9285 = vst [vmem:[#allocation64_spill] sm:$0xff] %v7703_v38  ;;  %v7712_v48 = vld [vmem:[#allocation10] sm:$0xff] }
 0xd48   :  { %2922 = vmatpush.msra.mxu0 %v7408_v23  ;;  %2891 = vmatpush.msrb.mxu2 %v7700_v18  ;;  %9286 = vst [vmem:[#allocation34_spill] sm:$0xff] %v7709_v47  ;;  %v7715_v23 = vld [vmem:[#allocation10 + $0x8] sm:$0xff]  ;;  %v7719_v18 = vld [vmem:[#allocation10 + $0xd0] sm:$0xff] }
 0xd49   :  { %2773 = vmatpush.msrb.mxu1 %v7703_v38  ;;  %2911 = vmatpush.msrb.mxu3 %v7706_v35  ;;  %v7724_v38 = vld [vmem:[#allocation10 + $0xb8] sm:$0xff] }
 0xd4a   :  { %2923 = vmatpush.msra.mxu0 %v7709_v47  ;;  %2892 = vmatpush.msrb.mxu2 %v7712_v48  ;;  %v7729_v47 = vld [vmem:[#allocation10 + $0xa0] sm:$0xff] }
 0xd4b   :  { %2912 = vmatpush.msrb.mxu3 %v7715_v23  ;;  %3040 = vmatpush.msra.mxu1 %v7433_v42  ;;  %v7734_v42 = vld [vmem:[#allocation10 + $0x88] sm:$0xff] }
 0xd4c   :  { %2924 = vmatpush.msra.mxu0 %v7719_v18  ;;  %3060 = vmatpush.msra.mxu2 %v7437_v7  ;;  %v7739_v7 = vld [vmem:[#allocation10 + $0x70] sm:$0xff] }
 0xd4d   :  { %3041 = vmatpush.msra.mxu1 %v7440_v40  ;;  %v7744_v40 = vld [vmem:[#allocation10 + $0x58] sm:$0xff] }
 0xd4e   :  { %2925 = vmatpush.msra.mxu0 %v7724_v38  ;;  %3061 = vmatpush.msra.mxu2 %v7444_v3  ;;  %v7749_v3 = vld [vmem:[#allocation10 + $0x40] sm:$0xff] }
 0xd4f   :  { %3042 = vmatpush.msra.mxu1 %v7447_v52  ;;  %v7754_v52 = vld [vmem:[#allocation10 + $0x28] sm:$0xff] }
 0xd50   :  { %2926 = vmatpush.msra.mxu0 %v7729_v47  ;;  %3062 = vmatpush.msra.mxu2 %v7451_v33  ;;  %v7759_v33 = vld [vmem:[#allocation10 + $0x10] sm:$0xff] }
 0xd51   :  { %3043 = vmatpush.msra.mxu1 %v7454_v9  ;;  %v5766_v9 = vld [vmem:[#allocation7] sm:$0xff] }
 0xd52   :  { %2927 = vmatpush.msra.mxu0 %v7734_v42  ;;  %3063 = vmatpush.msra.mxu2 %v7458_v43  ;;  %v5767_v43 = vld [vmem:[#allocation7 + $0x8] sm:$0xff] }
 0xd53   :  { %3044 = vmatpush.msra.mxu1 %v7461_v10 }
 0xd54   :  { %2928 = vmatpush.msra.mxu0 %v7739_v7  ;;  %3064 = vmatpush.msra.mxu2 %v7465_v29 }
 0xd55   :  { %3045 = vmatpush.msra.mxu1 %v7468_v56 }
 0xd56   :  { %2929 = vmatpush.msra.mxu0 %v7744_v40  ;;  %3065 = vmatpush.msra.mxu2 %v7471_v27 }
 0xd57   :  { %3046 = vmatpush.msra.mxu1 %v7474_v62 }
 0xd58   :  { %2930 = vmatpush.msra.mxu0 %v7749_v3  ;;  %3066 = vmatpush.msra.mxu2 %v7477_v31 }
 0xd59   :  { %3047 = vmatpush.msra.mxu1 %v7480_v20 }
 0xd5a   :  { %2931 = vmatpush.msra.mxu0 %v7754_v52  ;;  %3067 = vmatpush.msra.mxu2 %v7483_v45 }
 0xd5b   :  { %3048 = vmatpush.msra.mxu1 %v7486_v12 }
 0xd5c   :  { %2932 = vmatpush.msra.mxu0 %v7759_v33  ;;  %3068 = vmatpush.msra.mxu2 %v7489_v5 }
 0xd5d   :  { %3049 = vmatpush.msra.mxu1 %v7492_v19 }
 0xd5e   :  { %3069 = vmatpush.msra.mxu2 %v7495_v36 }
 0xd5f   :  { %3050 = vmatpush.msra.mxu1 %v7498_v50 }
 0xd60   :  { %3070 = vmatpush.msra.mxu2 %v7501_v26 }
 0xd61   :  { %3051 = vmatpush.msra.mxu1 %v5766_v9 }
 0xd62   :  { %3071 = vmatpush.msra.mxu2 %v5767_v43 }
 0xdae   :  { %v2417_v20 = vpop.f32.mrf.mxu1 }
 0xdaf   :  { %v2461_v26 = vrot.slane %v2417_v20, 6 }
 0xdb1   :  { %v2463_v9 = vadd.f32 %v2461_v26, %v7523_v51 }
 0xdb3   :  { %v5204_v43 = vmul.f32 -1.442695, %v2463_v9 }
 0xdb4   :  { %v7767_v10 = vpop.f32.mrf.mxu2 }
 0xdb5   :  { %v2506_v29 = vadd.f32 %v7767_v10, %v9260_v37  ;;  %v2457_v56 = vpop.f32.mrf.mxu3  ;;  %5444 = vpow2.f32 %v5204_v43 }
 0xdb6   :  { %v2507_v27 = vadd.f32 %v2457_v56, %v9260_v37 }
 0xdb7   :  { %v2510_v62 = vrot.slane %v2506_v29, 6 }
 0xdb8   :  { %v2511_v31 = vrot.slane %v2507_v27, 6 }
 0xdb9   :  { %2512 = vrot.lane.b32.xlu1 %v2510_v62, %s6099_s3 }
 0xdba   :  { %2514 = vrot.lane.b32.xlu2 %v2511_v31, %s6099_s3 }
 0xdbb   :  { %v5445_v56 = vpop.eup %5444 }
 0xdbc   :  { %v2467_v62 = vadd.f32 1.0, %v5445_v56 }
 0xdbe   :  { %5446 = vrcp.f32 %v2467_v62  ;;  %v2479_v26 = vand.u32 2147483648, %v2467_v62  ;;  %vm2473_vm4 = vweird.f32 %v2467_v62  ;;  %v2477_v9 = vand.u32 2147483647, %v2467_v62 }
 0xdc0   :  { %v2480_v56 = vor.u32 1.1754944e-38, %v2479_v26  ;;  %vm2478_vm7 = vcmp.eq.f32.partialorder %v2477_v9, 8.507059e+37 }
 0xdc1   :  { %v7774_v45 = vpop.f32.mrf.mxu1  ;;  %v2576_v29 = vpop.f32.mrf.mxu0 }
 0xdc2   :  { %v2665_v12 = vadd.f32 %v7774_v45, %v9235_v28  ;;  %v2620_v27 = vrot.slane %v2576_v29, 4 }
 0xdc4   :  { %v2669_v5 = vrot.slane %v2665_v12, 4  ;;  %v2622_v31 = vadd.f32 %v2620_v27, %v7529_v46 }
 0xdc6   :  { %2671 = vrot.lane.b32.xlu0 %v2669_v5, %s6099_s3  ;;  %v5209_v12 = vmul.f32 -1.442695, %v2622_v31  ;;  %v5447_v5 = vpop.eup %5446 }
 0xdc7   :  { %v2469_v37 = vmul.f32 %v5447_v5, %v2467_v62  ;;  %vm2474_vm0 = vweird.f32 %v5447_v5 }
 0xdc8   :  { %v2616_v19 = vpop.f32.mrf.mxu2  ;;  %5448 = vpow2.f32 %v5209_v12  ;;  %vm2475_vm6 = vmor %vm2473_vm4, %vm2474_vm0 }
 0xdc9   :  { %v2666_v36 = vadd.f32 %v2616_v19, %v9235_v28 }
 0xdcb   :  { %v2670_v50 = vrot.slane %v2666_v36, 4  ;;  %v2470_v36 = vsub.f32 1.0, %v2469_v37 }
 0xdcd   :  { %2673 = vrot.lane.b32.xlu1 %v2670_v50, %s6099_s3  ;;  %v2471_v50 = vmul.f32 %v5447_v5, %v2470_v36 }
 0xdce   :  { %v5449_v19 = vpop.eup %5448 }
 0xdcf   :  { %v2626_v28 = vadd.f32 1.0, %v5449_v19  ;;  %v2472_v20 = vadd.f32 %v5447_v5, %v2471_v50 }
 0xdd1   :  { %5450 = vrcp.f32 %v2626_v28  ;;  %v2476_v43 = vsel %vm2475_vm6, %v5447_v5, %v2472_v20  ;;  %v2638_v62 = vand.u32 2147483648, %v2626_v28  ;;  %vm2632_vm11 = vweird.f32 %v2626_v28 }
 0xdd2   :  { %v7783_v31 = vsel %vm2478_vm7, %v2480_v56, %v2476_v43  ;;  %v2636_v5 = vand.u32 2147483647, %v2626_v28 }
 0xdd3   :  { %v2639_v26 = vor.u32 1.1754944e-38, %v2638_v62 }
 0xdd4   :  { %vm2637_vm13 = vcmp.eq.f32.partialorder %v2636_v5, 8.507059e+37 }
 0xdd7   :  { %v5451_v29 = vpop.eup %5450 }
 0xdd8   :  { %v2628_v19 = vmul.f32 %v5451_v29, %v2626_v28  ;;  %vm2633_vm8 = vweird.f32 %v5451_v29 }
 0xdd9   :  { %vm2634_vm12 = vmor %vm2632_vm11, %vm2633_vm8 }
 0xdda   :  { %v2629_v36 = vsub.f32 1.0, %v2628_v19 }
 0xddc   :  { %v2630_v50 = vmul.f32 %v5451_v29, %v2629_v36 }
 0xdde   :  { %v2631_v51 = vadd.f32 %v5451_v29, %v2630_v50 }
 0xde0   :  { %v2635_v20 = vsel %vm2634_vm12, %v5451_v29, %v2631_v51 }
 0xde1   :  { %v7788_v56 = vsel %vm2637_vm13, %v2639_v26, %v2635_v20  ;;  %v2484_v20 = vrot.slane %v7767_v10, 6 }
 0xde3   :  { %v2486_v26 = vadd.f32 %v2484_v20, %v7542_v44 }
 0xe14   :  { %v2515_v27 = vpop.permute.xlu2 %2514 }
 0xe2b   :  { %v2513_v46 = vpop.permute.xlu1 %2512 }
 0xe2c   :  { %v2516_v12 = vsel %vm689_vm3, %v2513_v46, %v2515_v27 }
 0xe2d   :  { %v2518_v37 = vmul.f32 %v2516_v12, %v7783_v31 }
 0xe2f   :  { %2520 = vrot.lane.b32.xlu2 %v2518_v37, %s6099_s3 }
 0xe38   :  { %v2672_v9 = vpop.permute.xlu0 %2671 }
 0xe3f   :  { %v2674_v43 = vpop.permute.xlu1 %2673 }
 0xe40   :  { %v2675_v46 = vsel %vm689_vm3, %v2672_v9, %v2674_v43  ;;  %v5205_v9 = vmul.f32 -1.442695, %v2486_v26  ;;  %v2527_v26 = vsub.f32 1.0, %v7783_v31 }
 0xe41   :  { %v2677_v27 = vmul.f32 %v2675_v46, %v7788_v56 }
 0xe43   :  { %2679 = vrot.lane.b32.xlu0 %v2677_v27, %s6099_s3 }
 0xe89   :  { %v2521_v12 = vpop.permute.xlu2 %2520 }
 0xe8a   :  { %v2523_v37 = vadd.f32 %v2521_v12, %v7542_v44  ;;  %v2524_v19 = vadd.f32 %v2521_v12, %v7547_v21 }
 0xe8c   :  { %5452 = vtanh.f32 %v2523_v37 }
 0xe8d   :  { %5454 = vtanh.f32 %v2524_v19 }
 0xe92   :  { %v5453_v28 = vpop.eup %5452 }
 0xe93   :  { %v5455_v51 = vpop.eup %5454  ;;  %2531 = vrot.lane.b32.xlu1 %v5453_v28, %s6098_s0  ;;  %v2643_v28 = vrot.slane %v7774_v45, 4 }
 0xe94   :  { %2533 = vrot.lane.b32.xlu2 %v5455_v51, %s6098_s0 }
 0xe95   :  { %v2645_v10 = vadd.f32 %v2643_v28, %v7556_v53 }
 0xeb5   :  { %v2680_v29 = vpop.permute.xlu0 %2679 }
 0xeb6   :  { %v2682_v36 = vadd.f32 %v2680_v29, %v7556_v53  ;;  %v2683_v50 = vadd.f32 %v2680_v29, %v7561_v6 }
 0xeb8   :  { %5456 = vtanh.f32 %v2682_v36 }
 0xeb9   :  { %5458 = vtanh.f32 %v2683_v50 }
 0xeba   :  { %5460 = vpow2.f32 %v5205_v9  ;;  %v2540_v9 = vrot.slane %v7573_v54, 6 }
 0xebe   :  { %v5457_v62 = vpop.eup %5456 }
 0xebf   :  { %v5459_v5 = vpop.eup %5458  ;;  %2690 = vrot.lane.b32.xlu0 %v5457_v62, %s6098_s0 }
 0xec0   :  { %2692 = vrot.lane.b32.xlu1 %v5459_v5, %s6098_s0  ;;  %v5461_v43 = vpop.eup %5460  ;;  %v5210_v5 = vmul.f32 -1.442695, %v2645_v10 }
 0xec1   :  { %v2490_v46 = vadd.f32 1.0, %v5461_v43  ;;  %v2541_v43 = vrot.slane %v7580_v8, 6 }
 0xec3   :  { %5462 = vrcp.f32 %v2490_v46  ;;  %v2502_v29 = vand.u32 2147483648, %v2490_v46  ;;  %vm2496_vm15 = vweird.f32 %v2490_v46  ;;  %v2500_v36 = vand.u32 2147483647, %v2490_v46 }
 0xec4   :  { %5464 = vpow2.f32 %v5210_v5 }
 0xec5   :  { %v2503_v62 = vor.u32 1.1754944e-38, %v2502_v29  ;;  %vm2501_vm4 = vcmp.eq.f32.partialorder %v2500_v36, 8.507059e+37 }
 0xec9   :  { %v5463_v27 = vpop.eup %5462 }
 0xeca   :  { %v2492_v12 = vmul.f32 %v5463_v27, %v2490_v46  ;;  %vm2497_vm14 = vweird.f32 %v5463_v27  ;;  %v2544_v46 = vmul.f32 %v2540_v9, %v7783_v31 }
 0xecb   :  { %vm2498_vm0 = vmor %vm2496_vm15, %vm2497_vm14 }
 0xecc   :  { %v2493_v37 = vsub.f32 1.0, %v2492_v12 }
 0xece   :  { %v2494_v19 = vmul.f32 %v5463_v27, %v2493_v37 }
 0xed0   :  { %v2495_v51 = vadd.f32 %v5463_v27, %v2494_v19 }
 0xed2   :  { %v2499_v50 = vsel %vm2498_vm0, %v5463_v27, %v2495_v51 }
 0xed3   :  { %v2504_v20 = vsel %vm2501_vm4, %v2503_v62, %v2499_v50  ;;  %v5465_v62 = vpop.eup %5464 }
 0xed4   :  { %v2528_v12 = vsub.f32 1.0, %v2504_v20  ;;  %v2545_v27 = vmul.f32 %v2541_v43, %v2504_v20  ;;  %v2649_v5 = vadd.f32 1.0, %v5465_v62 }
 0xed6   :  { %5466 = vrcp.f32 %v2649_v5  ;;  %vm2655_vm7 = vweird.f32 %v2649_v5 }
 0xedc   :  { %v5467_v31 = vpop.eup %5466 }
 0xedd   :  { %v2651_v9 = vmul.f32 %v5467_v31, %v2649_v5  ;;  %vm2656_vm6 = vweird.f32 %v5467_v31 }
 0xede   :  { %vm2657_vm8 = vmor %vm2655_vm7, %vm2656_vm6 }
 0xeee   :  { %v2534_v45 = vpop.permute.xlu2 %2533 }
 0xf05   :  { %v2532_v37 = vpop.permute.xlu1 %2531 }
 0xf06   :  { %v2535_v19 = vsel %vm687_vm2, %v2532_v37, %v2534_v45  ;;  %v2538_v28 = vmul.f32 %v2532_v37, %v2527_v26  ;;  %v2652_v26 = vsub.f32 1.0, %v2651_v9  ;;  %v2661_v45 = vand.u32 2147483648, %v2649_v5 }
 0xf07   :  { %v2539_v51 = vmul.f32 %v2535_v19, %v2528_v12  ;;  %v2659_v12 = vand.u32 2147483647, %v2649_v5  ;;  %v2700_v9 = vrot.slane %v7591_v58, 2 }
 0xf08   :  { %v7810_v29 = vadd.f32 %v2544_v46, %v2538_v28  ;;  %v2653_v20 = vmul.f32 %v5467_v31, %v2652_v26  ;;  %v2662_v46 = vor.u32 1.1754944e-38, %v2661_v45  ;;  %v2686_v28 = vsub.f32 1.0, %v7788_v56 }
 0xf09   :  { %v7812_v36 = vadd.f32 %v2545_v27, %v2539_v51  ;;  %vm2660_vm11 = vcmp.eq.f32.partialorder %v2659_v12, 8.507059e+37  ;;  %v2699_v27 = vrot.slane %v7589_v11, 2 }
 0xf0a   :  { %v2709_v10 = vrot.slane %v7810_v29, 2  ;;  %v2654_v43 = vadd.f32 %v5467_v31, %v2653_v20 }
 0xf0b   :  { %v2710_v50 = vrot.slane %v7812_v36, 2 }
 0xf0c   :  { %2711 = vrot.lane.b32.xlu2 %v2709_v10, %s6098_s0  ;;  %v2658_v37 = vsel %vm2657_vm8, %v5467_v31, %v2654_v43  ;;  %v2703_v10 = vmul.f32 %v2699_v27, %v7788_v56 }
 0xf0d   :  { %2713 = vrot.lane.b32.xlu0 %v2710_v50, %s6098_s0  ;;  %v2663_v19 = vsel %vm2660_vm11, %v2662_v46, %v2658_v37 }
 0xf0e   :  { %v2687_v62 = vsub.f32 1.0, %v2663_v19  ;;  %v2704_v31 = vmul.f32 %v2700_v9, %v2663_v19  ;;  %v2859_v19 = vrot.slane %v7812_v36, 6 }
 0xf31   :  { %v2691_v51 = vpop.permute.xlu0 %2690 }
 0xf32   :  { %v2697_v50 = vmul.f32 %v2691_v51, %v2686_v28  ;;  %v2693_v26 = vpop.permute.xlu1 %2692 }
 0xf33   :  { %v2694_v20 = vsel %vm687_vm2, %v2691_v51, %v2693_v26 }
 0xf34   :  { %v7823_v5 = vadd.f32 %v2703_v10, %v2697_v50  ;;  %v2698_v43 = vmul.f32 %v2694_v20, %v2687_v62  ;;  %v9299_v62 = vld [vmem:[#allocation49_spill] sm:$0xff] }
 0xf36   :  { %v7825_v45 = vadd.f32 %v2704_v31, %v2698_v43  ;;  %v2868_v12 = vrot.slane %v7823_v5, 4 }
 0xf38   :  { %2870 = vrot.lane.b32.xlu1 %v2868_v12, %s6098_s0  ;;  %v2869_v37 = vrot.slane %v7825_v45, 4 }
 0xf3a   :  { %2872 = vrot.lane.b32.xlu2 %v2869_v37, %s6098_s0  ;;  %v9300_v37 = vld [vmem:[#allocation70_spill] sm:$0xff] }
 0xf66   :  { %v2712_v56 = vpop.permute.xlu2 %2711 }
 0xf7f   :  { %v2714_v46 = vpop.permute.xlu0 %2713 }
 0xf80   :  { %v2715_v28 = vsel %vm687_vm2, %v2712_v56, %v2714_v46 }
 0xf81   :  { %5211 = vmatmul.msk.f32.vlgmr.msra.gmra.mxu3 %vm698_vm1, %v2715_v28  ;;  %5212 = vmatmul.msk.f32.vlgmr.msrb.gmra.mxu0 %vm698_vm1, %v2715_v28 }
 0xf82   :  { %5213 = vmatmul.msk.f32.vlgmr.msrb.gmra.mxu1 %vm698_vm1, %v2715_v28  ;;  %3080 = vmatpush.msra.mxu3 %v7601_v0  ;;  %v9287_v0 = vld [vmem:[#allocation74_spill] sm:$0xff] }
 0xf83   :  { %3199 = vmatpush.msrb.mxu0 %v7604_v57  ;;  %3219 = vmatpush.msrb.mxu1 %v7607_v59  ;;  %v9288_v57 = vld [vmem:[#allocation60_spill] sm:$0xff]  ;;  %v9289_v59 = vld [vmem:[#allocation61_spill] sm:$0xff] }
 0xf84   :  { %3081 = vmatpush.msra.mxu3 %v7610_v30  ;;  %v9290_v30 = vld [vmem:[#allocation62_spill] sm:$0xff] }
 0xf85   :  { %3200 = vmatpush.msrb.mxu0 %v7613_v14  ;;  %3220 = vmatpush.msrb.mxu1 %v7616_v39  ;;  %v9291_v14 = vld [vmem:[#allocation39_spill] sm:$0xff] }
 0xf86   :  { %3082 = vmatpush.msra.mxu3 %v7619_v2  ;;  %v9292_v39 = vld [vmem:[#allocation63_spill] sm:$0xff]  ;;  %v9293_v2 = vld [vmem:[#allocation45_spill] sm:$0xff] }
 0xf87   :  { %3201 = vmatpush.msrb.mxu0 %v7622_v15  ;;  %3221 = vmatpush.msrb.mxu1 %v7625_v1  ;;  %v9294_v15 = vld [vmem:[#allocation46_spill] sm:$0xff] }
 0xf88   :  { %3083 = vmatpush.msra.mxu3 %v7628_v16 }
 0xf89   :  { %3202 = vmatpush.msrb.mxu0 %v7631_v24  ;;  %3222 = vmatpush.msrb.mxu1 %v7634_v13  ;;  %v9296_v24 = vld [vmem:[#allocation73_spill] sm:$0xff]  ;;  %v9297_v13 = vld [vmem:[#allocation34_spill] sm:$0xff] }
 0xf8a   :  { %3084 = vmatpush.msra.mxu3 %v7637_v63 }
 0xf8b   :  { %3203 = vmatpush.msrb.mxu0 %v7640_v25  ;;  %3223 = vmatpush.msrb.mxu1 %v7643_v32  ;;  %v9298_v25 = vld [vmem:[#allocation31_spill] sm:$0xff] }
 0xf8c   :  { %3085 = vmatpush.msra.mxu3 %v7646_v17 }
 0xf8d   :  { %3204 = vmatpush.msrb.mxu0 %v7649_v55  ;;  %3224 = vmatpush.msrb.mxu1 %v7652_v41 }
 0xf8e   :  { %3086 = vmatpush.msra.mxu3 %v7655_v34 }
 0xf8f   :  { %3205 = vmatpush.msrb.mxu0 %v7658_v60  ;;  %3225 = vmatpush.msrb.mxu1 %v9287_v0 }
 0xf90   :  { %3087 = vmatpush.msra.mxu3 %v9288_v57 }
 0xf91   :  { %3206 = vmatpush.msrb.mxu0 %v7667_v4  ;;  %3226 = vmatpush.msrb.mxu1 %v9289_v59  ;;  %v9295_v4 = vld [vmem:[#allocation64_spill] sm:$0xff] }
 0xf92   :  { %3088 = vmatpush.msra.mxu3 %v7673_v49 }
 0xf93   :  { %3207 = vmatpush.msrb.mxu0 %v7677_v61  ;;  %3227 = vmatpush.msrb.mxu1 %v9290_v30 }
 0xf94   :  { %3089 = vmatpush.msra.mxu3 %v9291_v14  ;;  %v2873_v49 = vpop.permute.xlu2 %2872 }
 0xf95   :  { %3208 = vmatpush.msrb.mxu0 %v9292_v39  ;;  %3228 = vmatpush.msrb.mxu1 %v7696_v22  ;;  %v5768_v22 = vld [vmem:[#allocation10 + $0x118] sm:$0xff] }
 0xf96   :  { %3090 = vmatpush.msra.mxu3 %v9293_v2 }
 0xf97   :  { %3209 = vmatpush.msrb.mxu0 %v9294_v15  ;;  %3229 = vmatpush.msrb.mxu1 %v7706_v35 }
 0xf98   :  { %3091 = vmatpush.msra.mxu3 %v9295_v4  ;;  %v9301_v4 = vld [vmem:[#allocation76_spill] sm:$0xff] }
 0xf99   :  { %3210 = vmatpush.msrb.mxu0 %v7712_v48  ;;  %3230 = vmatpush.msrb.mxu1 %v7715_v23 }
 0xfaa   :  { %v2871_v1 = vpop.permute.xlu1 %2870 }
 0xfab   :  { %v2874_v16 = vsel %vm687_vm2, %v2871_v1, %v2873_v49 }
 0xfac   :  { %5216 = vmatmul.msk.f32.vlgmr.msrb.gmra.mxu2 %vm698_vm1, %v2874_v16  ;;  %5217 = vmatmul.msk.f32.vlgmr.msrb.gmra.mxu3 %vm698_vm1, %v2874_v16 }
 0xfad   :  { %5218 = vmatmul.msk.f32.vlgmr.msra.gmra.mxu0 %vm698_vm1, %v2874_v16  ;;  %3239 = vmatpush.msrb.mxu2 %v5768_v22 }
 0xfaf   :  { %3240 = vmatpush.msrb.mxu2 %v9296_v24 }
 0xfb1   :  { %3241 = vmatpush.msrb.mxu2 %v9297_v13 }
 0xfb3   :  { %3242 = vmatpush.msrb.mxu2 %v7719_v18 }
 0xfb5   :  { %3243 = vmatpush.msrb.mxu2 %v7724_v38 }
 0xfb7   :  { %3244 = vmatpush.msrb.mxu2 %v7729_v47 }
 0xfb9   :  { %3245 = vmatpush.msrb.mxu2 %v7734_v42 }
 0xfbb   :  { %3246 = vmatpush.msrb.mxu2 %v7739_v7 }
 0xfbd   :  { %3247 = vmatpush.msrb.mxu2 %v7744_v40 }
 0xfbf   :  { %3248 = vmatpush.msrb.mxu2 %v7749_v3 }
 0xfc1   :  { %3249 = vmatpush.msrb.mxu2 %v7754_v52 }
 0xfc3   :  { %3250 = vmatpush.msrb.mxu2 %v7759_v33 }
 0xffe   :  { %v2755_v23 = vpop.f32.mrf.mxu0 }
 0xfff   :  { %v2802_v63 = vrot.slane %v2755_v23, 4  ;;  %v2824_v32 = vadd.f32 %v2755_v23, %v9298_v25  ;;  %v2775_v17 = vpop.f32.mrf.mxu1 }
0x1000   :  { %v2825_v38 = vadd.f32 %v2775_v17, %v9298_v25 }
0x1001   :  { %v2804_v55 = vadd.f32 %v2802_v63, %v7542_v44  ;;  %v2828_v41 = vrot.slane %v2824_v32, 4 }
0x1002   :  { %v2829_v34 = vrot.slane %v2825_v38, 4 }
0x1003   :  { %v5215_v60 = vmul.f32 -1.442695, %v2804_v55  ;;  %2830 = vrot.lane.b32.xlu0 %v2828_v41, %s6099_s3 }
0x1004   :  { %2832 = vrot.lane.b32.xlu1 %v2829_v34, %s6099_s3  ;;  %v2735_v10 = vpop.f32.mrf.mxu3 }
0x1005   :  { %5468 = vpow2.f32 %v5215_v60  ;;  %v2779_v12 = vrot.slane %v2735_v10, 4 }
0x1007   :  { %v2781_v56 = vadd.f32 %v2779_v12, %v9300_v37 }
0x1009   :  { %v5214_v46 = vmul.f32 -1.442695, %v2781_v56 }
0x100b   :  { %v5469_v61 = vpop.eup %5468 }
0x100c   :  { %v2808_v47 = vadd.f32 1.0, %v5469_v61 }
0x100e   :  { %5470 = vrcp.f32 %v2808_v47  ;;  %v2820_v42 = vand.u32 2147483648, %v2808_v47  ;;  %v2818_v40 = vand.u32 2147483647, %v2808_v47  ;;  %vm2814_vm13 = vweird.f32 %v2808_v47 }
0x100f   :  { %5472 = vpow2.f32 %v5214_v46 }
0x1010   :  { %v2821_v52 = vor.u32 1.1754944e-38, %v2820_v42  ;;  %vm2819_vm15 = vcmp.eq.f32.partialorder %v2818_v40, 8.507059e+37 }
0x1014   :  { %v5471_v48 = vpop.eup %5470 }
0x1015   :  { %v2810_v18 = vmul.f32 %v5471_v48, %v2808_v47  ;;  %vm2815_vm12 = vweird.f32 %v5471_v48  ;;  %v5473_v28 = vpop.eup %5472 }
0x1016   :  { %vm2816_vm14 = vmor %vm2814_vm13, %vm2815_vm12  ;;  %v2785_v0 = vadd.f32 1.0, %v5473_v28 }
0x1017   :  { %v2811_v35 = vsub.f32 1.0, %v2810_v18 }
0x1018   :  { %5474 = vrcp.f32 %v2785_v0  ;;  %v2797_v1 = vand.u32 2147483648, %v2785_v0  ;;  %vm2791_vm4 = vweird.f32 %v2785_v0  ;;  %v2795_v16 = vand.u32 2147483647, %v2785_v0 }
0x1019   :  { %v2812_v7 = vmul.f32 %v5471_v48, %v2811_v35 }
0x101a   :  { %v2798_v23 = vor.u32 1.1754944e-38, %v2797_v1  ;;  %vm2796_vm7 = vcmp.eq.f32.partialorder %v2795_v16, 8.507059e+37 }
0x101b   :  { %v2813_v3 = vadd.f32 %v5471_v48, %v2812_v7 }
0x101d   :  { %v2817_v33 = vsel %vm2816_vm14, %v5471_v48, %v2813_v3 }
0x101e   :  { %v7892_v27 = vsel %vm2819_vm15, %v2821_v52, %v2817_v33  ;;  %v5475_v57 = vpop.eup %5474 }
0x101f   :  { %v7895_v51 = vmul.f32 %v2859_v19, %v7892_v27  ;;  %v2787_v59 = vmul.f32 %v5475_v57, %v2785_v0  ;;  %vm2792_vm0 = vweird.f32 %v5475_v57 }
0x1020   :  { %vm2793_vm6 = vmor %vm2791_vm4, %vm2792_vm0 }
0x1021   :  { %v2788_v30 = vsub.f32 1.0, %v2787_v59 }
0x1023   :  { %v2789_v39 = vmul.f32 %v5475_v57, %v2788_v30 }
0x1025   :  { %v2790_v15 = vadd.f32 %v5475_v57, %v2789_v39 }
0x1027   :  { %v2794_v22 = vsel %vm2793_vm6, %v5475_v57, %v2790_v15 }
0x1028   :  { %v7906_v32 = vsel %vm2796_vm7, %v2798_v23, %v2794_v22 }
0x102a   :  { %v2934_v50 = vpop.f32.mrf.mxu0 }
0x102b   :  { %v2984_v9 = vadd.f32 %v2934_v50, %v9299_v62 }
0x102d   :  { %v2988_v26 = vrot.slane %v2984_v9, 6 }
0x102f   :  { %2991 = vrot.lane.b32.xlu0 %v2988_v26, %s6099_s3  ;;  %v7899_v20 = vpop.f32.mrf.mxu3  ;;  %v2894_v14 = vpop.f32.mrf.mxu2 }
0x1030   :  { %v2983_v31 = vadd.f32 %v7899_v20, %v9299_v62  ;;  %v2938_v2 = vrot.slane %v2894_v14, 6  ;;  %v2961_v0 = vrot.slane %v7899_v20, 6  ;;  %v2858_v20 = vrot.slane %v7810_v29, 6 }
0x1032   :  { %v2987_v43 = vrot.slane %v2983_v31, 6  ;;  %v2940_v49 = vadd.f32 %v2938_v2, %v9301_v4  ;;  %v2963_v57 = vadd.f32 %v2961_v0, %v7556_v53  ;;  %v3017_v2 = vrot.slane %v7823_v5, 2 }
0x1034   :  { %2989 = vrot.lane.b32.xlu2 %v2987_v43, %s6099_s3  ;;  %v5219_v24 = vmul.f32 -1.442695, %v2940_v49  ;;  %v5220_v59 = vmul.f32 -1.442695, %v2963_v57 }
0x1036   :  { %5476 = vpow2.f32 %v5219_v24 }
0x103c   :  { %v5477_v55 = vpop.eup %5476 }
0x103d   :  { %v2944_v41 = vadd.f32 1.0, %v5477_v55  ;;  %v2862_v55 = vmul.f32 %v2858_v20, %v7906_v32 }
0x103f   :  { %5478 = vrcp.f32 %v2944_v41  ;;  %v2956_v18 = vand.u32 2147483648, %v2944_v41  ;;  %vm2950_vm11 = vweird.f32 %v2944_v41  ;;  %v2954_v35 = vand.u32 2147483647, %v2944_v41 }
0x1041   :  { %v2957_v7 = vor.u32 1.1754944e-38, %v2956_v18  ;;  %vm2955_vm13 = vcmp.eq.f32.partialorder %v2954_v35, 8.507059e+37  ;;  %v3343_v35 = vsel %vm3333_vm9, %v7580_v8, %v7812_v36 }
0x1045   :  { %v5479_v34 = vpop.eup %5478 }
0x1046   :  { %v2946_v60 = vmul.f32 %v5479_v34, %v2944_v41  ;;  %vm2951_vm8 = vweird.f32 %v5479_v34 }
0x1047   :  { %vm2952_vm12 = vmor %vm2950_vm11, %vm2951_vm8 }
0x1048   :  { %v2947_v61 = vsub.f32 1.0, %v2946_v60 }
0x104a   :  { %v2948_v47 = vmul.f32 %v5479_v34, %v2947_v61 }
0x104c   :  { %v2949_v48 = vadd.f32 %v5479_v34, %v2948_v47 }
0x104e   :  { %v2953_v42 = vsel %vm2952_vm12, %v5479_v34, %v2949_v48  ;;  %v3342_v48 = vsel %vm3333_vm9, %v7573_v54, %v7810_v29 }
0x104f   :  { %v2958_v52 = vsel %vm2955_vm13, %v2957_v7, %v2953_v42 }
0x1050   :  { %v3004_v39 = vsub.f32 1.0, %v2958_v52  ;;  %v3021_v1 = vmul.f32 %v3017_v2, %v2958_v52 }
0x1075   :  { %v2831_v13 = vpop.permute.xlu0 %2830 }
0x1076   :  { %v2833_v63 = vpop.permute.xlu1 %2832 }
0x1077   :  { %v2834_v17 = vsel %vm689_vm3, %v2831_v13, %v2833_v63  ;;  %v2845_v13 = vsub.f32 1.0, %v7906_v32 }
0x1078   :  { %v2836_v38 = vmul.f32 %v2834_v17, %v7906_v32 }
0x107a   :  { %2838 = vrot.lane.b32.xlu1 %v2836_v38, %s6099_s3  ;;  %v2846_v38 = vsub.f32 1.0, %v7892_v27 }
0x108e   :  { %v2990_v40 = vpop.permute.xlu2 %2989 }
0x10a1   :  { %v2992_v3 = vpop.permute.xlu0 %2991 }
0x10a2   :  { %v2993_v33 = vsel %vm689_vm3, %v2990_v40, %v2992_v3 }
0x10a3   :  { %v2995_v19 = vmul.f32 %v2993_v33, %v2958_v52  ;;  %v3018_v33 = vrot.slane %v7825_v45, 2 }
0x10a5   :  { %2997 = vrot.lane.b32.xlu2 %v2995_v19, %s6099_s3 }
0x10ec   :  { %v2839_v10 = vpop.permute.xlu1 %2838 }
0x10ed   :  { %v2841_v50 = vadd.f32 %v2839_v10, %v7542_v44  ;;  %v2842_v9 = vadd.f32 %v2839_v10, %v7547_v21 }
0x10ef   :  { %5480 = vtanh.f32 %v2841_v50 }
0x10f0   :  { %5482 = vtanh.f32 %v2842_v9 }
0x10f5   :  { %v5481_v26 = vpop.eup %5480 }
0x10f6   :  { %v5483_v31 = vpop.eup %5482  ;;  %2849 = vrot.lane.b32.xlu0 %v5481_v26, %s6098_s0 }
0x10f7   :  { %2851 = vrot.lane.b32.xlu1 %v5483_v31, %s6098_s0 }
0x10ff   :  { %v2998_v43 = vpop.permute.xlu2 %2997 }
0x1100   :  { %v3000_v12 = vadd.f32 %v2998_v43, %v7556_v53  ;;  %v3001_v56 = vadd.f32 %v2998_v43, %v7561_v6 }
0x1102   :  { %5484 = vtanh.f32 %v3000_v12 }
0x1103   :  { %5486 = vtanh.f32 %v3001_v56 }
0x1104   :  { %5488 = vpow2.f32 %v5220_v59 }
0x1108   :  { %v5485_v46 = vpop.eup %5484 }
0x1109   :  { %v5487_v28 = vpop.eup %5486  ;;  %3008 = vrot.lane.b32.xlu2 %v5485_v46, %s6098_s0 }
0x110a   :  { %3010 = vrot.lane.b32.xlu0 %v5487_v28, %s6098_s0  ;;  %v5489_v30 = vpop.eup %5488 }
0x110b   :  { %v2967_v14 = vadd.f32 1.0, %v5489_v30 }
0x110d   :  { %5490 = vrcp.f32 %v2967_v14  ;;  %vm2973_vm15 = vweird.f32 %v2967_v14  ;;  %v2977_v40 = vand.u32 2147483647, %v2967_v14 }
0x110f   :  { %vm2978_vm4 = vcmp.eq.f32.partialorder %v2977_v40, 8.507059e+37 }
0x1113   :  { %v5491_v15 = vpop.eup %5490 }
0x1114   :  { %v2969_v24 = vmul.f32 %v5491_v15, %v2967_v14  ;;  %vm2974_vm14 = vweird.f32 %v5491_v15 }
0x1115   :  { %vm2975_vm0 = vmor %vm2973_vm15, %vm2974_vm14 }
0x1116   :  { %v2970_v60 = vsub.f32 1.0, %v2969_v24 }
0x1118   :  { %v2971_v42 = vmul.f32 %v5491_v15, %v2970_v60 }
0x111a   :  { %v2972_v29 = vadd.f32 %v5491_v15, %v2971_v42 }
0x111c   :  { %v2976_v3 = vsel %vm2975_vm0, %v5491_v15, %v2972_v29 }
0x1163   :  { %v3009_v49 = vpop.permute.xlu2 %3008 }
0x1164   :  { %v3015_v16 = vmul.f32 %v3009_v49, %v3004_v39 }
0x1166   :  { %v7924_v22 = vadd.f32 %v3021_v1, %v3015_v16 }
0x1168   :  { %v2850_v23 = vpop.permute.xlu0 %2849  ;;  %v3186_v63 = vrot.slane %v7924_v22, 2 }
0x1169   :  { %v2852_v17 = vpop.permute.xlu1 %2851  ;;  %v2856_v41 = vmul.f32 %v2850_v23, %v2845_v13 }
0x116a   :  { %v2853_v34 = vsel %vm687_vm2, %v2850_v23, %v2852_v17  ;;  %3188 = vrot.lane.b32.xlu0 %v3186_v63, %s6098_s0 }
0x116b   :  { %v2857_v61 = vmul.f32 %v2853_v34, %v2846_v38  ;;  %v7935_v47 = vadd.f32 %v2862_v55, %v2856_v41 }
0x116d   :  { %v7941_v18 = vadd.f32 %v7895_v51, %v2857_v61  ;;  %v3027_v27 = vrot.slane %v7935_v47, 4  ;;  %v7946_v32 = vsel %vm3336_vm10, %v3342_v48, %v7935_v47  ;;  %v2979_v51 = vand.u32 2147483648, %v2967_v14 }
0x116f   :  { %3029 = vrot.lane.b32.xlu1 %v3027_v27, %s6098_s0  ;;  %v3028_v7 = vrot.slane %v7941_v18, 4  ;;  %v7955_v54 = vsel %vm3336_vm10, %v3343_v35, %v7941_v18  ;;  %v2980_v52 = vor.u32 1.1754944e-38, %v2979_v51  ;;  %v3177_v42 = vrot.slane %v7941_v18, 6 }
0x1171   :  { %3031 = vrot.lane.b32.xlu2 %v3028_v7, %s6098_s0  ;;  %v2981_v8 = vsel %vm2978_vm4, %v2980_v52, %v2976_v3 }
0x1172   :  { %v3005_v36 = vsub.f32 1.0, %v2981_v8  ;;  %v3022_v50 = vmul.f32 %v3018_v33, %v2981_v8 }
0x117c   :  { %v3011_v19 = vpop.permute.xlu0 %3010 }
0x117d   :  { %v3012_v10 = vsel %vm687_vm2, %v3009_v49, %v3011_v19 }
0x117e   :  { %v3016_v9 = vmul.f32 %v3012_v10, %v3005_v36 }
0x1180   :  { %v7960_v26 = vadd.f32 %v3022_v50, %v3016_v9 }
0x1182   :  { %v3187_v31 = vrot.slane %v7960_v26, 2 }
0x1184   :  { %3190 = vrot.lane.b32.xlu1 %v3187_v31, %s6098_s0 }
0x11cb   :  { %v3032_v43 = vpop.permute.xlu2 %3031 }
0x11dc   :  { %v3189_v46 = vpop.permute.xlu0 %3188 }
0x11e1   :  { %v3030_v12 = vpop.permute.xlu1 %3029 }
0x11e2   :  { %v3033_v56 = vsel %vm687_vm2, %v3030_v12, %v3032_v43 }
0x11e3   :  { %5221 = vmatmul.msk.f32.vlgmr.msra.gmra.mxu1 %vm698_vm1, %v3033_v56  ;;  %5222 = vmatmul.msk.f32.vlgmr.msra.gmra.mxu2 %vm698_vm1, %v3033_v56 }
0x11e4   :  { %5223 = vmatmul.msk.f32.vlgmr.msra.gmra.mxu3 %vm698_vm1, %v3033_v56 }
0x11f6   :  { %v3191_v28 = vpop.permute.xlu1 %3190 }
0x11f7   :  { %v3192_v0 = vsel %vm687_vm2, %v3189_v46, %v3191_v28 }
0x11f8   :  { %5226 = vmatmul.msk.f32.vlgmr.msrb.gmra.mxu0 %vm698_vm1, %v3192_v0  ;;  %5227 = vmatmul.msk.f32.vlgmr.msrb.gmra.mxu1 %vm698_vm1, %v3192_v0 }
0x11f9   :  { %5228 = vmatmul.msk.f32.vlgmr.msrb.gmra.mxu2 %vm698_vm1, %v3192_v0 }
0x1260   :  { %v3053_v16 = vpop.f32.mrf.mxu1 }
0x1261   :  { %v3097_v29 = vrot.slane %v3053_v16, 2 }
0x1263   :  { %v3099_v51 = vadd.f32 %v3097_v29, %v9300_v37  ;;  %v9302_v29 = vld [vmem:[#allocation66_spill] sm:$0xff] }
0x1265   :  { %v5224_v40 = vmul.f32 -1.442695, %v3099_v51 }
0x1266   :  { %v3073_v57 = vpop.f32.mrf.mxu2 }
0x1267   :  { %v3120_v59 = vrot.slane %v3073_v57, 2  ;;  %v3142_v30 = vadd.f32 %v3073_v57, %v9298_v25  ;;  %v3093_v14 = vpop.f32.mrf.mxu3 }
0x1268   :  { %v3143_v39 = vadd.f32 %v3093_v14, %v9298_v25 }
0x1269   :  { %v3122_v2 = vadd.f32 %v3120_v59, %v7542_v44  ;;  %v3146_v15 = vrot.slane %v3142_v30, 2 }
0x126a   :  { %v3147_v49 = vrot.slane %v3143_v39, 2 }
0x126b   :  { %v5225_v1 = vmul.f32 -1.442695, %v3122_v2  ;;  %3148 = vrot.lane.b32.xlu2 %v3146_v15, %s6099_s3 }
0x126c   :  { %3150 = vrot.lane.b32.xlu0 %v3147_v49, %s6099_s3 }
0x126d   :  { %5492 = vpow2.f32 %v5225_v1 }
0x1273   :  { %v5493_v24 = vpop.eup %5492 }
0x1274   :  { %v3126_v13 = vadd.f32 1.0, %v5493_v24 }
0x1275   :  { %v7979_v20 = vpop.f32.mrf.mxu1  ;;  %v3212_v3 = vpop.f32.mrf.mxu0 }
0x1276   :  { %5494 = vrcp.f32 %v3126_v13  ;;  %v3295_v23 = vadd.f32 %v7979_v20, %v9299_v62  ;;  %v3138_v60 = vand.u32 2147483648, %v3126_v13  ;;  %v3136_v61 = vand.u32 2147483647, %v3126_v13 }
0x1277   :  { %vm3132_vm7 = vweird.f32 %v3126_v13  ;;  %5496 = vpow2.f32 %v5224_v40  ;;  %v3255_v52 = vadd.f32 %v3212_v3, %v9301_v4  ;;  %v437_v3 = vld [vmem:[#allocation11 + $0x168] sm:$0xff] }
0x1278   :  { %3299 = vrot.lane.b32.xlu1 %v3295_v23, %s6099_s3  ;;  %v3139_v27 = vor.u32 1.1754944e-38, %v3138_v60  ;;  %vm3137_vm11 = vcmp.eq.f32.partialorder %v3136_v61, 8.507059e+37  ;;  %3391 = vmatpush.msrb.mxu3 %v437_v3  ;;  %v420_v3 = vld [vmem:[#allocation11 + $0xe0] sm:$0xff] }
0x1279   :  { %v5229_v36 = vmul.f32 -1.442695, %v3255_v52  ;;  %v461_v52 = vld [vmem:[#allocation11 + $0x228] sm:$0xff] }
0x127a   :  { %3422 = vmatpush.msra.mxu1 %v461_v52 }
0x127b   :  { %5498 = vpow2.f32 %v5229_v36  ;;  %v458_v36 = vld [vmem:[#allocation11 + $0x210] sm:$0xff] }
0x127c   :  { %v5495_v25 = vpop.eup %5494  ;;  %v3252_v17 = vpop.f32.mrf.mxu2  ;;  %3423 = vmatpush.msra.mxu1 %v458_v36  ;;  %v445_v36 = vld [vmem:[#allocation11 + $0x1a8] sm:$0xff] }
0x127d   :  { %v3296_v38 = vadd.f32 %v3252_v17, %v9299_v62  ;;  %v3128_v55 = vmul.f32 %v5495_v25, %v3126_v13  ;;  %vm3133_vm6 = vweird.f32 %v5495_v25  ;;  %v5497_v8 = vpop.eup %5496 }
0x127e   :  { %vm3134_vm8 = vmor %vm3132_vm7, %vm3133_vm6  ;;  %v3103_v33 = vadd.f32 1.0, %v5497_v8  ;;  %v434_v8 = vld [vmem:[#allocation11 + $0x150] sm:$0xff] }
0x127f   :  { %3301 = vrot.lane.b32.xlu2 %v3296_v38, %s6099_s3  ;;  %v3129_v41 = vsub.f32 1.0, %v3128_v55  ;;  %3392 = vmatpush.msrb.mxu3 %v434_v8  ;;  %v444_v8 = vld [vmem:[#allocation11 + $0x1a0] sm:$0xff] }
0x1280   :  { %5500 = vrcp.f32 %v3103_v33  ;;  %v3115_v46 = vand.u32 2147483648, %v3103_v33  ;;  %vm3109_vm13 = vweird.f32 %v3103_v33  ;;  %v3113_v28 = vand.u32 2147483647, %v3103_v33 }
0x1281   :  { %v3130_v34 = vmul.f32 %v5495_v25, %v3129_v41  ;;  %v5499_v19 = vpop.eup %5498 }
0x1282   :  { %v3259_v10 = vadd.f32 1.0, %v5499_v19  ;;  %v3116_v57 = vor.u32 1.1754944e-38, %v3115_v46  ;;  %vm3114_vm15 = vcmp.eq.f32.partialorder %v3113_v28, 8.507059e+37  ;;  %v3275_v19 = vadd.f32 %v7979_v20, %v7556_v53  ;;  %v416_v20 = vld [vmem:[#allocation11 + $0xc0] sm:$0xff]  ;;  %v413_v28 = vld [vmem:[#allocation11 + $0xa8] sm:$0xff] }
0x1283   :  { %v3131_v48 = vadd.f32 %v5495_v25, %v3130_v34  ;;  %v440_v46 = vld [vmem:[#allocation11 + $0x180] sm:$0xff] }
0x1284   :  { %5502 = vrcp.f32 %v3259_v10  ;;  %v3271_v1 = vand.u32 2147483648, %v3259_v10  ;;  %vm3265_vm4 = vweird.f32 %v3259_v10  ;;  %v3269_v16 = vand.u32 2147483647, %v3259_v10 }
0x1285   :  { %v3135_v35 = vsel %vm3134_vm8, %v5495_v25, %v3131_v48 }
0x1286   :  { %v7987_v7 = vsel %vm3137_vm11, %v3139_v27, %v3135_v35  ;;  %v5501_v18 = vpop.eup %5500  ;;  %v3272_v13 = vor.u32 1.1754944e-38, %v3271_v1  ;;  %vm3270_vm7 = vcmp.eq.f32.partialorder %v3269_v16, 8.507059e+37  ;;  %v460_v1 = vld [vmem:[#allocation11 + $0x220] sm:$0xff] }
0x1287   :  { %v7990_v62 = vmul.f32 %v3177_v42, %v7987_v7  ;;  %v3105_v50 = vmul.f32 %v5501_v18, %v3103_v33  ;;  %vm3110_vm12 = vweird.f32 %v5501_v18  ;;  %v455_v33 = vld [vmem:[#allocation11 + $0x1f8] sm:$0xff] }
0x1288   :  { %vm3111_vm14 = vmor %vm3109_vm13, %vm3110_vm12  ;;  %3424 = vmatpush.msra.mxu1 %v455_v33  ;;  %v417_v33 = vld [vmem:[#allocation11 + $0xc8] sm:$0xff] }
0x1289   :  { %v3106_v9 = vsub.f32 1.0, %v3105_v50  ;;  %v425_v50 = vld [vmem:[#allocation11 + $0x108] sm:$0xff] }
0x128a   :  { %v5503_v12 = vpop.eup %5502 }
0x128b   :  { %v3107_v43 = vmul.f32 %v5501_v18, %v3106_v9  ;;  %v3261_v56 = vmul.f32 %v5503_v12, %v3259_v10  ;;  %vm3266_vm0 = vweird.f32 %v5503_v12  ;;  %v452_v10 = vld [vmem:[#allocation11 + $0x1e0] sm:$0xff]  ;;  %v449_v9 = vld [vmem:[#allocation11 + $0x1c8] sm:$0xff] }
0x128c   :  { %vm3267_vm6 = vmor %vm3265_vm4, %vm3266_vm0  ;;  %3425 = vmatpush.msra.mxu1 %v452_v10 }
0x128d   :  { %v3108_v37 = vadd.f32 %v5501_v18, %v3107_v43  ;;  %v3262_v0 = vsub.f32 1.0, %v3261_v56  ;;  %v5230_v43 = vmul.f32 -1.442695, %v3275_v19  ;;  %v446_v56 = vld [vmem:[#allocation11 + $0x1b0] sm:$0xff]  ;;  %v441_v19 = vld [vmem:[#allocation11 + $0x188] sm:$0xff] }
0x128e   :  { %3426 = vmatpush.msra.mxu1 %v449_v9  ;;  %v571_v9 = vld [vmem:[#allocation14 + $0x228] sm:$0xff] }
0x128f   :  { %v3112_v4 = vsel %vm3111_vm14, %v5501_v18, %v3108_v37  ;;  %v3263_v15 = vmul.f32 %v5503_v12, %v3262_v0  ;;  %v428_v18 = vld [vmem:[#allocation11 + $0x120] sm:$0xff]  ;;  %v419_v37 = vld [vmem:[#allocation11 + $0xd8] sm:$0xff] }
0x1290   :  { %v7994_v14 = vsel %vm3114_vm15, %v3116_v57, %v3112_v4  ;;  %3427 = vmatpush.msra.mxu1 %v446_v56  ;;  %v438_v4 = vld [vmem:[#allocation11 + $0x170] sm:$0xff]  ;;  %v408_v56 = vld [vmem:[#allocation11 + $0x80] sm:$0xff] }
0x1291   :  { %v3264_v49 = vadd.f32 %v5503_v12, %v3263_v15  ;;  %v462_v57 = vld [vmem:[#allocation11 + $0x230] sm:$0xff]  ;;  %v435_v15 = vld [vmem:[#allocation11 + $0x158] sm:$0xff] }
0x1292   :  { %3468 = vmatpush.msra.mxu2 %v462_v57  ;;  %v399_v57 = vld [vmem:[#allocation11 + $0x38] sm:$0xff] }
0x1293   :  { %v3268_v24 = vsel %vm3267_vm6, %v5503_v12, %v3264_v49  ;;  %v422_v12 = vld [vmem:[#allocation11 + $0xf0] sm:$0xff]  ;;  %v459_v49 = vld [vmem:[#allocation11 + $0x218] sm:$0xff] }
0x1294   :  { %v7999_v17 = vsel %vm3270_vm7, %v3272_v13, %v3268_v24  ;;  %3469 = vmatpush.msra.mxu2 %v459_v49 }
0x12c5   :  { %v3149_v59 = vpop.permute.xlu2 %3148 }
0x12d9   :  { %v3302_v23 = vpop.permute.xlu2 %3301 }
0x12de   :  { %v3151_v30 = vpop.permute.xlu0 %3150 }
0x12df   :  { %v3152_v39 = vsel %vm689_vm3, %v3149_v59, %v3151_v30  ;;  %v463_v59 = vld [vmem:[#allocation11 + $0x238] sm:$0xff]  ;;  %v410_v30 = vld [vmem:[#allocation11 + $0x90] sm:$0xff] }
0x12e0   :  { %v3154_v2 = vmul.f32 %v3152_v39, %v7994_v14  ;;  %v3163_v39 = vsub.f32 1.0, %v7994_v14  ;;  %3514 = vmatpush.msra.mxu0 %v463_v59  ;;  %v556_v59 = vld [vmem:[#allocation14 + $0x1b0] sm:$0xff] }
0x12e2   :  { %3156 = vrot.lane.b32.xlu0 %v3154_v2, %s6099_s3  ;;  %v3176_v2 = vrot.slane %v7935_v47, 6  ;;  %3515 = vmatpush.msra.mxu0 %v460_v1  ;;  %v407_v47 = vld [vmem:[#allocation11 + $0x78] sm:$0xff] }
0x12e4   :  { %v3180_v13 = vmul.f32 %v3176_v2, %v7994_v14  ;;  %v396_v2 = vld [vmem:[#allocation11 + $0x20] sm:$0xff] }
0x12ea   :  { %v3300_v25 = vpop.permute.xlu1 %3299 }
0x12eb   :  { %v3303_v38 = vsel %vm689_vm3, %v3300_v25, %v3302_v23  ;;  %v432_v25 = vld [vmem:[#allocation11 + $0x140] sm:$0xff] }
0x12ec   :  { %v3305_v55 = vmul.f32 %v3303_v38, %v7999_v17  ;;  %v456_v38 = vld [vmem:[#allocation11 + $0x200] sm:$0xff] }
0x12ed   :  { %3470 = vmatpush.msra.mxu2 %v456_v38 }
0x12ee   :  { %3307 = vrot.lane.b32.xlu1 %v3305_v55, %s6099_s3 }
0x1354   :  { %v3157_v41 = vpop.permute.xlu0 %3156 }
0x1355   :  { %v3159_v34 = vadd.f32 %v3157_v41, %v7542_v44  ;;  %v3160_v60 = vadd.f32 %v3157_v41, %v7547_v21  ;;  %v9303_v44 = vld [vmem:[#allocation69_spill] sm:$0xff]  ;;  %v457_v41 = vld [vmem:[#allocation11 + $0x208] sm:$0xff] }
0x1356   :  { %v9304_v51 = vpack.i.bf16 %v9302_v29, %v9303_v44  ;;  %3516 = vmatpush.msra.mxu0 %v457_v41  ;;  %v451_v29 = vld [vmem:[#allocation11 + $0x1d8] sm:$0xff]  ;;  %v398_v44 = vld [vmem:[#allocation11 + $0x30] sm:$0xff] }
0x1357   :  { %5504 = vtanh.f32 %v3159_v34  ;;  %v404_v34 = vld [vmem:[#allocation11 + $0x60] sm:$0xff] }
0x1358   :  { %5506 = vtanh.f32 %v3160_v60  ;;  %v429_v60 = vld [vmem:[#allocation11 + $0x128] sm:$0xff] }
0x135d   :  { %v5505_v61 = vpop.eup %5504 }
0x135e   :  { %v5507_v48 = vpop.eup %5506  ;;  %3167 = vrot.lane.b32.xlu2 %v5505_v61, %s6098_s0  ;;  %v453_v61 = vld [vmem:[#allocation11 + $0x1e8] sm:$0xff] }
0x135f   :  { %3169 = vrot.lane.b32.xlu0 %v5507_v48, %s6098_s0  ;;  %v454_v48 = vld [vmem:[#allocation11 + $0x1f0] sm:$0xff]  ;;  %3471 = vmatpush.msra.mxu2 %v453_v61 }
0x1360   :  { %v3308_v27 = vpop.permute.xlu1 %3307  ;;  %3517 = vmatpush.msra.mxu0 %v454_v48 }
0x1361   :  { %v3310_v35 = vadd.f32 %v3308_v27, %v7556_v53  ;;  %v3311_v42 = vadd.f32 %v3308_v27, %v7561_v6  ;;  %v431_v6 = vld [vmem:[#allocation11 + $0x138] sm:$0xff]  ;;  %v401_v27 = vld [vmem:[#allocation11 + $0x48] sm:$0xff] }
0x1362   :  { %3393 = vmatpush.msrb.mxu3 %v431_v6  ;;  %v443_v53 = vld [vmem:[#allocation11 + $0x198] sm:$0xff]  ;;  %3518 = vmatpush.msra.mxu0 %v451_v29  ;;  %v392_v6 = vld [vmem:[#allocation11] sm:$0xff]  ;;  %v3314_v29 = vsub.f32 1.0, %v7999_v17 }
0x1363   :  { %5508 = vtanh.f32 %v3310_v35  ;;  %3428 = vmatpush.msra.mxu1 %v443_v53  ;;  %v426_v35 = vld [vmem:[#allocation11 + $0x110] sm:$0xff] }
0x1364   :  { %5510 = vtanh.f32 %v3311_v42  ;;  %3394 = vmatpush.msrb.mxu3 %v428_v18  ;;  %v450_v42 = vld [vmem:[#allocation11 + $0x1d0] sm:$0xff] }
0x1365   :  { %5512 = vpow2.f32 %v5230_v43  ;;  %3429 = vmatpush.msra.mxu1 %v440_v46  ;;  %3472 = vmatpush.msra.mxu2 %v450_v42  ;;  %v442_v18 = vld [vmem:[#allocation11 + $0x190] sm:$0xff]  ;;  %v411_v43 = vld [vmem:[#allocation11 + $0x98] sm:$0xff]  ;;  %v562_v46 = vld [vmem:[#allocation14 + $0x1e0] sm:$0xff] }
0x1366   :  { %3395 = vmatpush.msrb.mxu3 %v425_v50  ;;  %v414_v50 = vld [vmem:[#allocation11 + $0xb0] sm:$0xff] }
0x1367   :  { %5304 = vrot.lane.b32.xlu0 %v9304_v51, %s6098_s0  ;;  %3437 = vmatpush.msrb.mxu1 %v438_v4  ;;  %v423_v51 = vld [vmem:[#allocation11 + $0xf8] sm:$0xff]  ;;  %v402_v4 = vld [vmem:[#allocation11 + $0x50] sm:$0xff] }
0x1368   :  { %3396 = vmatpush.msrb.mxu3 %v422_v12  ;;  %v568_v12 = vld [vmem:[#allocation14 + $0x210] sm:$0xff] }
0x1369   :  { %v5509_v21 = vpop.eup %5508  ;;  %3438 = vmatpush.msrb.mxu1 %v435_v15  ;;  %v553_v15 = vld [vmem:[#allocation14 + $0x198] sm:$0xff] }
0x136a   :  { %v5511_v40 = vpop.eup %5510  ;;  %3318 = vrot.lane.b32.xlu1 %v5509_v21, %s6098_s0  ;;  %3397 = vmatpush.msrb.mxu3 %v419_v37  ;;  %v447_v21 = vld [vmem:[#allocation11 + $0x1b8] sm:$0xff] }
0x136b   :  { %3320 = vrot.lane.b32.xlu2 %v5511_v40, %s6098_s0  ;;  %v5513_v0 = vpop.eup %5512  ;;  %3439 = vmatpush.msrb.mxu1 %v432_v25  ;;  %v448_v40 = vld [vmem:[#allocation11 + $0x1c0] sm:$0xff]  ;;  %v565_v37 = vld [vmem:[#allocation14 + $0x1f8] sm:$0xff] }
0x136c   :  { %3398 = vmatpush.msrb.mxu3 %v416_v20  ;;  %v8022_v24 = vadd.f32 1.0, %v5513_v0  ;;  %3473 = vmatpush.msra.mxu2 %v447_v21  ;;  %v405_v20 = vld [vmem:[#allocation11 + $0x68] sm:$0xff]  ;;  %v550_v25 = vld [vmem:[#allocation14 + $0x180] sm:$0xff] }
0x136d   :  { %3440 = vmatpush.msrb.mxu1 %v429_v60  ;;  %3519 = vmatpush.msra.mxu0 %v448_v40  ;;  %v559_v0 = vld [vmem:[#allocation14 + $0x1c8] sm:$0xff]  ;;  %v436_v60 = vld [vmem:[#allocation11 + $0x160] sm:$0xff]  ;;  %v3329_v40 = vmul.f32 %v7999_v17, %v3186_v63 }
0x136e   :  { %3399 = vmatpush.msrb.mxu3 %v413_v28  ;;  %5514 = vrcp.f32 %v8022_v24  ;;  %3474 = vmatpush.msra.mxu2 %v444_v8  ;;  %vm3285_vm11 = vweird.f32 %v8022_v24  ;;  %v421_v17 = vld [vmem:[#allocation11 + $0xe8] sm:$0xff] }
0x136f   :  { %3441 = vmatpush.msrb.mxu1 %v426_v35  ;;  %3520 = vmatpush.msra.mxu0 %v445_v36  ;;  %v541_v35 = vld [vmem:[#allocation14 + $0x138] sm:$0xff] }
0x1370   :  { %3400 = vmatpush.msrb.mxu3 %v410_v30  ;;  %3475 = vmatpush.msra.mxu2 %v441_v19  ;;  %v3164_v30 = vsub.f32 1.0, %v7987_v7  ;;  %v3289_v7 = vand.u32 2147483647, %v8022_v24 }
0x1371   :  { %3442 = vmatpush.msrb.mxu1 %v423_v51  ;;  %3521 = vmatpush.msra.mxu0 %v442_v18 }
0x1372   :  { %3401 = vmatpush.msrb.mxu3 %v407_v47  ;;  %v393_v47 = vld [vmem:[#allocation11 + $0x8] sm:$0xff]  ;;  %vm3290_vm13 = vcmp.eq.f32.partialorder %v3289_v7, 8.507059e+37  ;;  %v520_v7 = vld [vmem:[#allocation14 + $0x90] sm:$0xff] }
0x1373   :  { %3443 = vmatpush.msrb.mxu1 %v420_v3  ;;  %3570 = vmatpush.msrb.mxu0 %v571_v9  ;;  %v532_v9 = vld [vmem:[#allocation14 + $0xf0] sm:$0xff] }
0x1374   :  { %3402 = vmatpush.msrb.mxu3 %v404_v34  ;;  %v8031_v52 = vpop.eup %5514  ;;  %v439_v34 = vld [vmem:[#allocation11 + $0x178] sm:$0xff] }
0x1375   :  { %v3281_v10 = vmul.f32 %v8031_v52, %v8022_v24  ;;  %3444 = vmatpush.msrb.mxu1 %v417_v33  ;;  %3571 = vmatpush.msrb.mxu0 %v568_v12  ;;  %vm3286_vm8 = vweird.f32 %v8031_v52 }
0x1376   :  { %3403 = vmatpush.msrb.mxu3 %v401_v27  ;;  %vm3287_vm12 = vmor %vm3285_vm11, %vm3286_vm8  ;;  %v433_v27 = vld [vmem:[#allocation11 + $0x148] sm:$0xff] }
0x1377   :  { %3445 = vmatpush.msrb.mxu1 %v414_v50  ;;  %v3282_v53 = vsub.f32 1.0, %v3281_v10  ;;  %3572 = vmatpush.msrb.mxu0 %v565_v37  ;;  %v424_v10 = vld [vmem:[#allocation11 + $0x100] sm:$0xff] }
0x1378   :  { %3404 = vmatpush.msrb.mxu3 %v398_v44 }
0x1379   :  { %3446 = vmatpush.msrb.mxu1 %v411_v43  ;;  %v3283_v28 = vmul.f32 %v8031_v52, %v3282_v53  ;;  %3573 = vmatpush.msrb.mxu0 %v562_v46  ;;  %v9306_v46 = vld [vmem:[#allocation72_spill] sm:$0xff] }
0x137b   :  { %3447 = vmatpush.msrb.mxu1 %v408_v56  ;;  %3574 = vmatpush.msrb.mxu0 %v559_v0  ;;  %v3284_v1 = vadd.f32 %v8031_v52, %v3283_v28  ;;  %v415_v0 = vld [vmem:[#allocation11 + $0xb8] sm:$0xff] }
0x137d   :  { %3448 = vmatpush.msrb.mxu1 %v405_v20  ;;  %3575 = vmatpush.msrb.mxu0 %v556_v59  ;;  %v418_v20 = vld [vmem:[#allocation11 + $0xd0] sm:$0xff]  ;;  %v543_v59 = vld [vmem:[#allocation14 + $0x148] sm:$0xff] }
0x137f   :  { %3449 = vmatpush.msrb.mxu1 %v402_v4  ;;  %3576 = vmatpush.msrb.mxu0 %v553_v15  ;;  %v546_v4 = vld [vmem:[#allocation14 + $0x160] sm:$0xff]  ;;  %v523_v15 = vld [vmem:[#allocation14 + $0xa8] sm:$0xff] }
0x1381   :  { %3450 = vmatpush.msrb.mxu1 %v399_v57  ;;  %3577 = vmatpush.msrb.mxu0 %v550_v25  ;;  %v545_v57 = vld [vmem:[#allocation14 + $0x158] sm:$0xff]  ;;  %v409_v25 = vld [vmem:[#allocation11 + $0x88] sm:$0xff] }
0x1383   :  { %3451 = vmatpush.msrb.mxu1 %v396_v2 }
0x1385   :  { %3452 = vmatpush.msrb.mxu1 %v393_v47  ;;  %v537_v47 = vld [vmem:[#allocation14 + $0x118] sm:$0xff] }
0x13b8   :  { %v8020_v16 = vpop.permute.xlu2 %3167 }
0x13b9   :  { %v3174_v23 = vmul.f32 %v8020_v16, %v3163_v39 }
0x13bb   :  { %v3182_v55 = vadd.f32 %v3180_v13, %v3174_v23  ;;  %v3291_v23 = vand.u32 2147483648, %v8022_v24  ;;  %v547_v24 = vld [vmem:[#allocation14 + $0x168] sm:$0xff] }
0x13bc   :  { %3542 = vmatpush.msrb.mxu2 %v547_v24  ;;  %v514_v24 = vld [vmem:[#allocation14 + $0x60] sm:$0xff] }
0x13bd   :  { %v8029_v14 = vsel %vm3339_vm5, %v7946_v32, %v3182_v55  ;;  %v395_v32 = vld [vmem:[#allocation11 + $0x18] sm:$0xff]  ;;  %v3292_v41 = vor.u32 1.1754944e-38, %v3291_v23 }
0x13be   :  { %3405 = vmatpush.msrb.mxu3 %v395_v32 }
0x13c0   :  { %3406 = vmatpush.msrb.mxu3 %v392_v6  ;;  %v535_v6 = vld [vmem:[#allocation14 + $0x108] sm:$0xff] }
0x13c2   :  { %3483 = vmatpush.msra.mxu3 %v439_v34  ;;  %v536_v34 = vld [vmem:[#allocation14 + $0x110] sm:$0xff] }
0x13c4   :  { %3484 = vmatpush.msra.mxu3 %v436_v60  ;;  %v531_v60 = vld [vmem:[#allocation14 + $0xe8] sm:$0xff] }
0x13c5   :  { %v3321_v42 = vpop.permute.xlu2 %3320 }
0x13c6   :  { %3485 = vmatpush.msra.mxu3 %v433_v27  ;;  %v528_v27 = vld [vmem:[#allocation14 + $0xd0] sm:$0xff] }
0x13d1   :  { %v3170_v39 = vpop.permute.xlu0 %3169 }
0x13d2   :  { %v3171_v49 = vsel %vm687_vm2, %v8020_v16, %v3170_v39  ;;  %v3288_v16 = vsel %vm3287_vm12, %v8031_v52, %v3284_v1  ;;  %v427_v52 = vld [vmem:[#allocation11 + $0x118] sm:$0xff]  ;;  %v9307_v39 = vld [vmem:[#allocation28_spill] sm:$0xff] }
0x13d3   :  { %v3175_v13 = vmul.f32 %v3171_v49, %v3164_v30  ;;  %v3293_v48 = vsel %vm3290_vm13, %v3292_v41, %v3288_v16  ;;  %v412_v30 = vld [vmem:[#allocation11 + $0xa0] sm:$0xff]  ;;  %v540_v1 = vld [vmem:[#allocation14 + $0x130] sm:$0xff]  ;;  %v517_v41 = vld [vmem:[#allocation14 + $0x78] sm:$0xff] }
0x13d4   :  { %v3315_v51 = vsub.f32 1.0, %v3293_v48  ;;  %v3330_v8 = vmul.f32 %v3293_v48, %v3187_v31  ;;  %v542_v49 = vld [vmem:[#allocation14 + $0x140] sm:$0xff]  ;;  %v533_v48 = vld [vmem:[#allocation14 + $0xf8] sm:$0xff] }
0x13d5   :  { %v3183_v38 = vadd.f32 %v7990_v62, %v3175_v13  ;;  %v544_v62 = vld [vmem:[#allocation14 + $0x150] sm:$0xff]  ;;  %v9308_v13 = vld [vmem:[#allocation55_spill] sm:$0xff] }
0x13d6   :  { %3543 = vmatpush.msrb.mxu2 %v544_v62  ;;  %v534_v16 = vld [vmem:[#allocation14 + $0x100] sm:$0xff] }
0x13d7   :  { %v3347_v55 = vsel %vm3339_vm5, %v7955_v54, %v3183_v38  ;;  %v430_v54 = vld [vmem:[#allocation11 + $0x130] sm:$0xff]  ;;  %v539_v38 = vld [vmem:[#allocation14 + $0x128] sm:$0xff]  ;;  %v400_v62 = vld [vmem:[#allocation11 + $0x40] sm:$0xff] }
0x13d8   :  { %v5308_v61 = vpack.i.bf16 %v3347_v55, %v8029_v14  ;;  %v538_v14 = vld [vmem:[#allocation14 + $0x120] sm:$0xff]  ;;  %3544 = vmatpush.msrb.mxu2 %v541_v35  ;;  %3486 = vmatpush.msra.mxu3 %v430_v54  ;;  %v406_v55 = vld [vmem:[#allocation11 + $0x70] sm:$0xff] }
0x13d9   :  { %v5305_v44 = vpop.permute.xlu0 %5304  ;;  %v530_v54 = vld [vmem:[#allocation14 + $0xe0] sm:$0xff] }
0x13da   :  { %5309 = vrot.lane.b32.xlu1 %v5308_v61, %s6098_s0  ;;  %v5307_v33 = vunpack.i.h.bf16 %v5305_v44  ;;  %v5306_v19 = vunpack.i.l.bf16 %v5305_v44  ;;  %3545 = vmatpush.msrb.mxu2 %v538_v14  ;;  %v403_v61 = vld [vmem:[#allocation11 + $0x58] sm:$0xff]  ;;  %v397_v44 = vld [vmem:[#allocation11 + $0x28] sm:$0xff] }
0x13db   :  { %3487 = vmatpush.msra.mxu3 %v427_v52  ;;  %v527_v14 = vld [vmem:[#allocation14 + $0xc8] sm:$0xff]  ;;  %v524_v52 = vld [vmem:[#allocation14 + $0xb0] sm:$0xff] }
0x13dc   :  { %v3319_v21 = vpop.permute.xlu1 %3318  ;;  %3546 = vmatpush.msrb.mxu2 %v535_v6  ;;  %v3372_v56 = vsel %vm687_vm2, %v5306_v19, %v5307_v33  ;;  %v502_v6 = vld [vmem:[#allocation14] sm:$0xff]  ;;  %v569_v33 = vld [vmem:[#allocation14 + $0x218] sm:$0xff] }
0x13dd   :  { %v3322_v32 = vsel %vm687_vm2, %v3319_v21, %v3321_v42  ;;  %v3325_v3 = vmul.f32 %v3319_v21, %v3314_v29  ;;  %3488 = vmatpush.msra.mxu3 %v424_v10  ;;  %v525_v42 = vld [vmem:[#allocation14 + $0xb8] sm:$0xff]  ;;  %v511_v29 = vld [vmem:[#allocation14 + $0x48] sm:$0xff]  ;;  %v508_v21 = vld [vmem:[#allocation14 + $0x30] sm:$0xff] }
0x13de   :  { %v3326_v36 = vmul.f32 %v3322_v32, %v3315_v51  ;;  %3547 = vmatpush.msrb.mxu2 %v532_v9  ;;  %v522_v51 = vld [vmem:[#allocation14 + $0xa0] sm:$0xff]  ;;  %v519_v32 = vld [vmem:[#allocation14 + $0x88] sm:$0xff]  ;;  %v513_v19 = vld [vmem:[#allocation14 + $0x58] sm:$0xff] }
0x13df   :  { %v3331_v18 = vadd.f32 %v3329_v40, %v3325_v3  ;;  %3489 = vmatpush.msra.mxu3 %v421_v17  ;;  %v394_v40 = vld [vmem:[#allocation11 + $0x10] sm:$0xff]  ;;  %v505_v3 = vld [vmem:[#allocation14 + $0x18] sm:$0xff]  ;;  %v507_v10 = vld [vmem:[#allocation14 + $0x28] sm:$0xff] }
0x13e0   :  { %v3332_v50 = vadd.f32 %v3330_v8, %v3326_v36  ;;  %v572_v8 = vld [vmem:[#allocation14 + $0x230] sm:$0xff]  ;;  %v8092_v9 = vld [vmem:[#allocation13 + $0x108] sm:$0xff]  ;;  %v8097_v17 = vld [vmem:[#allocation13 + $0xd8] sm:$0xff] }
0x13e1   :  { %v3348_v63 = vsel %vm3333_vm9, %v3331_v18, %v7924_v22  ;;  %3490 = vmatpush.msra.mxu3 %v418_v20  ;;  %v516_v36 = vld [vmem:[#allocation14 + $0x70] sm:$0xff]  ;;  %v510_v18 = vld [vmem:[#allocation14 + $0x40] sm:$0xff] }
0x13e2   :  { %v3349_v43 = vsel %vm3333_vm9, %v3332_v50, %v7960_v26  ;;  %v3350_v31 = vsel %vm3336_vm10, %v3348_v63, %v7823_v5  ;;  %v549_v26 = vld [vmem:[#allocation14 + $0x178] sm:$0xff]  ;;  %v548_v5 = vld [vmem:[#allocation14 + $0x170] sm:$0xff] }
0x13e3   :  { %v3352_v12 = vsel %vm3339_vm5, %v3350_v31, %v7589_v11  ;;  %v3351_v37 = vsel %vm3336_vm10, %v3349_v43, %v7825_v45  ;;  %v529_v11 = vld [vmem:[#allocation14 + $0xd8] sm:$0xff]  ;;  %3491 = vmatpush.msra.mxu3 %v415_v0  ;;  %v504_v50 = vld [vmem:[#allocation14 + $0x10] sm:$0xff]  ;;  %v8100_v43 = vld [vmem:[#allocation13 + $0xc0] sm:$0xff] }
0x13e4   :  { %v8069_v22 = vsel %vm698_vm1, %v3372_v56, %v3352_v12  ;;  %v3353_v53 = vsel %vm3339_vm5, %v3351_v37, %v7591_v58  ;;  %v9305_v45 = vld [vmem:[#allocation89_spill] sm:$0xff]  ;;  %v526_v58 = vld [vmem:[#allocation14 + $0xc0] sm:$0xff]  ;;  %3548 = vmatpush.msrb.mxu2 %v529_v11  ;;  %v8104_v56 = vld [vmem:[#allocation13 + $0xa8] sm:$0xff] }
0x13e5   :  { %3407 = vmatmul.f32.vlgmr.msrb.gmra.mxu3 %v8069_v22  ;;  %5231 = vmatmul.msk.f32.vlgmr.msra.gmra.mxu1 %vm689_vm3, %v3353_v53  ;;  %v3355_v28 = vsel %vm3333_vm9, %v9306_v46, %v9305_v45  ;;  %v8094_v63 = vld [vmem:[#allocation13 + $0xf0] sm:$0xff]  ;;  %v521_v31 = vld [vmem:[#allocation14 + $0x98] sm:$0xff]  ;;  %v518_v37 = vld [vmem:[#allocation14 + $0x80] sm:$0xff] }
0x13e6   :  { %5233 = vmatmul.msk.f32.vlgmr.msra.gmra.mxu2 %vm689_vm3, %v3353_v53  ;;  %5235 = vmatmul.msk.f32.vlgmr.msra.gmra.mxu0 %vm689_vm3, %v3353_v53  ;;  %v3357_v2 = vsel %vm3336_vm10, %v3355_v28, %v9307_v39  ;;  %v573_v12 = vld [vmem:[#allocation14 + $0x238] sm:$0xff]  ;;  %v566_v53 = vld [vmem:[#allocation14 + $0x200] sm:$0xff]  ;;  %v8107_v20 = vld [vmem:[#allocation13 + $0x90] sm:$0xff] }
0x13e7   :  { %3622 = vmatpush.msra.mxu0 %v549_v26  ;;  %3582 = vmatpush.msra.mxu1 %v548_v5  ;;  %v3359_v23 = vsel %vm3339_vm5, %v3357_v2, %v9308_v13  ;;  %v570_v26 = vld [vmem:[#allocation14 + $0x220] sm:$0xff]  ;;  %v515_v11 = vld [vmem:[#allocation14 + $0x68] sm:$0xff]  ;;  %v8109_v46 = vld [vmem:[#allocation13 + $0x78] sm:$0xff] }
0x13e8   :  { %3549 = vmatpush.msrb.mxu2 %v526_v58  ;;  %3492 = vmatpush.msra.mxu3 %v412_v30  ;;  %v8087_v35 = vrot.slane %v3359_v23, 6  ;;  %v563_v5 = vld [vmem:[#allocation14 + $0x1e8] sm:$0xff]  ;;  %v512_v28 = vld [vmem:[#allocation14 + $0x50] sm:$0xff]  ;;  %v8113_v58 = vld [vmem:[#allocation13 + $0x60] sm:$0xff] }
0x13e9   :  { %3623 = vmatpush.msra.mxu0 %v546_v4  ;;  %3583 = vmatpush.msra.mxu1 %v545_v57  ;;  %v567_v45 = vld [vmem:[#allocation14 + $0x208] sm:$0xff]  ;;  %v560_v4 = vld [vmem:[#allocation14 + $0x1d0] sm:$0xff]  ;;  %v509_v57 = vld [vmem:[#allocation14 + $0x38] sm:$0xff] }
0x13ea   :  { %3550 = vmatpush.msrb.mxu2 %v523_v15  ;;  %3493 = vmatpush.msra.mxu3 %v409_v25  ;;  %v564_v0 = vld [vmem:[#allocation14 + $0x1f0] sm:$0xff]  ;;  %v561_v30 = vld [vmem:[#allocation14 + $0x1d8] sm:$0xff]  ;;  %v8116_v39 = vld [vmem:[#allocation13 + $0x48] sm:$0xff] }
0x13eb   :  { %3624 = vmatpush.msra.mxu0 %v543_v59  ;;  %3584 = vmatpush.msra.mxu1 %v542_v49  ;;  %v557_v59 = vld [vmem:[#allocation14 + $0x1b8] sm:$0xff]  ;;  %v506_v2 = vld [vmem:[#allocation14 + $0x20] sm:$0xff]  ;;  %v503_v13 = vld [vmem:[#allocation14 + $0x8] sm:$0xff] }
0x13ec   :  { %3551 = vmatpush.msrb.mxu2 %v520_v7  ;;  %3494 = vmatpush.msra.mxu3 %v406_v55  ;;  %v554_v15 = vld [vmem:[#allocation14 + $0x1a0] sm:$0xff]  ;;  %v8121_v25 = vld [vmem:[#allocation13 + $0x18] sm:$0xff]  ;;  %v552_v7 = vld [vmem:[#allocation14 + $0x190] sm:$0xff] }
0x13ed   :  { %5232 = vmatmul.msk.f32.gmra.mxu1 %vm689_vm3, %v3359_v23  ;;  %3625 = vmatpush.msra.mxu0 %v540_v1  ;;  %v558_v49 = vld [vmem:[#allocation14 + $0x1c0] sm:$0xff]  ;;  %v8118_v1 = vld [vmem:[#allocation13 + $0x30] sm:$0xff]  ;;  %v606_v55 = vld [vmem:[#allocation16 + $0xf8] sm:$0xff] }
0x13ee   :  { %5234 = vmatmul.msk.f32.gmra.mxu2 %vm689_vm3, %v3359_v23  ;;  %5236 = vmatmul.msk.f32.gmra.mxu0 %vm689_vm3, %v3359_v23  ;;  %v551_v23 = vld [vmem:[#allocation14 + $0x188] sm:$0xff] }
0x13ef   :  { %3626 = vmatpush.msra.mxu0 %v537_v47  ;;  %3585 = vmatpush.msra.mxu1 %v539_v38  ;;  %v555_v47 = vld [vmem:[#allocation14 + $0x1a8] sm:$0xff]  ;;  %v609_v38 = vld [vmem:[#allocation16 + $0x110] sm:$0xff] }
0x13f0   :  { %3552 = vmatpush.msrb.mxu2 %v517_v41  ;;  %3495 = vmatpush.msra.mxu3 %v403_v61  ;;  %v603_v41 = vld [vmem:[#allocation16 + $0xe0] sm:$0xff]  ;;  %v594_v61 = vld [vmem:[#allocation16 + $0x98] sm:$0xff] }
0x13f1   :  { %3627 = vmatpush.msra.mxu0 %v534_v16  ;;  %3586 = vmatpush.msra.mxu1 %v536_v34  ;;  %v8125_v16 = vld [vmem:[#allocation13] sm:$0xff]  ;;  %v600_v34 = vld [vmem:[#allocation16 + $0xc8] sm:$0xff] }
0x13f2   :  { %3553 = vmatpush.msrb.mxu2 %v514_v24  ;;  %3496 = vmatpush.msra.mxu3 %v400_v62  ;;  %v591_v24 = vld [vmem:[#allocation16 + $0x80] sm:$0xff]  ;;  %v9310_v62 = vld [vmem:[#allocation68_spill] sm:$0xff] }
0x13f3   :  { %3628 = vmatpush.msra.mxu0 %v531_v60  ;;  %3587 = vmatpush.msra.mxu1 %v533_v48  ;;  %v597_v60 = vld [vmem:[#allocation16 + $0xb0] sm:$0xff]  ;;  %v588_v48 = vld [vmem:[#allocation16 + $0x68] sm:$0xff] }
0x13f4   :  { %3554 = vmatpush.msrb.mxu2 %v511_v29  ;;  %3497 = vmatpush.msra.mxu3 %v397_v44  ;;  %v585_v29 = vld [vmem:[#allocation16 + $0x50] sm:$0xff]  ;;  %v9311_v44 = vld [vmem:[#allocation27_spill] sm:$0xff] }
0x13f5   :  { %3453 = vmatmul.f32.vlgmr.msrb.gmra.mxu1 %v8069_v22  ;;  %3629 = vmatpush.msra.mxu0 %v528_v27  ;;  %v9309_v27 = vld [vmem:[#allocation88_spill] sm:$0xff] }
0x13f6   :  { %5237 = vmatmul.msk.f32.vlgmr.msrb.gmra.mxu0 %vm689_vm3, %v8087_v35  ;;  %3588 = vmatpush.msra.mxu1 %v530_v54 }
0x13f7   :  { %3630 = vmatpush.msra.mxu0 %v525_v42  ;;  %3555 = vmatpush.msrb.mxu2 %v508_v21  ;;  %v3354_v42 = vsel %vm3333_vm9, %v9310_v62, %v9309_v27  ;;  %v582_v21 = vld [vmem:[#allocation16 + $0x38] sm:$0xff]  ;;  %v575_v27 = vld [vmem:[#allocation16] sm:$0xff]  ;;  %v8212_v62 = vld [vmem:[#allocation13 + $0x10] sm:$0xff] }
0x13f8   :  { %3589 = vmatpush.msra.mxu1 %v527_v14  ;;  %3498 = vmatpush.msra.mxu3 %v394_v40  ;;  %9314 = vst [vmem:[#allocation41_spill] sm:$0xff] %v8212_v62 }
0x13f9   :  { %3631 = vmatpush.msra.mxu0 %v522_v51  ;;  %3556 = vmatpush.msrb.mxu2 %v505_v3  ;;  %v3356_v51 = vsel %vm3336_vm10, %v3354_v42, %v9311_v44  ;;  %v9312_v3 = vld [vmem:[#allocation54_spill] sm:$0xff]  ;;  %v8215_v42 = vld [vmem:[#allocation13 + $0x8] sm:$0xff] }
0x13fa   :  { %3590 = vmatpush.msra.mxu1 %v524_v52  ;;  %3610 = vmatpush.msrb.mxu3 %v572_v8  ;;  %v3358_v52 = vsel %vm3339_vm5, %v3356_v51, %v9312_v3  ;;  %v8311_v3 = vld [vmem:[%s8882_s14] sm:$0x7] }
0x13fb   :  { %3632 = vmatpush.msra.mxu0 %v519_v32  ;;  %3557 = vmatpush.msrb.mxu2 %v502_v6  ;;  %v579_v32 = vld [vmem:[#allocation16 + $0x20] sm:$0xff]  ;;  %v576_v6 = vld [vmem:[#allocation16 + $0x8] sm:$0xff] }
0x13fc   :  { %3611 = vmatpush.msrb.mxu3 %v569_v33  ;;  %3591 = vmatpush.msra.mxu1 %v521_v31  ;;  %v8145_v31 = vld [vmem:[#allocation13 + $0x118] sm:$0xff] }
0x13fd   :  { %3633 = vmatpush.msra.mxu0 %v516_v36  ;;  %3650 = vmatpush.msra.mxu2 %v573_v12  ;;  %v605_v12 = vld [vmem:[#allocation16 + $0xf0] sm:$0xff] }
0x13fe   :  { %3612 = vmatpush.msrb.mxu3 %v566_v53  ;;  %3592 = vmatpush.msra.mxu1 %v518_v37  ;;  %v8149_v37 = vld [vmem:[#allocation13 + $0x100] sm:$0xff]  ;;  %v9313_v53 = vmov 0.0  }
0x13ff   :  { %3634 = vmatpush.msra.mxu0 %v513_v19  ;;  %3651 = vmatpush.msra.mxu2 %v570_v26  ;;  %v8137_v19 = vld [vmem:[#allocation13 + $0x110] sm:$0xff]  ;;  %v602_v26 = vld [vmem:[#allocation16 + $0xd8] sm:$0xff] }
0x1400   :  { %3613 = vmatpush.msrb.mxu3 %v563_v5  ;;  %3593 = vmatpush.msra.mxu1 %v515_v11  ;;  %v8155_v11 = vld [vmem:[#allocation13 + $0xe8] sm:$0xff] }
0x1401   :  { %3635 = vmatpush.msra.mxu0 %v510_v18  ;;  %3652 = vmatpush.msra.mxu2 %v567_v45  ;;  %v8140_v18 = vld [vmem:[#allocation13 + $0xf8] sm:$0xff]  ;;  %v8157_v5 = vld [vmem:[#allocation13 + $0xc8] sm:$0xff]  ;;  %v8160_v45 = vld [vmem:[#allocation13 + $0xd0] sm:$0xff] }
0x1402   :  { %3614 = vmatpush.msrb.mxu3 %v560_v4  ;;  %3594 = vmatpush.msra.mxu1 %v512_v28  ;;  %v8163_v28 = vld [vmem:[#allocation13 + $0xb0] sm:$0xff]  ;;  %v596_v4 = vld [vmem:[#allocation16 + $0xa8] sm:$0xff] }
0x1403   :  { %3636 = vmatpush.msra.mxu0 %v507_v10  ;;  %3653 = vmatpush.msra.mxu2 %v564_v0  ;;  %v608_v10 = vld [vmem:[#allocation16 + $0x108] sm:$0xff]  ;;  %v8166_v0 = vld [vmem:[#allocation13 + $0xb8] sm:$0xff] }
0x1404   :  { %3615 = vmatpush.msrb.mxu3 %v557_v59  ;;  %3595 = vmatpush.msra.mxu1 %v509_v57  ;;  %v593_v57 = vld [vmem:[#allocation16 + $0x90] sm:$0xff]  ;;  %v8171_v59 = vld [vmem:[#allocation13 + $0xa0] sm:$0xff] }
0x1405   :  { %3637 = vmatpush.msra.mxu0 %v504_v50  ;;  %3654 = vmatpush.msra.mxu2 %v561_v30  ;;  %v8143_v50 = vld [vmem:[#allocation13 + $0xe0] sm:$0xff]  ;;  %v8173_v30 = vld [vmem:[#allocation13 + $0x98] sm:$0xff] }
0x1406   :  { %3616 = vmatpush.msrb.mxu3 %v554_v15  ;;  %3596 = vmatpush.msra.mxu1 %v506_v2  ;;  %v590_v2 = vld [vmem:[#allocation16 + $0x78] sm:$0xff]  ;;  %v8176_v15 = vld [vmem:[#allocation13 + $0x88] sm:$0xff] }
0x1407   :  { %3807 = vmatpush.msrb.mxu0 %v8092_v9  ;;  %3655 = vmatpush.msra.mxu2 %v558_v49  ;;  %v8179_v49 = vld [vmem:[#allocation13 + $0x80] sm:$0xff] }
0x1408   :  { %3617 = vmatpush.msrb.mxu3 %v551_v23  ;;  %3597 = vmatpush.msra.mxu1 %v503_v13  ;;  %v587_v13 = vld [vmem:[#allocation16 + $0x60] sm:$0xff]  ;;  %v8182_v23 = vld [vmem:[#allocation13 + $0x70] sm:$0xff] }
0x1409   :  { %3808 = vmatpush.msrb.mxu0 %v8094_v63  ;;  %3656 = vmatpush.msra.mxu2 %v555_v47  ;;  %v8185_v47 = vld [vmem:[#allocation13 + $0x68] sm:$0xff] }
0x140a   :  { %3686 = vmatpush.msrb.mxu1 %v609_v38  ;;  %v8188_v38 = vld [vmem:[#allocation13 + $0x58] sm:$0xff] }
0x140b   :  { %3809 = vmatpush.msrb.mxu0 %v8097_v17  ;;  %3657 = vmatpush.msra.mxu2 %v552_v7  ;;  %v584_v7 = vld [vmem:[#allocation16 + $0x48] sm:$0xff] }
0x140c   :  { %3687 = vmatpush.msrb.mxu1 %v606_v55  ;;  %v8191_v55 = vld [vmem:[#allocation13 + $0x50] sm:$0xff] }
0x140d   :  { %3810 = vmatpush.msrb.mxu0 %v8100_v43 }
0x140e   :  { %3688 = vmatpush.msrb.mxu1 %v603_v41  ;;  %v581_v41 = vld [vmem:[#allocation16 + $0x30] sm:$0xff] }
0x140f   :  { %3811 = vmatpush.msrb.mxu0 %v8104_v56 }
0x1410   :  { %3689 = vmatpush.msrb.mxu1 %v600_v34  ;;  %v8196_v34 = vld [vmem:[#allocation13 + $0x40] sm:$0xff] }
0x1411   :  { %3812 = vmatpush.msrb.mxu0 %v8107_v20 }
0x1412   :  { %3690 = vmatpush.msrb.mxu1 %v597_v60  ;;  %v5321_v60 = vld [vmem:[%s8884_s16] ss:$0 sm:$0xff] }
0x1413   :  { %3813 = vmatpush.msrb.mxu0 %v8109_v46  ;;  %3905 = vrot.lane.b32.xlu2 %v5321_v60, %s6099_s3 }
0x1414   :  { %3691 = vmatpush.msrb.mxu1 %v594_v61  ;;  %v8202_v61 = vld [vmem:[#allocation13 + $0x38] sm:$0xff] }
0x1415   :  { %3814 = vmatpush.msrb.mxu0 %v8113_v58 }
0x1416   :  { %3692 = vmatpush.msrb.mxu1 %v591_v24  ;;  %v578_v24 = vld [vmem:[#allocation16 + $0x18] sm:$0xff] }
0x1417   :  { %3815 = vmatpush.msrb.mxu0 %v8116_v39 }
0x1418   :  { %3693 = vmatpush.msrb.mxu1 %v588_v48  ;;  %v8205_v48 = vld [vmem:[#allocation13 + $0x28] sm:$0xff] }
0x1419   :  { %3816 = vmatpush.msrb.mxu0 %v8118_v1 }
0x141a   :  { %3694 = vmatpush.msrb.mxu1 %v585_v29 }
0x141b   :  { %3817 = vmatpush.msrb.mxu0 %v8121_v25 }
0x141c   :  { %3695 = vmatpush.msrb.mxu1 %v582_v21 }
0x141d   :  { %3818 = vmatpush.msrb.mxu0 %v8125_v16 }
0x141e   :  { %3696 = vmatpush.msrb.mxu1 %v579_v32  ;;  %v574_v32 = vld [vmem:[%s8886_s18] sm:$0x7] }
0x1420   :  { %3697 = vmatpush.msrb.mxu1 %v576_v6 }
0x144c   :  { %v5310_v54 = vpop.permute.xlu1 %5309 }
0x144d   :  { %v5312_v14 = vunpack.i.h.bf16 %v5310_v54  ;;  %v5311_v40 = vunpack.i.l.bf16 %v5310_v54 }
0x144f   :  { %v3373_v8 = vsel %vm687_vm2, %v5311_v40, %v5312_v14 }
0x1450   :  { %v3377_v36 = vsel %vm698_vm1, %v3373_v8, %v3358_v52  ;;  %v3380_v8 = vperm.slane %v8311_v3, 1 }
0x1451   :  { %3410 = vmatmul.f32.gmra.mxu3 %v3377_v36  ;;  %3456 = vmatmul.f32.gmra.mxu1 %v3377_v36  ;;  %v3537_v33 = vrot.slane %v3377_v36, 6 }
0x1453   :  { %3558 = vmatmul.f32.vlgmr.msrb.gmra.mxu2 %v3537_v33  ;;  %3638 = vmatmul.f32.vlgmr.msra.gmra.mxu0 %v3537_v33 }
0x1454   :  { %3977 = vmatpush.msra.mxu0 %v8137_v19 }
0x1456   :  { %3978 = vmatpush.msra.mxu0 %v8140_v18 }
0x1458   :  { %3979 = vmatpush.msra.mxu0 %v8143_v50 }
0x1459   :  { %3499 = vmatmul.f32.vlgmr.msra.gmra.mxu3 %v8069_v22  ;;  %3598 = vmatmul.f32.vlgmr.msra.gmra.mxu1 %v3537_v33  ;;  %v599_v22 = vld [vmem:[#allocation16 + $0xc0] sm:$0xff] }
0x145a   :  { %3666 = vmatpush.msra.mxu3 %v608_v10  ;;  %3847 = vmatpush.msra.mxu1 %v8145_v31 }
0x145b   :  { %5239 = vmatmul.msk.f32.vlgmr.msra.gmra.mxu2 %vm689_vm3, %v8087_v35  ;;  %3819 = vmatmul.f32.vlgmr.msrb.gmra.mxu0 %v9313_v53 }
0x145c   :  { %3667 = vmatpush.msra.mxu3 %v605_v12  ;;  %3848 = vmatpush.msra.mxu1 %v8149_v37 }
0x145d   :  { %3980 = vmatpush.msra.mxu0 %v8157_v5 }
0x145e   :  { %3668 = vmatpush.msra.mxu3 %v602_v26  ;;  %3849 = vmatpush.msra.mxu1 %v8155_v11 }
0x145f   :  { %3981 = vmatpush.msra.mxu0 %v8163_v28 }
0x1460   :  { %3669 = vmatpush.msra.mxu3 %v599_v22  ;;  %3850 = vmatpush.msra.mxu1 %v8160_v45 }
0x1461   :  { %3502 = vmatmul.f32.gmra.mxu3 %v3377_v36  ;;  %3698 = vmatmul.f32.vlgmr.msrb.gmra.mxu1 %v9313_v53  ;;  %v3532_v36 = vperm.slane %v574_v32, 2 }
0x1462   :  { %3670 = vmatpush.msra.mxu3 %v596_v4  ;;  %3851 = vmatpush.msra.mxu1 %v8166_v0  ;;  %v3431_v29 = vpop.f32.mrf.mxu1  ;;  %v3530_v4 = vperm.slane %v574_v32, 0 }
0x1463   :  { %3982 = vmatpush.msra.mxu0 %v8173_v30  ;;  %v8293_v54 = vpop.f32.mrf.mxu0 }
0x1464   :  { %3671 = vmatpush.msra.mxu3 %v593_v57  ;;  %3852 = vmatpush.msra.mxu1 %v8171_v59  ;;  %v3531_v57 = vperm.slane %v574_v32, 1 }
0x1465   :  { %3983 = vmatpush.msra.mxu0 %v8179_v49 }
0x1466   :  { %3672 = vmatpush.msra.mxu3 %v590_v2  ;;  %3853 = vmatpush.msra.mxu1 %v8176_v15 }
0x1467   :  { %3984 = vmatpush.msra.mxu0 %v8185_v47 }
0x1468   :  { %3673 = vmatpush.msra.mxu3 %v587_v13  ;;  %3854 = vmatpush.msra.mxu1 %v8182_v23  ;;  %v3408_v52 = vpop.f32.mrf.mxu3 }
0x1469   :  { %5238 = vmatmul.msk.f32.vlgmr.msrb.gmra.mxu3 %vm689_vm3, %v8087_v35  ;;  %3985 = vmatpush.msra.mxu0 %v8191_v55  ;;  %v8209_v35 = vld [vmem:[#allocation13 + $0x20] sm:$0xff]  ;;  %v8301_v21 = vpop.f32.mrf.mxu2 }
0x146a   :  { %3674 = vmatpush.msra.mxu3 %v584_v7  ;;  %3855 = vmatpush.msra.mxu1 %v8188_v38  ;;  %v8297_v44 = vpop.f32.mrf.mxu1 }
0x146b   :  { %3986 = vmatpush.msra.mxu0 %v8202_v61  ;;  %9315 = vst [vmem:[#allocation47_spill] sm:$0xff] %v8297_v44  ;;  %v8299_v51 = vpop.f32.mrf.mxu0 }
0x146c   :  { %3675 = vmatpush.msra.mxu3 %v581_v41  ;;  %3856 = vmatpush.msra.mxu1 %v8196_v34  ;;  %9316 = vst [vmem:[#allocation48_spill] sm:$0xff] %v8299_v51  ;;  %v3381_v51 = vperm.slane %v8311_v3, 2 }
0x146d   :  { %3987 = vmatpush.msra.mxu0 %v8209_v35 }
0x146e   :  { %3676 = vmatpush.msra.mxu3 %v578_v24  ;;  %3857 = vmatpush.msra.mxu1 %v8205_v48 }
0x146f   :  { %3988 = vmatpush.msra.mxu0 %v8215_v42 }
0x1470   :  { %3677 = vmatpush.msra.mxu3 %v575_v27  ;;  %3858 = vmatpush.msra.mxu1 %v8212_v62 }
0x1471   :  { %3859 = vmatmul.f32.vlgmr.msra.gmra.mxu1 %v9313_v53  ;;  %3678 = vmatmul.f32.vlgmr.msra.gmra.mxu3 %v9313_v53  ;;  %v3480_v6 = vpop.f32.mrf.mxu2 }
0x1472   :  { %3827 = vmatpush.msrb.mxu3 %v8137_v19  ;;  %4116 = vmatpush.msrb.mxu1 %v8092_v9  ;;  %v8303_v14 = vpop.f32.mrf.mxu1 }
0x1473   :  { %4156 = vmatpush.msrb.mxu0 %v8145_v31  ;;  %v3579_v40 = vpop.f32.mrf.mxu0 }
0x1474   :  { %3828 = vmatpush.msrb.mxu3 %v8140_v18  ;;  %4117 = vmatpush.msrb.mxu1 %v8094_v63 }
0x1475   :  { %4157 = vmatpush.msrb.mxu0 %v8149_v37 }
0x1476   :  { %3829 = vmatpush.msrb.mxu3 %v8143_v50  ;;  %4118 = vmatpush.msrb.mxu1 %v8097_v17 }
0x1477   :  { %4158 = vmatpush.msrb.mxu0 %v8155_v11 }
0x1478   :  { %3830 = vmatpush.msrb.mxu3 %v8157_v5  ;;  %4119 = vmatpush.msrb.mxu1 %v8100_v43 }
0x1479   :  { %4159 = vmatpush.msrb.mxu0 %v8160_v45 }
0x147a   :  { %3831 = vmatpush.msrb.mxu3 %v8163_v28  ;;  %4120 = vmatpush.msrb.mxu1 %v8104_v56 }
0x147b   :  { %4160 = vmatpush.msrb.mxu0 %v8166_v0 }
0x147c   :  { %3832 = vmatpush.msrb.mxu3 %v8173_v30  ;;  %4121 = vmatpush.msrb.mxu1 %v8107_v20 }
0x147d   :  { %4161 = vmatpush.msrb.mxu0 %v8171_v59 }
0x147e   :  { %3833 = vmatpush.msrb.mxu3 %v8179_v49  ;;  %4122 = vmatpush.msrb.mxu1 %v8109_v46 }
0x147f   :  { %4162 = vmatpush.msrb.mxu0 %v8176_v15 }
0x1480   :  { %3834 = vmatpush.msrb.mxu3 %v8185_v47  ;;  %4123 = vmatpush.msrb.mxu1 %v8113_v58 }
0x1481   :  { %4163 = vmatpush.msrb.mxu0 %v8182_v23 }
0x1482   :  { %3835 = vmatpush.msrb.mxu3 %v8191_v55  ;;  %4124 = vmatpush.msrb.mxu1 %v8116_v39 }
0x1483   :  { %4164 = vmatpush.msrb.mxu0 %v8188_v38 }
0x1484   :  { %3836 = vmatpush.msrb.mxu3 %v8202_v61  ;;  %4125 = vmatpush.msrb.mxu1 %v8118_v1 }
0x1485   :  { %4165 = vmatpush.msrb.mxu0 %v8196_v34 }
0x1486   :  { %3837 = vmatpush.msrb.mxu3 %v8209_v35  ;;  %4126 = vmatpush.msrb.mxu1 %v8121_v25 }
0x1487   :  { %4166 = vmatpush.msrb.mxu0 %v8205_v48 }
0x1488   :  { %3838 = vmatpush.msrb.mxu3 %v8215_v42  ;;  %4127 = vmatpush.msrb.mxu1 %v8125_v16 }
0x1489   :  { %3839 = vmatmul.f32.vlgmr.msrb.gmra.mxu3 %v9313_v53  ;;  %4167 = vmatpush.msrb.mxu0 %v8212_v62 }
0x148a   :  { %3997 = vmatpush.msra.mxu3 %v8145_v31  ;;  %4295 = vmatpush.msra.mxu1 %v8137_v19 }
0x148c   :  { %3998 = vmatpush.msra.mxu3 %v8149_v37  ;;  %4296 = vmatpush.msra.mxu1 %v8140_v18 }
0x148e   :  { %3999 = vmatpush.msra.mxu3 %v8155_v11  ;;  %4297 = vmatpush.msra.mxu1 %v8143_v50 }
0x1490   :  { %4000 = vmatpush.msra.mxu3 %v8160_v45  ;;  %4298 = vmatpush.msra.mxu1 %v8157_v5 }
0x1492   :  { %4001 = vmatpush.msra.mxu3 %v8166_v0  ;;  %4299 = vmatpush.msra.mxu1 %v8163_v28 }
0x1494   :  { %4002 = vmatpush.msra.mxu3 %v8171_v59  ;;  %4300 = vmatpush.msra.mxu1 %v8173_v30 }
0x1496   :  { %4003 = vmatpush.msra.mxu3 %v8176_v15  ;;  %4301 = vmatpush.msra.mxu1 %v8179_v49 }
0x1498   :  { %4004 = vmatpush.msra.mxu3 %v8182_v23  ;;  %4302 = vmatpush.msra.mxu1 %v8185_v47 }
0x149a   :  { %4005 = vmatpush.msra.mxu3 %v8188_v38  ;;  %4303 = vmatpush.msra.mxu1 %v8191_v55 }
0x149c   :  { %4006 = vmatpush.msra.mxu3 %v8196_v34  ;;  %4304 = vmatpush.msra.mxu1 %v8202_v61 }
0x149e   :  { %4007 = vmatpush.msra.mxu3 %v8205_v48  ;;  %4305 = vmatpush.msra.mxu1 %v8209_v35 }
0x14a0   :  { %4008 = vmatpush.msra.mxu3 %v8212_v62  ;;  %4306 = vmatpush.msra.mxu1 %v8215_v42 }
0x14a2   :  { %4275 = vmatpush.msrb.mxu3 %v8092_v9 }
0x14a4   :  { %4276 = vmatpush.msrb.mxu3 %v8094_v63 }
0x14a6   :  { %4277 = vmatpush.msrb.mxu3 %v8097_v17 }
0x14a8   :  { %4278 = vmatpush.msrb.mxu3 %v8100_v43 }
0x14aa   :  { %4279 = vmatpush.msrb.mxu3 %v8104_v56 }
0x14ac   :  { %4280 = vmatpush.msrb.mxu3 %v8107_v20 }
0x14ae   :  { %4281 = vmatpush.msrb.mxu3 %v8109_v46 }
0x14b0   :  { %4282 = vmatpush.msrb.mxu3 %v8113_v58 }
0x14b2   :  { %4283 = vmatpush.msrb.mxu3 %v8116_v39 }
0x14b4   :  { %4284 = vmatpush.msrb.mxu3 %v8118_v1 }
0x14b6   :  { %4285 = vmatpush.msrb.mxu3 %v8121_v25 }
0x14b8   :  { %4286 = vmatpush.msrb.mxu3 %v8125_v16 }
0x14ce   :  { %v3457_v33 = vpop.f32.mrf.mxu1 }
0x14cf   :  { %v3458_v10 = vadd.f32 %v3457_v33, %v3380_v8 }
0x14d0   :  { %v3639_v12 = vpop.f32.mrf.mxu0 }
0x14d1   :  { %v8314_v26 = vadd.f32 %v3480_v6, %v3458_v10  ;;  %v8316_v22 = vadd.f32 %v3639_v12, %v3532_v36  ;;  %v8325_v36 = vpop.permute.xlu2 %3905 }
0x14d3   :  { %9317 = vst [vmem:[#allocation36_spill] sm:$0xff] %v8314_v26 }
0x14d4   :  { %9318 = vst [vmem:[#allocation43_spill] sm:$0xff] %v8316_v22  ;;  %v8318_v2 = vpop.f32.mrf.mxu3 }
0x14d6   :  { %v3559_v13 = vpop.f32.mrf.mxu2  ;;  %v3599_v7 = vpop.f32.mrf.mxu1 }
0x14d7   :  { %v3560_v41 = vadd.f32 %v3559_v13, %v3530_v4  ;;  %v3600_v60 = vadd.f32 %v3599_v7, %v3531_v57 }
0x14d9   :  { %v3580_v24 = vadd.f32 %v3579_v40, %v3560_v41  ;;  %v3820_v41 = vpop.f32.mrf.mxu0 }
0x14dc   :  { %v3500_v27 = vpop.f32.mrf.mxu3 }
0x14de   :  { %v8323_v33 = vpop.f32.mrf.mxu1 }
0x14df   :  { %9319 = vst [vmem:[#allocation38_spill] sm:$0xff] %v8323_v33 }
0x14e4   :  { %v3503_v44 = vpop.f32.mrf.mxu3 }
0x14e5   :  { %v8321_v62 = vadd.f32 %v3503_v44, %v3381_v51  ;;  %v9056_v44 = vperm.slane %v8311_v3, 0 }
0x14e7   :  { %v3409_v7 = vadd.f32 %v3408_v52, %v9056_v44 }
0x14ec   :  { %v3619_v6 = vpop.f32.mrf.mxu3 }
0x14ed   :  { %v8327_v10 = vadd.f32 %v3619_v6, %v3600_v60  ;;  %v8338_v60 = vadd.f32 %v3431_v29, %v3409_v7 }
0x14ee   :  { %v3860_v32 = vpop.f32.mrf.mxu1 }
0x14ef   :  { %9320 = vst [vmem:[#allocation40_spill] sm:$0xff] %v8327_v10  ;;  %v3909_v12 = vadd.f32 %v8325_v36, %v3860_v32  ;;  %v3863_v6 = vadd.f32 %v3820_v41, %v8338_v60 }
0x14f1   :  { %3914 = vrot.lane.b32.xlu1 %v3909_v12, %s6099_s3  ;;  %v5242_v32 = vmul.f32 -1.442695, %v3863_v6 }
0x14f3   :  { %5516 = vpow2.f32 %v5242_v32 }
0x14f4   :  { %v3679_v4 = vpop.f32.mrf.mxu3 }
0x14f5   :  { %v8331_v40 = vadd.f32 %v3679_v4, %v3580_v24 }
0x14f7   :  { %9321 = vst [vmem:[#allocation42_spill] sm:$0xff] %v8331_v40 }
0x14f9   :  { %v5517_v12 = vpop.eup %5516 }
0x14fa   :  { %v3867_v24 = vadd.f32 1.0, %v5517_v12 }
0x14fc   :  { %5518 = vrcp.f32 %v3867_v24  ;;  %v3879_v33 = vand.u32 2147483648, %v3867_v24  ;;  %vm3873_vm10 = vweird.f32 %v3867_v24  ;;  %v3877_v26 = vand.u32 2147483647, %v3867_v24 }
0x14fe   :  { %v3880_v7 = vor.u32 1.1754944e-38, %v3879_v33  ;;  %vm3878_vm14 = vcmp.eq.f32.partialorder %v3877_v26, 8.507059e+37 }
0x1502   :  { %v5519_v4 = vpop.eup %5518 }
0x1503   :  { %v3869_v22 = vmul.f32 %v5519_v4, %v3867_v24  ;;  %vm3874_vm9 = vweird.f32 %v5519_v4 }
0x1504   :  { %vm3875_vm5 = vmor %vm3873_vm10, %vm3874_vm9 }
0x1505   :  { %v3870_v10 = vsub.f32 1.0, %v3869_v22  ;;  %v3455_v22 = vadd.f32 %v8303_v14, %v3380_v8  ;;  %v610_v8 = vld [vmem:[#allocation16 + $0x118] sm:$0xff] }
0x1506   :  { %3706 = vmatpush.msrb.mxu2 %v610_v8 }
0x1507   :  { %v3871_v40 = vmul.f32 %v5519_v4, %v3870_v10  ;;  %v3501_v10 = vadd.f32 %v3500_v27, %v3381_v51  ;;  %v607_v27 = vld [vmem:[#allocation16 + $0x100] sm:$0xff] }
0x1508   :  { %3707 = vmatpush.msrb.mxu2 %v607_v27 }
0x1509   :  { %v8351_v24 = vadd.f32 %v8293_v54, %v3501_v10  ;;  %v595_v10 = vld [vmem:[#allocation16 + $0xa0] sm:$0xff] }
0x150c   :  { %v3840_v57 = vpop.f32.mrf.mxu3 }
0x150d   :  { %v3908_v13 = vadd.f32 %v8325_v36, %v3840_v57 }
0x150f   :  { %3912 = vrot.lane.b32.xlu0 %v3908_v13, %s6099_s3  ;;  %v3872_v13 = vadd.f32 %v5519_v4, %v3871_v40  ;;  %v8348_v40 = vadd.f32 %v8301_v21, %v3455_v22 }
0x1511   :  { %v3876_v29 = vsel %vm3875_vm5, %v5519_v4, %v3872_v13  ;;  %v3883_v51 = vadd.f32 %v3840_v57, %v8348_v40  ;;  %v592_v57 = vld [vmem:[#allocation16 + $0x88] sm:$0xff] }
0x1512   :  { %v8341_v6 = vsel %vm3878_vm14, %v3880_v7, %v3876_v29  ;;  %v604_v7 = vld [vmem:[#allocation16 + $0xe8] sm:$0xff] }
0x1513   :  { %v5243_v21 = vmul.f32 -1.442695, %v3883_v51  ;;  %3708 = vmatpush.msrb.mxu2 %v604_v7  ;;  %v3927_v7 = vsub.f32 1.0, %v8341_v6 }
0x1563   :  { %v3915_v52 = vpop.permute.xlu1 %3914 }
0x1581   :  { %v3913_v41 = vpop.permute.xlu0 %3912 }
0x1582   :  { %v3916_v32 = vsel %vm689_vm3, %v3913_v41, %v3915_v52 }
0x1583   :  { %v3918_v12 = vmul.f32 %v3916_v32, %v8341_v6  ;;  %v601_v32 = vld [vmem:[#allocation16 + $0xd0] sm:$0xff] }
0x1584   :  { %3709 = vmatpush.msrb.mxu2 %v601_v32 }
0x1585   :  { %3920 = vrot.lane.b32.xlu2 %v3918_v12, %s6099_s3  ;;  %v598_v12 = vld [vmem:[#allocation16 + $0xb8] sm:$0xff] }
0x1586   :  { %3710 = vmatpush.msrb.mxu2 %v598_v12 }
0x1588   :  { %3711 = vmatpush.msrb.mxu2 %v595_v10 }
0x158a   :  { %3712 = vmatpush.msrb.mxu2 %v592_v57 }
0x15df   :  { %v3921_v33 = vpop.permute.xlu2 %3920 }
0x15e0   :  { %v3923_v26 = vadd.f32 %v3921_v33, %v8348_v40  ;;  %v3924_v4 = vadd.f32 %v3921_v33, %v8351_v24 }
0x15e2   :  { %5520 = vtanh.f32 %v3923_v26  ;;  %v589_v26 = vld [vmem:[#allocation16 + $0x70] sm:$0xff] }
0x15e3   :  { %5522 = vtanh.f32 %v3924_v4  ;;  %v586_v4 = vld [vmem:[#allocation16 + $0x58] sm:$0xff]  ;;  %3713 = vmatpush.msrb.mxu2 %v589_v26 }
0x15e4   :  { %5524 = vpow2.f32 %v5243_v21 }
0x15e5   :  { %3714 = vmatpush.msrb.mxu2 %v586_v4  ;;  %v580_v4 = vld [vmem:[#allocation16 + $0x28] sm:$0xff] }
0x15e8   :  { %v5521_v13 = vpop.eup %5520 }
0x15e9   :  { %v5523_v52 = vpop.eup %5522  ;;  %3931 = vrot.lane.b32.xlu0 %v5521_v13, %s6098_s0 }
0x15ea   :  { %3933 = vrot.lane.b32.xlu1 %v5523_v52, %s6098_s0  ;;  %v5525_v14 = vpop.eup %5524  ;;  %v583_v52 = vld [vmem:[#allocation16 + $0x40] sm:$0xff] }
0x15eb   :  { %v3887_v54 = vadd.f32 1.0, %v5525_v14  ;;  %3715 = vmatpush.msrb.mxu2 %v583_v52 }
0x15ed   :  { %5526 = vrcp.f32 %v3887_v54  ;;  %v3899_v51 = vand.u32 2147483648, %v3887_v54  ;;  %vm3893_vm0 = vweird.f32 %v3887_v54  ;;  %v3897_v21 = vand.u32 2147483647, %v3887_v54  ;;  %3716 = vmatpush.msrb.mxu2 %v580_v4 }
0x15ef   :  { %v3900_v8 = vor.u32 1.1754944e-38, %v3899_v51  ;;  %vm3898_vm6 = vcmp.eq.f32.partialorder %v3897_v21, 8.507059e+37 }
0x15f3   :  { %v5527_v29 = vpop.eup %5526 }
0x15f4   :  { %v3889_v41 = vmul.f32 %v5527_v29, %v3887_v54  ;;  %vm3894_vm15 = vweird.f32 %v5527_v29 }
0x15f5   :  { %vm3895_vm4 = vmor %vm3893_vm0, %vm3894_vm15 }
0x15f6   :  { %v3890_v22 = vsub.f32 1.0, %v3889_v41 }
0x15f8   :  { %v3891_v33 = vmul.f32 %v5527_v29, %v3890_v22  ;;  %v3940_v22 = vmul.f32 0.0, %v8341_v6 }
0x15fa   :  { %v3892_v13 = vadd.f32 %v5527_v29, %v3891_v33 }
0x15fc   :  { %v3896_v14 = vsel %vm3895_vm4, %v5527_v29, %v3892_v13  ;;  %v577_v13 = vld [vmem:[#allocation16 + $0x10] sm:$0xff] }
0x15fd   :  { %v3901_v27 = vsel %vm3898_vm6, %v3900_v8, %v3896_v14  ;;  %3717 = vmatpush.msrb.mxu2 %v577_v13 }
0x15fe   :  { %v3928_v12 = vsub.f32 1.0, %v3901_v27  ;;  %v3941_v54 = vmul.f32 0.0, %v3901_v27  ;;  %3718 = vmatmul.f32.vlgmr.msrb.gmra.mxu2 %v9313_v53 }
0x15ff   :  { %3957 = vmatpush.msra.mxu2 %v8092_v9 }
0x1601   :  { %3958 = vmatpush.msra.mxu2 %v8094_v63 }
0x1603   :  { %3959 = vmatpush.msra.mxu2 %v8097_v17 }
0x1605   :  { %3960 = vmatpush.msra.mxu2 %v8100_v43 }
0x1607   :  { %3961 = vmatpush.msra.mxu2 %v8104_v56 }
0x1609   :  { %3962 = vmatpush.msra.mxu2 %v8107_v20 }
0x160b   :  { %3963 = vmatpush.msra.mxu2 %v8109_v46 }
0x160d   :  { %3964 = vmatpush.msra.mxu2 %v8113_v58 }
0x160f   :  { %3965 = vmatpush.msra.mxu2 %v8116_v39 }
0x1611   :  { %3966 = vmatpush.msra.mxu2 %v8118_v1 }
0x1613   :  { %3967 = vmatpush.msra.mxu2 %v8121_v25 }
0x1615   :  { %3968 = vmatpush.msra.mxu2 %v8125_v16 }
0x1617   :  { %4136 = vmatpush.msrb.mxu2 %v8137_v19 }
0x1619   :  { %4137 = vmatpush.msrb.mxu2 %v8140_v18 }
0x161b   :  { %4138 = vmatpush.msrb.mxu2 %v8143_v50 }
0x161d   :  { %4139 = vmatpush.msrb.mxu2 %v8157_v5 }
0x161f   :  { %4140 = vmatpush.msrb.mxu2 %v8163_v28 }
0x1621   :  { %4141 = vmatpush.msrb.mxu2 %v8173_v30 }
0x1623   :  { %4142 = vmatpush.msrb.mxu2 %v8179_v49 }
0x1625   :  { %4143 = vmatpush.msrb.mxu2 %v8185_v47 }
0x1627   :  { %4144 = vmatpush.msrb.mxu2 %v8191_v55 }
0x1629   :  { %4145 = vmatpush.msrb.mxu2 %v8202_v61 }
0x162b   :  { %4146 = vmatpush.msrb.mxu2 %v8209_v35 }
0x162d   :  { %4147 = vmatpush.msrb.mxu2 %v8215_v42 }
0x165b   :  { %v3932_v41 = vpop.permute.xlu0 %3931 }
0x165c   :  { %v3934_v32 = vpop.permute.xlu1 %3933  ;;  %v3938_v10 = vmul.f32 %v3932_v41, %v3927_v7 }
0x165d   :  { %v3935_v57 = vsel %vm687_vm2, %v3932_v41, %v3934_v32 }
0x165e   :  { %v3939_v33 = vmul.f32 %v3935_v57, %v3928_v12  ;;  %v8361_v26 = vadd.f32 %v3940_v22, %v3938_v10 }
0x1660   :  { %3946 = vrot.lane.b32.xlu2 %v8361_v26, %s6098_s0  ;;  %v8365_v29 = vadd.f32 %v3941_v54, %v3939_v33 }
0x1662   :  { %3948 = vrot.lane.b32.xlu0 %v8365_v29, %s6098_s0 }
0x16ba   :  { %v3947_v53 = vpop.permute.xlu2 %3946 }
0x16d4   :  { %v3949_v6 = vpop.permute.xlu0 %3948 }
0x16d5   :  { %v3950_v52 = vsel %vm687_vm2, %v3947_v53, %v3949_v6 }
0x16d6   :  { %5244 = vmatmul.msk.f32.vlgmr.msra.gmra.mxu2 %vm698_vm1, %v3950_v52  ;;  %5245 = vmatmul.msk.f32.vlgmr.msra.gmra.mxu0 %vm698_vm1, %v3950_v52 }
0x16d7   :  { %5246 = vmatmul.msk.f32.vlgmr.msra.gmra.mxu3 %vm698_vm1, %v3950_v52  ;;  %4315 = vmatpush.msra.mxu2 %v8145_v31 }
0x16d8   :  { %4434 = vmatpush.msra.mxu0 %v8092_v9  ;;  %4454 = vmatpush.msra.mxu3 %v8137_v19  ;;  %v9322_v9 = vld [vmem:[#allocation41_spill] sm:$0xff] }
0x16d9   :  { %4316 = vmatpush.msra.mxu2 %v8149_v37 }
0x16da   :  { %4435 = vmatpush.msra.mxu0 %v8094_v63  ;;  %4455 = vmatpush.msra.mxu3 %v8140_v18 }
0x16db   :  { %4317 = vmatpush.msra.mxu2 %v8155_v11 }
0x16dc   :  { %4436 = vmatpush.msra.mxu0 %v8097_v17  ;;  %4456 = vmatpush.msra.mxu3 %v8143_v50 }
0x16dd   :  { %4318 = vmatpush.msra.mxu2 %v8160_v45 }
0x16de   :  { %4437 = vmatpush.msra.mxu0 %v8100_v43  ;;  %4457 = vmatpush.msra.mxu3 %v8157_v5 }
0x16df   :  { %4319 = vmatpush.msra.mxu2 %v8166_v0 }
0x16e0   :  { %4438 = vmatpush.msra.mxu0 %v8104_v56  ;;  %4458 = vmatpush.msra.mxu3 %v8163_v28 }
0x16e1   :  { %4320 = vmatpush.msra.mxu2 %v8171_v59 }
0x16e2   :  { %4439 = vmatpush.msra.mxu0 %v8107_v20  ;;  %4459 = vmatpush.msra.mxu3 %v8173_v30 }
0x16e3   :  { %4321 = vmatpush.msra.mxu2 %v8176_v15 }
0x16e4   :  { %4440 = vmatpush.msra.mxu0 %v8109_v46  ;;  %4460 = vmatpush.msra.mxu3 %v8179_v49 }
0x16e5   :  { %4322 = vmatpush.msra.mxu2 %v8182_v23 }
0x16e6   :  { %4441 = vmatpush.msra.mxu0 %v8113_v58  ;;  %4461 = vmatpush.msra.mxu3 %v8185_v47  ;;  %v8438_v58 = vpop.f32.mrf.mxu2 }
0x16e7   :  { %4323 = vmatpush.msra.mxu2 %v8188_v38 }
0x16e8   :  { %4442 = vmatpush.msra.mxu0 %v8116_v39  ;;  %4462 = vmatpush.msra.mxu3 %v8191_v55 }
0x16e9   :  { %4324 = vmatpush.msra.mxu2 %v8196_v34 }
0x16ea   :  { %4443 = vmatpush.msra.mxu0 %v8118_v1  ;;  %4463 = vmatpush.msra.mxu3 %v8202_v61 }
0x16eb   :  { %4325 = vmatpush.msra.mxu2 %v8205_v48 }
0x16ec   :  { %4444 = vmatpush.msra.mxu0 %v8121_v25  ;;  %4464 = vmatpush.msra.mxu3 %v8209_v35 }
0x16ed   :  { %4326 = vmatpush.msra.mxu2 %v9322_v9 }
0x16ee   :  { %4445 = vmatpush.msra.mxu0 %v8125_v16  ;;  %4465 = vmatpush.msra.mxu3 %v8215_v42  ;;  %v8440_v39 = vpop.f32.mrf.mxu2 }
0x1753   :  { %v3990_v63 = vpop.f32.mrf.mxu0 }
0x1754   :  { %v4059_v17 = vadd.f32 %v3990_v63, %v8325_v36 }
0x1756   :  { %v4063_v43 = vrot.slane %v4059_v17, 6 }
0x1758   :  { %4065 = vrot.lane.b32.xlu1 %v4063_v43, %s6099_s3 }
0x1759   :  { %v3970_v1 = vpop.f32.mrf.mxu2 }
0x175a   :  { %v4010_v56 = vpop.f32.mrf.mxu3  ;;  %v4014_v25 = vrot.slane %v3970_v1, 6 }
0x175b   :  { %v4060_v20 = vadd.f32 %v4010_v56, %v8325_v36 }
0x175c   :  { %v4016_v16 = vadd.f32 %v4014_v25, %v8338_v60 }
0x175d   :  { %v4064_v46 = vrot.slane %v4060_v20, 6  ;;  %v4037_v20 = vrot.slane %v3990_v63, 6 }
0x175e   :  { %v5247_v51 = vmul.f32 -1.442695, %v4016_v16 }
0x175f   :  { %4067 = vrot.lane.b32.xlu2 %v4064_v46, %s6099_s3  ;;  %v4039_v46 = vadd.f32 %v4037_v20, %v8348_v40 }
0x1760   :  { %5528 = vpow2.f32 %v5247_v51 }
0x1761   :  { %v5248_v1 = vmul.f32 -1.442695, %v4039_v46 }
0x1766   :  { %v5529_v21 = vpop.eup %5528 }
0x1767   :  { %v4020_v14 = vadd.f32 1.0, %v5529_v21 }
0x1769   :  { %5530 = vrcp.f32 %v4020_v14  ;;  %v4032_v12 = vand.u32 2147483648, %v4020_v14  ;;  %vm4026_vm8 = vweird.f32 %v4020_v14  ;;  %v4030_v22 = vand.u32 2147483647, %v4020_v14 }
0x176b   :  { %v4033_v57 = vor.u32 1.1754944e-38, %v4032_v12  ;;  %vm4031_vm12 = vcmp.eq.f32.partialorder %v4030_v22, 8.507059e+37  ;;  %v4093_v22 = vrot.slane %v8361_v26, 6 }
0x176f   :  { %v5531_v8 = vpop.eup %5530 }
0x1770   :  { %v4022_v27 = vmul.f32 %v5531_v8, %v4020_v14  ;;  %vm4027_vm7 = vweird.f32 %v5531_v8 }
0x1771   :  { %vm4028_vm11 = vmor %vm4026_vm8, %vm4027_vm7 }
0x1772   :  { %v4023_v7 = vsub.f32 1.0, %v4022_v27 }
0x1774   :  { %v4024_v41 = vmul.f32 %v5531_v8, %v4023_v7 }
0x1776   :  { %v4025_v32 = vadd.f32 %v5531_v8, %v4024_v41 }
0x1778   :  { %v4029_v10 = vsel %vm4028_vm11, %v5531_v8, %v4025_v32 }
0x1779   :  { %v4034_v4 = vsel %vm4031_vm12, %v4033_v57, %v4029_v10  ;;  %v4094_v57 = vrot.slane %v8365_v29, 6 }
0x177a   :  { %v4080_v10 = vsub.f32 1.0, %v4034_v4 }
0x17b9   :  { %v4068_v33 = vpop.permute.xlu2 %4067 }
0x17ca   :  { %v4066_v54 = vpop.permute.xlu1 %4065 }
0x17cb   :  { %v4069_v13 = vsel %vm689_vm3, %v4066_v54, %v4068_v33 }
0x17cc   :  { %v4071_v53 = vmul.f32 %v4069_v13, %v4034_v4 }
0x17ce   :  { %4073 = vrot.lane.b32.xlu0 %v4071_v53, %s6099_s3  ;;  %v4097_v53 = vmul.f32 %v4093_v22, %v4034_v4 }
0x1840   :  { %v4074_v6 = vpop.permute.xlu0 %4073 }
0x1841   :  { %v4076_v52 = vadd.f32 %v4074_v6, %v8348_v40  ;;  %v4077_v17 = vadd.f32 %v4074_v6, %v8351_v24 }
0x1843   :  { %5532 = vtanh.f32 %v4076_v52 }
0x1844   :  { %5534 = vtanh.f32 %v4077_v17 }
0x1845   :  { %5536 = vpow2.f32 %v5248_v1 }
0x1849   :  { %v5533_v43 = vpop.eup %5532 }
0x184a   :  { %v5535_v56 = vpop.eup %5534  ;;  %4084 = vrot.lane.b32.xlu1 %v5533_v43, %s6098_s0 }
0x184b   :  { %4086 = vrot.lane.b32.xlu2 %v5535_v56, %s6098_s0  ;;  %v5537_v25 = vpop.eup %5536 }
0x184c   :  { %v4043_v16 = vadd.f32 1.0, %v5537_v25  ;;  %v8466_v25 = vld [vmem:[#allocation13 + $0x108] sm:$0xff] }
0x184e   :  { %5538 = vrcp.f32 %v4043_v16  ;;  %v4055_v7 = vand.u32 2147483648, %v4043_v16  ;;  %vm4049_vm9 = vweird.f32 %v4043_v16  ;;  %v4053_v41 = vand.u32 2147483647, %v4043_v16 }
0x1850   :  { %v4056_v12 = vor.u32 1.1754944e-38, %v4055_v7  ;;  %vm4054_vm5 = vcmp.eq.f32.partialorder %v4053_v41, 8.507059e+37 }
0x1854   :  { %v5539_v51 = vpop.eup %5538 }
0x1855   :  { %v4045_v21 = vmul.f32 %v5539_v51, %v4043_v16  ;;  %vm4050_vm13 = vweird.f32 %v5539_v51  ;;  %v8471_v16 = vld [vmem:[#allocation13 + $0xf0] sm:$0xff] }
0x1856   :  { %vm4051_vm10 = vmor %vm4049_vm9, %vm4050_vm13 }
0x1857   :  { %v4046_v14 = vsub.f32 1.0, %v4045_v21 }
0x1859   :  { %v4047_v8 = vmul.f32 %v5539_v51, %v4046_v14 }
0x185b   :  { %v4048_v27 = vadd.f32 %v5539_v51, %v4047_v8 }
0x185d   :  { %v4052_v32 = vsel %vm4051_vm10, %v5539_v51, %v4048_v27  ;;  %v8476_v51 = vld [vmem:[#allocation13 + $0xd8] sm:$0xff] }
0x185e   :  { %v4057_v63 = vsel %vm4054_vm5, %v4056_v12, %v4052_v32 }
0x185f   :  { %v4081_v54 = vsub.f32 1.0, %v4057_v63  ;;  %v4098_v43 = vmul.f32 %v4094_v57, %v4057_v63 }
0x18a5   :  { %v4087_v33 = vpop.permute.xlu2 %4086 }
0x18bc   :  { %v4085_v13 = vpop.permute.xlu1 %4084 }
0x18bd   :  { %v4088_v6 = vsel %vm687_vm2, %v4085_v13, %v4087_v33  ;;  %v4091_v52 = vmul.f32 %v4085_v13, %v4080_v10 }
0x18be   :  { %v4092_v17 = vmul.f32 %v4088_v6, %v4081_v54 }
0x18bf   :  { %v8453_v56 = vadd.f32 %v4097_v53, %v4091_v52 }
0x18c0   :  { %v8455_v20 = vadd.f32 %v4098_v43, %v4092_v17 }
0x18c1   :  { %v4103_v46 = vrot.slane %v8453_v56, 2 }
0x18c2   :  { %v4104_v26 = vrot.slane %v8455_v20, 2 }
0x18c3   :  { %4105 = vrot.lane.b32.xlu0 %v4103_v46, %s6098_s0 }
0x18c4   :  { %4107 = vrot.lane.b32.xlu1 %v4104_v26, %s6098_s0  ;;  %v4252_v26 = vrot.slane %v8453_v56, 6 }
0x1935   :  { %v4106_v29 = vpop.permute.xlu0 %4105 }
0x1936   :  { %v4108_v1 = vpop.permute.xlu1 %4107 }
0x1937   :  { %v4109_v4 = vsel %vm687_vm2, %v4106_v29, %v4108_v1 }
0x1938   :  { %5249 = vmatmul.msk.f32.vlgmr.msrb.gmra.mxu1 %vm698_vm1, %v4109_v4  ;;  %5250 = vmatmul.msk.f32.vlgmr.msrb.gmra.mxu2 %vm698_vm1, %v4109_v4 }
0x1939   :  { %5251 = vmatmul.msk.f32.vlgmr.msrb.gmra.mxu0 %vm698_vm1, %v4109_v4  ;;  %4474 = vmatpush.msrb.mxu1 %v8145_v31  ;;  %v8481_v31 = vld [vmem:[#allocation13 + $0xc0] sm:$0xff] }
0x193a   :  { %4581 = vmatpush.msrb.mxu2 %v8466_v25  ;;  %4601 = vmatpush.msrb.mxu0 %v8137_v19  ;;  %v8486_v19 = vld [vmem:[#allocation13 + $0xa8] sm:$0xff] }
0x193b   :  { %4475 = vmatpush.msrb.mxu1 %v8149_v37  ;;  %v8501_v37 = vld [vmem:[#allocation13 + $0x60] sm:$0xff] }
0x193c   :  { %4582 = vmatpush.msrb.mxu2 %v8471_v16  ;;  %4602 = vmatpush.msrb.mxu0 %v8140_v18  ;;  %v8491_v18 = vld [vmem:[#allocation13 + $0x90] sm:$0xff] }
0x193d   :  { %4476 = vmatpush.msrb.mxu1 %v8155_v11  ;;  %v8506_v11 = vld [vmem:[#allocation13 + $0x48] sm:$0xff] }
0x193e   :  { %4583 = vmatpush.msrb.mxu2 %v8476_v51  ;;  %4603 = vmatpush.msrb.mxu0 %v8143_v50  ;;  %v8496_v50 = vld [vmem:[#allocation13 + $0x78] sm:$0xff] }
0x193f   :  { %4477 = vmatpush.msrb.mxu1 %v8160_v45  ;;  %v8516_v45 = vld [vmem:[#allocation13 + $0x18] sm:$0xff] }
0x1940   :  { %4584 = vmatpush.msrb.mxu2 %v8481_v31  ;;  %4604 = vmatpush.msrb.mxu0 %v8157_v5  ;;  %v8511_v5 = vld [vmem:[#allocation13 + $0x30] sm:$0xff] }
0x1941   :  { %4478 = vmatpush.msrb.mxu1 %v8166_v0 }
0x1942   :  { %4585 = vmatpush.msrb.mxu2 %v8486_v19  ;;  %4605 = vmatpush.msrb.mxu0 %v8163_v28  ;;  %v8521_v28 = vld [vmem:[#allocation13] sm:$0xff] }
0x1943   :  { %4479 = vmatpush.msrb.mxu1 %v8171_v59 }
0x1944   :  { %4586 = vmatpush.msrb.mxu2 %v8491_v18  ;;  %4606 = vmatpush.msrb.mxu0 %v8173_v30 }
0x1945   :  { %4480 = vmatpush.msrb.mxu1 %v8176_v15 }
0x1946   :  { %4587 = vmatpush.msrb.mxu2 %v8496_v50  ;;  %4607 = vmatpush.msrb.mxu0 %v8179_v49 }
0x1947   :  { %4481 = vmatpush.msrb.mxu1 %v8182_v23 }
0x1948   :  { %4588 = vmatpush.msrb.mxu2 %v8501_v37  ;;  %4608 = vmatpush.msrb.mxu0 %v8185_v47 }
0x1949   :  { %4482 = vmatpush.msrb.mxu1 %v8188_v38 }
0x194a   :  { %4589 = vmatpush.msrb.mxu2 %v8506_v11  ;;  %4609 = vmatpush.msrb.mxu0 %v8191_v55 }
0x194b   :  { %4483 = vmatpush.msrb.mxu1 %v8196_v34 }
0x194c   :  { %4590 = vmatpush.msrb.mxu2 %v8511_v5  ;;  %4610 = vmatpush.msrb.mxu0 %v8202_v61 }
0x194d   :  { %4484 = vmatpush.msrb.mxu1 %v8205_v48 }
0x194e   :  { %4591 = vmatpush.msrb.mxu2 %v8516_v45  ;;  %4611 = vmatpush.msrb.mxu0 %v8209_v35 }
0x194f   :  { %4485 = vmatpush.msrb.mxu1 %v9322_v9 }
0x1950   :  { %4592 = vmatpush.msrb.mxu2 %v8521_v28  ;;  %4612 = vmatpush.msrb.mxu0 %v8215_v42 }
0x19b5   :  { %v4129_v47 = vpop.f32.mrf.mxu1 }
0x19b6   :  { %v4169_v0 = vpop.f32.mrf.mxu0  ;;  %v4173_v38 = vrot.slane %v4129_v47, 4 }
0x19b7   :  { %v4219_v59 = vadd.f32 %v4169_v0, %v8325_v36 }
0x19b8   :  { %v4175_v55 = vadd.f32 %v4173_v38, %v8338_v60 }
0x19b9   :  { %v4223_v30 = vrot.slane %v4219_v59, 4 }
0x19ba   :  { %v5252_v34 = vmul.f32 -1.442695, %v4175_v55 }
0x19bb   :  { %4226 = vrot.lane.b32.xlu0 %v4223_v30, %s6099_s3  ;;  %v4149_v15 = vpop.f32.mrf.mxu2 }
0x19bc   :  { %v4218_v49 = vadd.f32 %v4149_v15, %v8325_v36  ;;  %5540 = vpow2.f32 %v5252_v34  ;;  %v4196_v6 = vrot.slane %v4149_v15, 4 }
0x19be   :  { %v4222_v23 = vrot.slane %v4218_v49, 4  ;;  %v4198_v52 = vadd.f32 %v4196_v6, %v8348_v40  ;;  %v8584_v6 = vld [vmem:[#allocation13 + $0xb0] sm:$0xff] }
0x19c0   :  { %4224 = vrot.lane.b32.xlu2 %v4222_v23, %s6099_s3  ;;  %v5253_v17 = vmul.f32 -1.442695, %v4198_v52  ;;  %v8587_v52 = vld [vmem:[#allocation13 + $0xa0] sm:$0xff] }
0x19c2   :  { %v5541_v61 = vpop.eup %5540 }
0x19c3   :  { %v4179_v48 = vadd.f32 1.0, %v5541_v61 }
0x19c5   :  { %5542 = vrcp.f32 %v4179_v48  ;;  %v4191_v8 = vand.u32 2147483648, %v4179_v48  ;;  %vm4185_vm15 = vweird.f32 %v4179_v48  ;;  %v4189_v27 = vand.u32 2147483647, %v4179_v48 }
0x19c7   :  { %v4192_v41 = vor.u32 1.1754944e-38, %v4191_v8  ;;  %vm4190_vm4 = vcmp.eq.f32.partialorder %v4189_v27, 8.507059e+37 }
0x19cb   :  { %v5543_v35 = vpop.eup %5542 }
0x19cc   :  { %v4181_v42 = vmul.f32 %v5543_v35, %v4179_v48  ;;  %vm4186_vm14 = vweird.f32 %v5543_v35 }
0x19cd   :  { %vm4187_vm0 = vmor %vm4185_vm15, %vm4186_vm14 }
0x19ce   :  { %v4182_v9 = vsub.f32 1.0, %v4181_v42 }
0x19d0   :  { %v4183_v21 = vmul.f32 %v5543_v35, %v4182_v9 }
0x19d2   :  { %v4184_v14 = vadd.f32 %v5543_v35, %v4183_v21 }
0x19d4   :  { %v4188_v7 = vsel %vm4187_vm0, %v5543_v35, %v4184_v14  ;;  %v4253_v35 = vrot.slane %v8455_v20, 6  ;;  %v8552_v20 = vld [vmem:[#allocation13 + $0x118] sm:$0xff] }
0x19d5   :  { %v4193_v63 = vsel %vm4190_vm4, %v4192_v41, %v4188_v7 }
0x19d6   :  { %v4239_v29 = vsub.f32 1.0, %v4193_v63  ;;  %v4256_v0 = vmul.f32 %v4252_v26, %v4193_v63  ;;  %v8601_v26 = vld [vmem:[#allocation13 + $0x70] sm:$0xff] }
0x1a1a   :  { %v4225_v32 = vpop.permute.xlu2 %4224 }
0x1a2d   :  { %v4227_v12 = vpop.permute.xlu0 %4226 }
0x1a2e   :  { %v4228_v22 = vsel %vm689_vm3, %v4225_v32, %v4227_v12 }
0x1a2f   :  { %v4230_v10 = vmul.f32 %v4228_v22, %v4193_v63  ;;  %v8556_v63 = vld [vmem:[#allocation13 + $0x110] sm:$0xff]  ;;  %v8559_v22 = vld [vmem:[#allocation13 + $0x100] sm:$0xff] }
0x1a31   :  { %4232 = vrot.lane.b32.xlu1 %v4230_v10, %s6099_s3  ;;  %v8563_v10 = vld [vmem:[#allocation13 + $0xf8] sm:$0xff] }
0x1aa3   :  { %v4233_v57 = vpop.permute.xlu1 %4232 }
0x1aa4   :  { %v4235_v33 = vadd.f32 %v4233_v57, %v8348_v40  ;;  %v4236_v54 = vadd.f32 %v4233_v57, %v8351_v24  ;;  %v8566_v57 = vld [vmem:[#allocation13 + $0xe8] sm:$0xff] }
0x1aa6   :  { %5544 = vtanh.f32 %v4235_v33  ;;  %v8570_v33 = vld [vmem:[#allocation13 + $0xe0] sm:$0xff] }
0x1aa7   :  { %5546 = vtanh.f32 %v4236_v54  ;;  %v8573_v54 = vld [vmem:[#allocation13 + $0xd0] sm:$0xff] }
0x1aa8   :  { %5548 = vpow2.f32 %v5253_v17  ;;  %v8591_v17 = vld [vmem:[#allocation13 + $0x98] sm:$0xff] }
0x1aac   :  { %v5545_v13 = vpop.eup %5544 }
0x1aad   :  { %v5547_v53 = vpop.eup %5546  ;;  %4243 = vrot.lane.b32.xlu2 %v5545_v13, %s6098_s0  ;;  %v8577_v13 = vld [vmem:[#allocation13 + $0xc8] sm:$0xff] }
0x1aae   :  { %4245 = vrot.lane.b32.xlu0 %v5547_v53, %s6098_s0  ;;  %v5549_v43 = vpop.eup %5548  ;;  %v8580_v53 = vld [vmem:[#allocation13 + $0xb8] sm:$0xff] }
0x1aaf   :  { %v4202_v46 = vadd.f32 1.0, %v5549_v43  ;;  %v8594_v43 = vld [vmem:[#allocation13 + $0x88] sm:$0xff] }
0x1ab1   :  { %5550 = vrcp.f32 %v4202_v46  ;;  %v4214_v55 = vand.u32 2147483648, %v4202_v46  ;;  %vm4208_vm7 = vweird.f32 %v4202_v46  ;;  %v4212_v34 = vand.u32 2147483647, %v4202_v46 }
0x1ab3   :  { %v4215_v61 = vor.u32 1.1754944e-38, %v4214_v55  ;;  %vm4213_vm11 = vcmp.eq.f32.partialorder %v4212_v34, 8.507059e+37 }
0x1ab7   :  { %v5551_v1 = vpop.eup %5550 }
0x1ab8   :  { %v4204_v49 = vmul.f32 %v5551_v1, %v4202_v46  ;;  %vm4209_vm6 = vweird.f32 %v5551_v1  ;;  %v8598_v46 = vld [vmem:[#allocation13 + $0x80] sm:$0xff] }
0x1ab9   :  { %vm4210_vm8 = vmor %vm4208_vm7, %vm4209_vm6 }
0x1aba   :  { %v4205_v15 = vsub.f32 1.0, %v4204_v49  ;;  %v8622_v49 = vld [vmem:[#allocation13 + $0x28] sm:$0xff] }
0x1abc   :  { %v4206_v47 = vmul.f32 %v5551_v1, %v4205_v15  ;;  %v8629_v15 = vld [vmem:[#allocation13 + $0x10] sm:$0xff] }
0x1abe   :  { %v4207_v38 = vadd.f32 %v5551_v1, %v4206_v47  ;;  %v8633_v47 = vld [vmem:[#allocation13 + $0x8] sm:$0xff] }
0x1ac0   :  { %v4211_v56 = vsel %vm4210_vm8, %v5551_v1, %v4207_v38  ;;  %v8608_v1 = vld [vmem:[#allocation13 + $0x58] sm:$0xff] }
0x1ac1   :  { %v4216_v48 = vsel %vm4213_vm11, %v4215_v61, %v4211_v56 }
0x1ac2   :  { %v4240_v42 = vsub.f32 1.0, %v4216_v48  ;;  %v4257_v14 = vmul.f32 %v4253_v35, %v4216_v48 }
0x1b07   :  { %v4244_v4 = vpop.permute.xlu2 %4243 }
0x1b08   :  { %v4250_v59 = vmul.f32 %v4244_v4, %v4239_v29  ;;  %v8605_v29 = vld [vmem:[#allocation13 + $0x68] sm:$0xff] }
0x1b0a   :  { %v8538_v30 = vadd.f32 %v4256_v0, %v4250_v59  ;;  %v8615_v0 = vld [vmem:[#allocation13 + $0x40] sm:$0xff]  ;;  %v8619_v59 = vld [vmem:[#allocation13 + $0x38] sm:$0xff] }
0x1b0c   :  { %v4262_v23 = vrot.slane %v8538_v30, 4 }
0x1b0e   :  { %4264 = vrot.lane.b32.xlu1 %v4262_v23, %s6098_s0  ;;  %v8626_v23 = vld [vmem:[#allocation13 + $0x20] sm:$0xff] }
0x1b20   :  { %v4246_v9 = vpop.permute.xlu0 %4245 }
0x1b21   :  { %v4247_v21 = vsel %vm687_vm2, %v4244_v4, %v4246_v9  ;;  %v8612_v4 = vld [vmem:[#allocation13 + $0x50] sm:$0xff] }
0x1b22   :  { %v4251_v8 = vmul.f32 %v4247_v21, %v4240_v42 }
0x1b24   :  { %v8544_v27 = vadd.f32 %v4257_v14, %v4251_v8 }
0x1b26   :  { %v4263_v7 = vrot.slane %v8544_v27, 4 }
0x1b28   :  { %4266 = vrot.lane.b32.xlu2 %v4263_v7, %s6098_s0 }
0x1b80   :  { %v4265_v41 = vpop.permute.xlu1 %4264 }
0x1b82   :  { %v4267_v32 = vpop.permute.xlu2 %4266 }
0x1b83   :  { %v4268_v12 = vsel %vm687_vm2, %v4265_v41, %v4267_v32 }
0x1b84   :  { %5254 = vmatmul.msk.f32.vlgmr.msrb.gmra.mxu3 %vm698_vm1, %v4268_v12  ;;  %5255 = vmatmul.msk.f32.vlgmr.msra.gmra.mxu1 %vm698_vm1, %v4268_v12 }
0x1b85   :  { %5256 = vmatmul.msk.f32.vlgmr.msra.gmra.mxu2 %vm698_vm1, %v4268_v12  ;;  %4621 = vmatpush.msrb.mxu3 %v8552_v20 }
0x1b86   :  { %4740 = vmatpush.msra.mxu1 %v8466_v25  ;;  %4760 = vmatpush.msra.mxu2 %v8556_v63 }
0x1b87   :  { %4622 = vmatpush.msrb.mxu3 %v8559_v22 }
0x1b88   :  { %4741 = vmatpush.msra.mxu1 %v8471_v16  ;;  %4761 = vmatpush.msra.mxu2 %v8563_v10 }
0x1b89   :  { %4623 = vmatpush.msrb.mxu3 %v8566_v57 }
0x1b8a   :  { %4742 = vmatpush.msra.mxu1 %v8476_v51  ;;  %4762 = vmatpush.msra.mxu2 %v8570_v33 }
0x1b8b   :  { %4624 = vmatpush.msrb.mxu3 %v8573_v54 }
0x1b8c   :  { %4743 = vmatpush.msra.mxu1 %v8481_v31  ;;  %4763 = vmatpush.msra.mxu2 %v8577_v13 }
0x1b8d   :  { %4625 = vmatpush.msrb.mxu3 %v8580_v53 }
0x1b8e   :  { %4744 = vmatpush.msra.mxu1 %v8486_v19  ;;  %4764 = vmatpush.msra.mxu2 %v8584_v6 }
0x1b8f   :  { %4626 = vmatpush.msrb.mxu3 %v8587_v52 }
0x1b90   :  { %4745 = vmatpush.msra.mxu1 %v8491_v18  ;;  %4765 = vmatpush.msra.mxu2 %v8591_v17 }
0x1b91   :  { %4627 = vmatpush.msrb.mxu3 %v8594_v43 }
0x1b92   :  { %4746 = vmatpush.msra.mxu1 %v8496_v50  ;;  %4766 = vmatpush.msra.mxu2 %v8598_v46 }
0x1b93   :  { %4628 = vmatpush.msrb.mxu3 %v8601_v26 }
0x1b94   :  { %4747 = vmatpush.msra.mxu1 %v8501_v37  ;;  %4767 = vmatpush.msra.mxu2 %v8605_v29 }
0x1b95   :  { %4629 = vmatpush.msrb.mxu3 %v8608_v1 }
0x1b96   :  { %4748 = vmatpush.msra.mxu1 %v8506_v11  ;;  %4768 = vmatpush.msra.mxu2 %v8612_v4 }
0x1b97   :  { %4630 = vmatpush.msrb.mxu3 %v8615_v0 }
0x1b98   :  { %4749 = vmatpush.msra.mxu1 %v8511_v5  ;;  %4769 = vmatpush.msra.mxu2 %v8619_v59 }
0x1b99   :  { %4631 = vmatpush.msrb.mxu3 %v8622_v49 }
0x1b9a   :  { %4750 = vmatpush.msra.mxu1 %v8516_v45  ;;  %4770 = vmatpush.msra.mxu2 %v8626_v23 }
0x1b9b   :  { %4632 = vmatpush.msrb.mxu3 %v8629_v15 }
0x1b9c   :  { %4751 = vmatpush.msra.mxu1 %v8521_v28  ;;  %4771 = vmatpush.msra.mxu2 %v8633_v47 }
0x1c01   :  { %v4308_v38 = vpop.f32.mrf.mxu1 }
0x1c02   :  { %v4377_v55 = vadd.f32 %v4308_v38, %v8325_v36 }
0x1c04   :  { %v4381_v34 = vrot.slane %v4377_v55, 2 }
0x1c06   :  { %4383 = vrot.lane.b32.xlu0 %v4381_v34, %s6099_s3 }
0x1c07   :  { %v4288_v35 = vpop.f32.mrf.mxu3 }
0x1c08   :  { %v4328_v56 = vpop.f32.mrf.mxu2  ;;  %v4332_v42 = vrot.slane %v4288_v35, 2 }
0x1c09   :  { %v4378_v61 = vadd.f32 %v4328_v56, %v8325_v36 }
0x1c0a   :  { %v4334_v9 = vadd.f32 %v4332_v42, %v8338_v60 }
0x1c0b   :  { %v4382_v48 = vrot.slane %v4378_v61, 2 }
0x1c0c   :  { %v5257_v21 = vmul.f32 -1.442695, %v4334_v9 }
0x1c0d   :  { %4385 = vrot.lane.b32.xlu1 %v4382_v48, %s6099_s3 }
0x1c0e   :  { %5552 = vpow2.f32 %v5257_v21 }
0x1c14   :  { %v5553_v14 = vpop.eup %5552 }
0x1c15   :  { %v4338_v8 = vadd.f32 1.0, %v5553_v14 }
0x1c17   :  { %5554 = vrcp.f32 %v4338_v8  ;;  %v4350_v34 = vand.u32 2147483648, %v4338_v8  ;;  %vm4344_vm13 = vweird.f32 %v4338_v8  ;;  %v4348_v56 = vand.u32 2147483647, %v4338_v8 }
0x1c19   :  { %v4351_v48 = vor.u32 1.1754944e-38, %v4350_v34  ;;  %vm4349_vm10 = vcmp.eq.f32.partialorder %v4348_v56, 8.507059e+37 }
0x1c1d   :  { %v5555_v7 = vpop.eup %5554 }
0x1c1e   :  { %v4340_v41 = vmul.f32 %v5555_v7, %v4338_v8  ;;  %vm4345_vm12 = vweird.f32 %v5555_v7 }
0x1c1f   :  { %vm4346_vm9 = vmor %vm4344_vm13, %vm4345_vm12 }
0x1c20   :  { %v4341_v32 = vsub.f32 1.0, %v4340_v41 }
0x1c22   :  { %v4342_v12 = vmul.f32 %v5555_v7, %v4341_v32 }
0x1c24   :  { %v4343_v55 = vadd.f32 %v5555_v7, %v4342_v12 }
0x1c26   :  { %v4347_v61 = vsel %vm4346_vm9, %v5555_v7, %v4343_v55  ;;  %v4355_v7 = vrot.slane %v4308_v38, 2 }
0x1c27   :  { %v4352_v60 = vsel %vm4349_vm10, %v4351_v48, %v4347_v61 }
0x1c28   :  { %v4357_v12 = vadd.f32 %v4355_v7, %v8348_v40 }
0x1c78   :  { %v4384_v35 = vpop.permute.xlu0 %4383 }
0x1c7f   :  { %v4386_v44 = vpop.permute.xlu1 %4385 }
0x1c80   :  { %v4387_v42 = vsel %vm689_vm3, %v4384_v35, %v4386_v44  ;;  %v5258_v44 = vmul.f32 -1.442695, %v4357_v12 }
0x1c81   :  { %v4389_v9 = vmul.f32 %v4387_v42, %v4352_v60 }
0x1c83   :  { %4391 = vrot.lane.b32.xlu2 %v4389_v9, %s6099_s3 }
0x1cdd   :  { %v4392_v21 = vpop.permute.xlu2 %4391 }
0x1cde   :  { %v4394_v14 = vadd.f32 %v4392_v21, %v8348_v40  ;;  %v4395_v41 = vadd.f32 %v4392_v21, %v8351_v24  ;;  %v4411_v40 = vrot.slane %v8538_v30, 6 }
0x1ce0   :  { %5556 = vtanh.f32 %v4394_v14 }
0x1ce1   :  { %5558 = vtanh.f32 %v4395_v41  ;;  %v4398_v41 = vsub.f32 1.0, %v4352_v60 }
0x1ce2   :  { %5560 = vpow2.f32 %v5258_v44  ;;  %v4415_v44 = vmul.f32 %v4411_v40, %v4352_v60  ;;  %v9326_v40 = vld [vmem:[#allocation36_spill] sm:$0xff] }
0x1ce6   :  { %v5557_v8 = vpop.eup %5556 }
0x1ce7   :  { %v5559_v32 = vpop.eup %5558  ;;  %4402 = vrot.lane.b32.xlu0 %v5557_v8, %s6098_s0 }
0x1ce8   :  { %4404 = vrot.lane.b32.xlu1 %v5559_v32, %s6098_s0  ;;  %v5561_v55 = vpop.eup %5560  ;;  %v4412_v32 = vrot.slane %v8544_v27, 6 }
0x1ce9   :  { %v4361_v34 = vadd.f32 1.0, %v5561_v55 }
0x1ceb   :  { %5562 = vrcp.f32 %v4361_v34  ;;  %v4373_v42 = vand.u32 2147483648, %v4361_v34  ;;  %vm4367_vm14 = vweird.f32 %v4361_v34  ;;  %v4371_v9 = vand.u32 2147483647, %v4361_v34 }
0x1ced   :  { %v4374_v14 = vor.u32 1.1754944e-38, %v4373_v42  ;;  %vm4372_vm0 = vcmp.eq.f32.partialorder %v4371_v9, 8.507059e+37 }
0x1cf1   :  { %v5563_v56 = vpop.eup %5562 }
0x1cf2   :  { %v4363_v61 = vmul.f32 %v5563_v56, %v4361_v34  ;;  %vm4368_vm5 = vweird.f32 %v5563_v56 }
0x1cf3   :  { %vm4369_vm15 = vmor %vm4367_vm14, %vm4368_vm5 }
0x1cf4   :  { %v4364_v48 = vsub.f32 1.0, %v4363_v61 }
0x1cf6   :  { %v4365_v24 = vmul.f32 %v5563_v56, %v4364_v48 }
0x1cf8   :  { %v4366_v35 = vadd.f32 %v5563_v56, %v4365_v24 }
0x1cfa   :  { %v4370_v21 = vsel %vm4369_vm15, %v5563_v56, %v4366_v35 }
0x1cfb   :  { %v4375_v38 = vsel %vm4372_vm0, %v4374_v14, %v4370_v21  ;;  %v9325_v21 = vld [vmem:[#allocation48_spill] sm:$0xff] }
0x1cfc   :  { %v4399_v12 = vsub.f32 1.0, %v4375_v38  ;;  %v4416_v34 = vmul.f32 %v4412_v32, %v4375_v38  ;;  %v8718_v14 = vadd.f32 %v9325_v21, %v8321_v62 }
0x1d59   :  { %v4403_v8 = vpop.permute.xlu0 %4402 }
0x1d5a   :  { %v4405_v7 = vpop.permute.xlu1 %4404  ;;  %v4409_v55 = vmul.f32 %v4403_v8, %v4398_v41 }
0x1d5b   :  { %v4406_v61 = vsel %vm687_vm2, %v4403_v8, %v4405_v7 }
0x1d5c   :  { %v4410_v48 = vmul.f32 %v4406_v61, %v4399_v12  ;;  %v8651_v24 = vadd.f32 %v4415_v44, %v4409_v55 }
0x1d5e   :  { %v4421_v56 = vrot.slane %v8651_v24, 6  ;;  %v8654_v35 = vadd.f32 %v4416_v34, %v4410_v48 }
0x1d60   :  { %4423 = vrot.lane.b32.xlu2 %v4421_v56, %s6098_s0  ;;  %v4422_v30 = vrot.slane %v8654_v35, 6 }
0x1d62   :  { %4425 = vrot.lane.b32.xlu0 %v4422_v30, %s6098_s0 }
0x1dba   :  { %v4424_v27 = vpop.permute.xlu2 %4423 }
0x1dd4   :  { %v4426_v60 = vpop.permute.xlu0 %4425 }
0x1dd5   :  { %v4427_v42 = vsel %vm687_vm2, %v4424_v27, %v4426_v60 }
0x1dd6   :  { %5259 = vmatmul.msk.f32.vlgmr.msra.gmra.mxu0 %vm698_vm1, %v4427_v42  ;;  %5260 = vmatmul.msk.f32.vlgmr.msra.gmra.mxu3 %vm698_vm1, %v4427_v42 }
0x1dd7   :  { %5261 = vmatmul.msk.f32.vlgmr.msrb.gmra.mxu1 %vm698_vm1, %v4427_v42  ;;  %4780 = vmatpush.msra.mxu0 %v8552_v20 }
0x1dd8   :  { %4899 = vmatpush.msra.mxu3 %v8466_v25  ;;  %4919 = vmatpush.msrb.mxu1 %v8556_v63 }
0x1dd9   :  { %4781 = vmatpush.msra.mxu0 %v8559_v22 }
0x1dda   :  { %4900 = vmatpush.msra.mxu3 %v8471_v16  ;;  %4920 = vmatpush.msrb.mxu1 %v8563_v10 }
0x1ddb   :  { %4782 = vmatpush.msra.mxu0 %v8566_v57 }
0x1ddc   :  { %4901 = vmatpush.msra.mxu3 %v8476_v51  ;;  %4921 = vmatpush.msrb.mxu1 %v8570_v33 }
0x1ddd   :  { %4783 = vmatpush.msra.mxu0 %v8573_v54 }
0x1dde   :  { %4902 = vmatpush.msra.mxu3 %v8481_v31  ;;  %4922 = vmatpush.msrb.mxu1 %v8577_v13 }
0x1ddf   :  { %4784 = vmatpush.msra.mxu0 %v8580_v53 }
0x1de0   :  { %4903 = vmatpush.msra.mxu3 %v8486_v19  ;;  %4923 = vmatpush.msrb.mxu1 %v8584_v6  ;;  %v9323_v19 = vperm.slane %v8311_v3, 0 }
0x1de1   :  { %4785 = vmatpush.msra.mxu0 %v8587_v52 }
0x1de2   :  { %4904 = vmatpush.msra.mxu3 %v8491_v18  ;;  %4924 = vmatpush.msrb.mxu1 %v8591_v17  ;;  %v3412_v18 = vadd.f32 %v8318_v2, %v9323_v19 }
0x1de3   :  { %4786 = vmatpush.msra.mxu0 %v8594_v43 }
0x1de4   :  { %4905 = vmatpush.msra.mxu3 %v8496_v50  ;;  %4925 = vmatpush.msrb.mxu1 %v8598_v46 }
0x1de5   :  { %4787 = vmatpush.msra.mxu0 %v8601_v26 }
0x1de6   :  { %4906 = vmatpush.msra.mxu3 %v8501_v37  ;;  %4926 = vmatpush.msrb.mxu1 %v8605_v29  ;;  %v9324_v37 = vld [vmem:[#allocation47_spill] sm:$0xff] }
0x1de7   :  { %4788 = vmatpush.msra.mxu0 %v8608_v1 }
0x1de8   :  { %4907 = vmatpush.msra.mxu3 %v8506_v11  ;;  %4927 = vmatpush.msrb.mxu1 %v8612_v4  ;;  %v8711_v11 = vadd.f32 %v9324_v37, %v3412_v18 }
0x1de9   :  { %4789 = vmatpush.msra.mxu0 %v8615_v0 }
0x1dea   :  { %4908 = vmatpush.msra.mxu3 %v8511_v5  ;;  %4928 = vmatpush.msrb.mxu1 %v8619_v59 }
0x1deb   :  { %4790 = vmatpush.msra.mxu0 %v8622_v49 }
0x1dec   :  { %4909 = vmatpush.msra.mxu3 %v8516_v45  ;;  %4929 = vmatpush.msrb.mxu1 %v8626_v23 }
0x1ded   :  { %4791 = vmatpush.msra.mxu0 %v8629_v15 }
0x1dee   :  { %4910 = vmatpush.msra.mxu3 %v8521_v28  ;;  %4930 = vmatpush.msrb.mxu1 %v8633_v47 }
0x1e53   :  { %v4447_v50 = vpop.f32.mrf.mxu0 }
0x1e54   :  { %v4487_v25 = vpop.f32.mrf.mxu1  ;;  %v4490_v5 = vadd.f32 %v4447_v50, %v8711_v11 }
0x1e55   :  { %v4531_v16 = vadd.f32 %v4487_v25, %v8325_v36 }
0x1e56   :  { %v5262_v45 = vmul.f32 -1.442695, %v4490_v5 }
0x1e57   :  { %4536 = vrot.lane.b32.xlu2 %v4531_v16, %s6099_s3 }
0x1e58   :  { %5564 = vpow2.f32 %v5262_v45 }
0x1e59   :  { %v4467_v51 = vpop.f32.mrf.mxu3 }
0x1e5a   :  { %v4530_v31 = vadd.f32 %v4467_v51, %v8325_v36  ;;  %v4510_v12 = vadd.f32 %v4467_v51, %v9326_v40 }
0x1e5c   :  { %4534 = vrot.lane.b32.xlu1 %v4530_v31, %s6099_s3  ;;  %v5263_v44 = vmul.f32 -1.442695, %v4510_v12 }
0x1e5e   :  { %v5565_v28 = vpop.eup %5564 }
0x1e5f   :  { %v4494_v63 = vadd.f32 1.0, %v5565_v28 }
0x1e61   :  { %5566 = vrcp.f32 %v4494_v63  ;;  %v4506_v3 = vand.u32 2147483648, %v4494_v63  ;;  %vm4500_vm6 = vweird.f32 %v4494_v63  ;;  %v4504_v2 = vand.u32 2147483647, %v4494_v63 }
0x1e63   :  { %v4507_v29 = vor.u32 1.1754944e-38, %v4506_v3  ;;  %vm4505_vm8 = vcmp.eq.f32.partialorder %v4504_v2, 8.507059e+37 }
0x1e67   :  { %v5567_v10 = vpop.eup %5566 }
0x1e68   :  { %v4496_v33 = vmul.f32 %v5567_v10, %v4494_v63  ;;  %vm4501_vm4 = vweird.f32 %v5567_v10 }
0x1e69   :  { %vm4502_vm7 = vmor %vm4500_vm6, %vm4501_vm4 }
0x1e6a   :  { %v4497_v13 = vsub.f32 1.0, %v4496_v33 }
0x1e6c   :  { %v4498_v6 = vmul.f32 %v5567_v10, %v4497_v13 }
0x1e6e   :  { %v4499_v17 = vadd.f32 %v5567_v10, %v4498_v6 }
0x1e70   :  { %v4503_v46 = vsel %vm4502_vm7, %v5567_v10, %v4499_v17 }
0x1e71   :  { %v4508_v23 = vsel %vm4505_vm8, %v4507_v29, %v4503_v46 }
0x1e72   :  { %v4549_v51 = vsub.f32 1.0, %v4508_v23  ;;  %v4564_v5 = vmul.f32 %v4508_v23, %v4421_v56 }
0x1eb1   :  { %v4537_v4 = vpop.permute.xlu2 %4536 }
0x1ece   :  { %v4535_v59 = vpop.permute.xlu1 %4534 }
0x1ecf   :  { %v4538_v47 = vsel %vm689_vm3, %v4535_v59, %v4537_v4 }
0x1ed0   :  { %v4540_v9 = vmul.f32 %v4538_v47, %v4508_v23 }
0x1ed2   :  { %4542 = vrot.lane.b32.xlu0 %v4540_v9, %s6099_s3 }
0x1f44   :  { %v4543_v38 = vpop.permute.xlu0 %4542 }
0x1f45   :  { %v4545_v41 = vadd.f32 %v4543_v38, %v9326_v40  ;;  %v4546_v8 = vadd.f32 %v4543_v38, %v8718_v14 }
0x1f47   :  { %5568 = vtanh.f32 %v4545_v41 }
0x1f48   :  { %5570 = vtanh.f32 %v4546_v8 }
0x1f49   :  { %5572 = vpow2.f32 %v5263_v44 }
0x1f4d   :  { %v5569_v32 = vpop.eup %5568 }
0x1f4e   :  { %v5571_v7 = vpop.eup %5570  ;;  %4553 = vrot.lane.b32.xlu1 %v5569_v32, %s6098_s0 }
0x1f4f   :  { %4555 = vrot.lane.b32.xlu2 %v5571_v7, %s6098_s0  ;;  %v5573_v55 = vpop.eup %5572 }
0x1f50   :  { %v4514_v62 = vadd.f32 1.0, %v5573_v55 }
0x1f52   :  { %5574 = vrcp.f32 %v4514_v62  ;;  %v4526_v42 = vand.u32 2147483648, %v4514_v62  ;;  %vm4520_vm12 = vweird.f32 %v4514_v62  ;;  %v4524_v25 = vand.u32 2147483647, %v4514_v62 }
0x1f54   :  { %v4527_v31 = vor.u32 1.1754944e-38, %v4526_v42  ;;  %vm4525_vm9 = vcmp.eq.f32.partialorder %v4524_v25, 8.507059e+37 }
0x1f58   :  { %v5575_v61 = vpop.eup %5574 }
0x1f59   :  { %v4516_v48 = vmul.f32 %v5575_v61, %v4514_v62  ;;  %vm4521_vm11 = vweird.f32 %v5575_v61 }
0x1f5a   :  { %vm4522_vm13 = vmor %vm4520_vm12, %vm4521_vm11 }
0x1f5b   :  { %v4517_v34 = vsub.f32 1.0, %v4516_v48 }
0x1f5d   :  { %v4518_v27 = vmul.f32 %v5575_v61, %v4517_v34 }
0x1f5f   :  { %v4519_v60 = vadd.f32 %v5575_v61, %v4518_v27 }
0x1f61   :  { %v4523_v16 = vsel %vm4522_vm13, %v5575_v61, %v4519_v60 }
0x1f62   :  { %v4528_v19 = vsel %vm4525_vm9, %v4527_v31, %v4523_v16 }
0x1f63   :  { %v4550_v50 = vsub.f32 1.0, %v4528_v19  ;;  %v4565_v63 = vmul.f32 %v4528_v19, %v4422_v30 }
0x1fa9   :  { %v4556_v18 = vpop.permute.xlu2 %4555 }
0x1fc0   :  { %v4554_v37 = vpop.permute.xlu1 %4553 }
0x1fc1   :  { %v4557_v45 = vsel %vm687_vm2, %v4554_v37, %v4556_v18  ;;  %v4560_v28 = vmul.f32 %v4554_v37, %v4549_v51 }
0x1fc2   :  { %v4561_v10 = vmul.f32 %v4557_v45, %v4550_v50 }
0x1fc3   :  { %v8730_v33 = vadd.f32 %v4564_v5, %v4560_v28 }
0x1fc4   :  { %v8732_v13 = vadd.f32 %v4565_v63, %v4561_v10 }
0x1fc5   :  { %4570 = vrot.lane.b32.xlu0 %v8730_v33, %s6098_s0  ;;  %v4717_v34 = vrot.slane %v8730_v33, 6 }
0x1fc6   :  { %4572 = vrot.lane.b32.xlu1 %v8732_v13, %s6098_s0  ;;  %v4718_v33 = vrot.slane %v8732_v13, 6 }
0x2037   :  { %v4571_v6 = vpop.permute.xlu0 %4570 }
0x2038   :  { %v4573_v24 = vpop.permute.xlu1 %4572 }
0x2039   :  { %v4574_v56 = vsel %vm687_vm2, %v4571_v6, %v4573_v24 }
0x203a   :  { %5264 = vmatmul.msk.f32.vlgmr.msrb.gmra.mxu2 %vm698_vm1, %v4574_v56  ;;  %5265 = vmatmul.msk.f32.vlgmr.msrb.gmra.mxu0 %vm698_vm1, %v4574_v56 }
0x203b   :  { %5266 = vmatmul.msk.f32.vlgmr.msrb.gmra.mxu3 %vm698_vm1, %v4574_v56  ;;  %4939 = vmatpush.msrb.mxu2 %v8552_v20 }
0x203d   :  { %4940 = vmatpush.msrb.mxu2 %v8559_v22 }
0x203f   :  { %4941 = vmatpush.msrb.mxu2 %v8566_v57 }
0x2041   :  { %4942 = vmatpush.msrb.mxu2 %v8573_v54 }
0x2043   :  { %4943 = vmatpush.msrb.mxu2 %v8580_v53 }
0x2045   :  { %4944 = vmatpush.msrb.mxu2 %v8587_v52 }
0x2047   :  { %4945 = vmatpush.msrb.mxu2 %v8594_v43 }
0x2049   :  { %4946 = vmatpush.msrb.mxu2 %v8601_v26 }
0x204b   :  { %4947 = vmatpush.msrb.mxu2 %v8608_v1 }
0x204d   :  { %4948 = vmatpush.msrb.mxu2 %v8615_v0 }
0x204f   :  { %4949 = vmatpush.msrb.mxu2 %v8622_v49 }
0x2051   :  { %4950 = vmatpush.msrb.mxu2 %v8629_v15 }
0x20b7   :  { %v4614_v20 = vpop.f32.mrf.mxu0 }
0x20b8   :  { %v4683_v22 = vadd.f32 %v4614_v20, %v8325_v36  ;;  %v4661_v44 = vrot.slane %v4614_v20, 6 }
0x20ba   :  { %v4687_v57 = vrot.slane %v4683_v22, 6  ;;  %v4663_v55 = vadd.f32 %v4661_v44, %v9326_v40 }
0x20bc   :  { %4689 = vrot.lane.b32.xlu2 %v4687_v57, %s6099_s3  ;;  %v5268_v62 = vmul.f32 -1.442695, %v4663_v55 }
0x20bd   :  { %v4594_v43 = vpop.f32.mrf.mxu2 }
0x20be   :  { %v4634_v54 = vpop.f32.mrf.mxu3  ;;  %v4638_v26 = vrot.slane %v4594_v43, 6 }
0x20bf   :  { %v4684_v53 = vadd.f32 %v4634_v54, %v8325_v36 }
0x20c0   :  { %v4640_v1 = vadd.f32 %v4638_v26, %v8711_v11 }
0x20c1   :  { %v4688_v52 = vrot.slane %v4684_v53, 6 }
0x20c2   :  { %v5267_v0 = vmul.f32 -1.442695, %v4640_v1 }
0x20c3   :  { %4691 = vrot.lane.b32.xlu0 %v4688_v52, %s6099_s3 }
0x20c4   :  { %5576 = vpow2.f32 %v5267_v0 }
0x20ca   :  { %v5577_v49 = vpop.eup %5576 }
0x20cb   :  { %v4644_v15 = vadd.f32 1.0, %v5577_v49 }
0x20cd   :  { %5578 = vrcp.f32 %v4644_v15  ;;  %v4656_v46 = vand.u32 2147483648, %v4644_v15  ;;  %vm4650_vm5 = vweird.f32 %v4644_v15  ;;  %v4654_v29 = vand.u32 2147483647, %v4644_v15 }
0x20cf   :  { %v4657_v59 = vor.u32 1.1754944e-38, %v4656_v46  ;;  %vm4655_vm15 = vcmp.eq.f32.partialorder %v4654_v29, 8.507059e+37 }
0x20d3   :  { %v5579_v35 = vpop.eup %5578 }
0x20d4   :  { %v4646_v30 = vmul.f32 %v5579_v35, %v4644_v15  ;;  %vm4651_vm10 = vweird.f32 %v5579_v35 }
0x20d5   :  { %vm4652_vm14 = vmor %vm4650_vm5, %vm4651_vm10 }
0x20d6   :  { %v4647_v17 = vsub.f32 1.0, %v4646_v30 }
0x20d8   :  { %v4648_v3 = vmul.f32 %v5579_v35, %v4647_v17 }
0x20da   :  { %v4649_v2 = vadd.f32 %v5579_v35, %v4648_v3 }
0x20dc   :  { %v4653_v4 = vsel %vm4652_vm14, %v5579_v35, %v4649_v2 }
0x20dd   :  { %v4658_v9 = vsel %vm4655_vm15, %v4657_v59, %v4653_v4 }
0x20de   :  { %v4704_v27 = vsub.f32 1.0, %v4658_v9  ;;  %v4721_v25 = vmul.f32 %v4717_v34, %v4658_v9 }
0x2116   :  { %v4690_v23 = vpop.permute.xlu2 %4689 }
0x2135   :  { %v4692_v47 = vpop.permute.xlu0 %4691 }
0x2136   :  { %v4693_v21 = vsel %vm689_vm3, %v4690_v23, %v4692_v47 }
0x2137   :  { %v4695_v38 = vmul.f32 %v4693_v21, %v4658_v9 }
0x2139   :  { %4697 = vrot.lane.b32.xlu1 %v4695_v38, %s6099_s3 }
0x21ab   :  { %v4698_v41 = vpop.permute.xlu1 %4697 }
0x21ac   :  { %v4700_v8 = vadd.f32 %v4698_v41, %v9326_v40  ;;  %v4701_v32 = vadd.f32 %v4698_v41, %v8718_v14 }
0x21ae   :  { %5580 = vtanh.f32 %v4700_v8 }
0x21af   :  { %5582 = vtanh.f32 %v4701_v32 }
0x21b0   :  { %5584 = vpow2.f32 %v5268_v62 }
0x21b4   :  { %v5581_v7 = vpop.eup %5580 }
0x21b5   :  { %v5583_v12 = vpop.eup %5582  ;;  %4708 = vrot.lane.b32.xlu2 %v5581_v7, %s6098_s0 }
0x21b6   :  { %4710 = vrot.lane.b32.xlu0 %v5583_v12, %s6098_s0  ;;  %v5585_v61 = vpop.eup %5584 }
0x21b7   :  { %v4667_v48 = vadd.f32 1.0, %v5585_v61 }
0x21b9   :  { %5586 = vrcp.f32 %v4667_v48  ;;  %v4679_v5 = vand.u32 2147483648, %v4667_v48  ;;  %vm4673_vm4 = vweird.f32 %v4667_v48  ;;  %v4677_v45 = vand.u32 2147483647, %v4667_v48 }
0x21bb   :  { %v4680_v63 = vor.u32 1.1754944e-38, %v4679_v5  ;;  %vm4678_vm7 = vcmp.eq.f32.partialorder %v4677_v45, 8.507059e+37 }
0x21bf   :  { %v5587_v60 = vpop.eup %5586 }
0x21c0   :  { %v4669_v19 = vmul.f32 %v5587_v60, %v4667_v48  ;;  %vm4674_vm0 = vweird.f32 %v5587_v60 }
0x21c1   :  { %vm4675_vm6 = vmor %vm4673_vm4, %vm4674_vm0 }
0x21c2   :  { %v4670_v18 = vsub.f32 1.0, %v4669_v19 }
0x21c4   :  { %v4671_v50 = vmul.f32 %v5587_v60, %v4670_v18 }
0x21c6   :  { %v4672_v37 = vadd.f32 %v5587_v60, %v4671_v50 }
0x21c8   :  { %v4676_v28 = vsel %vm4675_vm6, %v5587_v60, %v4672_v37 }
0x21c9   :  { %v4681_v10 = vsel %vm4678_vm7, %v4680_v63, %v4676_v28 }
0x21ca   :  { %v4705_v6 = vsub.f32 1.0, %v4681_v10  ;;  %v4722_v22 = vmul.f32 %v4718_v33, %v4681_v10 }
0x220f   :  { %v4709_v42 = vpop.permute.xlu2 %4708 }
0x2210   :  { %v4715_v16 = vmul.f32 %v4709_v42, %v4704_v27  ;;  %v5322_v27 = vld [vmem:[%s8888_s20] ss:$0 sm:$0xff] }
0x2212   :  { %v8767_v31 = vadd.f32 %v4721_v25, %v4715_v16 }
0x2214   :  { %v4727_v51 = vrot.slane %v8767_v31, 2 }
0x2216   :  { %4729 = vrot.lane.b32.xlu1 %v4727_v51, %s6098_s0 }
0x2228   :  { %v4711_v24 = vpop.permute.xlu0 %4710 }
0x2229   :  { %v4712_v56 = vsel %vm687_vm2, %v4709_v42, %v4711_v24 }
0x222a   :  { %v4716_v20 = vmul.f32 %v4712_v56, %v4705_v6  ;;  %v4876_v6 = vrot.slane %v8767_v31, 6 }
0x222c   :  { %v8773_v57 = vadd.f32 %v4722_v22, %v4716_v20 }
0x222e   :  { %v4728_v54 = vrot.slane %v8773_v57, 2  ;;  %v4877_v20 = vrot.slane %v8773_v57, 6  ;;  %v9327_v57 = vld [vmem:[#allocation38_spill] sm:$0xff] }
0x2230   :  { %4731 = vrot.lane.b32.xlu2 %v4728_v54, %s6098_s0 }
0x2288   :  { %v4730_v53 = vpop.permute.xlu1 %4729 }
0x228a   :  { %v4732_v52 = vpop.permute.xlu2 %4731 }
0x228b   :  { %v4733_v43 = vsel %vm687_vm2, %v4730_v53, %v4732_v52 }
0x228c   :  { %5269 = vmatmul.msk.f32.vlgmr.msra.gmra.mxu1 %vm698_vm1, %v4733_v43  ;;  %5270 = vmatmul.msk.f32.vlgmr.msra.gmra.mxu2 %vm698_vm1, %v4733_v43 }
0x228d   :  { %5271 = vmatmul.msk.f32.vlgmr.msra.gmra.mxu0 %vm698_vm1, %v4733_v43 }
0x2309   :  { %v4753_v35 = vpop.f32.mrf.mxu1 }
0x230a   :  { %v4793_v13 = vpop.f32.mrf.mxu0  ;;  %v4797_v30 = vrot.slane %v4753_v35, 4 }
0x230b   :  { %v4843_v26 = vadd.f32 %v4793_v13, %v8325_v36 }
0x230c   :  { %v4799_v17 = vadd.f32 %v4797_v30, %v8711_v11 }
0x230d   :  { %v4847_v1 = vrot.slane %v4843_v26, 4 }
0x230e   :  { %v5272_v3 = vmul.f32 -1.442695, %v4799_v17 }
0x230f   :  { %4850 = vrot.lane.b32.xlu1 %v4847_v1, %s6099_s3  ;;  %v4773_v0 = vpop.f32.mrf.mxu2 }
0x2310   :  { %v4842_v49 = vadd.f32 %v4773_v0, %v8325_v36  ;;  %5588 = vpow2.f32 %v5272_v3  ;;  %v4820_v60 = vrot.slane %v4773_v0, 4 }
0x2312   :  { %v4846_v15 = vrot.slane %v4842_v49, 4  ;;  %v4822_v42 = vadd.f32 %v4820_v60, %v9326_v40  ;;  %v9328_v60 = vld [vmem:[#allocation42_spill] sm:$0xff] }
0x2314   :  { %4848 = vrot.lane.b32.xlu0 %v4846_v15, %s6099_s3  ;;  %v5273_v25 = vmul.f32 -1.442695, %v4822_v42  ;;  %v5240_v42 = vmul.f32 -1.442695, %v9328_v60  ;;  %v630_v60 = vld [vmem:[#allocation17 + $0x90] sm:$0xff] }
0x2316   :  { %v5589_v2 = vpop.eup %5588 }
0x2317   :  { %v4803_v46 = vadd.f32 1.0, %v5589_v2 }
0x2319   :  { %5590 = vrcp.f32 %v4803_v46  ;;  %v4815_v9 = vand.u32 2147483648, %v4803_v46  ;;  %vm4809_vm11 = vweird.f32 %v4803_v46  ;;  %v4813_v21 = vand.u32 2147483647, %v4803_v46 }
0x231b   :  { %v4816_v41 = vor.u32 1.1754944e-38, %v4815_v9  ;;  %vm4814_vm13 = vcmp.eq.f32.partialorder %v4813_v21, 8.507059e+37 }
0x231f   :  { %v5591_v29 = vpop.eup %5590 }
0x2320   :  { %v4805_v4 = vmul.f32 %v5591_v29, %v4803_v46  ;;  %vm4810_vm8 = vweird.f32 %v5591_v29 }
0x2321   :  { %vm4811_vm12 = vmor %vm4809_vm11, %vm4810_vm8 }
0x2322   :  { %v4806_v59 = vsub.f32 1.0, %v4805_v4 }
0x2324   :  { %v4807_v23 = vmul.f32 %v5591_v29, %v4806_v59 }
0x2326   :  { %v4808_v47 = vadd.f32 %v5591_v29, %v4807_v23 }
0x2328   :  { %v4812_v38 = vsel %vm4811_vm12, %v5591_v29, %v4808_v47 }
0x2329   :  { %v4817_v7 = vsel %vm4814_vm13, %v4816_v41, %v4812_v38 }
0x232a   :  { %v4863_v24 = vsub.f32 1.0, %v4817_v7  ;;  %v4880_v53 = vmul.f32 %v4876_v6, %v4817_v7 }
0x2381   :  { %v4851_v8 = vpop.permute.xlu1 %4850 }
0x2386   :  { %v4849_v32 = vpop.permute.xlu0 %4848 }
0x2387   :  { %v4852_v12 = vsel %vm689_vm3, %v4849_v32, %v4851_v8 }
0x2388   :  { %v4854_v44 = vmul.f32 %v4852_v12, %v4817_v7 }
0x238a   :  { %4856 = vrot.lane.b32.xlu2 %v4854_v44, %s6099_s3 }
0x23e4   :  { %v4857_v55 = vpop.permute.xlu2 %4856 }
0x23e5   :  { %v4859_v62 = vadd.f32 %v4857_v55, %v9326_v40  ;;  %v4860_v61 = vadd.f32 %v4857_v55, %v8718_v14 }
0x23e7   :  { %5592 = vtanh.f32 %v4859_v62 }
0x23e8   :  { %5594 = vtanh.f32 %v4860_v61 }
0x23e9   :  { %5596 = vpow2.f32 %v5273_v25 }
0x23ed   :  { %v5593_v48 = vpop.eup %5592 }
0x23ee   :  { %v5595_v34 = vpop.eup %5594  ;;  %4867 = vrot.lane.b32.xlu0 %v5593_v48, %s6098_s0 }
0x23ef   :  { %4869 = vrot.lane.b32.xlu1 %v5595_v34, %s6098_s0  ;;  %v5597_v16 = vpop.eup %5596 }
0x23f0   :  { %v4826_v19 = vadd.f32 1.0, %v5597_v16 }
0x23f2   :  { %5598 = vrcp.f32 %v4826_v19  ;;  %v4838_v45 = vand.u32 2147483648, %v4826_v19  ;;  %vm4832_vm10 = vweird.f32 %v4826_v19  ;;  %v4836_v28 = vand.u32 2147483647, %v4826_v19 }
0x23f4   :  { %v4839_v10 = vor.u32 1.1754944e-38, %v4838_v45  ;;  %vm4837_vm14 = vcmp.eq.f32.partialorder %v4836_v28, 8.507059e+37 }
0x23f7   :  { %3764 = vrot.lane.b32.xlu1 %v5322_v27, %s6099_s3 }
0x23f8   :  { %v5599_v51 = vpop.eup %5598 }
0x23f9   :  { %v4828_v18 = vmul.f32 %v5599_v51, %v4826_v19  ;;  %vm4833_vm9 = vweird.f32 %v5599_v51 }
0x23fa   :  { %vm4834_vm5 = vmor %vm4832_vm10, %vm4833_vm9 }
0x23fb   :  { %v4829_v50 = vsub.f32 1.0, %v4828_v18 }
0x23fd   :  { %v4830_v37 = vmul.f32 %v5599_v51, %v4829_v50 }
0x23ff   :  { %v4831_v5 = vadd.f32 %v5599_v51, %v4830_v37 }
0x2401   :  { %v4835_v63 = vsel %vm4834_vm5, %v5599_v51, %v4831_v5 }
0x2402   :  { %v4840_v33 = vsel %vm4837_vm14, %v4839_v10, %v4835_v63 }
0x2403   :  { %v4864_v54 = vsub.f32 1.0, %v4840_v33  ;;  %v4881_v13 = vmul.f32 %v4877_v20, %v4840_v33 }
0x2460   :  { %v4868_v56 = vpop.permute.xlu0 %4867 }
0x2461   :  { %v4870_v22 = vpop.permute.xlu1 %4869  ;;  %v4874_v52 = vmul.f32 %v4868_v56, %v4863_v24 }
0x2462   :  { %v4871_v43 = vsel %vm687_vm2, %v4868_v56, %v4870_v22 }
0x2463   :  { %v4875_v26 = vmul.f32 %v4871_v43, %v4864_v54  ;;  %v8800_v1 = vadd.f32 %v4880_v53, %v4874_v52 }
0x2465   :  { %v4883_v0 = vadd.f32 %v4881_v13, %v4875_v26  ;;  %v4886_v49 = vrot.slane %v8800_v1, 4 }
0x2467   :  { %v4887_v15 = vrot.slane %v4883_v0, 4  ;;  %4888 = vrot.lane.b32.xlu2 %v4886_v49, %s6098_s0  ;;  %v5036_v48 = vrot.slane %v4883_v0, 6 }
0x2469   :  { %v3765_v31 = vpop.permute.xlu1 %3764  ;;  %4890 = vrot.lane.b32.xlu0 %v4887_v15, %s6098_s0 }
0x246a   :  { %v3767_v35 = vadd.f32 %v3765_v31, %v9327_v57  ;;  %v3768_v38 = vadd.f32 %v3765_v31, %v8440_v39 }
0x246c   :  { %3771 = vrot.lane.b32.xlu1 %v3767_v35, %s6099_s3 }
0x24c1   :  { %v4889_v30 = vpop.permute.xlu2 %4888 }
0x24db   :  { %v4891_v17 = vpop.permute.xlu0 %4890 }
0x24dc   :  { %v4892_v3 = vsel %vm687_vm2, %v4889_v30, %v4891_v17 }
0x24dd   :  { %5274 = vmatmul.msk.f32.vlgmr.msra.gmra.mxu3 %vm698_vm1, %v4892_v3  ;;  %5275 = vmatmul.msk.f32.vlgmr.msrb.gmra.mxu1 %vm698_vm1, %v4892_v3 }
0x24de   :  { %5276 = vmatmul.msk.f32.vlgmr.msrb.gmra.mxu2 %vm698_vm1, %v4892_v3  ;;  %v3772_v54 = vpop.permute.xlu1 %3771 }
0x255a   :  { %v4932_v2 = vpop.f32.mrf.mxu1 }
0x255b   :  { %v4979_v46 = vrot.slane %v4932_v2, 2  ;;  %v5001_v29 = vadd.f32 %v4932_v2, %v8325_v36 }
0x255d   :  { %v4981_v4 = vadd.f32 %v4979_v46, %v9326_v40  ;;  %v5005_v59 = vrot.slane %v5001_v29, 2 }
0x255f   :  { %v5278_v23 = vmul.f32 -1.442695, %v4981_v4  ;;  %5007 = vrot.lane.b32.xlu2 %v5005_v59, %s6099_s3  ;;  %v9329_v59 = vld [vmem:[#allocation40_spill] sm:$0xff] }
0x2560   :  { %v4912_v16 = vpop.f32.mrf.mxu3 }
0x2561   :  { %5600 = vpow2.f32 %v5278_v23  ;;  %v4952_v47 = vpop.f32.mrf.mxu2  ;;  %v4956_v51 = vrot.slane %v4912_v16, 2 }
0x2562   :  { %v5002_v9 = vadd.f32 %v4952_v47, %v8325_v36 }
0x2563   :  { %v4958_v18 = vadd.f32 %v4956_v51, %v8711_v11 }
0x2564   :  { %v5006_v21 = vrot.slane %v5002_v9, 2  ;;  %v635_v9 = vld [vmem:[#allocation17 + $0xb8] sm:$0xff] }
0x2565   :  { %v5277_v37 = vmul.f32 -1.442695, %v4958_v18  ;;  %5094 = vmatpush.msrb.mxu3 %v635_v9 }
0x2566   :  { %5009 = vrot.lane.b32.xlu0 %v5006_v21, %s6099_s3 }
0x2567   :  { %v5601_v41 = vpop.eup %5600  ;;  %3773 = vrot.lane.b32.xlu2 %v3768_v38, %s6099_s3 }
0x2568   :  { %v4985_v8 = vadd.f32 1.0, %v5601_v41 }
0x256a   :  { %5602 = vrcp.f32 %v4985_v8  ;;  %v4997_v44 = vand.u32 2147483648, %v4985_v8  ;;  %v4995_v62 = vand.u32 2147483647, %v4985_v8  ;;  %vm4991_vm0 = vweird.f32 %v4985_v8 }
0x256b   :  { %5604 = vpow2.f32 %v5240_v42  ;;  %v629_v42 = vld [vmem:[#allocation17 + $0x88] sm:$0xff] }
0x256c   :  { %v4998_v36 = vor.u32 1.1754944e-38, %v4997_v44  ;;  %vm4996_vm6 = vcmp.eq.f32.partialorder %v4995_v62, 8.507059e+37  ;;  %v634_v62 = vld [vmem:[#allocation17 + $0xb0] sm:$0xff] }
0x256d   :  { %5095 = vmatpush.msrb.mxu3 %v634_v62 }
0x2570   :  { %v5603_v32 = vpop.eup %5602 }
0x2571   :  { %v4987_v7 = vmul.f32 %v5603_v32, %v4985_v8  ;;  %vm4992_vm15 = vweird.f32 %v5603_v32  ;;  %v5605_v25 = vpop.eup %5604  ;;  %v9330_v8 = vld [vmem:[#allocation43_spill] sm:$0xff] }
0x2572   :  { %vm4993_vm4 = vmor %vm4991_vm0, %vm4992_vm15  ;;  %v3726_v19 = vadd.f32 1.0, %v5605_v25  ;;  %v628_v25 = vld [vmem:[#allocation17 + $0x80] sm:$0xff] }
0x2573   :  { %v4988_v12 = vsub.f32 1.0, %v4987_v7 }
0x2574   :  { %5606 = vrcp.f32 %v3726_v19  ;;  %v3738_v24 = vand.u32 2147483648, %v3726_v19  ;;  %vm3732_vm8 = vweird.f32 %v3726_v19  ;;  %v3736_v56 = vand.u32 2147483647, %v3726_v19 }
0x2575   :  { %v4989_v55 = vmul.f32 %v5603_v32, %v4988_v12  ;;  %5608 = vpow2.f32 %v5277_v37 }
0x2576   :  { %v3739_v22 = vor.u32 1.1754944e-38, %v3738_v24  ;;  %vm3737_vm12 = vcmp.eq.f32.partialorder %v3736_v56, 8.507059e+37  ;;  %v624_v24 = vld [vmem:[#allocation17 + $0x60] sm:$0xff]  ;;  %v623_v56 = vld [vmem:[#allocation17 + $0x58] sm:$0xff] }
0x2577   :  { %v4990_v61 = vadd.f32 %v5603_v32, %v4989_v55 }
0x2579   :  { %v4994_v39 = vsel %vm4993_vm4, %v5603_v32, %v4990_v61  ;;  %v3660_v32 = vadd.f32 %v8438_v58, %v9330_v8  ;;  %v633_v58 = vld [vmem:[#allocation17 + $0xa8] sm:$0xff]  ;;  %v614_v8 = vld [vmem:[#allocation17 + $0x10] sm:$0xff] }
0x257a   :  { %v8818_v34 = vsel %vm4996_vm6, %v4998_v36, %v4994_v39  ;;  %v5607_v50 = vpop.eup %5606  ;;  %5096 = vmatpush.msrb.mxu3 %v633_v58  ;;  %v631_v39 = vld [vmem:[#allocation17 + $0x98] sm:$0xff] }
0x257b   :  { %v8821_v27 = vmul.f32 %v5036_v48, %v8818_v34  ;;  %v3728_v5 = vmul.f32 %v5607_v50, %v3726_v19  ;;  %v5609_v28 = vpop.eup %5608  ;;  %vm3733_vm7 = vweird.f32 %v5607_v50  ;;  %v632_v48 = vld [vmem:[#allocation17 + $0xa0] sm:$0xff]  ;;  %v5323_v58 = vld [vmem:[%s8890_s22] ss:$0 sm:$0xff]  ;;  %s6103_s22 = smov 2  }
0x257c   :  { %v4962_v10 = vadd.f32 1.0, %v5609_v28  ;;  %vm3734_vm11 = vmor %vm3732_vm8, %vm3733_vm7  ;;  %5097 = vmatpush.msrb.mxu3 %v632_v48  ;;  %v626_v28 = vld [vmem:[#allocation17 + $0x70] sm:$0xff] }
0x257d   :  { %v3729_v45 = vsub.f32 1.0, %v3728_v5 }
0x257e   :  { %5610 = vrcp.f32 %v4962_v10  ;;  %v4974_v31 = vand.u32 2147483648, %v4962_v10  ;;  %vm4968_vm9 = vweird.f32 %v4962_v10  ;;  %v4972_v35 = vand.u32 2147483647, %v4962_v10  ;;  %5098 = vmatpush.msrb.mxu3 %v631_v39 }
0x257f   :  { %v3730_v63 = vmul.f32 %v5607_v50, %v3729_v45  ;;  %v627_v45 = vld [vmem:[#allocation17 + $0x78] sm:$0xff] }
0x2580   :  { %v4975_v17 = vor.u32 1.1754944e-38, %v4974_v31  ;;  %vm4973_vm5 = vcmp.eq.f32.partialorder %v4972_v35, 8.507059e+37  ;;  %5099 = vmatpush.msrb.mxu3 %v630_v60  ;;  %5066 = vmatpush.msrb.mxu0 %v627_v45  ;;  %v618_v31 = vld [vmem:[#allocation17 + $0x30] sm:$0xff]  ;;  %v617_v35 = vld [vmem:[#allocation17 + $0x28] sm:$0xff] }
0x2581   :  { %v3731_v6 = vadd.f32 %v5607_v50, %v3730_v63 }
0x2582   :  { %5100 = vmatpush.msrb.mxu3 %v629_v42  ;;  %5067 = vmatpush.msrb.mxu0 %v626_v28 }
0x2583   :  { %v3735_v20 = vsel %vm3734_vm11, %v5607_v50, %v3731_v6 }
0x2584   :  { %v8825_v53 = vsel %vm3737_vm12, %v3739_v22, %v3735_v20  ;;  %v5611_v43 = vpop.eup %5610  ;;  %5101 = vmatpush.msrb.mxu3 %v628_v25 }
0x2585   :  { %v4964_v26 = vmul.f32 %v5611_v43, %v4962_v10  ;;  %vm4969_vm13 = vweird.f32 %v5611_v43 }
0x2586   :  { %vm4970_vm10 = vmor %vm4968_vm9, %vm4969_vm13 }
0x2587   :  { %v4965_v0 = vsub.f32 1.0, %v4964_v26  ;;  %v621_v26 = vld [vmem:[#allocation17 + $0x48] sm:$0xff] }
0x2589   :  { %v4966_v49 = vmul.f32 %v5611_v43, %v4965_v0 }
0x258b   :  { %v4967_v15 = vadd.f32 %v5611_v43, %v4966_v49  ;;  %v620_v49 = vld [vmem:[#allocation17 + $0x40] sm:$0xff] }
0x258d   :  { %v4971_v30 = vsel %vm4970_vm10, %v5611_v43, %v4967_v15  ;;  %v619_v15 = vld [vmem:[#allocation17 + $0x38] sm:$0xff] }
0x258e   :  { %v8830_v2 = vsel %vm4973_vm5, %v4975_v17, %v4971_v30  ;;  %v616_v30 = vld [vmem:[#allocation17 + $0x20] sm:$0xff] }
0x258f   :  { %v5022_v17 = vsub.f32 1.0, %v8830_v2 }
0x25b9   :  { %v5008_v33 = vpop.permute.xlu2 %5007 }
0x25c1   :  { %v3774_v11 = vpop.permute.xlu2 %3773 }
0x25c2   :  { %v3775_v52 = vsel %vm689_vm3, %v3772_v54, %v3774_v11 }
0x25c3   :  { %v3777_v13 = vmul.f32 %v3775_v52, %v8825_v53  ;;  %v622_v52 = vld [vmem:[#allocation17 + $0x50] sm:$0xff] }
0x25c5   :  { %3779 = vrot.lane.b32.xlu1 %v3777_v13, %s6099_s3 }
0x25d8   :  { %v5010_v3 = vpop.permute.xlu0 %5009 }
0x25d9   :  { %v5011_v46 = vsel %vm689_vm3, %v5008_v33, %v5010_v3  ;;  %v625_v33 = vld [vmem:[#allocation17 + $0x68] sm:$0xff]  ;;  %v5035_v3 = vrot.slane %v8800_v1, 6 }
0x25da   :  { %v5013_v29 = vmul.f32 %v5011_v46, %v8830_v2  ;;  %5068 = vmatpush.msrb.mxu0 %v625_v33  ;;  %v613_v1 = vld [vmem:[#allocation17 + $0x8] sm:$0xff] }
0x25dc   :  { %5015 = vrot.lane.b32.xlu0 %v5013_v29, %s6099_s3  ;;  %5069 = vmatpush.msrb.mxu0 %v624_v24  ;;  %v5023_v29 = vsub.f32 1.0, %v8818_v34  ;;  %v3786_v34 = vsub.f32 1.0, %v8825_v53 }
0x25de   :  { %5070 = vmatpush.msrb.mxu0 %v623_v56 }
0x25e0   :  { %5071 = vmatpush.msrb.mxu0 %v622_v52 }
0x25e2   :  { %5072 = vmatpush.msrb.mxu0 %v621_v26 }
0x25e4   :  { %5073 = vmatpush.msrb.mxu0 %v620_v49 }
0x25e6   :  { %5074 = vmatpush.msrb.mxu0 %v619_v15 }
0x25e8   :  { %5075 = vmatpush.msrb.mxu0 %v618_v31 }
0x25ea   :  { %5076 = vmatpush.msrb.mxu0 %v617_v35 }
0x25ec   :  { %5077 = vmatpush.msrb.mxu0 %v616_v30 }
0x2637   :  { %v3780_v4 = vpop.permute.xlu1 %3779 }
0x2638   :  { %v3782_v23 = vadd.f32 %v3780_v4, %v9329_v59  ;;  %v3783_v7 = vadd.f32 %v3780_v4, %v3660_v32  ;;  %v612_v32 = vld [vmem:[#allocation17] sm:$0xff] }
0x263a   :  { %5612 = vtanh.f32 %v3782_v23  ;;  %v5039_v23 = vmul.f32 %v5035_v3, %v8830_v2  ;;  %v3799_v2 = vmul.f32 0.0, %v8825_v53 }
0x2640   :  { %v5613_v47 = vpop.eup %5612 }
0x2641   :  { %3790 = vrot.lane.b32.xlu1 %v5613_v47, %s6098_s0 }
0x264e   :  { %v5016_v21 = vpop.permute.xlu0 %5015 }
0x264f   :  { %v5018_v38 = vadd.f32 %v5016_v21, %v9326_v40  ;;  %v5019_v41 = vadd.f32 %v5016_v21, %v8718_v14  ;;  %v3742_v40 = vadd.f32 %v9327_v57, %v9329_v59 }
0x2651   :  { %5614 = vtanh.f32 %v5018_v38  ;;  %v5241_v14 = vmul.f32 -1.442695, %v3742_v40 }
0x2652   :  { %5616 = vtanh.f32 %v5019_v41  ;;  %v615_v41 = vld [vmem:[#allocation17 + $0x18] sm:$0xff] }
0x2653   :  { %5618 = vtanh.f32 %v3783_v7  ;;  %5078 = vmatpush.msrb.mxu0 %v615_v41 }
0x2654   :  { %5620 = vpow2.f32 %v5241_v14 }
0x2655   :  { %5079 = vmatpush.msrb.mxu0 %v614_v8 }
0x2657   :  { %v5615_v12 = vpop.eup %5614  ;;  %5080 = vmatpush.msrb.mxu0 %v613_v1 }
0x2658   :  { %v5617_v44 = vpop.eup %5616  ;;  %5026 = vrot.lane.b32.xlu2 %v5615_v12, %s6098_s0 }
0x2659   :  { %5028 = vrot.lane.b32.xlu0 %v5617_v44, %s6098_s0  ;;  %v5619_v55 = vpop.eup %5618  ;;  %5081 = vmatpush.msrb.mxu0 %v612_v32 }
0x265a   :  { %v5621_v61 = vpop.eup %5620 }
0x265b   :  { %v3746_v36 = vadd.f32 1.0, %v5621_v61 }
0x265d   :  { %5622 = vrcp.f32 %v3746_v36  ;;  %v3758_v50 = vand.u32 2147483648, %v3746_v36  ;;  %vm3752_vm15 = vweird.f32 %v3746_v36  ;;  %v3756_v5 = vand.u32 2147483647, %v3746_v36 }
0x265f   :  { %v3759_v10 = vor.u32 1.1754944e-38, %v3758_v50  ;;  %vm3757_vm4 = vcmp.eq.f32.partialorder %v3756_v5, 8.507059e+37 }
0x2660   :  { %3792 = vrot.lane.b32.xlu2 %v5619_v55, %s6098_s0 }
0x2663   :  { %v5623_v57 = vpop.eup %5622 }
0x2664   :  { %v3748_v16 = vmul.f32 %v5623_v57, %v3746_v36  ;;  %vm3753_vm14 = vweird.f32 %v5623_v57 }
0x2665   :  { %vm3754_vm0 = vmor %vm3752_vm15, %vm3753_vm14 }
0x2666   :  { %v3749_v19 = vsub.f32 1.0, %v3748_v16 }
0x2668   :  { %v3750_v51 = vmul.f32 %v5623_v57, %v3749_v19 }
0x266a   :  { %v3751_v18 = vadd.f32 %v5623_v57, %v3750_v51 }
0x266c   :  { %v3755_v63 = vsel %vm3754_vm0, %v5623_v57, %v3751_v18 }
0x266d   :  { %v3760_v6 = vsel %vm3757_vm4, %v3759_v10, %v3755_v63 }
0x266e   :  { %v3787_v22 = vsub.f32 1.0, %v3760_v6  ;;  %v3800_v43 = vmul.f32 0.0, %v3760_v6 }
0x26b2   :  { %v5027_v37 = vpop.permute.xlu2 %5026 }
0x26b3   :  { %v3791_v20 = vpop.permute.xlu1 %3790  ;;  %v5033_v46 = vmul.f32 %v5027_v37, %v5022_v17 }
0x26b4   :  { %v3797_v7 = vmul.f32 %v3791_v20, %v3786_v34 }
0x26b5   :  { %v5041_v9 = vadd.f32 %v5039_v23, %v5033_v46 }
0x26b6   :  { %v3801_v12 = vadd.f32 %v3799_v2, %v3797_v7 }
0x26b8   :  { %v5053_v40 = vrot.slane %v3801_v12, 2 }
0x26ba   :  { %v3793_v54 = vpop.permute.xlu2 %3792 }
0x26bb   :  { %v3794_v11 = vsel %vm687_vm2, %v3791_v20, %v3793_v54 }
0x26bc   :  { %v3798_v13 = vmul.f32 %v3794_v11, %v3787_v22 }
0x26be   :  { %v3802_v0 = vadd.f32 %v3800_v43, %v3798_v13 }
0x26c0   :  { %5280 = vmatmul.msk.f32.vlgmr.msrb.gmra.mxu3 %vm689_vm3, %v3802_v0  ;;  %vm5107_vm3 = vcmask 254976  }
0x26cb   :  { %v5029_v4 = vpop.permute.xlu0 %5028 }
0x26cc   :  { %v5030_v59 = vsel %vm687_vm2, %v5027_v37, %v5029_v4 }
0x26cd   :  { %v5034_v47 = vmul.f32 %v5030_v59, %v5023_v29 }
0x26cf   :  { %v5042_v21 = vadd.f32 %v8821_v27, %v5034_v47 }
0x26d1   :  { %v5313_v38 = vpack.i.bf16 %v5042_v21, %v5041_v9 }
0x26d3   :  { %5314 = vrot.lane.b32.xlu0 %v5313_v38, %s6098_s0 }
0x2743   :  { %v5103_v39 = vpop.f32.mrf.mxu3 }
0x2745   :  { %v5315_v44 = vpop.permute.xlu0 %5314 }
0x2746   :  { %v5317_v55 = vunpack.i.h.bf16 %v5315_v44  ;;  %v5316_v27 = vunpack.i.l.bf16 %v5315_v44 }
0x2748   :  { %v5049_v14 = vsel %vm687_vm2, %v5316_v27, %v5317_v55 }
0x2749   :  { %v5056_v62 = vsel %vm698_vm1, %v5049_v14, %v5053_v40 }
0x274a   :  { %v5061_v61 = vrot.slane %v5056_v62, 6 }
0x274c   :  { %5082 = vmatmul.f32.vlgmr.msrb.gmra.mxu0 %v5061_v61 }
0x27c9   :  { %v5083_v36 = vpop.f32.mrf.mxu0 }
0x27ca   :  { %v5084_v48 = vadd.f32 %v5323_v58, %v5083_v36 }
0x27cc   :  { %v5104_v60 = vadd.f32 %v5103_v39, %v5084_v48 }
0x27ce   :  { %v5106_v53 = vmax.f32 %v5104_v60, 0.0 }
0x27d0   :  { %5115 = vrot.lane.b32.xlu2 %v5106_v53, %s6099_s3  ;;  %5110 = vrot.lane.b32.xlu1 %v5106_v53, %s6101_s5  ;;  %5108 = vst.msk [vmem:[#allocation19] sm:$0x3] %vm5107_vm3, %v5106_v53 }
0x282a   :  { %v5116_v42 = vpop.permute.xlu2 %5115 }
0x282b   :  { %5119 = vst.msk [vmem:[#allocation19 + $0x4] sm:$0x3] %vm5107_vm3, %v5116_v42 }
0x2842   :  { %v5111_v25 = vpop.permute.xlu1 %5110 }
0x2843   :  { %5114 = vst.msk [vmem:[#allocation19 + $0x2] sm:$0x3] %vm5107_vm3, %v5111_v25 }
0x2844   :  { %5132 = dma.vmem_to_hbm [thread:$0]  %s5125_s28, 96, %s5127_s11, [#allocation4], %s6098_s0, %s6098_s0, %s6103_s22  }
0x2845   :  { %6081 = dma.done.wait [#allocation4], 96  }
0x2846   :  { %6082 = vsyncadd [#allocation4], 4294967200 }
0x2847   :  { %5137 = vsyncpa [#allocation3], 1 }
0x2848   :  { %5138 = vsyncpa [#allocation6], 1 }
0x2849   :  { %5139 = vsyncpa [#allocation9], 1 }
0x284a   :  { %5140 = vsyncpa [#allocation12], 1 }
0x284b   :  { %5141 = vsyncpa [#allocation15], 1 }
0x284c   :  { %5142 = vsyncpa [#allocation18], 1 }
0x284d   :  { %5143 = vsyncpa [#allocation4], 1 }

</bundles_post_ra>
